<compile_context>
chip_gen: v7x
topology: tpu7x:2x2x1
jax: 0.10.0
libtpu: 0.0.40
codegen_flags: <defaults>
</compile_context>

<pallas_src>
import functools

import jax
import jax.numpy as jnp
from jax.experimental import pallas as pl
from jax.experimental.pallas import tpu as pltpu


# ----------------------------------------------------------------------------
# Pallas kernel: single-pass matmul with fused bias + optional ReLU.
# A/B blocks carry the FULL K dimension -> one MXU pass per output tile,
# no reduction grid axis, no scratch accumulator.
# ----------------------------------------------------------------------------
def _matmul_bias_act_kernel(a_ref, b_ref, bias_ref, o_ref, *, relu):
    acc = jnp.dot(a_ref[...], b_ref[...], preferred_element_type=jnp.float32)
    acc = acc + bias_ref[...]          # f32 epilogue (bias is f32)
    if relu:
        acc = jnp.maximum(acc, 0.0)
    o_ref[...] = acc.astype(o_ref.dtype)


def _pick_tm(m):
    # Prefer >=2 M-blocks (feeds both v7x TensorCores) when cheaply possible;
    # block sublane dim must be a multiple of 8 or equal the full dim.
    if m % 512 == 0:
        return 256
    if m % 16 == 0 and m > 16:
        return m // 2
    return m


def _pick_tn(n):
    # Lane-dense output tiles; split only very wide N so both TensorCores get
    # a block without adding many grid steps.
    if n > 2048 and n % 2048 == 0:
        return 2048
    return n


def pallas_matmul_bias(a, b, bias, *, relu=False, out_dtype=jnp.float32):
    """act(a @ b + bias). a:(M,K) bf16, b:(K,N) bf16 (pre-packed), bias:(N,) f32."""
    m, k = a.shape
    k2, n = b.shape
    assert k == k2
    tm, tn = _pick_tm(m), _pick_tn(n)
    assert m % tm == 0 and n % tn == 0
    bias2 = bias.reshape(1, n).astype(jnp.float32)

    # TODO(synk): for the original 416x416 input (FC K = 256*52*52) a full-K
    # block no longer fits in VMEM; reintroduce a K grid axis (tk~2048-4096)
    # with an f32 accumulator and vmem_limit_bytes budgeted for v7x's 64 MiB.
    return pl.pallas_call(
        functools.partial(_matmul_bias_act_kernel, relu=relu),
        out_shape=jax.ShapeDtypeStruct((m, n), out_dtype),
        grid_spec=pltpu.PrefetchScalarGridSpec(
            num_scalar_prefetch=0,
            grid=(m // tm, n // tn),
            in_specs=[
                pl.BlockSpec((tm, k), lambda i, j: (i, 0)),
                pl.BlockSpec((k, tn), lambda i, j: (0, j)),
                pl.BlockSpec((1, tn), lambda i, j: (0, j)),
            ],
            out_specs=pl.BlockSpec((tm, tn), lambda i, j: (i, j)),
        ),
        compiler_params=pltpu.CompilerParams(
            dimension_semantics=("parallel", "parallel")),
    )(a, b, bias2)


# ----------------------------------------------------------------------------
# Fused bottleneck kernel: latent = feat @ W1 + b1 ;  dec = relu(latent @ W2 + b2)
# Both FC layers in one pallas_call (weights resident in VMEM, latent never
# round-trips through HBM between them).
# ----------------------------------------------------------------------------
def _bottleneck_kernel(feat_ref, w1_ref, b1_ref, w2_ref, b2_ref,
                       lat_ref, dec_ref):
    lat = jnp.dot(feat_ref[...], w1_ref[...], preferred_element_type=jnp.float32)
    lat = lat + b1_ref[...]
    lat_ref[...] = lat.astype(lat_ref.dtype)
    dec = jnp.dot(lat.astype(w2_ref.dtype), w2_ref[...],
                  preferred_element_type=jnp.float32)
    dec = jnp.maximum(dec + b2_ref[...], 0.0)
    dec_ref[...] = dec.astype(dec_ref.dtype)


def pallas_bottleneck(feat, w1, b1, w2, b2):
    """feat:(M,K1) bf16, w1:(K1,L) bf16, w2:(L,K1) bf16 -> (latent f32, dec bf16)."""
    m, k1 = feat.shape
    _, ld = w1.shape
    _, n2 = w2.shape
    b1r = b1.reshape(1, ld).astype(jnp.float32)
    b2r = b2.reshape(1, n2).astype(jnp.float32)
    return pl.pallas_call(
        _bottleneck_kernel,
        out_shape=(jax.ShapeDtypeStruct((m, ld), jnp.float32),
                   jax.ShapeDtypeStruct((m, n2), jnp.bfloat16)),
        grid_spec=pltpu.PrefetchScalarGridSpec(
            num_scalar_prefetch=0,
            grid=(1,),
            in_specs=[
                pl.BlockSpec((m, k1), lambda i: (0, 0)),
                pl.BlockSpec((k1, ld), lambda i: (0, 0)),
                pl.BlockSpec((1, ld), lambda i: (0, 0)),
                pl.BlockSpec((ld, n2), lambda i: (0, 0)),
                pl.BlockSpec((1, n2), lambda i: (0, 0)),
            ],
            out_specs=(pl.BlockSpec((m, ld), lambda i: (0, 0)),
                       pl.BlockSpec((m, n2), lambda i: (0, 0))),
        ),
        compiler_params=pltpu.CompilerParams(
            dimension_semantics=("arbitrary",)),
    )(feat, w1, b1r, w2, b2r)


# ----------------------------------------------------------------------------
# Patch-extraction glue (XLA ops between Pallas calls), bf16 activations.
# ----------------------------------------------------------------------------
def _encoder_patches(x):
    """im2col for Conv2d(k=4, s=2, p=1) via pad + space-to-depth + 2x2 window.
    x:(n,h,w,c) -> (n*oh*ow, 16*c); K ordered (a,b,r,s,c) with ky=2a+r, kx=2b+s."""
    n, h, w, c = x.shape
    oh, ow = h // 2, w // 2
    xp = jnp.pad(x, ((0, 0), (1, 1), (1, 1), (0, 0)))
    xs = xp.reshape(n, oh + 1, 2, ow + 1, 2, c).transpose(0, 1, 3, 2, 4, 5)
    blocks = [xs[:, a:a + oh, b:b + ow] for a in range(2) for b in range(2)]
    col = jnp.stack(blocks, axis=3)            # (n, oh, ow, 4[a,b], 2[r], 2[s], c)
    return col.reshape(n * oh * ow, 16 * c), oh, ow


def _decoder_patches(x):
    """3x3 / stride-1 / pad-1 patches for the sub-pixel ConvTranspose.
    x:(n,h,w,c) -> (n*h*w, 9*c); K ordered (a, b, c)."""
    n, h, w, c = x.shape
    xp = jnp.pad(x, ((0, 0), (1, 1), (1, 1), (0, 0)))
    blocks = [xp[:, a:a + h, b:b + w] for a in range(3) for b in range(3)]
    col = jnp.stack(blocks, axis=3)            # (n, h, w, 9, c)
    return col.reshape(n * h * w, 9 * c)


def conv2d(x, w_mat, bias, *, relu, out_dtype=jnp.bfloat16):
    """PyTorch Conv2d(k=4, s=2, p=1) with pre-packed (16*Cin, Cout) weight."""
    n = x.shape[0]
    cols, oh, ow = _encoder_patches(x)
    y = pallas_matmul_bias(cols, w_mat, bias, relu=relu, out_dtype=out_dtype)
    return y.reshape(n, oh, ow, w_mat.shape[1])


def conv_transpose2d(x, w_mat, bias4, *, relu, out_dtype=jnp.bfloat16):
    """PyTorch ConvTranspose2d(k=4, s=2, p=1) via sub-pixel decomposition:
    one matmul against a pre-packed (9*Cin, 4*Cout) kernel, then interleave
    the 4 output phases (no zero-insertion / upsampled im2col)."""
    n, h, w, _ = x.shape
    o = w_mat.shape[1] // 4
    cols = _decoder_patches(x)
    y = pallas_matmul_bias(cols, w_mat, bias4, relu=relu, out_dtype=out_dtype)
    y = y.reshape(n, h, w, 2, 2, o).transpose(0, 1, 3, 2, 4, 5)
    return y.reshape(n, 2 * h, 2 * w, o)


# ----------------------------------------------------------------------------
# One-time weight pre-packing (outside jit): matmul-ready (K, N) bf16 weights.
# ----------------------------------------------------------------------------
def _pack_conv_weight(w_oikk):
    """Conv2d weight (O, I, 4, 4) -> (16*I, O), K order (a, b, r, s, i)."""
    o, i, kh, kw = w_oikk.shape
    assert (kh, kw) == (4, 4)
    w = w_oikk.reshape(o, i, 2, 2, 2, 2)       # (o, i, a, r, b, s); ky=2a+r, kx=2b+s
    w = w.transpose(2, 4, 3, 5, 1, 0)          # (a, b, r, s, i, o)
    return w.reshape(16 * i, o)


def _pack_convt_weight(w_iokk):
    """ConvTranspose2d weight (I, O, 4, 4) -> (9*I, 4*O) sub-pixel kernel.
    Output columns ordered (ry, rx, oc); taps outside a phase's 2x2 support
    are zero."""
    i, o, kh, kw = w_iokk.shape
    assert (kh, kw) == (4, 4)
    zeros = jnp.zeros((i, o), w_iokk.dtype)
    rows = []
    for a in range(3):
        for b in range(3):
            taps = []
            for ry in range(2):
                ky = ry + 3 - 2 * a
                for rx in range(2):
                    kx = rx + 3 - 2 * b
                    if 0 <= ky <= 3 and 0 <= kx <= 3:
                        taps.append(w_iokk[:, :, ky, kx])
                    else:
                        taps.append(zeros)
            rows.append(jnp.stack(taps, axis=1))   # (i, 4[ry,rx], o)
    mat = jnp.stack(rows, axis=0)                  # (9[a,b], i, 4, o)
    return mat.reshape(9 * i, 4 * o)


def pack_params(p):
    """Run once outside the jitted forward."""
    bf = jnp.bfloat16
    return {
        "enc1_w": _pack_conv_weight(p["enc1_w"]).astype(bf), "enc1_b": p["enc1_b"],
        "enc2_w": _pack_conv_weight(p["enc2_w"]).astype(bf), "enc2_b": p["enc2_b"],
        "enc3_w": _pack_conv_weight(p["enc3_w"]).astype(bf), "enc3_b": p["enc3_b"],
        "enc_fc_w": p["enc_fc_w"].T.astype(bf), "enc_fc_b": p["enc_fc_b"],
        "dec_fc_w": p["dec_fc_w"].T.astype(bf), "dec_fc_b": p["dec_fc_b"],
        "dec1_w": _pack_convt_weight(p["dec1_w"]).astype(bf),
        "dec1_b": jnp.tile(p["dec1_b"], 4),
        "dec2_w": _pack_convt_weight(p["dec2_w"]).astype(bf),
        "dec2_b": jnp.tile(p["dec2_b"], 4),
        "dec3_w": _pack_convt_weight(p["dec3_w"]).astype(bf),
        "dec3_b": jnp.tile(p["dec3_b"], 4),
    }


# ----------------------------------------------------------------------------
# Autoencoder parameters + forward pass.
# ----------------------------------------------------------------------------
LATENT_DIM = 128


def init_params(key, latent_dim=LATENT_DIM, feat_hw=4):
    flat = 256 * feat_hw * feat_hw
    ks = jax.random.split(key, 16)
    s = 0.02
    return {
        "enc1_w": jax.random.normal(ks[0], (64, 3, 4, 4), jnp.float32) * s,
        "enc1_b": jax.random.normal(ks[1], (64,), jnp.float32) * s,
        "enc2_w": jax.random.normal(ks[2], (128, 64, 4, 4), jnp.float32) * s,
        "enc2_b": jax.random.normal(ks[3], (128,), jnp.float32) * s,
        "enc3_w": jax.random.normal(ks[4], (256, 128, 4, 4), jnp.float32) * s,
        "enc3_b": jax.random.normal(ks[5], (256,), jnp.float32) * s,
        "enc_fc_w": jax.random.normal(ks[6], (latent_dim, flat), jnp.float32) * s,
        "enc_fc_b": jax.random.normal(ks[7], (latent_dim,), jnp.float32) * s,
        "dec_fc_w": jax.random.normal(ks[8], (flat, latent_dim), jnp.float32) * s,
        "dec_fc_b": jax.random.normal(ks[9], (flat,), jnp.float32) * s,
        "dec1_w": jax.random.normal(ks[10], (256, 128, 4, 4), jnp.float32) * s,
        "dec1_b": jax.random.normal(ks[11], (128,), jnp.float32) * s,
        "dec2_w": jax.random.normal(ks[12], (128, 64, 4, 4), jnp.float32) * s,
        "dec2_b": jax.random.normal(ks[13], (64,), jnp.float32) * s,
        "dec3_w": jax.random.normal(ks[14], (64, 3, 4, 4), jnp.float32) * s,
        "dec3_b": jax.random.normal(ks[15], (3,), jnp.float32) * s,
    }


def autoencoder_forward(x_nchw, w):
    n = x_nchw.shape[0]
    # ----- encoder CNN (NHWC, bf16 activations, f32 accumulation) -----
    h = jnp.transpose(x_nchw, (0, 2, 3, 1)).astype(jnp.bfloat16)
    h = conv2d(h, w["enc1_w"], w["enc1_b"], relu=True)
    h = conv2d(h, w["enc2_w"], w["enc2_b"], relu=True)
    h = conv2d(h, w["enc3_w"], w["enc3_b"], relu=True)
    _, fh, fw, fc = h.shape
    # nn.Flatten over NCHW (channel-major), like PyTorch
    feat = jnp.transpose(h, (0, 3, 1, 2)).reshape(n, fc * fh * fw)
    # ----- fused encoder_fc -> latent -> decoder_fc (+ReLU) -----
    latent, dec = pallas_bottleneck(feat, w["enc_fc_w"], w["enc_fc_b"],
                                    w["dec_fc_w"], w["dec_fc_b"])
    # nn.Unflatten(1, (256, fh, fw)), then NCHW -> NHWC
    h = jnp.transpose(dec.reshape(n, fc, fh, fw), (0, 2, 3, 1))
    # ----- decoder CNN -----
    h = conv_transpose2d(h, w["dec1_w"], w["dec1_b"], relu=True)
    h = conv_transpose2d(h, w["dec2_w"], w["dec2_b"], relu=True)
    h = conv_transpose2d(h, w["dec3_w"], w["dec3_b"], relu=False,
                         out_dtype=jnp.float32)
    reconstructed = jnp.transpose(h, (0, 3, 1, 2))      # NHWC -> NCHW
    return reconstructed, latent


if __name__ == "__main__":
    key = jax.random.PRNGKey(0)
    k_x, k_p = jax.random.split(key)
    # Small shapes: batch=2, 3x32x32 image -> 256x4x4 features.
    x = jax.random.normal(k_x, (2, 3, 32, 32), jnp.float32)
    raw_params = init_params(k_p, latent_dim=LATENT_DIM, feat_hw=4)
    packed = pack_params(raw_params)          # one-time pre-pack, outside jit

    fwd = jax.jit(autoencoder_forward)
    recon, latent = fwd(x, packed)
    jax.block_until_ready((recon, latent))

    assert recon.shape == (2, 3, 32, 32), recon.shape
    assert latent.shape == (2, LATENT_DIM), latent.shape
    print("KERNEL_OK")
</pallas_src>

<mosaic_0001>
module attributes {stable_mosaic.version = 11 : i64} {
  func.func @_matmul_bias_act_kernel(%arg0: i32, %arg1: i32, %arg2: memref<256x48xbf16, #tpu.memory_space<vmem>>, %arg3: memref<48x64xbf16, #tpu.memory_space<vmem>>, %arg4: memref<1x64xf32, #tpu.memory_space<vmem>>, %arg5: memref<256x64xbf16, #tpu.memory_space<vmem>>) attributes {dimension_semantics = [#tpu.dimension_semantics<parallel>, #tpu.dimension_semantics<parallel>], iteration_bounds = array<i64: 2, 1>, scalar_prefetch = 0 : i64, scratch_operands = 0 : i64, tpu.core_type = #tpu.core_type<tc>, window_params = [{transform_indices = @transform_0, window_bounds = array<i64: 256, 48>}, {transform_indices = @transform_1, window_bounds = array<i64: 48, 64>}, {transform_indices = @transform_2, window_bounds = array<i64: 1, 64>}, {transform_indices = @transform_3, window_bounds = array<i64: 256, 64>}]} {
    %c0 = arith.constant 0 : index
    %c0_0 = arith.constant 0 : index
    %0 = vector.load %arg2[%c0, %c0_0] : memref<256x48xbf16, #tpu.memory_space<vmem>>, vector<256x48xbf16>
    %c0_1 = arith.constant 0 : index
    %c0_2 = arith.constant 0 : index
    %1 = vector.load %arg3[%c0_1, %c0_2] : memref<48x64xbf16, #tpu.memory_space<vmem>>, vector<48x64xbf16>
    %cst = arith.constant dense<0.000000e+00> : vector<256x64xf32>
    %2 = tpu.matmul %0, %1, %cst {dimension_numbers = #tpu.dot_dimension_numbers<[1], [0], [0], [1], [0, 0, 1, 1], [], []>} : vector<256x48xbf16>, vector<48x64xbf16>, vector<256x64xf32> -> vector<256x64xf32>
    %c0_3 = arith.constant 0 : index
    %c0_4 = arith.constant 0 : index
    %3 = vector.load %arg4[%c0_3, %c0_4] : memref<1x64xf32, #tpu.memory_space<vmem>>, vector<1x64xf32>
    %4 = vector.broadcast %3 : vector<1x64xf32> to vector<256x64xf32>
    %5 = arith.addf %2, %4 : vector<256x64xf32>
    %cst_5 = arith.constant 0.000000e+00 : f32
    %6 = vector.broadcast %cst_5 : f32 to vector<256x64xf32>
    %7 = arith.maximumf %5, %6 : vector<256x64xf32>
    %8 = arith.truncf %7 : vector<256x64xf32> to vector<256x64xbf16>
    %c0_6 = arith.constant 0 : index
    %c0_7 = arith.constant 0 : index
    %9 = vector.load %arg5[%c0_6, %c0_7] : memref<256x64xbf16, #tpu.memory_space<vmem>>, vector<256x64xbf16>
    tpu.vector_store %arg5[%c0_6, %c0_7], %8 {strides = array<i32>} : memref<256x64xbf16, #tpu.memory_space<vmem>>, vector<256x64xbf16>,
    return
  }
  func.func @transform_0(%arg0: i32, %arg1: i32) -> (i32, i32) {
    %c0_i32 = arith.constant 0 : i32
    %c0_i32_0 = arith.constant 0 : i32
    return %arg0, %c0_i32 : i32, i32
  }
  func.func @transform_1(%arg0: i32, %arg1: i32) -> (i32, i32) {
    %c0_i32 = arith.constant 0 : i32
    %c0_i32_0 = arith.constant 0 : i32
    return %c0_i32, %arg1 : i32, i32
  }
  func.func @transform_2(%arg0: i32, %arg1: i32) -> (i32, i32) {
    %c0_i32 = arith.constant 0 : i32
    %c0_i32_0 = arith.constant 0 : i32
    return %c0_i32, %arg1 : i32, i32
  }
  func.func @transform_3(%arg0: i32, %arg1: i32) -> (i32, i32) {
    %c0_i32 = arith.constant 0 : i32
    return %arg0, %arg1 : i32, i32
  }
}

module attributes {stable_mosaic.version = 11 : i64} {
  func.func @_matmul_bias_act_kernel(%arg0: i32, %arg1: i32, %arg2: memref<64x1024xbf16, #tpu.memory_space<vmem>>, %arg3: memref<1024x128xbf16, #tpu.memory_space<vmem>>, %arg4: memref<1x128xf32, #tpu.memory_space<vmem>>, %arg5: memref<64x128xbf16, #tpu.memory_space<vmem>>) attributes {dimension_semantics = [#tpu.dimension_semantics<parallel>, #tpu.dimension_semantics<parallel>], iteration_bounds = array<i64: 2, 1>, scalar_prefetch = 0 : i64, scratch_operands = 0 : i64, tpu.core_type = #tpu.core_type<tc>, window_params = [{transform_indices = @transform_0, window_bounds = array<i64: 64, 1024>}, {transform_indices = @transform_1, window_bounds = array<i64: 1024, 128>}, {transform_indices = @transform_2, window_bounds = array<i64: 1, 128>}, {transform_indices = @transform_3, window_bounds = array<i64: 64, 128>}]} {
    %c0 = arith.constant 0 : index
    %c0_0 = arith.constant 0 : index
    %0 = vector.load %arg2[%c0, %c0_0] : memref<64x1024xbf16, #tpu.memory_space<vmem>>, vector<64x1024xbf16>
    %c0_1 = arith.constant 0 : index
    %c0_2 = arith.constant 0 : index
    %1 = vector.load %arg3[%c0_1, %c0_2] : memref<1024x128xbf16, #tpu.memory_space<vmem>>, vector<1024x128xbf16>
    %cst = arith.constant dense<0.000000e+00> : vector<64x128xf32>
    %2 = tpu.matmul %0, %1, %cst {dimension_numbers = #tpu.dot_dimension_numbers<[1], [0], [0], [1], [0, 0, 1, 1], [], []>} : vector<64x1024xbf16>, vector<1024x128xbf16>, vector<64x128xf32> -> vector<64x128xf32>
    %c0_3 = arith.constant 0 : index
    %c0_4 = arith.constant 0 : index
    %3 = vector.load %arg4[%c0_3, %c0_4] : memref<1x128xf32, #tpu.memory_space<vmem>>, vector<1x128xf32>
    %4 = vector.broadcast %3 : vector<1x128xf32> to vector<64x128xf32>
    %5 = arith.addf %2, %4 : vector<64x128xf32>
    %cst_5 = arith.constant 0.000000e+00 : f32
    %6 = vector.broadcast %cst_5 : f32 to vector<64x128xf32>
    %7 = arith.maximumf %5, %6 : vector<64x128xf32>
    %8 = arith.truncf %7 : vector<64x128xf32> to vector<64x128xbf16>
    %c0_6 = arith.constant 0 : index
    %c0_7 = arith.constant 0 : index
    %9 = vector.load %arg5[%c0_6, %c0_7] : memref<64x128xbf16, #tpu.memory_space<vmem>>, vector<64x128xbf16>
    tpu.vector_store %arg5[%c0_6, %c0_7], %8 {strides = array<i32>} : memref<64x128xbf16, #tpu.memory_space<vmem>>, vector<64x128xbf16>,
    return
  }
  func.func @transform_0(%arg0: i32, %arg1: i32) -> (i32, i32) {
    %c0_i32 = arith.constant 0 : i32
    %c0_i32_0 = arith.constant 0 : i32
    return %arg0, %c0_i32 : i32, i32
  }
  func.func @transform_1(%arg0: i32, %arg1: i32) -> (i32, i32) {
    %c0_i32 = arith.constant 0 : i32
    %c0_i32_0 = arith.constant 0 : i32
    return %c0_i32, %arg1 : i32, i32
  }
  func.func @transform_2(%arg0: i32, %arg1: i32) -> (i32, i32) {
    %c0_i32 = arith.constant 0 : i32
    %c0_i32_0 = arith.constant 0 : i32
    return %c0_i32, %arg1 : i32, i32
  }
  func.func @transform_3(%arg0: i32, %arg1: i32) -> (i32, i32) {
    %c0_i32 = arith.constant 0 : i32
    return %arg0, %arg1 : i32, i32
  }
}

module attributes {stable_mosaic.version = 11 : i64} {
  func.func @_matmul_bias_act_kernel(%arg0: i32, %arg1: i32, %arg2: memref<16x2048xbf16, #tpu.memory_space<vmem>>, %arg3: memref<2048x256xbf16, #tpu.memory_space<vmem>>, %arg4: memref<1x256xf32, #tpu.memory_space<vmem>>, %arg5: memref<16x256xbf16, #tpu.memory_space<vmem>>) attributes {dimension_semantics = [#tpu.dimension_semantics<parallel>, #tpu.dimension_semantics<parallel>], iteration_bounds = array<i64: 2, 1>, scalar_prefetch = 0 : i64, scratch_operands = 0 : i64, tpu.core_type = #tpu.core_type<tc>, window_params = [{transform_indices = @transform_0, window_bounds = array<i64: 16, 2048>}, {transform_indices = @transform_1, window_bounds = array<i64: 2048, 256>}, {transform_indices = @transform_2, window_bounds = array<i64: 1, 256>}, {transform_indices = @transform_3, window_bounds = array<i64: 16, 256>}]} {
    %c0 = arith.constant 0 : index
    %c0_0 = arith.constant 0 : index
    %0 = vector.load %arg2[%c0, %c0_0] : memref<16x2048xbf16, #tpu.memory_space<vmem>>, vector<16x2048xbf16>
    %c0_1 = arith.constant 0 : index
    %c0_2 = arith.constant 0 : index
    %1 = vector.load %arg3[%c0_1, %c0_2] : memref<2048x256xbf16, #tpu.memory_space<vmem>>, vector<2048x256xbf16>
    %cst = arith.constant dense<0.000000e+00> : vector<16x256xf32>
    %2 = tpu.matmul %0, %1, %cst {dimension_numbers = #tpu.dot_dimension_numbers<[1], [0], [0], [1], [0, 0, 1, 1], [], []>} : vector<16x2048xbf16>, vector<2048x256xbf16>, vector<16x256xf32> -> vector<16x256xf32>
    %c0_3 = arith.constant 0 : index
    %c0_4 = arith.constant 0 : index
    %3 = vector.load %arg4[%c0_3, %c0_4] : memref<1x256xf32, #tpu.memory_space<vmem>>, vector<1x256xf32>
    %4 = vector.broadcast %3 : vector<1x256xf32> to vector<16x256xf32>
    %5 = arith.addf %2, %4 : vector<16x256xf32>
    %cst_5 = arith.constant 0.000000e+00 : f32
    %6 = vector.broadcast %cst_5 : f32 to vector<16x256xf32>
    %7 = arith.maximumf %5, %6 : vector<16x256xf32>
    %8 = arith.truncf %7 : vector<16x256xf32> to vector<16x256xbf16>
    %c0_6 = arith.constant 0 : index
    %c0_7 = arith.constant 0 : index
    %9 = vector.load %arg5[%c0_6, %c0_7] : memref<16x256xbf16, #tpu.memory_space<vmem>>, vector<16x256xbf16>
    tpu.vector_store %arg5[%c0_6, %c0_7], %8 {strides = array<i32>} : memref<16x256xbf16, #tpu.memory_space<vmem>>, vector<16x256xbf16>,
    return
  }
  func.func @transform_0(%arg0: i32, %arg1: i32) -> (i32, i32) {
    %c0_i32 = arith.constant 0 : i32
    %c0_i32_0 = arith.constant 0 : i32
    return %arg0, %c0_i32 : i32, i32
  }
  func.func @transform_1(%arg0: i32, %arg1: i32) -> (i32, i32) {
    %c0_i32 = arith.constant 0 : i32
    %c0_i32_0 = arith.constant 0 : i32
    return %c0_i32, %arg1 : i32, i32
  }
  func.func @transform_2(%arg0: i32, %arg1: i32) -> (i32, i32) {
    %c0_i32 = arith.constant 0 : i32
    %c0_i32_0 = arith.constant 0 : i32
    return %c0_i32, %arg1 : i32, i32
  }
  func.func @transform_3(%arg0: i32, %arg1: i32) -> (i32, i32) {
    %c0_i32 = arith.constant 0 : i32
    return %arg0, %arg1 : i32, i32
  }
}

module attributes {stable_mosaic.version = 11 : i64} {
  func.func @_bottleneck_kernel(%arg0: i32, %arg1: memref<2x4096xbf16, #tpu.memory_space<vmem>>, %arg2: memref<4096x128xbf16, #tpu.memory_space<vmem>>, %arg3: memref<1x128xf32, #tpu.memory_space<vmem>>, %arg4: memref<128x4096xbf16, #tpu.memory_space<vmem>>, %arg5: memref<1x4096xf32, #tpu.memory_space<vmem>>, %arg6: memref<2x128xf32, #tpu.memory_space<vmem>>, %arg7: memref<2x4096xbf16, #tpu.memory_space<vmem>>) attributes {dimension_semantics = [#tpu.dimension_semantics<arbitrary>], iteration_bounds = array<i64: 1>, scalar_prefetch = 0 : i64, scratch_operands = 0 : i64, tpu.core_type = #tpu.core_type<tc>, window_params = [{pipeline_mode = #tpu.pipeline_mode<synchronous>, transform_indices = @transform_0, window_bounds = array<i64: 2, 4096>}, {pipeline_mode = #tpu.pipeline_mode<synchronous>, transform_indices = @transform_1, window_bounds = array<i64: 4096, 128>}, {pipeline_mode = #tpu.pipeline_mode<synchronous>, transform_indices = @transform_2, window_bounds = array<i64: 1, 128>}, {pipeline_mode = #tpu.pipeline_mode<synchronous>, transform_indices = @transform_3, window_bounds = array<i64: 128, 4096>}, {pipeline_mode = #tpu.pipeline_mode<synchronous>, transform_indices = @transform_4, window_bounds = array<i64: 1, 4096>}, {pipeline_mode = #tpu.pipeline_mode<synchronous>, transform_indices = @transform_5, window_bounds = array<i64: 2, 128>}, {pipeline_mode = #tpu.pipeline_mode<synchronous>, transform_indices = @transform_6, window_bounds = array<i64: 2, 4096>}]} {
    %c0 = arith.constant 0 : index
    %c0_0 = arith.constant 0 : index
    %0 = vector.load %arg1[%c0, %c0_0] : memref<2x4096xbf16, #tpu.memory_space<vmem>>, vector<2x4096xbf16>
    %c0_1 = arith.constant 0 : index
    %c0_2 = arith.constant 0 : index
    %1 = vector.load %arg2[%c0_1, %c0_2] : memref<4096x128xbf16, #tpu.memory_space<vmem>>, vector<4096x128xbf16>
    %cst = arith.constant dense<0.000000e+00> : vector<2x128xf32>
    %2 = tpu.matmul %0, %1, %cst {dimension_numbers = #tpu.dot_dimension_numbers<[1], [0], [0], [1], [0, 0, 1, 1], [], []>} : vector<2x4096xbf16>, vector<4096x128xbf16>, vector<2x128xf32> -> vector<2x128xf32>
    %c0_3 = arith.constant 0 : index
    %c0_4 = arith.constant 0 : index
    %3 = vector.load %arg3[%c0_3, %c0_4] : memref<1x128xf32, #tpu.memory_space<vmem>>, vector<1x128xf32>
    %4 = vector.broadcast %3 : vector<1x128xf32> to vector<2x128xf32>
    %5 = arith.addf %2, %4 : vector<2x128xf32>
    %c0_5 = arith.constant 0 : index
    %c0_6 = arith.constant 0 : index
    %6 = vector.load %arg6[%c0_5, %c0_6] : memref<2x128xf32, #tpu.memory_space<vmem>>, vector<2x128xf32>
    tpu.vector_store %arg6[%c0_5, %c0_6], %5 {strides = array<i32>} : memref<2x128xf32, #tpu.memory_space<vmem>>, vector<2x128xf32>,
    %7 = arith.truncf %5 : vector<2x128xf32> to vector<2x128xbf16>
    %c0_7 = arith.constant 0 : index
    %c0_8 = arith.constant 0 : index
    %8 = vector.load %arg4[%c0_7, %c0_8] : memref<128x4096xbf16, #tpu.memory_space<vmem>>, vector<128x4096xbf16>
    %cst_9 = arith.constant dense<0.000000e+00> : vector<2x4096xf32>
    %9 = tpu.matmul %7, %8, %cst_9 {dimension_numbers = #tpu.dot_dimension_numbers<[1], [0], [0], [1], [0, 0, 1, 1], [], []>} : vector<2x128xbf16>, vector<128x4096xbf16>, vector<2x4096xf32> -> vector<2x4096xf32>
    %c0_10 = arith.constant 0 : index
    %c0_11 = arith.constant 0 : index
    %10 = vector.load %arg5[%c0_10, %c0_11] : memref<1x4096xf32, #tpu.memory_space<vmem>>, vector<1x4096xf32>
    %11 = vector.broadcast %10 : vector<1x4096xf32> to vector<2x4096xf32>
    %12 = arith.addf %9, %11 : vector<2x4096xf32>
    %cst_12 = arith.constant 0.000000e+00 : f32
    %13 = vector.broadcast %cst_12 : f32 to vector<2x4096xf32>
    %14 = arith.maximumf %12, %13 : vector<2x4096xf32>
    %15 = arith.truncf %14 : vector<2x4096xf32> to vector<2x4096xbf16>
    %c0_13 = arith.constant 0 : index
    %c0_14 = arith.constant 0 : index
    %16 = vector.load %arg7[%c0_13, %c0_14] : memref<2x4096xbf16, #tpu.memory_space<vmem>>, vector<2x4096xbf16>
    tpu.vector_store %arg7[%c0_13, %c0_14], %15 {strides = array<i32>} : memref<2x4096xbf16, #tpu.memory_space<vmem>>, vector<2x4096xbf16>,
    return
  }
  func.func @transform_0(%arg0: i32) -> (i32, i32) {
    %c0_i32 = arith.constant 0 : i32
    %c0_i32_0 = arith.constant 0 : i32
    %c0_i32_1 = arith.constant 0 : i32
    return %c0_i32, %c0_i32_0 : i32, i32
  }
  func.func @transform_1(%arg0: i32) -> (i32, i32) {
    %c0_i32 = arith.constant 0 : i32
    %c0_i32_0 = arith.constant 0 : i32
    %c0_i32_1 = arith.constant 0 : i32
    return %c0_i32, %c0_i32_0 : i32, i32
  }
  func.func @transform_2(%arg0: i32) -> (i32, i32) {
    %c0_i32 = arith.constant 0 : i32
    %c0_i32_0 = arith.constant 0 : i32
    %c0_i32_1 = arith.constant 0 : i32
    return %c0_i32, %c0_i32_0 : i32, i32
  }
  func.func @transform_3(%arg0: i32) -> (i32, i32) {
    %c0_i32 = arith.constant 0 : i32
    %c0_i32_0 = arith.constant 0 : i32
    %c0_i32_1 = arith.constant 0 : i32
    return %c0_i32, %c0_i32_0 : i32, i32
  }
  func.func @transform_4(%arg0: i32) -> (i32, i32) {
    %c0_i32 = arith.constant 0 : i32
    %c0_i32_0 = arith.constant 0 : i32
    %c0_i32_1 = arith.constant 0 : i32
    return %c0_i32, %c0_i32_0 : i32, i32
  }
  func.func @transform_5(%arg0: i32) -> (i32, i32) {
    %c0_i32 = arith.constant 0 : i32
    %c0_i32_0 = arith.constant 0 : i32
    %c0_i32_1 = arith.constant 0 : i32
    return %c0_i32, %c0_i32_0 : i32, i32
  }
  func.func @transform_6(%arg0: i32) -> (i32, i32) {
    %c0_i32 = arith.constant 0 : i32
    %c0_i32_0 = arith.constant 0 : i32
    %c0_i32_1 = arith.constant 0 : i32
    return %c0_i32, %c0_i32_0 : i32, i32
  }
}

module attributes {stable_mosaic.version = 11 : i64} {
  func.func @_matmul_bias_act_kernel(%arg0: i32, %arg1: i32, %arg2: memref<16x2304xbf16, #tpu.memory_space<vmem>>, %arg3: memref<2304x512xbf16, #tpu.memory_space<vmem>>, %arg4: memref<1x512xf32, #tpu.memory_space<vmem>>, %arg5: memref<16x512xbf16, #tpu.memory_space<vmem>>) attributes {dimension_semantics = [#tpu.dimension_semantics<parallel>, #tpu.dimension_semantics<parallel>], iteration_bounds = array<i64: 2, 1>, scalar_prefetch = 0 : i64, scratch_operands = 0 : i64, tpu.core_type = #tpu.core_type<tc>, window_params = [{transform_indices = @transform_0, window_bounds = array<i64: 16, 2304>}, {transform_indices = @transform_1, window_bounds = array<i64: 2304, 512>}, {transform_indices = @transform_2, window_bounds = array<i64: 1, 512>}, {transform_indices = @transform_3, window_bounds = array<i64: 16, 512>}]} {
    %c0 = arith.constant 0 : index
    %c0_0 = arith.constant 0 : index
    %0 = vector.load %arg2[%c0, %c0_0] : memref<16x2304xbf16, #tpu.memory_space<vmem>>, vector<16x2304xbf16>
    %c0_1 = arith.constant 0 : index
    %c0_2 = arith.constant 0 : index
    %1 = vector.load %arg3[%c0_1, %c0_2] : memref<2304x512xbf16, #tpu.memory_space<vmem>>, vector<2304x512xbf16>
    %cst = arith.constant dense<0.000000e+00> : vector<16x512xf32>
    %2 = tpu.matmul %0, %1, %cst {dimension_numbers = #tpu.dot_dimension_numbers<[1], [0], [0], [1], [0, 0, 1, 1], [], []>} : vector<16x2304xbf16>, vector<2304x512xbf16>, vector<16x512xf32> -> vector<16x512xf32>
    %c0_3 = arith.constant 0 : index
    %c0_4 = arith.constant 0 : index
    %3 = vector.load %arg4[%c0_3, %c0_4] : memref<1x512xf32, #tpu.memory_space<vmem>>, vector<1x512xf32>
    %4 = vector.broadcast %3 : vector<1x512xf32> to vector<16x512xf32>
    %5 = arith.addf %2, %4 : vector<16x512xf32>
    %cst_5 = arith.constant 0.000000e+00 : f32
    %6 = vector.broadcast %cst_5 : f32 to vector<16x512xf32>
    %7 = arith.maximumf %5, %6 : vector<16x512xf32>
    %8 = arith.truncf %7 : vector<16x512xf32> to vector<16x512xbf16>
    %c0_6 = arith.constant 0 : index
    %c0_7 = arith.constant 0 : index
    %9 = vector.load %arg5[%c0_6, %c0_7] : memref<16x512xbf16, #tpu.memory_space<vmem>>, vector<16x512xbf16>
    tpu.vector_store %arg5[%c0_6, %c0_7], %8 {strides = array<i32>} : memref<16x512xbf16, #tpu.memory_space<vmem>>, vector<16x512xbf16>,
    return
  }
  func.func @transform_0(%arg0: i32, %arg1: i32) -> (i32, i32) {
    %c0_i32 = arith.constant 0 : i32
    %c0_i32_0 = arith.constant 0 : i32
    return %arg0, %c0_i32 : i32, i32
  }
  func.func @transform_1(%arg0: i32, %arg1: i32) -> (i32, i32) {
    %c0_i32 = arith.constant 0 : i32
    %c0_i32_0 = arith.constant 0 : i32
    return %c0_i32, %arg1 : i32, i32
  }
  func.func @transform_2(%arg0: i32, %arg1: i32) -> (i32, i32) {
    %c0_i32 = arith.constant 0 : i32
    %c0_i32_0 = arith.constant 0 : i32
    return %c0_i32, %arg1 : i32, i32
  }
  func.func @transform_3(%arg0: i32, %arg1: i32) -> (i32, i32) {
    %c0_i32 = arith.constant 0 : i32
    return %arg0, %arg1 : i32, i32
  }
}

module attributes {stable_mosaic.version = 11 : i64} {
  func.func @_matmul_bias_act_kernel(%arg0: i32, %arg1: i32, %arg2: memref<64x1152xbf16, #tpu.memory_space<vmem>>, %arg3: memref<1152x256xbf16, #tpu.memory_space<vmem>>, %arg4: memref<1x256xf32, #tpu.memory_space<vmem>>, %arg5: memref<64x256xbf16, #tpu.memory_space<vmem>>) attributes {dimension_semantics = [#tpu.dimension_semantics<parallel>, #tpu.dimension_semantics<parallel>], iteration_bounds = array<i64: 2, 1>, scalar_prefetch = 0 : i64, scratch_operands = 0 : i64, tpu.core_type = #tpu.core_type<tc>, window_params = [{transform_indices = @transform_0, window_bounds = array<i64: 64, 1152>}, {transform_indices = @transform_1, window_bounds = array<i64: 1152, 256>}, {transform_indices = @transform_2, window_bounds = array<i64: 1, 256>}, {transform_indices = @transform_3, window_bounds = array<i64: 64, 256>}]} {
    %c0 = arith.constant 0 : index
    %c0_0 = arith.constant 0 : index
    %0 = vector.load %arg2[%c0, %c0_0] : memref<64x1152xbf16, #tpu.memory_space<vmem>>, vector<64x1152xbf16>
    %c0_1 = arith.constant 0 : index
    %c0_2 = arith.constant 0 : index
    %1 = vector.load %arg3[%c0_1, %c0_2] : memref<1152x256xbf16, #tpu.memory_space<vmem>>, vector<1152x256xbf16>
    %cst = arith.constant dense<0.000000e+00> : vector<64x256xf32>
    %2 = tpu.matmul %0, %1, %cst {dimension_numbers = #tpu.dot_dimension_numbers<[1], [0], [0], [1], [0, 0, 1, 1], [], []>} : vector<64x1152xbf16>, vector<1152x256xbf16>, vector<64x256xf32> -> vector<64x256xf32>
    %c0_3 = arith.constant 0 : index
    %c0_4 = arith.constant 0 : index
    %3 = vector.load %arg4[%c0_3, %c0_4] : memref<1x256xf32, #tpu.memory_space<vmem>>, vector<1x256xf32>
    %4 = vector.broadcast %3 : vector<1x256xf32> to vector<64x256xf32>
    %5 = arith.addf %2, %4 : vector<64x256xf32>
    %cst_5 = arith.constant 0.000000e+00 : f32
    %6 = vector.broadcast %cst_5 : f32 to vector<64x256xf32>
    %7 = arith.maximumf %5, %6 : vector<64x256xf32>
    %8 = arith.truncf %7 : vector<64x256xf32> to vector<64x256xbf16>
    %c0_6 = arith.constant 0 : index
    %c0_7 = arith.constant 0 : index
    %9 = vector.load %arg5[%c0_6, %c0_7] : memref<64x256xbf16, #tpu.memory_space<vmem>>, vector<64x256xbf16>
    tpu.vector_store %arg5[%c0_6, %c0_7], %8 {strides = array<i32>} : memref<64x256xbf16, #tpu.memory_space<vmem>>, vector<64x256xbf16>,
    return
  }
  func.func @transform_0(%arg0: i32, %arg1: i32) -> (i32, i32) {
    %c0_i32 = arith.constant 0 : i32
    %c0_i32_0 = arith.constant 0 : i32
    return %arg0, %c0_i32 : i32, i32
  }
  func.func @transform_1(%arg0: i32, %arg1: i32) -> (i32, i32) {
    %c0_i32 = arith.constant 0 : i32
    %c0_i32_0 = arith.constant 0 : i32
    return %c0_i32, %arg1 : i32, i32
  }
  func.func @transform_2(%arg0: i32, %arg1: i32) -> (i32, i32) {
    %c0_i32 = arith.constant 0 : i32
    %c0_i32_0 = arith.constant 0 : i32
    return %c0_i32, %arg1 : i32, i32
  }
  func.func @transform_3(%arg0: i32, %arg1: i32) -> (i32, i32) {
    %c0_i32 = arith.constant 0 : i32
    return %arg0, %arg1 : i32, i32
  }
}

module attributes {stable_mosaic.version = 11 : i64} {
  func.func @_matmul_bias_act_kernel(%arg0: i32, %arg1: i32, %arg2: memref<256x576xbf16, #tpu.memory_space<vmem>>, %arg3: memref<576x12xbf16, #tpu.memory_space<vmem>>, %arg4: memref<1x12xf32, #tpu.memory_space<vmem>>, %arg5: memref<256x12xf32, #tpu.memory_space<vmem>>) attributes {dimension_semantics = [#tpu.dimension_semantics<parallel>, #tpu.dimension_semantics<parallel>], iteration_bounds = array<i64: 2, 1>, scalar_prefetch = 0 : i64, scratch_operands = 0 : i64, tpu.core_type = #tpu.core_type<tc>, window_params = [{transform_indices = @transform_0, window_bounds = array<i64: 256, 576>}, {transform_indices = @transform_1, window_bounds = array<i64: 576, 12>}, {transform_indices = @transform_2, window_bounds = array<i64: 1, 12>}, {transform_indices = @transform_3, window_bounds = array<i64: 256, 12>}]} {
    %c0 = arith.constant 0 : index
    %c0_0 = arith.constant 0 : index
    %0 = vector.load %arg2[%c0, %c0_0] : memref<256x576xbf16, #tpu.memory_space<vmem>>, vector<256x576xbf16>
    %c0_1 = arith.constant 0 : index
    %c0_2 = arith.constant 0 : index
    %1 = vector.load %arg3[%c0_1, %c0_2] : memref<576x12xbf16, #tpu.memory_space<vmem>>, vector<576x12xbf16>
    %cst = arith.constant dense<0.000000e+00> : vector<256x12xf32>
    %2 = tpu.matmul %0, %1, %cst {dimension_numbers = #tpu.dot_dimension_numbers<[1], [0], [0], [1], [0, 0, 1, 1], [], []>} : vector<256x576xbf16>, vector<576x12xbf16>, vector<256x12xf32> -> vector<256x12xf32>
    %c0_3 = arith.constant 0 : index
    %c0_4 = arith.constant 0 : index
    %3 = vector.load %arg4[%c0_3, %c0_4] : memref<1x12xf32, #tpu.memory_space<vmem>>, vector<1x12xf32>
    %4 = vector.broadcast %3 : vector<1x12xf32> to vector<256x12xf32>
    %5 = arith.addf %2, %4 : vector<256x12xf32>
    %c0_5 = arith.constant 0 : index
    %c0_6 = arith.constant 0 : index
    %6 = vector.load %arg5[%c0_5, %c0_6] : memref<256x12xf32, #tpu.memory_space<vmem>>, vector<256x12xf32>
    tpu.vector_store %arg5[%c0_5, %c0_6], %5 {strides = array<i32>} : memref<256x12xf32, #tpu.memory_space<vmem>>, vector<256x12xf32>,
    return
  }
  func.func @transform_0(%arg0: i32, %arg1: i32) -> (i32, i32) {
    %c0_i32 = arith.constant 0 : i32
    %c0_i32_0 = arith.constant 0 : i32
    return %arg0, %c0_i32 : i32, i32
  }
  func.func @transform_1(%arg0: i32, %arg1: i32) -> (i32, i32) {
    %c0_i32 = arith.constant 0 : i32
    %c0_i32_0 = arith.constant 0 : i32
    return %c0_i32, %arg1 : i32, i32
  }
  func.func @transform_2(%arg0: i32, %arg1: i32) -> (i32, i32) {
    %c0_i32 = arith.constant 0 : i32
    %c0_i32_0 = arith.constant 0 : i32
    return %c0_i32, %arg1 : i32, i32
  }
  func.func @transform_3(%arg0: i32, %arg1: i32) -> (i32, i32) {
    %c0_i32 = arith.constant 0 : i32
    return %arg0, %arg1 : i32, i32
  }
}

</mosaic_0001>

<bundles_post_ra>
// kernel: autoencoder_forward.7
= control target key start
LH: loop header
LB: loop body
LE: loop exit
PB: predicated region body
PF: predicated region fallthrough
CT: control target
= control target key end

     0   :  { %s1137_s12 = smov 0   ;;  %s1139_s13 = smov 0   ;;  %s1323_s0 = inlined_call_operand.vmem [shape: bf16[512,48], index: 0, kind: input, shape index: {}]   ;;  %s1324_s1 = inlined_call_operand.vmem [shape: bf16[48,64], index: 1, kind: input, shape index: {}]   ;;  %s1325_s2 = inlined_call_operand.vmem [shape: f32[1,64], index: 2, kind: input, shape index: {}]   ;;  %s1326_s3 = inlined_call_operand.vmem [shape: bf16[512,64], index: 3, kind: output, shape index: {}]  }
   0x1   :  { %s1141_s14 = smov 0  }
   0x2 LB: > { %s25_s15 = sadd.s32 1, %s1111_s13  ;;  %p880_p0 = scmp.ge.s32.totalorder %s1115_s14, 1  ;;  %s1115_s14 = sphi %s1141_s14, %s13_s14   ;;  %s1111_s13 = sphi %s1139_s13, %s1328_s13   ;;  %s1107_s12 = sphi %s1137_s12, %s1327_s12  }
   0x3   : > { %p27_p1 = scmp.ge.s32.totalorder %s25_s15, 2  ;;  %p169_p2 = scmp.lt.s32.totalorder %s1115_s14, 3 }
   0x5   : > { %s1330_s15 = smov (%p27_p1, %s25_s15), 0  ;;  %p170_p3 = pnand %p880_p0, %p169_p2 }
   0x6   : > { %v1074_v0 = vld [vmem:[%s1324_s1] sm:$0xff] (!%p170_p3)   ;;  %s881_s18 = sshll.u32 (!%p170_p3), %s1107_s12, 5  ;;  %v1075_v1 = vld [vmem:[%s1324_s1 + $0x8] sm:$0xff] (!%p170_p3)   ;;  %v1076_v2 = vld [vmem:[%s1324_s1 + $0x10] sm:$0xff] (!%p170_p3)   ;;  %vm369_vm0 = vcmask (!%p170_p3), 392192   ;;  %vm739_vm1 = vcmask (!%p170_p3), 519168  }
   0x7   : > { %173 = sbr.rel (%p170_p3) target bundleno = 266 (0x10a), region = 32  ;;  %p204_p4 = scmp.lt.s32.totalorder (!%p170_p3), %s881_s18, 63  ;;  %1006 = vmatprep.subr.bf16.mxu0 (!%p170_p3), %v1074_v0  ;;  %1044 = vmatprep.subr.bf16.mxu1 (!%p170_p3), %v1074_v0  ;;  %v1209_v19 = vld [vmem:[%s1325_s2] ss:$0 sm:$0xff] (!%p170_p3) }
   0x8   : > { %1007 = vmatpush3.bf16.msra.mxu0 (!%p170_p3), %v1074_v0  ;;  %1047 = vmatpush3.bf16.msra.mxu1 (!%p170_p3), %v1074_v0 }
   0x9   : > { %1008 = vmatprep.subr.bf16.mxu0 (!%p170_p3), %v1075_v1  ;;  %1045 = vmatprep.subr.bf16.mxu1 (!%p170_p3), %v1075_v1 }
   0xc   : > { %1009 = vmatpush3.bf16.msra.mxu0 (!%p170_p3), %v1075_v1  ;;  %1048 = vmatpush3.bf16.msra.mxu1 (!%p170_p3), %v1075_v1 }
   0xd   : > { %1010 = vmatprep.subr.bf16.mxu0 (!%p170_p3), %v1076_v2  ;;  %1046 = vmatprep.subr.bf16.mxu1 (!%p170_p3), %v1076_v2 }
   0xe   : > { %s1332_s18 = smov (!%p204_p4, %s881_s18), 63 }
   0xf   : > { %s882_s23 = sshll.u32 %s1332_s18, 2 }
  0x10   : > { %s1172_s26 = scalar_lea.vmem %s1323_s0, %s882_s23  ;;  %1011 = vmatpush3.bf16.msra.mxu0 %v1076_v2  ;;  %1049 = vmatpush3.bf16.msra.mxu1 %v1076_v2  ;;  %s1222_s4 = scalar_lea.vmem %s1326_s3, %s882_s23 }
  0x11   : > { %v1077_v3 = vld [vmem:[%s1172_s26] sm:$0xff]   ;;  %v1079_v5 = vld [vmem:[%s1172_s26 + $0x8] sm:$0xff]   ;;  %v1081_v7 = vld [vmem:[%s1172_s26 + $0x10] sm:$0xff]  }
  0x12   : > { %v1078_v4 = vld [vmem:[%s1172_s26 + $0x40] sm:$0xff]   ;;  %1012 = vmatprep.mubr.msk.bf16.mxu0 %vm369_vm0, %v1077_v3  ;;  %v1080_v6 = vld [vmem:[%s1172_s26 + $0x48] sm:$0xff]   ;;  %v1082_v8 = vld [vmem:[%s1172_s26 + $0x50] sm:$0xff]  }
  0x13   : > { %1028 = vmatprep.mubr.msk.bf16.mxu1 %vm369_vm0, %v1078_v4  ;;  %1013 = vmatmul.mubr.msk.bf16.vlgmr.msra.gmra.mrb[0].mxu0 %vm369_vm0, %v1079_v5  ;;  %v1083_v9 = vld [vmem:[%s1172_s26 + $0x18] sm:$0xff]   ;;  %v1085_v11 = vld [vmem:[%s1172_s26 + $0x20] sm:$0xff]   ;;  %v1087_v13 = vld [vmem:[%s1172_s26 + $0x28] sm:$0xff]  }
  0x14   : > { %1029 = vmatmul.mubr.msk.bf16.vlgmr.msra.gmra.mrb[0].mxu1 %vm369_vm0, %v1080_v6  ;;  %1016 = vmatprep.mubr.msk.bf16.mxu0 %vm369_vm0, %v1081_v7  ;;  %v1084_v10 = vld [vmem:[%s1172_s26 + $0x58] sm:$0xff]   ;;  %v1086_v12 = vld [vmem:[%s1172_s26 + $0x60] sm:$0xff]   ;;  %v1088_v14 = vld [vmem:[%s1172_s26 + $0x68] sm:$0xff]  }
  0x15   : > { %1032 = vmatprep.mubr.msk.bf16.mxu1 %vm369_vm0, %v1082_v8  ;;  %v1089_v15 = vld [vmem:[%s1172_s26 + $0x30] sm:$0xff]   ;;  %v1091_v17 = vld [vmem:[%s1172_s26 + $0x38] sm:$0xff]  }
  0x16   : > { %v1090_v16 = vld [vmem:[%s1172_s26 + $0x70] sm:$0xff]   ;;  %v1092_v18 = vld [vmem:[%s1172_s26 + $0x78] sm:$0xff]  }
  0x1b   : > { %1017 = vmatmul.mubr.msk.bf16.gmra.mrb[4].mxu0 %vm369_vm0, %v1083_v9 }
  0x1c   : > { %1033 = vmatmul.mubr.msk.bf16.gmra.mrb[4].mxu1 %vm369_vm0, %v1084_v10  ;;  %1020 = vmatprep.mubr.msk.bf16.mxu0 %vm369_vm0, %v1085_v11 }
  0x1d   : > { %1036 = vmatprep.mubr.msk.bf16.mxu1 %vm369_vm0, %v1086_v12 }
  0x23   : > { %1021 = vmatmul.mubr.msk.bf16.gmra.mrb[8].mxu0 %vm369_vm0, %v1087_v13 }
  0x24   : > { %1037 = vmatmul.mubr.msk.bf16.gmra.mrb[8].mxu1 %vm369_vm0, %v1088_v14  ;;  %1024 = vmatprep.mubr.msk.bf16.mxu0 %vm369_vm0, %v1089_v15 }
  0x25   : > { %1040 = vmatprep.mubr.msk.bf16.mxu1 %vm369_vm0, %v1090_v16 }
  0x2b   : > { %1025 = vmatmul.mubr.msk.bf16.gmra.mrb[12].mxu0 %vm369_vm0, %v1091_v17 }
  0x2c   : > { %1041 = vmatmul.mubr.msk.bf16.gmra.mrb[12].mxu1 %vm369_vm0, %v1092_v18 }
  0xe6   : > { %v1014_v20 = vpop.f32.mrb[0].mxu0 }
  0xe7   : > { %v1030_v21 = vpop.f32.mrb[0].mxu1  ;;  %v461_v22 = vadd.f32 %v1014_v20, %v1209_v19  ;;  %v452_v24 = vpop.f32.mrb[1].mxu0 }
  0xe8   : > { %v525_v23 = vadd.f32 %v1030_v21, %v1209_v19  ;;  %v516_v25 = vpop.f32.mrb[1].mxu1  ;;  %v453_v26 = vadd.f32 %v1209_v19, %v452_v24  ;;  %v1015_v28 = vpop.f32.mrb[2].mxu0 }
  0xe9   : > { %v517_v27 = vadd.f32 %v1209_v19, %v516_v25  ;;  %v1031_v29 = vpop.f32.mrb[2].mxu1  ;;  %v581_v30 = vmax.f32 %v461_v22, 0.0  ;;  %v464_v32 = vadd.f32 %v1015_v28, %v1209_v19  ;;  %v455_v34 = vpop.f32.mrb[3].mxu0 }
  0xea   : > { %v597_v31 = vmax.f32 %v525_v23, 0.0  ;;  %v528_v33 = vadd.f32 %v1031_v29, %v1209_v19  ;;  %v519_v35 = vpop.f32.mrb[3].mxu1  ;;  %v579_v36 = vmax.f32 %v453_v26, 0.0  ;;  %v456_v38 = vadd.f32 %v1209_v19, %v455_v34 }
  0xeb   : > { %v595_v37 = vmax.f32 %v517_v27, 0.0  ;;  %v520_v39 = vadd.f32 %v1209_v19, %v519_v35  ;;  %v957_v40 = vpack.c.bf16 %v581_v30, %v581_v30  ;;  %v582_v42 = vmax.f32 %v464_v32, 0.0 }
  0xec   : > { %v973_v41 = vpack.c.bf16 %v597_v31, %v597_v31  ;;  %v598_v43 = vmax.f32 %v528_v33, 0.0  ;;  %v955_v44 = vpack.c.bf16 %v579_v36, %v579_v36  ;;  %v580_v46 = vmax.f32 %v456_v38, 0.0 }
  0xed   : > { %v971_v45 = vpack.c.bf16 %v595_v37, %v595_v37  ;;  %v596_v47 = vmax.f32 %v520_v39, 0.0  ;;  %742 = vst.msk [vmem:[%s1222_s4 + $0x8] sm:$0xf] %vm739_vm1, %v957_v40  ;;  %v958_v48 = vpack.c.bf16 %v582_v42, %v582_v42 }
  0xee   : > { %758 = vst.msk [vmem:[%s1222_s4 + $0x48] sm:$0xf] %vm739_vm1, %v973_v41  ;;  %v974_v49 = vpack.c.bf16 %v598_v43, %v598_v43  ;;  %740 = vst.msk [vmem:[%s1222_s4] sm:$0xf] %vm739_vm1, %v955_v44  ;;  %v956_v50 = vpack.c.bf16 %v580_v46, %v580_v46  ;;  %v1018_v52 = vpop.f32.mrb[4].mxu0 }
  0xef   : > { %756 = vst.msk [vmem:[%s1222_s4 + $0x40] sm:$0xf] %vm739_vm1, %v971_v45  ;;  %v972_v51 = vpack.c.bf16 %v596_v47, %v596_v47  ;;  %v1034_v53 = vpop.f32.mrb[4].mxu1  ;;  %743 = vst.msk [vmem:[%s1222_s4 + $0xc] sm:$0xf] %vm739_vm1, %v958_v48  ;;  %v477_v54 = vadd.f32 %v1018_v52, %v1209_v19  ;;  %v468_v56 = vpop.f32.mrb[5].mxu0 }
  0xf0   : > { %759 = vst.msk [vmem:[%s1222_s4 + $0x4c] sm:$0xf] %vm739_vm1, %v974_v49  ;;  %v541_v55 = vadd.f32 %v1034_v53, %v1209_v19  ;;  %v532_v57 = vpop.f32.mrb[5].mxu1  ;;  %741 = vst.msk [vmem:[%s1222_s4 + $0x4] sm:$0xf] %vm739_vm1, %v956_v50  ;;  %v469_v58 = vadd.f32 %v1209_v19, %v468_v56  ;;  %v1019_v60 = vpop.f32.mrb[6].mxu0 }
  0xf1   : > { %757 = vst.msk [vmem:[%s1222_s4 + $0x44] sm:$0xf] %vm739_vm1, %v972_v51  ;;  %v533_v59 = vadd.f32 %v1209_v19, %v532_v57  ;;  %v1035_v61 = vpop.f32.mrb[6].mxu1  ;;  %v585_v62 = vmax.f32 %v477_v54, 0.0  ;;  %v480_v0 = vadd.f32 %v1019_v60, %v1209_v19  ;;  %v471_v2 = vpop.f32.mrb[7].mxu0 }
  0xf2   : > { %v601_v63 = vmax.f32 %v541_v55, 0.0  ;;  %v544_v1 = vadd.f32 %v1035_v61, %v1209_v19  ;;  %v535_v3 = vpop.f32.mrb[7].mxu1  ;;  %v583_v4 = vmax.f32 %v469_v58, 0.0  ;;  %v472_v6 = vadd.f32 %v1209_v19, %v471_v2 }
  0xf3   : > { %v599_v5 = vmax.f32 %v533_v59, 0.0  ;;  %v536_v7 = vadd.f32 %v1209_v19, %v535_v3  ;;  %v961_v8 = vpack.c.bf16 %v585_v62, %v585_v62  ;;  %v586_v10 = vmax.f32 %v480_v0, 0.0 }
  0xf4   : > { %v977_v9 = vpack.c.bf16 %v601_v63, %v601_v63  ;;  %v602_v11 = vmax.f32 %v544_v1, 0.0  ;;  %v959_v12 = vpack.c.bf16 %v583_v4, %v583_v4  ;;  %v584_v14 = vmax.f32 %v472_v6, 0.0 }
  0xf5   : > { %v975_v13 = vpack.c.bf16 %v599_v5, %v599_v5  ;;  %v600_v15 = vmax.f32 %v536_v7, 0.0  ;;  %746 = vst.msk [vmem:[%s1222_s4 + $0x18] sm:$0xf] %vm739_vm1, %v961_v8  ;;  %v962_v16 = vpack.c.bf16 %v586_v10, %v586_v10 }
  0xf6   : > { %762 = vst.msk [vmem:[%s1222_s4 + $0x58] sm:$0xf] %vm739_vm1, %v977_v9  ;;  %v978_v17 = vpack.c.bf16 %v602_v11, %v602_v11  ;;  %744 = vst.msk [vmem:[%s1222_s4 + $0x10] sm:$0xf] %vm739_vm1, %v959_v12  ;;  %v960_v18 = vpack.c.bf16 %v584_v14, %v584_v14  ;;  %v1022_v21 = vpop.f32.mrb[8].mxu0 }
  0xf7   : > { %760 = vst.msk [vmem:[%s1222_s4 + $0x50] sm:$0xf] %vm739_vm1, %v975_v13  ;;  %v976_v20 = vpack.c.bf16 %v600_v15, %v600_v15  ;;  %v1038_v22 = vpop.f32.mrb[8].mxu1  ;;  %747 = vst.msk [vmem:[%s1222_s4 + $0x1c] sm:$0xf] %vm739_vm1, %v962_v16  ;;  %v493_v23 = vadd.f32 %v1022_v21, %v1209_v19  ;;  %v484_v25 = vpop.f32.mrb[9].mxu0 }
  0xf8   : > { %763 = vst.msk [vmem:[%s1222_s4 + $0x5c] sm:$0xf] %vm739_vm1, %v978_v17  ;;  %v557_v24 = vadd.f32 %v1038_v22, %v1209_v19  ;;  %v548_v26 = vpop.f32.mrb[9].mxu1  ;;  %745 = vst.msk [vmem:[%s1222_s4 + $0x14] sm:$0xf] %vm739_vm1, %v960_v18  ;;  %v485_v27 = vadd.f32 %v1209_v19, %v484_v25  ;;  %v1023_v29 = vpop.f32.mrb[10].mxu0 }
  0xf9   : > { %761 = vst.msk [vmem:[%s1222_s4 + $0x54] sm:$0xf] %vm739_vm1, %v976_v20  ;;  %v549_v28 = vadd.f32 %v1209_v19, %v548_v26  ;;  %v1039_v30 = vpop.f32.mrb[10].mxu1  ;;  %v589_v31 = vmax.f32 %v493_v23, 0.0  ;;  %v496_v33 = vadd.f32 %v1023_v29, %v1209_v19  ;;  %v487_v35 = vpop.f32.mrb[11].mxu0 }
  0xfa   : > { %v605_v32 = vmax.f32 %v557_v24, 0.0  ;;  %v560_v34 = vadd.f32 %v1039_v30, %v1209_v19  ;;  %v551_v36 = vpop.f32.mrb[11].mxu1  ;;  %v587_v37 = vmax.f32 %v485_v27, 0.0  ;;  %v488_v39 = vadd.f32 %v1209_v19, %v487_v35 }
  0xfb   : > { %v603_v38 = vmax.f32 %v549_v28, 0.0  ;;  %v552_v40 = vadd.f32 %v1209_v19, %v551_v36  ;;  %v965_v41 = vpack.c.bf16 %v589_v31, %v589_v31  ;;  %v590_v43 = vmax.f32 %v496_v33, 0.0 }
  0xfc   : > { %v981_v42 = vpack.c.bf16 %v605_v32, %v605_v32  ;;  %v606_v44 = vmax.f32 %v560_v34, 0.0  ;;  %v963_v45 = vpack.c.bf16 %v587_v37, %v587_v37  ;;  %v588_v47 = vmax.f32 %v488_v39, 0.0 }
  0xfd   : > { %v979_v46 = vpack.c.bf16 %v603_v38, %v603_v38  ;;  %v604_v48 = vmax.f32 %v552_v40, 0.0  ;;  %750 = vst.msk [vmem:[%s1222_s4 + $0x28] sm:$0xf] %vm739_vm1, %v965_v41  ;;  %v966_v49 = vpack.c.bf16 %v590_v43, %v590_v43 }
  0xfe   : > { %766 = vst.msk [vmem:[%s1222_s4 + $0x68] sm:$0xf] %vm739_vm1, %v981_v42  ;;  %v982_v50 = vpack.c.bf16 %v606_v44, %v606_v44  ;;  %748 = vst.msk [vmem:[%s1222_s4 + $0x20] sm:$0xf] %vm739_vm1, %v963_v45  ;;  %v964_v51 = vpack.c.bf16 %v588_v47, %v588_v47  ;;  %v1026_v53 = vpop.f32.mrb[12].mxu0 }
  0xff   : > { %764 = vst.msk [vmem:[%s1222_s4 + $0x60] sm:$0xf] %vm739_vm1, %v979_v46  ;;  %v980_v52 = vpack.c.bf16 %v604_v48, %v604_v48  ;;  %v1042_v54 = vpop.f32.mrb[12].mxu1  ;;  %751 = vst.msk [vmem:[%s1222_s4 + $0x2c] sm:$0xf] %vm739_vm1, %v966_v49  ;;  %v509_v55 = vadd.f32 %v1026_v53, %v1209_v19  ;;  %v500_v57 = vpop.f32.mrb[13].mxu0 }
 0x100   : > { %767 = vst.msk [vmem:[%s1222_s4 + $0x6c] sm:$0xf] %vm739_vm1, %v982_v50  ;;  %v573_v56 = vadd.f32 %v1042_v54, %v1209_v19  ;;  %v564_v58 = vpop.f32.mrb[13].mxu1  ;;  %749 = vst.msk [vmem:[%s1222_s4 + $0x24] sm:$0xf] %vm739_vm1, %v964_v51  ;;  %v501_v59 = vadd.f32 %v1209_v19, %v500_v57  ;;  %v1027_v61 = vpop.f32.mrb[14].mxu0 }
 0x101   : > { %765 = vst.msk [vmem:[%s1222_s4 + $0x64] sm:$0xf] %vm739_vm1, %v980_v52  ;;  %v565_v60 = vadd.f32 %v1209_v19, %v564_v58  ;;  %v1043_v62 = vpop.f32.mrb[14].mxu1  ;;  %v593_v63 = vmax.f32 %v509_v55, 0.0  ;;  %v512_v1 = vadd.f32 %v1027_v61, %v1209_v19  ;;  %v503_v3 = vpop.f32.mrb[15].mxu0 }
 0x102   : > { %v609_v0 = vmax.f32 %v573_v56, 0.0  ;;  %v576_v2 = vadd.f32 %v1043_v62, %v1209_v19  ;;  %v567_v4 = vpop.f32.mrb[15].mxu1  ;;  %v591_v5 = vmax.f32 %v501_v59, 0.0  ;;  %v504_v7 = vadd.f32 %v1209_v19, %v503_v3 }
 0x103   : > { %v607_v6 = vmax.f32 %v565_v60, 0.0  ;;  %v568_v8 = vadd.f32 %v1209_v19, %v567_v4  ;;  %v969_v9 = vpack.c.bf16 %v593_v63, %v593_v63  ;;  %v594_v11 = vmax.f32 %v512_v1, 0.0 }
 0x104   : > { %v985_v10 = vpack.c.bf16 %v609_v0, %v609_v0  ;;  %v610_v12 = vmax.f32 %v576_v2, 0.0  ;;  %v967_v13 = vpack.c.bf16 %v591_v5, %v591_v5  ;;  %v592_v15 = vmax.f32 %v504_v7, 0.0 }
 0x105   : > { %v983_v14 = vpack.c.bf16 %v607_v6, %v607_v6  ;;  %v608_v16 = vmax.f32 %v568_v8, 0.0  ;;  %754 = vst.msk [vmem:[%s1222_s4 + $0x38] sm:$0xf] %vm739_vm1, %v969_v9  ;;  %v970_v17 = vpack.c.bf16 %v594_v11, %v594_v11 }
 0x106   : > { %770 = vst.msk [vmem:[%s1222_s4 + $0x78] sm:$0xf] %vm739_vm1, %v985_v10  ;;  %v986_v18 = vpack.c.bf16 %v610_v12, %v610_v12  ;;  %752 = vst.msk [vmem:[%s1222_s4 + $0x30] sm:$0xf] %vm739_vm1, %v967_v13  ;;  %v968_v19 = vpack.c.bf16 %v592_v15, %v592_v15 }
 0x107   : > { %768 = vst.msk [vmem:[%s1222_s4 + $0x70] sm:$0xf] %vm739_vm1, %v983_v14  ;;  %v984_v20 = vpack.c.bf16 %v608_v16, %v608_v16  ;;  %755 = vst.msk [vmem:[%s1222_s4 + $0x3c] sm:$0xf] %vm739_vm1, %v970_v17 }
 0x108   : > { %771 = vst.msk [vmem:[%s1222_s4 + $0x7c] sm:$0xf] %vm739_vm1, %v986_v18  ;;  %753 = vst.msk [vmem:[%s1222_s4 + $0x34] sm:$0xf] %vm739_vm1, %v968_v19 }
 0x109   : > { %769 = vst.msk [vmem:[%s1222_s4 + $0x74] sm:$0xf] %vm739_vm1, %v984_v20 }
 0x10a PF: > { %s13_s14 = sadd.s32 1, %s1115_s14   ;;  %s1327_s12 = smov %s1111_s13 }
 0x10b   : > { %p10_p5 = scmp.ge.s32.totalorder %s13_s14, 4   ;;  %s1328_s13 = smov %s1330_s15 }
 0x10d   :  { %12 = sbr.rel (!%p10_p5) target bundleno = 2 (0x2), region = 68 }

// kernel: autoencoder_forward.8
= control target key start
LH: loop header
LB: loop body
LE: loop exit
PB: predicated region body
PF: predicated region fallthrough
CT: control target
= control target key end

     0   :  { %s1793_s12 = smov 0   ;;  %s1795_s13 = smov 0   ;;  %s2089_s0 = inlined_call_operand.vmem [shape: bf16[128,1024], index: 0, kind: input, shape index: {}]   ;;  %s2090_s1 = inlined_call_operand.vmem [shape: bf16[1024,128], index: 1, kind: input, shape index: {}]   ;;  %s2091_s2 = inlined_call_operand.vmem [shape: f32[1,128], index: 2, kind: input, shape index: {}]   ;;  %s2092_s3 = inlined_call_operand.vmem [shape: bf16[128,128], index: 3, kind: output, shape index: {}]  }
   0x1   :  { %s1797_s14 = smov 0  }
   0x2 LB: > { %s25_s15 = sadd.s32 1, %s1767_s13  ;;  %p1356_p0 = scmp.ge.s32.totalorder %s1771_s14, 1  ;;  %s1771_s14 = sphi %s1797_s14, %s13_s14   ;;  %s1767_s13 = sphi %s1795_s13, %s2094_s13   ;;  %s1763_s12 = sphi %s1793_s12, %s2093_s12  }
   0x3   : > { %p27_p1 = scmp.ge.s32.totalorder %s25_s15, 2  ;;  %p170_p2 = scmp.lt.s32.totalorder %s1771_s14, 3 }
   0x5   : > { %s2096_s15 = smov (%p27_p1, %s25_s15), 0  ;;  %p171_p3 = pnand %p1356_p0, %p170_p2 }
   0x6   : > { %v1685_v0 = vld [vmem:[%s2090_s1 + $0x40] sm:$0xff] (!%p171_p3)   ;;  %v1689_v4 = vld [vmem:[%s2090_s1 + $0x48] sm:$0xff] (!%p171_p3)   ;;  %v1693_v8 = vld [vmem:[%s2090_s1 + $0x50] sm:$0xff] (!%p171_p3)   ;;  %s1357_s25 = sshll.u32 (!%p171_p3), %s1763_s12, 3 }
   0x7   : > { %174 = sbr.rel (%p171_p3) target bundleno = 322 (0x142), region = 32  ;;  %v1686_v1 = vld [vmem:[%s2090_s1 + $0xc0] sm:$0xff] (!%p171_p3)   ;;  %1501 = vmatprep.subr.bf16.mxu0 (!%p171_p3), %v1685_v0  ;;  %v1690_v5 = vld [vmem:[%s2090_s1 + $0xc8] sm:$0xff] (!%p171_p3)   ;;  %v1694_v9 = vld [vmem:[%s2090_s1 + $0xd0] sm:$0xff] (!%p171_p3)   ;;  %p206_p4 = scmp.lt.s32.totalorder (!%p171_p3), %s1357_s25, 15 }
   0x8   : > { %v1687_v2 = vld [vmem:[%s2090_s1] sm:$0xff] (!%p171_p3)   ;;  %1541 = vmatprep.subr.bf16.mxu1 (!%p171_p3), %v1686_v1  ;;  %v1691_v6 = vld [vmem:[%s2090_s1 + $0x8] sm:$0xff] (!%p171_p3)   ;;  %v1695_v10 = vld [vmem:[%s2090_s1 + $0x10] sm:$0xff] (!%p171_p3)  }
   0x9   : > { %v1688_v3 = vld [vmem:[%s2090_s1 + $0x80] sm:$0xff] (!%p171_p3)   ;;  %1502 = vmatpush3.bf16.msra.mxu0 (!%p171_p3), %v1687_v2  ;;  %v1692_v7 = vld [vmem:[%s2090_s1 + $0x88] sm:$0xff] (!%p171_p3)   ;;  %v1696_v11 = vld [vmem:[%s2090_s1 + $0x90] sm:$0xff] (!%p171_p3)  }
   0xa   : > { %1542 = vmatpush3.bf16.msra.mxu1 (!%p171_p3), %v1688_v3  ;;  %1503 = vmatprep.subr.bf16.mxu0 (!%p171_p3), %v1689_v4  ;;  %v1697_v12 = vld [vmem:[%s2090_s1 + $0x58] sm:$0xff] (!%p171_p3)   ;;  %v1701_v16 = vld [vmem:[%s2090_s1 + $0x60] sm:$0xff] (!%p171_p3)   ;;  %v1705_v20 = vld [vmem:[%s2090_s1 + $0x68] sm:$0xff] (!%p171_p3)  }
   0xb   : > { %1543 = vmatprep.subr.bf16.mxu1 (!%p171_p3), %v1690_v5  ;;  %v1698_v13 = vld [vmem:[%s2090_s1 + $0xd8] sm:$0xff] (!%p171_p3)   ;;  %v1702_v17 = vld [vmem:[%s2090_s1 + $0xe0] sm:$0xff] (!%p171_p3)   ;;  %v1706_v21 = vld [vmem:[%s2090_s1 + $0xe8] sm:$0xff] (!%p171_p3)  }
   0xc   : > { %v1699_v14 = vld [vmem:[%s2090_s1 + $0x18] sm:$0xff] (!%p171_p3)   ;;  %v1703_v18 = vld [vmem:[%s2090_s1 + $0x20] sm:$0xff] (!%p171_p3)   ;;  %v1707_v22 = vld [vmem:[%s2090_s1 + $0x28] sm:$0xff] (!%p171_p3)  }
   0xd   : > { %1504 = vmatpush3.bf16.msra.mxu0 (!%p171_p3), %v1691_v6  ;;  %v1700_v15 = vld [vmem:[%s2090_s1 + $0x98] sm:$0xff] (!%p171_p3)   ;;  %v1704_v19 = vld [vmem:[%s2090_s1 + $0xa0] sm:$0xff] (!%p171_p3)   ;;  %v1708_v23 = vld [vmem:[%s2090_s1 + $0xa8] sm:$0xff] (!%p171_p3)  }
   0xe   : > { %1544 = vmatpush3.bf16.msra.mxu1 %v1692_v7  ;;  %1505 = vmatprep.subr.bf16.mxu0 %v1693_v8  ;;  %s2098_s25 = smov (!%p206_p4, %s1357_s25), 15  ;;  %v1709_v24 = vld [vmem:[%s2090_s1 + $0x70] sm:$0xff]   ;;  %v1713_v28 = vld [vmem:[%s2090_s1 + $0x78] sm:$0xff]   ;;  %v1717_v40 = vld [vmem:[%s2090_s1 + $0x140] sm:$0xff]  }
   0xf   : > { %1545 = vmatprep.subr.bf16.mxu1 %v1694_v9  ;;  %v1710_v25 = vld [vmem:[%s2090_s1 + $0xf0] sm:$0xff]   ;;  %s1469_s24 = sshll.u32 %s2098_s25, 5  ;;  %v1714_v29 = vld [vmem:[%s2090_s1 + $0xf8] sm:$0xff]   ;;  %v1718_v41 = vld [vmem:[%s2090_s1 + $0x1c0] sm:$0xff]  }
  0x10   : > { %v1711_v26 = vld [vmem:[%s2090_s1 + $0x30] sm:$0xff]   ;;  %s1910_s12 = scalar_lea.vmem %s2089_s0, %s1469_s24  ;;  %v1715_v30 = vld [vmem:[%s2090_s1 + $0x38] sm:$0xff]   ;;  %v1719_v42 = vld [vmem:[%s2090_s1 + $0x100] sm:$0xff]  }
  0x11   : > { %1506 = vmatpush3.bf16.msra.mxu0 %v1695_v10  ;;  %v1712_v27 = vld [vmem:[%s2090_s1 + $0xb0] sm:$0xff]   ;;  %v1716_v31 = vld [vmem:[%s2090_s1 + $0xb8] sm:$0xff]   ;;  %v229_v32 = vld [vmem:[%s1910_s12] sm:$0xff] }
  0x12   : > { %1546 = vmatpush3.bf16.msra.mxu1 %v1696_v11  ;;  %1507 = vmatprep.subr.bf16.mxu0 %v1697_v12  ;;  %v233_v33 = vld [vmem:[%s1910_s12 + $0x20] sm:$0xff]  ;;  %v230_v34 = vld [vmem:[%s1910_s12 + $0x8] sm:$0xff]  ;;  %v1725_v56 = vld [vmem:[%s2090_s1 + $0x150] sm:$0xff]  }
  0x13   : > { %1547 = vmatprep.subr.bf16.mxu1 %v1698_v13  ;;  %v1363_v35 = vcombine.low %v229_v32, %v233_v33  ;;  %v1364_v36 = vcombine.high %v229_v32, %v233_v33  ;;  %v234_v37 = vld [vmem:[%s1910_s12 + $0x28] sm:$0xff]  ;;  %v1720_v43 = vld [vmem:[%s2090_s1 + $0x180] sm:$0xff]   ;;  %v1726_v57 = vld [vmem:[%s2090_s1 + $0x1d0] sm:$0xff]  }
  0x14   : > { %v1365_v38 = vcombine.low %v230_v34, %v234_v37  ;;  %v1366_v39 = vcombine.high %v230_v34, %v234_v37  ;;  %v1721_v44 = vld [vmem:[%s2090_s1 + $0x148] sm:$0xff]   ;;  %v237_v48 = vld [vmem:[%s1910_s12 + $0x40] sm:$0xff]  ;;  %v1727_v58 = vld [vmem:[%s2090_s1 + $0x110] sm:$0xff]  }
  0x15   : > { %1508 = vmatpush3.bf16.msra.mxu0 %v1699_v14  ;;  %972 = vmatprep.mubr.bf16.mxu0 %v1364_v36  ;;  %v1722_v45 = vld [vmem:[%s2090_s1 + $0x1c8] sm:$0xff]   ;;  %v241_v49 = vld [vmem:[%s1910_s12 + $0x60] sm:$0xff]  ;;  %v1728_v59 = vld [vmem:[%s2090_s1 + $0x190] sm:$0xff]  }
  0x16   : > { %1548 = vmatpush3.bf16.msra.mxu1 %v1700_v15  ;;  %1509 = vmatprep.subr.bf16.mxu0 %v1701_v16  ;;  %v1723_v46 = vld [vmem:[%s2090_s1 + $0x108] sm:$0xff]   ;;  %v1372_v50 = vcombine.high %v237_v48, %v241_v49  ;;  %v1371_v53 = vcombine.low %v237_v48, %v241_v49  ;;  %v1729_v60 = vld [vmem:[%s2090_s1 + $0x158] sm:$0xff]   ;;  %v245_v0 = vld [vmem:[%s1910_s12 + $0x80] sm:$0xff] }
  0x17   : > { %1549 = vmatprep.subr.bf16.mxu1 %v1702_v17  ;;  %1037 = vmatprep.mubr.bf16.mxu1 %v1366_v39  ;;  %v1724_v47 = vld [vmem:[%s2090_s1 + $0x188] sm:$0xff]   ;;  %v1730_v61 = vld [vmem:[%s2090_s1 + $0x1d8] sm:$0xff]   ;;  %v249_v1 = vld [vmem:[%s1910_s12 + $0xa0] sm:$0xff] }
  0x18   : > { %v238_v51 = vld [vmem:[%s1910_s12 + $0x48] sm:$0xff]  ;;  %v1731_v62 = vld [vmem:[%s2090_s1 + $0x118] sm:$0xff]   ;;  %v1380_v4 = vcombine.high %v245_v0, %v249_v1  ;;  %v1379_v6 = vcombine.low %v245_v0, %v249_v1  ;;  %v1733_v8 = vld [vmem:[%s2090_s1 + $0x160] sm:$0xff]  }
  0x19   : > { %1510 = vmatpush3.bf16.msra.mxu0 %v1703_v18  ;;  %v242_v52 = vld [vmem:[%s1910_s12 + $0x68] sm:$0xff]  ;;  %v1732_v63 = vld [vmem:[%s2090_s1 + $0x198] sm:$0xff]   ;;  %v1734_v9 = vld [vmem:[%s2090_s1 + $0x1e0] sm:$0xff]  }
  0x1a   : > { %1550 = vmatpush3.bf16.msra.mxu1 %v1704_v19  ;;  %1511 = vmatprep.subr.bf16.mxu0 %v1705_v20  ;;  %v1374_v54 = vcombine.high %v238_v51, %v242_v52  ;;  %v1373_v55 = vcombine.low %v238_v51, %v242_v52  ;;  %v246_v2 = vld [vmem:[%s1910_s12 + $0x88] sm:$0xff]  ;;  %v1735_v10 = vld [vmem:[%s2090_s1 + $0x120] sm:$0xff]   ;;  %v231_v32 = vld [vmem:[%s1910_s12 + $0x10] sm:$0xff] }
  0x1b   : > { %1551 = vmatprep.subr.bf16.mxu1 %v1706_v21  ;;  %v250_v3 = vld [vmem:[%s1910_s12 + $0xa8] sm:$0xff]  ;;  %v1736_v11 = vld [vmem:[%s2090_s1 + $0x1a0] sm:$0xff]   ;;  %v235_v33 = vld [vmem:[%s1910_s12 + $0x30] sm:$0xff] }
  0x1c   : > { %v1382_v5 = vcombine.high %v246_v2, %v250_v3  ;;  %v1381_v7 = vcombine.low %v246_v2, %v250_v3  ;;  %v1737_v12 = vld [vmem:[%s2090_s1 + $0x168] sm:$0xff]   ;;  %v253_v16 = vld [vmem:[%s1910_s12 + $0xc0] sm:$0xff]  ;;  %v1367_v34 = vcombine.low %v231_v32, %v235_v33  ;;  %v232_v36 = vld [vmem:[%s1910_s12 + $0x18] sm:$0xff] }
  0x1d   : > { %1512 = vmatpush3.bf16.msra.mxu0 %v1707_v22  ;;  %v1738_v13 = vld [vmem:[%s2090_s1 + $0x1e8] sm:$0xff]   ;;  %v257_v17 = vld [vmem:[%s1910_s12 + $0xe0] sm:$0xff]  ;;  %v236_v37 = vld [vmem:[%s1910_s12 + $0x38] sm:$0xff] }
  0x1e   : > { %1552 = vmatpush3.bf16.msra.mxu1 %v1708_v23  ;;  %1513 = vmatprep.subr.bf16.mxu0 %v1709_v24  ;;  %v1739_v14 = vld [vmem:[%s2090_s1 + $0x128] sm:$0xff]   ;;  %v1388_v19 = vcombine.high %v253_v16, %v257_v17  ;;  %v1387_v21 = vcombine.low %v253_v16, %v257_v17  ;;  %v1741_v24 = vld [vmem:[%s2090_s1 + $0x170] sm:$0xff]   ;;  %v1369_v39 = vcombine.low %v232_v36, %v236_v37  ;;  %v248_v48 = vld [vmem:[%s1910_s12 + $0x98] sm:$0xff] }
  0x1f   : > { %1553 = vmatprep.subr.bf16.mxu1 %v1710_v25  ;;  %v1740_v15 = vld [vmem:[%s2090_s1 + $0x1a8] sm:$0xff]   ;;  %v1742_v25 = vld [vmem:[%s2090_s1 + $0x1f0] sm:$0xff]   ;;  %v252_v49 = vld [vmem:[%s1910_s12 + $0xb8] sm:$0xff] }
  0x20   : > { %v254_v18 = vld [vmem:[%s1910_s12 + $0xc8] sm:$0xff]  ;;  %v1362_v2 = vld [vmem:[%s2091_s2] ss:$0 sm:$0xff] }
  0x21   : > { %1514 = vmatpush3.bf16.msra.mxu0 %v1711_v26  ;;  %v258_v20 = vld [vmem:[%s1910_s12 + $0xe8] sm:$0xff]  ;;  %v1743_v26 = vld [vmem:[%s2090_s1 + $0x130] sm:$0xff]  }
  0x22   : > { %1554 = vmatpush3.bf16.msra.mxu1 %v1712_v27  ;;  %1515 = vmatprep.subr.bf16.mxu0 %v1713_v28  ;;  %v1390_v22 = vcombine.high %v254_v18, %v258_v20  ;;  %v1389_v23 = vcombine.low %v254_v18, %v258_v20  ;;  %v1744_v27 = vld [vmem:[%s2090_s1 + $0x1b0] sm:$0xff]   ;;  %v1745_v28 = vld [vmem:[%s2090_s1 + $0x178] sm:$0xff]  }
  0x23   : > { %1555 = vmatprep.subr.bf16.mxu1 %v1714_v29  ;;  %v1746_v29 = vld [vmem:[%s2090_s1 + $0x1f8] sm:$0xff]  }
  0x25   : > { %1516 = vmatpush3.bf16.msra.mxu0 %v1715_v30  ;;  %v1747_v30 = vld [vmem:[%s2090_s1 + $0x138] sm:$0xff]  }
  0x26   : > { %1556 = vmatpush3.bf16.msra.mxu1 %v1716_v31  ;;  %1581 = vmatprep.subr.bf16.mxu0 %v1717_v40  ;;  %v1748_v31 = vld [vmem:[%s2090_s1 + $0x1b8] sm:$0xff]   ;;  %v1370_v40 = vcombine.high %v232_v36, %v236_v37 }
  0x27   : > { %1621 = vmatprep.subr.bf16.mxu1 %v1718_v41  ;;  %v243_v41 = vld [vmem:[%s1910_s12 + $0x70] sm:$0xff] }
  0x28   : > { %973 = vmatmul.mubr.bf16.vlgmr.msra.gmra.mrb[0].mxu0 %v1363_v35  ;;  %v1368_v35 = vcombine.high %v231_v32, %v235_v33 }
  0x29   : > { %1038 = vmatmul.mubr.bf16.vlgmr.msra.gmra.mrb[0].mxu1 %v1365_v38  ;;  %1582 = vmatpush3.bf16.msra.mxu0 %v1719_v42  ;;  %v239_v38 = vld [vmem:[%s1910_s12 + $0x50] sm:$0xff]  ;;  %v240_v42 = vld [vmem:[%s1910_s12 + $0x58] sm:$0xff] }
  0x2a   : > { %1622 = vmatpush3.bf16.msra.mxu1 %v1720_v43  ;;  %1583 = vmatprep.subr.bf16.mxu0 %v1721_v44  ;;  %v244_v43 = vld [vmem:[%s1910_s12 + $0x78] sm:$0xff]  ;;  %v1376_v44 = vcombine.high %v239_v38, %v243_v41 }
  0x2b   : > { %1623 = vmatprep.subr.bf16.mxu1 %v1722_v45  ;;  %980 = vmatprep.mubr.bf16.mxu0 %v1372_v50  ;;  %v1378_v45 = vcombine.high %v240_v42, %v244_v43  ;;  %v1375_v50 = vcombine.low %v239_v38, %v243_v41  ;;  %v1377_v51 = vcombine.low %v240_v42, %v244_v43 }
  0x2c   : > { %1045 = vmatprep.mubr.bf16.mxu1 %v1374_v54  ;;  %v255_v54 = vld [vmem:[%s1910_s12 + $0xd0] sm:$0xff] }
  0x2d   : > { %1584 = vmatpush3.bf16.msra.mxu0 %v1723_v46  ;;  %v247_v46 = vld [vmem:[%s1910_s12 + $0x90] sm:$0xff] }
  0x2e   : > { %1624 = vmatpush3.bf16.msra.mxu1 %v1724_v47  ;;  %1585 = vmatprep.subr.bf16.mxu0 %v1725_v56  ;;  %v251_v47 = vld [vmem:[%s1910_s12 + $0xb0] sm:$0xff]  ;;  %v256_v56 = vld [vmem:[%s1910_s12 + $0xd8] sm:$0xff] }
  0x2f   : > { %1625 = vmatprep.subr.bf16.mxu1 %v1726_v57  ;;  %v1384_v52 = vcombine.high %v247_v46, %v251_v47  ;;  %v260_v57 = vld [vmem:[%s1910_s12 + $0xf8] sm:$0xff] }
  0x30   : > { %981 = vmatmul.mubr.bf16.gmra.mrb[4].mxu0 %v1371_v53  ;;  %v1386_v53 = vcombine.high %v248_v48, %v252_v49 }
  0x31   : > { %1046 = vmatmul.mubr.bf16.gmra.mrb[4].mxu1 %v1373_v55  ;;  %1586 = vmatpush3.bf16.msra.mxu0 %v1727_v58  ;;  %v259_v55 = vld [vmem:[%s1910_s12 + $0xf0] sm:$0xff]  ;;  %v1383_v58 = vcombine.low %v247_v46, %v251_v47  ;;  %s1361_s12 = sshll.u32 %s2098_s25, 2 }
  0x32   : > { %1626 = vmatpush3.bf16.msra.mxu1 %v1728_v59  ;;  %1587 = vmatprep.subr.bf16.mxu0 %v1729_v60  ;;  %v1385_v59 = vcombine.low %v248_v48, %v252_v49  ;;  %v1392_v60 = vcombine.high %v255_v54, %v259_v55  ;;  %s2068_s17 = scalar_lea.vmem %s2092_s3, %s1361_s12 }
  0x33   : > { %1627 = vmatprep.subr.bf16.mxu1 %v1730_v61  ;;  %988 = vmatprep.mubr.bf16.mxu0 %v1380_v4  ;;  %v1394_v61 = vcombine.high %v256_v56, %v260_v57 }
  0x34   : > { %1053 = vmatprep.mubr.bf16.mxu1 %v1382_v5 }
  0x35   : > { %1588 = vmatpush3.bf16.msra.mxu0 %v1731_v62  ;;  %v1391_v62 = vcombine.low %v255_v54, %v259_v55 }
  0x36   : > { %1628 = vmatpush3.bf16.msra.mxu1 %v1732_v63  ;;  %1589 = vmatprep.subr.bf16.mxu0 %v1733_v8  ;;  %v1393_v63 = vcombine.low %v256_v56, %v260_v57 }
  0x37   : > { %1629 = vmatprep.subr.bf16.mxu1 %v1734_v9 }
  0x38   : > { %989 = vmatmul.mubr.bf16.gmra.mrb[8].mxu0 %v1379_v6 }
  0x39   : > { %1054 = vmatmul.mubr.bf16.gmra.mrb[8].mxu1 %v1381_v7  ;;  %1590 = vmatpush3.bf16.msra.mxu0 %v1735_v10 }
  0x3a   : > { %1630 = vmatpush3.bf16.msra.mxu1 %v1736_v11  ;;  %1591 = vmatprep.subr.bf16.mxu0 %v1737_v12 }
  0x3b   : > { %1631 = vmatprep.subr.bf16.mxu1 %v1738_v13  ;;  %996 = vmatprep.mubr.bf16.mxu0 %v1388_v19 }
  0x3c   : > { %1061 = vmatprep.mubr.bf16.mxu1 %v1390_v22 }
  0x3d   : > { %1592 = vmatpush3.bf16.msra.mxu0 %v1739_v14 }
  0x3e   : > { %1632 = vmatpush3.bf16.msra.mxu1 %v1740_v15  ;;  %1593 = vmatprep.subr.bf16.mxu0 %v1741_v24 }
  0x3f   : > { %1633 = vmatprep.subr.bf16.mxu1 %v1742_v25 }
  0x40   : > { %997 = vmatmul.mubr.bf16.gmra.mrb[12].mxu0 %v1387_v21 }
  0x41   : > { %1062 = vmatmul.mubr.bf16.gmra.mrb[12].mxu1 %v1389_v23  ;;  %1594 = vmatpush3.bf16.msra.mxu0 %v1743_v26 }
  0x42   : > { %1634 = vmatpush3.bf16.msra.mxu1 %v1744_v27  ;;  %1595 = vmatprep.subr.bf16.mxu0 %v1745_v28 }
  0x43   : > { %1635 = vmatprep.subr.bf16.mxu1 %v1746_v29  ;;  %1102 = vmatprep.mubr.bf16.mxu0 %v1368_v35 }
  0x44   : > { %1167 = vmatprep.mubr.bf16.mxu1 %v1370_v40 }
  0x45   : > { %1596 = vmatpush3.bf16.msra.mxu0 %v1747_v30 }
  0x46   : > { %1636 = vmatpush3.bf16.msra.mxu1 %v1748_v31 }
  0x48   : > { %1103 = vmatmul.mubr.bf16.vlgmr.msra.gmra.mrb[16].mxu0 %v1367_v34 }
  0x49   : > { %1168 = vmatmul.mubr.bf16.vlgmr.msra.gmra.mrb[16].mxu1 %v1369_v39  ;;  %1110 = vmatprep.mubr.bf16.mxu0 %v1376_v44 }
  0x4a   : > { %1175 = vmatprep.mubr.bf16.mxu1 %v1378_v45 }
  0x50   : > { %1111 = vmatmul.mubr.bf16.gmra.mrb[20].mxu0 %v1375_v50 }
  0x51   : > { %1176 = vmatmul.mubr.bf16.gmra.mrb[20].mxu1 %v1377_v51  ;;  %1118 = vmatprep.mubr.bf16.mxu0 %v1384_v52 }
  0x52   : > { %1183 = vmatprep.mubr.bf16.mxu1 %v1386_v53 }
  0x58   : > { %1119 = vmatmul.mubr.bf16.gmra.mrb[24].mxu0 %v1383_v58 }
  0x59   : > { %1184 = vmatmul.mubr.bf16.gmra.mrb[24].mxu1 %v1385_v59  ;;  %1126 = vmatprep.mubr.bf16.mxu0 %v1392_v60 }
  0x5a   : > { %1191 = vmatprep.mubr.bf16.mxu1 %v1394_v61 }
  0x60   : > { %1127 = vmatmul.mubr.bf16.gmra.mrb[28].mxu0 %v1391_v62 }
  0x61   : > { %1192 = vmatmul.mubr.bf16.gmra.mrb[28].mxu1 %v1393_v63 }
  0xfb   : > { %v1517_v0 = vpop.f32.mrb[0].mxu0 }
  0xfc   : > { %v1557_v1 = vpop.f32.mrb[0].mxu1  ;;  %v1518_v3 = vpop.f32.mrb[1].mxu0 }
  0xfd   : > { %v1519_v4 = vadd.f32 %v1518_v3, %v1517_v0  ;;  %v1558_v5 = vpop.f32.mrb[1].mxu1  ;;  %v1520_v6 = vpop.f32.mrb[2].mxu0 }
  0xfe   : > { %v1559_v7 = vadd.f32 %v1558_v5, %v1557_v1  ;;  %v1560_v8 = vpop.f32.mrb[2].mxu1  ;;  %v1521_v9 = vpop.f32.mrb[3].mxu0 }
  0xff   : > { %v975_v10 = vadd.f32 %v1519_v4, %v1362_v2  ;;  %v1522_v11 = vadd.f32 %v1521_v9, %v1520_v6  ;;  %v1561_v12 = vpop.f32.mrb[3].mxu1 }
 0x100   : > { %v1562_v13 = vadd.f32 %v1561_v12, %v1560_v8 }
 0x101   : > { %v1040_v14 = vadd.f32 %v1559_v7, %v975_v10  ;;  %v978_v15 = vadd.f32 %v1522_v11, %v1362_v2 }
 0x103   : > { %v2049_v16 = vadd.f32 %v1562_v13, %v978_v15  ;;  %v1523_v17 = vpop.f32.mrb[4].mxu0 }
 0x104   : > { %v1563_v18 = vpop.f32.mrb[4].mxu1  ;;  %v1524_v19 = vpop.f32.mrb[5].mxu0 }
 0x105   : > { %v1525_v20 = vadd.f32 %v1524_v19, %v1523_v17  ;;  %v1564_v21 = vpop.f32.mrb[5].mxu1  ;;  %v1526_v22 = vpop.f32.mrb[6].mxu0 }
 0x106   : > { %v1565_v23 = vadd.f32 %v1564_v21, %v1563_v18  ;;  %v1566_v24 = vpop.f32.mrb[6].mxu1  ;;  %v1527_v25 = vpop.f32.mrb[7].mxu0 }
 0x107   : > { %v983_v26 = vadd.f32 %v1525_v20, %v1362_v2  ;;  %v1528_v27 = vadd.f32 %v1527_v25, %v1526_v22  ;;  %v1567_v28 = vpop.f32.mrb[7].mxu1 }
 0x108   : > { %v1568_v29 = vadd.f32 %v1567_v28, %v1566_v24 }
 0x109   : > { %v2051_v30 = vadd.f32 %v1565_v23, %v983_v26  ;;  %v986_v31 = vadd.f32 %v1528_v27, %v1362_v2 }
 0x10b   : > { %v2053_v32 = vadd.f32 %v1568_v29, %v986_v31  ;;  %v1529_v33 = vpop.f32.mrb[8].mxu0 }
 0x10c   : > { %v1569_v34 = vpop.f32.mrb[8].mxu1  ;;  %v1530_v35 = vpop.f32.mrb[9].mxu0 }
 0x10d   : > { %v1570_v36 = vpop.f32.mrb[9].mxu1  ;;  %v1531_v37 = vadd.f32 %v1530_v35, %v1529_v33  ;;  %v1532_v39 = vpop.f32.mrb[10].mxu0 }
 0x10e   : > { %v1571_v38 = vadd.f32 %v1570_v36, %v1569_v34  ;;  %v1572_v40 = vpop.f32.mrb[10].mxu1  ;;  %v1533_v41 = vpop.f32.mrb[11].mxu0 }
 0x10f   : > { %v1573_v42 = vpop.f32.mrb[11].mxu1  ;;  %v991_v43 = vadd.f32 %v1531_v37, %v1362_v2  ;;  %v1534_v44 = vadd.f32 %v1533_v41, %v1532_v39 }
 0x110   : > { %v1574_v45 = vadd.f32 %v1573_v42, %v1572_v40 }
 0x111   : > { %v2055_v46 = vadd.f32 %v1571_v38, %v991_v43  ;;  %v994_v47 = vadd.f32 %v1534_v44, %v1362_v2 }
 0x113   : > { %v2057_v48 = vadd.f32 %v1574_v45, %v994_v47  ;;  %v1535_v49 = vpop.f32.mrb[12].mxu0 }
 0x114   : > { %v1575_v50 = vpop.f32.mrb[12].mxu1  ;;  %v1536_v51 = vpop.f32.mrb[13].mxu0 }
 0x115   : > { %v1537_v52 = vadd.f32 %v1536_v51, %v1535_v49  ;;  %v1576_v53 = vpop.f32.mrb[13].mxu1  ;;  %v1538_v54 = vpop.f32.mrb[14].mxu0 }
 0x116   : > { %v1577_v55 = vadd.f32 %v1576_v53, %v1575_v50  ;;  %v1578_v56 = vpop.f32.mrb[14].mxu1  ;;  %v1539_v57 = vpop.f32.mrb[15].mxu0 }
 0x117   : > { %v999_v58 = vadd.f32 %v1537_v52, %v1362_v2  ;;  %v1540_v59 = vadd.f32 %v1539_v57, %v1538_v54  ;;  %v1579_v60 = vpop.f32.mrb[15].mxu1 }
 0x118   : > { %v1580_v61 = vadd.f32 %v1579_v60, %v1578_v56 }
 0x119   : > { %v2059_v62 = vadd.f32 %v1577_v55, %v999_v58  ;;  %v1002_v63 = vadd.f32 %v1540_v59, %v1362_v2 }
 0x11b   : > { %v2061_v0 = vadd.f32 %v1580_v61, %v1002_v63  ;;  %v1597_v1 = vpop.f32.mrb[16].mxu0 }
 0x11c   : > { %v1637_v3 = vpop.f32.mrb[16].mxu1  ;;  %v1598_v4 = vpop.f32.mrb[17].mxu0 }
 0x11d   : > { %v1599_v5 = vadd.f32 %v1598_v4, %v1597_v1  ;;  %v1638_v6 = vpop.f32.mrb[17].mxu1  ;;  %v1600_v7 = vpop.f32.mrb[18].mxu0 }
 0x11e   : > { %v1639_v8 = vadd.f32 %v1638_v6, %v1637_v3  ;;  %v1640_v9 = vpop.f32.mrb[18].mxu1  ;;  %v1601_v10 = vpop.f32.mrb[19].mxu0 }
 0x11f   : > { %v1105_v11 = vadd.f32 %v1599_v5, %v1040_v14  ;;  %v1602_v12 = vadd.f32 %v1601_v10, %v1600_v7  ;;  %v1641_v13 = vpop.f32.mrb[19].mxu1 }
 0x120   : > { %v1642_v15 = vadd.f32 %v1641_v13, %v1640_v9 }
 0x121   : > { %v1170_v17 = vadd.f32 %v1639_v8, %v1105_v11  ;;  %v1108_v18 = vadd.f32 %v1602_v12, %v2049_v16 }
 0x123   : > { %v1173_v2 = vadd.f32 %v1642_v15, %v1108_v18  ;;  %v1603_v19 = vpop.f32.mrb[20].mxu0  ;;  %v1200_v22 = vmax.f32 %v1170_v17, 0.0 }
 0x124   : > { %v1643_v20 = vpop.f32.mrb[20].mxu1  ;;  %v1604_v21 = vpop.f32.mrb[21].mxu0 }
 0x125   : > { %v1201_v23 = vmax.f32 %v1173_v2, 0.0  ;;  %v1605_v24 = vadd.f32 %v1604_v21, %v1603_v19  ;;  %v1644_v25 = vpop.f32.mrb[21].mxu1  ;;  %v1606_v26 = vpop.f32.mrb[22].mxu0 }
 0x126   : > { %v1645_v14 = vadd.f32 %v1644_v25, %v1643_v20  ;;  %v1646_v27 = vpop.f32.mrb[22].mxu1  ;;  %v1607_v28 = vpop.f32.mrb[23].mxu0 }
 0x127   : > { %v1481_v16 = vpack.c.bf16 %v1201_v23, %v1200_v22  ;;  %v1113_v29 = vadd.f32 %v1605_v24, %v2051_v30  ;;  %v1608_v31 = vadd.f32 %v1607_v28, %v1606_v26  ;;  %v1647_v33 = vpop.f32.mrb[23].mxu1 }
 0x128   : > { %v1648_v34 = vadd.f32 %v1647_v33, %v1646_v27 }
 0x129   : > { %1482 = vst [vmem:[%s2068_s17] sm:$0xff] %v1481_v16   ;;  %v1178_v35 = vadd.f32 %v1645_v14, %v1113_v29  ;;  %v1116_v36 = vadd.f32 %v1608_v31, %v2053_v32 }
 0x12b   : > { %v1181_v37 = vadd.f32 %v1648_v34, %v1116_v36  ;;  %v1609_v38 = vpop.f32.mrb[24].mxu0  ;;  %v1202_v41 = vmax.f32 %v1178_v35, 0.0 }
 0x12c   : > { %v1649_v39 = vpop.f32.mrb[24].mxu1  ;;  %v1610_v40 = vpop.f32.mrb[25].mxu0 }
 0x12d   : > { %v1203_v42 = vmax.f32 %v1181_v37, 0.0  ;;  %v1611_v43 = vadd.f32 %v1610_v40, %v1609_v38  ;;  %v1650_v44 = vpop.f32.mrb[25].mxu1  ;;  %v1612_v45 = vpop.f32.mrb[26].mxu0 }
 0x12e   : > { %v1651_v47 = vadd.f32 %v1650_v44, %v1649_v39  ;;  %v1652_v49 = vpop.f32.mrb[26].mxu1  ;;  %v1613_v30 = vpop.f32.mrb[27].mxu0 }
 0x12f   : > { %v1486_v50 = vpack.c.bf16 %v1203_v42, %v1202_v41  ;;  %v1121_v51 = vadd.f32 %v1611_v43, %v2055_v46  ;;  %v1614_v52 = vadd.f32 %v1613_v30, %v1612_v45  ;;  %v1653_v53 = vpop.f32.mrb[27].mxu1 }
 0x130   : > { %v1654_v54 = vadd.f32 %v1653_v53, %v1652_v49 }
 0x131   : > { %1498 = vst [vmem:[%s2068_s17 + $0x8] sm:$0xff] %v1486_v50   ;;  %v1186_v32 = vadd.f32 %v1651_v47, %v1121_v51  ;;  %v1124_v55 = vadd.f32 %v1614_v52, %v2057_v48 }
 0x133   : > { %v1189_v56 = vadd.f32 %v1654_v54, %v1124_v55  ;;  %v1615_v57 = vpop.f32.mrb[28].mxu0  ;;  %v1204_v60 = vmax.f32 %v1186_v32, 0.0 }
 0x134   : > { %v1655_v58 = vpop.f32.mrb[28].mxu1  ;;  %v1616_v59 = vpop.f32.mrb[29].mxu0 }
 0x135   : > { %v1205_v61 = vmax.f32 %v1189_v56, 0.0  ;;  %v1617_v63 = vadd.f32 %v1616_v59, %v1615_v57  ;;  %v1656_v1 = vpop.f32.mrb[29].mxu1  ;;  %v1618_v3 = vpop.f32.mrb[30].mxu0 }
 0x136   : > { %v1657_v4 = vadd.f32 %v1656_v1, %v1655_v58  ;;  %v1658_v46 = vpop.f32.mrb[30].mxu1  ;;  %v1619_v5 = vpop.f32.mrb[31].mxu0 }
 0x137   : > { %v1491_v6 = vpack.c.bf16 %v1205_v61, %v1204_v60  ;;  %v1129_v7 = vadd.f32 %v1617_v63, %v2059_v62  ;;  %v1620_v8 = vadd.f32 %v1619_v5, %v1618_v3  ;;  %v1659_v9 = vpop.f32.mrb[31].mxu1 }
 0x138   : > { %v1660_v48 = vadd.f32 %v1659_v9, %v1658_v46 }
 0x139   : > { %1499 = vst [vmem:[%s2068_s17 + $0x10] sm:$0xff] %v1491_v6   ;;  %v1194_v10 = vadd.f32 %v1657_v4, %v1129_v7  ;;  %v1132_v11 = vadd.f32 %v1620_v8, %v2061_v0 }
 0x13b   : > { %v1197_v12 = vadd.f32 %v1660_v48, %v1132_v11  ;;  %v1206_v13 = vmax.f32 %v1194_v10, 0.0 }
 0x13d   : > { %v1207_v15 = vmax.f32 %v1197_v12, 0.0 }
 0x13f   : > { %v1496_v17 = vpack.c.bf16 %v1207_v15, %v1206_v13 }
 0x141   : > { %1500 = vst [vmem:[%s2068_s17 + $0x18] sm:$0xff] %v1496_v17  }
 0x142 PF: > { %s13_s14 = sadd.s32 1, %s1771_s14   ;;  %s2093_s12 = smov %s1767_s13 }
 0x143   : > { %p10_p5 = scmp.ge.s32.totalorder %s13_s14, 4   ;;  %s2094_s13 = smov %s2096_s15 }
 0x145   :  { %12 = sbr.rel (!%p10_p5) target bundleno = 2 (0x2), region = 68 }

// kernel: autoencoder_forward.9
= control target key start
LH: loop header
LB: loop body
LE: loop exit
PB: predicated region body
PF: predicated region fallthrough
CT: control target
= control target key end

     0   :  { %s3137_s12 = smov 0   ;;  %s3139_s13 = smov 0   ;;  %s4014_s0 = inlined_call_operand.vmem [shape: bf16[32,2048], index: 0, kind: input, shape index: {}]   ;;  %s4015_s1 = inlined_call_operand.vmem [shape: bf16[2048,256], index: 1, kind: input, shape index: {}]   ;;  %s4016_s2 = inlined_call_operand.vmem [shape: f32[1,256], index: 2, kind: input, shape index: {}]   ;;  %s4017_s3 = inlined_call_operand.vmem [shape: bf16[32,256], index: 3, kind: output, shape index: {}]  }
   0x1   :  { %s3141_s14 = smov 0  }
   0x2 LB: > { %s25_s15 = sadd.s32 1, %s3111_s13  ;;  %p2366_p0 = scmp.ge.s32.totalorder %s3115_s14, 1  ;;  %s3115_s14 = sphi %s3141_s14, %s13_s14   ;;  %s3111_s13 = sphi %s3139_s13, %s4019_s13   ;;  %s3107_s12 = sphi %s3137_s12, %s4018_s12  }
   0x3   : > { %p27_p1 = scmp.ge.s32.totalorder %s25_s15, 2  ;;  %p174_p2 = scmp.lt.s32.totalorder %s3115_s14, 3 }
   0x5   : > { %s4021_s15 = smov (%p27_p1, %s25_s15), 0  ;;  %p175_p3 = pnand %p2366_p0, %p174_p2 }
   0x6   : > { %v2709_v0 = vld [vmem:[%s4015_s1 + $0x4] ss:$8 sps:$4 sm:$0xff] (!%p175_p3)   ;;  %v2713_v2 = vld [vmem:[%s4015_s1] ss:$8 sps:$4 sm:$0xff] (!%p175_p3)   ;;  %v2715_v4 = vld [vmem:[%s4015_s1 + $0x14] ss:$8 sps:$4 sm:$0xff] (!%p175_p3)  }
   0x7   : > { %178 = sbr.rel (%p175_p3) target bundleno = 487 (0x1e7), region = 32  ;;  %v2711_v1 = vld [vmem:[%s4015_s1 + $0x404] ss:$8 sps:$4 sm:$0xff] (!%p175_p3)   ;;  %1887 = vmatprep.subr.bf16.mxu1 (!%p175_p3), %v2709_v0  ;;  %v2714_v3 = vld [vmem:[%s4015_s1 + $0x400] ss:$8 sps:$4 sm:$0xff] (!%p175_p3)   ;;  %s2367_s30 = sshll.u32 (!%p175_p3), %s3107_s12, 1 }
   0x8   : > { %2059 = vmatprep.subr.bf16.mxu0 (!%p175_p3), %v2711_v1  ;;  %1888 = vmatpush1.bf16.msra.mxu1 (!%p175_p3), %v2713_v2  ;;  %v2717_v5 = vld [vmem:[%s4015_s1 + $0x414] ss:$8 sps:$4 sm:$0xff] (!%p175_p3)   ;;  %v2719_v6 = vld [vmem:[%s4015_s1 + $0x10] ss:$8 sps:$4 sm:$0xff] (!%p175_p3)   ;;  %v2721_v8 = vld [vmem:[%s4015_s1 + $0x24] ss:$8 sps:$4 sm:$0xff] (!%p175_p3)  }
   0x9   : > { %2060 = vmatpush1.bf16.msra.mxu0 (!%p175_p3), %v2714_v3  ;;  %1889 = vmatprep.subr.bf16.mxu1 (!%p175_p3), %v2715_v4  ;;  %v2720_v7 = vld [vmem:[%s4015_s1 + $0x410] ss:$8 sps:$4 sm:$0xff] (!%p175_p3)   ;;  %v2723_v9 = vld [vmem:[%s4015_s1 + $0x424] ss:$8 sps:$4 sm:$0xff] (!%p175_p3)   ;;  %v2725_v10 = vld [vmem:[%s4015_s1 + $0x20] ss:$8 sps:$4 sm:$0xff] (!%p175_p3)  }
   0xa   : > { %2061 = vmatprep.subr.bf16.mxu0 (!%p175_p3), %v2717_v5  ;;  %v2726_v11 = vld [vmem:[%s4015_s1 + $0x420] ss:$8 sps:$4 sm:$0xff] (!%p175_p3)   ;;  %v2727_v12 = vld [vmem:[%s4015_s1 + $0x34] ss:$8 sps:$4 sm:$0xff] (!%p175_p3)   ;;  %v2731_v14 = vld [vmem:[%s4015_s1 + $0x30] ss:$8 sps:$4 sm:$0xff] (!%p175_p3)  }
   0xb   : > { %v2729_v13 = vld [vmem:[%s4015_s1 + $0x434] ss:$8 sps:$4 sm:$0xff] (!%p175_p3)   ;;  %v2732_v15 = vld [vmem:[%s4015_s1 + $0x430] ss:$8 sps:$4 sm:$0xff] (!%p175_p3)   ;;  %v2733_v16 = vld [vmem:[%s4015_s1 + $0x44] ss:$8 sps:$4 sm:$0xff] (!%p175_p3)  }
   0xc   : > { %1890 = vmatpush1.bf16.msra.mxu1 (!%p175_p3), %v2719_v6  ;;  %v2735_v17 = vld [vmem:[%s4015_s1 + $0x444] ss:$8 sps:$4 sm:$0xff] (!%p175_p3)   ;;  %v2737_v18 = vld [vmem:[%s4015_s1 + $0x40] ss:$8 sps:$4 sm:$0xff] (!%p175_p3)   ;;  %v2739_v20 = vld [vmem:[%s4015_s1 + $0x54] ss:$8 sps:$4 sm:$0xff] (!%p175_p3)  }
   0xd   : > { %2062 = vmatpush1.bf16.msra.mxu0 (!%p175_p3), %v2720_v7  ;;  %1891 = vmatprep.subr.bf16.mxu1 (!%p175_p3), %v2721_v8  ;;  %v2738_v19 = vld [vmem:[%s4015_s1 + $0x440] ss:$8 sps:$4 sm:$0xff] (!%p175_p3)   ;;  %v2741_v21 = vld [vmem:[%s4015_s1 + $0x454] ss:$8 sps:$4 sm:$0xff] (!%p175_p3)   ;;  %v2743_v22 = vld [vmem:[%s4015_s1 + $0x50] ss:$8 sps:$4 sm:$0xff] (!%p175_p3)  }
   0xe   : > { %2063 = vmatprep.subr.bf16.mxu0 %v2723_v9  ;;  %v2744_v23 = vld [vmem:[%s4015_s1 + $0x450] ss:$8 sps:$4 sm:$0xff]   ;;  %v2745_v24 = vld [vmem:[%s4015_s1 + $0x64] ss:$8 sps:$4 sm:$0xff]   ;;  %v2749_v26 = vld [vmem:[%s4015_s1 + $0x60] ss:$8 sps:$4 sm:$0xff]  }
   0xf   : > { %v2747_v25 = vld [vmem:[%s4015_s1 + $0x464] ss:$8 sps:$4 sm:$0xff]   ;;  %v2750_v27 = vld [vmem:[%s4015_s1 + $0x460] ss:$8 sps:$4 sm:$0xff]   ;;  %v2751_v28 = vld [vmem:[%s4015_s1 + $0x74] ss:$8 sps:$4 sm:$0xff]  }
  0x10   : > { %1892 = vmatpush1.bf16.msra.mxu1 %v2725_v10  ;;  %v2753_v29 = vld [vmem:[%s4015_s1 + $0x474] ss:$8 sps:$4 sm:$0xff]   ;;  %v2755_v30 = vld [vmem:[%s4015_s1 + $0x70] ss:$8 sps:$4 sm:$0xff]   ;;  %v2757_v32 = vld [vmem:[%s4015_s1 + $0x84] ss:$8 sps:$4 sm:$0xff]  }
  0x11   : > { %2064 = vmatpush1.bf16.msra.mxu0 %v2726_v11  ;;  %1893 = vmatprep.subr.bf16.mxu1 %v2727_v12  ;;  %v2756_v31 = vld [vmem:[%s4015_s1 + $0x470] ss:$8 sps:$4 sm:$0xff]   ;;  %p214_p4 = scmp.lt.s32.totalorder %s2367_s30, 3  ;;  %v2759_v33 = vld [vmem:[%s4015_s1 + $0x484] ss:$8 sps:$4 sm:$0xff]  }
  0x12   : > { %2065 = vmatprep.subr.bf16.mxu0 %v2729_v13  ;;  %v2761_v34 = vld [vmem:[%s4015_s1 + $0x80] ss:$8 sps:$4 sm:$0xff]   ;;  %v2763_v36 = vld [vmem:[%s4015_s1 + $0x94] ss:$8 sps:$4 sm:$0xff]   ;;  %v2767_v38 = vld [vmem:[%s4015_s1 + $0x90] ss:$8 sps:$4 sm:$0xff]  }
  0x13   : > { %v2762_v35 = vld [vmem:[%s4015_s1 + $0x480] ss:$8 sps:$4 sm:$0xff]   ;;  %s4023_s30 = smov (!%p214_p4, %s2367_s30), 3  ;;  %v2765_v37 = vld [vmem:[%s4015_s1 + $0x494] ss:$8 sps:$4 sm:$0xff]  }
  0x14   : > { %1894 = vmatpush1.bf16.msra.mxu1 %v2731_v14  ;;  %v2768_v39 = vld [vmem:[%s4015_s1 + $0x490] ss:$8 sps:$4 sm:$0xff]   ;;  %v2769_v40 = vld [vmem:[%s4015_s1 + $0xa4] ss:$8 sps:$4 sm:$0xff]   ;;  %s2649_s29 = sshll.u32 %s4023_s30, 6  ;;  %s2650_s18 = sshll.u32 %s4023_s30, 3 }
  0x15   : > { %2066 = vmatpush1.bf16.msra.mxu0 %v2732_v15  ;;  %1895 = vmatprep.subr.bf16.mxu1 %v2733_v16  ;;  %v2771_v41 = vld [vmem:[%s4015_s1 + $0x4a4] ss:$8 sps:$4 sm:$0xff]   ;;  %v2773_v42 = vld [vmem:[%s4015_s1 + $0xa0] ss:$8 sps:$4 sm:$0xff]   ;;  %s3296_s12 = scalar_lea.vmem %s4014_s0, %s2649_s29  ;;  %v2775_v44 = vld [vmem:[%s4015_s1 + $0xb4] ss:$8 sps:$4 sm:$0xff]   ;;  %s240_s21 = scalar_lea.vmem %s4017_s3, %s2650_s18 }
  0x16   : > { %2067 = vmatprep.subr.bf16.mxu0 %v2735_v17  ;;  %v2774_v43 = vld [vmem:[%s4015_s1 + $0x4a0] ss:$8 sps:$4 sm:$0xff]   ;;  %v2777_v45 = vld [vmem:[%s4015_s1 + $0x4b4] ss:$8 sps:$4 sm:$0xff]   ;;  %v2779_v46 = vld [vmem:[%s4015_s1 + $0xb0] ss:$8 sps:$4 sm:$0xff]  }
  0x17   : > { %v2780_v47 = vld [vmem:[%s4015_s1 + $0x4b0] ss:$8 sps:$4 sm:$0xff]   ;;  %v243_v48 = vld [vmem:[%s3296_s12] sm:$0xff]  ;;  %v2787_v58 = vld [vmem:[%s4015_s1 + $0xd4] ss:$8 sps:$4 sm:$0xff]  }
  0x18   : > { %1896 = vmatpush1.bf16.msra.mxu1 %v2737_v18  ;;  %v251_v49 = vld [vmem:[%s3296_s12 + $0x40] sm:$0xff]  ;;  %v2789_v59 = vld [vmem:[%s4015_s1 + $0x4d4] ss:$8 sps:$4 sm:$0xff]   ;;  %v2791_v60 = vld [vmem:[%s4015_s1 + $0xd0] ss:$8 sps:$4 sm:$0xff]  }
  0x19   : > { %2068 = vmatpush1.bf16.msra.mxu0 %v2738_v19  ;;  %1897 = vmatprep.subr.bf16.mxu1 %v2739_v20  ;;  %v2781_v50 = vld [vmem:[%s4015_s1 + $0xc4] ss:$8 sps:$4 sm:$0xff]   ;;  %v2374_v52 = vcombine.high %v243_v48, %v251_v49  ;;  %v2785_v56 = vld [vmem:[%s4015_s1 + $0xc0] ss:$8 sps:$4 sm:$0xff]   ;;  %v2792_v61 = vld [vmem:[%s4015_s1 + $0x4d0] ss:$8 sps:$4 sm:$0xff]   ;;  %v2373_v8 = vcombine.low %v243_v48, %v251_v49 }
  0x1a   : > { %2069 = vmatprep.subr.bf16.mxu0 %v2741_v21  ;;  %v2783_v51 = vld [vmem:[%s4015_s1 + $0x4c4] ss:$8 sps:$4 sm:$0xff]   ;;  %v2786_v57 = vld [vmem:[%s4015_s1 + $0x4c0] ss:$8 sps:$4 sm:$0xff]   ;;  %v2799_v2 = vld [vmem:[%s4015_s1 + $0xf4] ss:$8 sps:$4 sm:$0xff]  }
  0x1b   : > { %v247_v53 = vld [vmem:[%s3296_s12 + $0x20] sm:$0xff]  ;;  %1919 = vmatprep.mubr.bf16.mxu1 %v2374_v52  ;;  %v2801_v3 = vld [vmem:[%s4015_s1 + $0x4f4] ss:$8 sps:$4 sm:$0xff]   ;;  %v2803_v4 = vld [vmem:[%s4015_s1 + $0xf0] ss:$8 sps:$4 sm:$0xff]  }
  0x1c   : > { %1898 = vmatpush1.bf16.msra.mxu1 %v2743_v22  ;;  %v255_v54 = vld [vmem:[%s3296_s12 + $0x60] sm:$0xff]  ;;  %v2804_v5 = vld [vmem:[%s4015_s1 + $0x4f0] ss:$8 sps:$4 sm:$0xff]   ;;  %v2813_v12 = vld [vmem:[%s4015_s1 + $0x114] ss:$8 sps:$4 sm:$0xff]  }
  0x1d   : > { %2070 = vmatpush1.bf16.msra.mxu0 %v2744_v23  ;;  %1899 = vmatprep.subr.bf16.mxu1 %v2745_v24  ;;  %v2382_v55 = vcombine.high %v247_v53, %v255_v54  ;;  %v2793_v62 = vld [vmem:[%s4015_s1 + $0xe4] ss:$8 sps:$4 sm:$0xff]   ;;  %v2797_v0 = vld [vmem:[%s4015_s1 + $0xe0] ss:$8 sps:$4 sm:$0xff]   ;;  %v2381_v10 = vcombine.low %v247_v53, %v255_v54  ;;  %v2816_v13 = vld [vmem:[%s4015_s1 + $0x514] ss:$8 sps:$4 sm:$0xff]  }
  0x1e   : > { %2071 = vmatprep.subr.bf16.mxu0 %v2747_v25  ;;  %v2795_v63 = vld [vmem:[%s4015_s1 + $0x4e4] ss:$8 sps:$4 sm:$0xff]   ;;  %v2798_v1 = vld [vmem:[%s4015_s1 + $0x4e0] ss:$8 sps:$4 sm:$0xff]   ;;  %v2811_v14 = vld [vmem:[%s4015_s1 + $0x110] ss:$8 sps:$4 sm:$0xff]  }
  0x1f   : > { %2091 = vmatprep.mubr.bf16.mxu0 %v2382_v55  ;;  %v2807_v6 = vld [vmem:[%s4015_s1 + $0x104] ss:$8 sps:$4 sm:$0xff]   ;;  %v2805_v9 = vld [vmem:[%s4015_s1 + $0x100] ss:$8 sps:$4 sm:$0xff]   ;;  %v2814_v15 = vld [vmem:[%s4015_s1 + $0x510] ss:$8 sps:$4 sm:$0xff]  }
  0x20   : > { %1900 = vmatpush1.bf16.msra.mxu1 %v2749_v26  ;;  %v2810_v7 = vld [vmem:[%s4015_s1 + $0x504] ss:$8 sps:$4 sm:$0xff]   ;;  %v2808_v11 = vld [vmem:[%s4015_s1 + $0x500] ss:$8 sps:$4 sm:$0xff]   ;;  %v2825_v20 = vld [vmem:[%s4015_s1 + $0x134] ss:$8 sps:$4 sm:$0xff]  }
  0x21   : > { %2072 = vmatpush1.bf16.msra.mxu0 %v2750_v27  ;;  %1901 = vmatprep.subr.bf16.mxu1 %v2751_v28  ;;  %v2819_v16 = vld [vmem:[%s4015_s1 + $0x124] ss:$8 sps:$4 sm:$0xff]   ;;  %v2817_v18 = vld [vmem:[%s4015_s1 + $0x120] ss:$8 sps:$4 sm:$0xff]   ;;  %v2828_v21 = vld [vmem:[%s4015_s1 + $0x534] ss:$8 sps:$4 sm:$0xff]  }
  0x22   : > { %2073 = vmatprep.subr.bf16.mxu0 %v2753_v29  ;;  %v2822_v17 = vld [vmem:[%s4015_s1 + $0x524] ss:$8 sps:$4 sm:$0xff]   ;;  %v2820_v19 = vld [vmem:[%s4015_s1 + $0x520] ss:$8 sps:$4 sm:$0xff]   ;;  %v2823_v22 = vld [vmem:[%s4015_s1 + $0x130] ss:$8 sps:$4 sm:$0xff]  }
  0x23   : > { %v2826_v23 = vld [vmem:[%s4015_s1 + $0x530] ss:$8 sps:$4 sm:$0xff]   ;;  %v2831_v24 = vld [vmem:[%s4015_s1 + $0x144] ss:$8 sps:$4 sm:$0xff]   ;;  %v2829_v26 = vld [vmem:[%s4015_s1 + $0x140] ss:$8 sps:$4 sm:$0xff]  }
  0x24   : > { %1902 = vmatpush1.bf16.msra.mxu1 %v2755_v30  ;;  %v2834_v25 = vld [vmem:[%s4015_s1 + $0x544] ss:$8 sps:$4 sm:$0xff]   ;;  %v2832_v27 = vld [vmem:[%s4015_s1 + $0x540] ss:$8 sps:$4 sm:$0xff]   ;;  %v2837_v28 = vld [vmem:[%s4015_s1 + $0x154] ss:$8 sps:$4 sm:$0xff]  }
  0x25   : > { %2074 = vmatpush1.bf16.msra.mxu0 %v2756_v31  ;;  %1903 = vmatprep.subr.bf16.mxu1 %v2757_v32  ;;  %v2840_v29 = vld [vmem:[%s4015_s1 + $0x554] ss:$8 sps:$4 sm:$0xff]   ;;  %v2835_v30 = vld [vmem:[%s4015_s1 + $0x150] ss:$8 sps:$4 sm:$0xff]   ;;  %v2843_v32 = vld [vmem:[%s4015_s1 + $0x164] ss:$8 sps:$4 sm:$0xff]  }
  0x26   : > { %2075 = vmatprep.subr.bf16.mxu0 %v2759_v33  ;;  %v2838_v31 = vld [vmem:[%s4015_s1 + $0x550] ss:$8 sps:$4 sm:$0xff]   ;;  %v2846_v33 = vld [vmem:[%s4015_s1 + $0x564] ss:$8 sps:$4 sm:$0xff]   ;;  %v2853_v48 = vld [vmem:[%s4015_s1 + $0x180] ss:$8 sps:$4 sm:$0xff]  }
  0x27   : > { %v2856_v49 = vld [vmem:[%s4015_s1 + $0x580] ss:$8 sps:$4 sm:$0xff]   ;;  %v2859_v52 = vld [vmem:[%s4015_s1 + $0x190] ss:$8 sps:$4 sm:$0xff]   ;;  %v2867_v54 = vld [vmem:[%s4015_s1 + $0x1a4] ss:$8 sps:$4 sm:$0xff]  }
  0x28   : > { %1904 = vmatpush1.bf16.msra.mxu1 %v2761_v34  ;;  %v2841_v34 = vld [vmem:[%s4015_s1 + $0x160] ss:$8 sps:$4 sm:$0xff]   ;;  %v2862_v53 = vld [vmem:[%s4015_s1 + $0x590] ss:$8 sps:$4 sm:$0xff]   ;;  %v2870_v55 = vld [vmem:[%s4015_s1 + $0x5a4] ss:$8 sps:$4 sm:$0xff]  }
  0x29   : > { %2076 = vmatpush1.bf16.msra.mxu0 %v2762_v35  ;;  %1905 = vmatprep.subr.bf16.mxu1 %v2763_v36  ;;  %v2844_v35 = vld [vmem:[%s4015_s1 + $0x560] ss:$8 sps:$4 sm:$0xff]  }
  0x2a   : > { %2077 = vmatprep.subr.bf16.mxu0 %v2765_v37  ;;  %v3447_v36 = vld [vmem:[%s3296_s12 + $0x8] sm:$0xff] }
  0x2b   : > { %v3450_v37 = vld [vmem:[%s3296_s12 + $0x48] sm:$0xff] }
  0x2c   : > { %1906 = vmatpush1.bf16.msra.mxu1 %v2767_v38  ;;  %v2849_v38 = vld [vmem:[%s4015_s1 + $0x174] ss:$8 sps:$4 sm:$0xff]  }
  0x2d   : > { %2078 = vmatpush1.bf16.msra.mxu0 %v2768_v39  ;;  %1907 = vmatprep.subr.bf16.mxu1 %v2769_v40  ;;  %v2852_v39 = vld [vmem:[%s4015_s1 + $0x574] ss:$8 sps:$4 sm:$0xff]   ;;  %v2376_v40 = vcombine.high %v3447_v36, %v3450_v37 }
  0x2e   : > { %2079 = vmatprep.subr.bf16.mxu0 %v2771_v41  ;;  %v3461_v41 = vld [vmem:[%s3296_s12 + $0x28] sm:$0xff] }
  0x30   : > { %1908 = vmatpush1.bf16.msra.mxu1 %v2773_v42  ;;  %v3464_v42 = vld [vmem:[%s3296_s12 + $0x68] sm:$0xff] }
  0x31   : > { %2080 = vmatpush1.bf16.msra.mxu0 %v2774_v43  ;;  %1909 = vmatprep.subr.bf16.mxu1 %v2775_v44  ;;  %v2384_v43 = vcombine.high %v3461_v41, %v3464_v42  ;;  %v2847_v44 = vld [vmem:[%s4015_s1 + $0x170] ss:$8 sps:$4 sm:$0xff]  }
  0x32   : > { %2081 = vmatprep.subr.bf16.mxu0 %v2777_v45  ;;  %v2850_v45 = vld [vmem:[%s4015_s1 + $0x570] ss:$8 sps:$4 sm:$0xff]  }
  0x34   : > { %1910 = vmatpush1.bf16.msra.mxu1 %v2779_v46  ;;  %v2855_v46 = vld [vmem:[%s4015_s1 + $0x184] ss:$8 sps:$4 sm:$0xff]  }
  0x35   : > { %2082 = vmatpush1.bf16.msra.mxu0 %v2780_v47  ;;  %1911 = vmatprep.subr.bf16.mxu1 %v2781_v50  ;;  %v2858_v47 = vld [vmem:[%s4015_s1 + $0x584] ss:$8 sps:$4 sm:$0xff]   ;;  %v2861_v50 = vld [vmem:[%s4015_s1 + $0x194] ss:$8 sps:$4 sm:$0xff]  }
  0x36   : > { %2083 = vmatprep.subr.bf16.mxu0 %v2783_v51  ;;  %v2864_v51 = vld [vmem:[%s4015_s1 + $0x594] ss:$8 sps:$4 sm:$0xff]  }
  0x38   : > { %1912 = vmatpush1.bf16.msra.mxu1 %v2785_v56  ;;  %v2865_v56 = vld [vmem:[%s4015_s1 + $0x1a0] ss:$8 sps:$4 sm:$0xff]  }
  0x39   : > { %2084 = vmatpush1.bf16.msra.mxu0 %v2786_v57  ;;  %1913 = vmatprep.subr.bf16.mxu1 %v2787_v58  ;;  %v2868_v57 = vld [vmem:[%s4015_s1 + $0x5a0] ss:$8 sps:$4 sm:$0xff]   ;;  %v2873_v58 = vld [vmem:[%s4015_s1 + $0x1b4] ss:$8 sps:$4 sm:$0xff]  }
  0x3a   : > { %2085 = vmatprep.subr.bf16.mxu0 %v2789_v59  ;;  %v2876_v59 = vld [vmem:[%s4015_s1 + $0x5b4] ss:$8 sps:$4 sm:$0xff]  }
  0x3c   : > { %1914 = vmatpush1.bf16.msra.mxu1 %v2791_v60  ;;  %v2871_v60 = vld [vmem:[%s4015_s1 + $0x1b0] ss:$8 sps:$4 sm:$0xff]  }
  0x3d   : > { %2086 = vmatpush1.bf16.msra.mxu0 %v2792_v61  ;;  %1915 = vmatprep.subr.bf16.mxu1 %v2793_v62  ;;  %v2874_v61 = vld [vmem:[%s4015_s1 + $0x5b0] ss:$8 sps:$4 sm:$0xff]   ;;  %v2879_v62 = vld [vmem:[%s4015_s1 + $0x1c4] ss:$8 sps:$4 sm:$0xff]  }
  0x3e   : > { %2087 = vmatprep.subr.bf16.mxu0 %v2795_v63  ;;  %v2882_v63 = vld [vmem:[%s4015_s1 + $0x5c4] ss:$8 sps:$4 sm:$0xff]  }
  0x40   : > { %1916 = vmatpush1.bf16.msra.mxu1 %v2797_v0  ;;  %v2877_v0 = vld [vmem:[%s4015_s1 + $0x1c0] ss:$8 sps:$4 sm:$0xff]  }
  0x41   : > { %2088 = vmatpush1.bf16.msra.mxu0 %v2798_v1  ;;  %1917 = vmatprep.subr.bf16.mxu1 %v2799_v2  ;;  %v2880_v1 = vld [vmem:[%s4015_s1 + $0x5c0] ss:$8 sps:$4 sm:$0xff]   ;;  %v2885_v2 = vld [vmem:[%s4015_s1 + $0x1d4] ss:$8 sps:$4 sm:$0xff]  }
  0x42   : > { %2089 = vmatprep.subr.bf16.mxu0 %v2801_v3  ;;  %v2888_v3 = vld [vmem:[%s4015_s1 + $0x5d4] ss:$8 sps:$4 sm:$0xff]  }
  0x44   : > { %1918 = vmatpush1.bf16.msra.mxu1 %v2803_v4  ;;  %v2883_v4 = vld [vmem:[%s4015_s1 + $0x1d0] ss:$8 sps:$4 sm:$0xff]  }
  0x45   : > { %2090 = vmatpush1.bf16.msra.mxu0 %v2804_v5  ;;  %1930 = vmatprep.subr.bf16.mxu1 %v2807_v6  ;;  %v2886_v5 = vld [vmem:[%s4015_s1 + $0x5d0] ss:$8 sps:$4 sm:$0xff]   ;;  %v2891_v6 = vld [vmem:[%s4015_s1 + $0x1e4] ss:$8 sps:$4 sm:$0xff]  }
  0x46   : > { %2102 = vmatprep.subr.bf16.mxu0 %v2810_v7  ;;  %v2894_v7 = vld [vmem:[%s4015_s1 + $0x5e4] ss:$8 sps:$4 sm:$0xff]  }
  0x47   : > { %1920 = vmatmul.mubr.bf16.vlgmr.msra.gmra.mrb[0].mxu1 %v2373_v8  ;;  %v2889_v8 = vld [vmem:[%s4015_s1 + $0x1e0] ss:$8 sps:$4 sm:$0xff]  }
  0x48   : > { %2092 = vmatmul.mubr.bf16.vlgmr.msra.gmra.mrb[0].mxu0 %v2381_v10  ;;  %1931 = vmatpush1.bf16.msra.mxu1 %v2805_v9  ;;  %v2892_v9 = vld [vmem:[%s4015_s1 + $0x5e0] ss:$8 sps:$4 sm:$0xff]   ;;  %v2897_v10 = vld [vmem:[%s4015_s1 + $0x1f4] ss:$8 sps:$4 sm:$0xff]  }
  0x49   : > { %2103 = vmatpush1.bf16.msra.mxu0 %v2808_v11  ;;  %1932 = vmatprep.subr.bf16.mxu1 %v2813_v12  ;;  %v2900_v11 = vld [vmem:[%s4015_s1 + $0x5f4] ss:$8 sps:$4 sm:$0xff]   ;;  %v2895_v12 = vld [vmem:[%s4015_s1 + $0x1f0] ss:$8 sps:$4 sm:$0xff]  }
  0x4a   : > { %2104 = vmatprep.subr.bf16.mxu0 %v2816_v13  ;;  %1962 = vmatprep.mubr.bf16.mxu1 %v2376_v40  ;;  %v2898_v13 = vld [vmem:[%s4015_s1 + $0x5f0] ss:$8 sps:$4 sm:$0xff]   ;;  %v2925_v40 = vld [vmem:[%s4015_s1 + $0x240] ss:$8 sps:$4 sm:$0xff]  }
  0x4b   : > { %2134 = vmatprep.mubr.bf16.mxu0 %v2384_v43  ;;  %v2936_v43 = vld [vmem:[%s4015_s1 + $0x654] ss:$8 sps:$4 sm:$0xff]  }
  0x4c   : > { %1933 = vmatpush1.bf16.msra.mxu1 %v2811_v14  ;;  %v2903_v14 = vld [vmem:[%s4015_s1 + $0x204] ss:$8 sps:$4 sm:$0xff]  }
  0x4d   : > { %2105 = vmatpush1.bf16.msra.mxu0 %v2814_v15  ;;  %1934 = vmatprep.subr.bf16.mxu1 %v2819_v16  ;;  %v2906_v15 = vld [vmem:[%s4015_s1 + $0x604] ss:$8 sps:$4 sm:$0xff]   ;;  %v2375_v16 = vcombine.low %v3447_v36, %v3450_v37  ;;  %v2919_v36 = vld [vmem:[%s4015_s1 + $0x230] ss:$8 sps:$4 sm:$0xff]  }
  0x4e   : > { %2106 = vmatprep.subr.bf16.mxu0 %v2822_v17  ;;  %v2901_v17 = vld [vmem:[%s4015_s1 + $0x200] ss:$8 sps:$4 sm:$0xff]   ;;  %v2922_v37 = vld [vmem:[%s4015_s1 + $0x630] ss:$8 sps:$4 sm:$0xff]  }
  0x50   : > { %1935 = vmatpush1.bf16.msra.mxu1 %v2817_v18  ;;  %v2383_v18 = vcombine.low %v3461_v41, %v3464_v42  ;;  %v2928_v41 = vld [vmem:[%s4015_s1 + $0x640] ss:$8 sps:$4 sm:$0xff]   ;;  %v2933_v42 = vld [vmem:[%s4015_s1 + $0x254] ss:$8 sps:$4 sm:$0xff]  }
  0x51   : > { %2107 = vmatpush1.bf16.msra.mxu0 %v2820_v19  ;;  %1936 = vmatprep.subr.bf16.mxu1 %v2825_v20  ;;  %v2904_v19 = vld [vmem:[%s4015_s1 + $0x600] ss:$8 sps:$4 sm:$0xff]   ;;  %v2909_v20 = vld [vmem:[%s4015_s1 + $0x214] ss:$8 sps:$4 sm:$0xff]  }
  0x52   : > { %2108 = vmatprep.subr.bf16.mxu0 %v2828_v21  ;;  %v2912_v21 = vld [vmem:[%s4015_s1 + $0x614] ss:$8 sps:$4 sm:$0xff]  }
  0x54   : > { %1937 = vmatpush1.bf16.msra.mxu1 %v2823_v22  ;;  %v2907_v22 = vld [vmem:[%s4015_s1 + $0x210] ss:$8 sps:$4 sm:$0xff]  }
  0x55   : > { %2109 = vmatpush1.bf16.msra.mxu0 %v2826_v23  ;;  %1938 = vmatprep.subr.bf16.mxu1 %v2831_v24  ;;  %v2910_v23 = vld [vmem:[%s4015_s1 + $0x610] ss:$8 sps:$4 sm:$0xff]  }
  0x56   : > { %2110 = vmatprep.subr.bf16.mxu0 %v2834_v25  ;;  %v3599_v24 = vld [vmem:[%s3296_s12 + $0x10] sm:$0xff] }
  0x57   : > { %v3602_v25 = vld [vmem:[%s3296_s12 + $0x50] sm:$0xff] }
  0x58   : > { %1939 = vmatpush1.bf16.msra.mxu1 %v2829_v26  ;;  %v2915_v26 = vld [vmem:[%s4015_s1 + $0x224] ss:$8 sps:$4 sm:$0xff]  }
  0x59   : > { %2111 = vmatpush1.bf16.msra.mxu0 %v2832_v27  ;;  %1940 = vmatprep.subr.bf16.mxu1 %v2837_v28  ;;  %v2918_v27 = vld [vmem:[%s4015_s1 + $0x624] ss:$8 sps:$4 sm:$0xff]   ;;  %v2378_v28 = vcombine.high %v3599_v24, %v3602_v25 }
  0x5a   : > { %2112 = vmatprep.subr.bf16.mxu0 %v2840_v29  ;;  %v3613_v29 = vld [vmem:[%s3296_s12 + $0x30] sm:$0xff] }
  0x5c   : > { %1941 = vmatpush1.bf16.msra.mxu1 %v2835_v30  ;;  %v3616_v30 = vld [vmem:[%s3296_s12 + $0x70] sm:$0xff] }
  0x5d   : > { %2113 = vmatpush1.bf16.msra.mxu0 %v2838_v31  ;;  %1942 = vmatprep.subr.bf16.mxu1 %v2843_v32  ;;  %v2386_v31 = vcombine.high %v3613_v29, %v3616_v30  ;;  %v2913_v32 = vld [vmem:[%s4015_s1 + $0x220] ss:$8 sps:$4 sm:$0xff]  }
  0x5e   : > { %2114 = vmatprep.subr.bf16.mxu0 %v2846_v33  ;;  %v2916_v33 = vld [vmem:[%s4015_s1 + $0x620] ss:$8 sps:$4 sm:$0xff]  }
  0x60   : > { %1943 = vmatpush1.bf16.msra.mxu1 %v2841_v34  ;;  %v2921_v34 = vld [vmem:[%s4015_s1 + $0x234] ss:$8 sps:$4 sm:$0xff]  }
  0x61   : > { %2115 = vmatpush1.bf16.msra.mxu0 %v2844_v35  ;;  %1944 = vmatprep.subr.bf16.mxu1 %v2849_v38  ;;  %v2924_v35 = vld [vmem:[%s4015_s1 + $0x634] ss:$8 sps:$4 sm:$0xff]   ;;  %v2927_v38 = vld [vmem:[%s4015_s1 + $0x244] ss:$8 sps:$4 sm:$0xff]  }
  0x62   : > { %2116 = vmatprep.subr.bf16.mxu0 %v2852_v39  ;;  %v2930_v39 = vld [vmem:[%s4015_s1 + $0x644] ss:$8 sps:$4 sm:$0xff]  }
  0x64   : > { %1945 = vmatpush1.bf16.msra.mxu1 %v2847_v44  ;;  %v2931_v44 = vld [vmem:[%s4015_s1 + $0x250] ss:$8 sps:$4 sm:$0xff]  }
  0x65   : > { %2117 = vmatpush1.bf16.msra.mxu0 %v2850_v45  ;;  %1946 = vmatprep.subr.bf16.mxu1 %v2855_v46  ;;  %v2934_v45 = vld [vmem:[%s4015_s1 + $0x650] ss:$8 sps:$4 sm:$0xff]   ;;  %v2939_v46 = vld [vmem:[%s4015_s1 + $0x264] ss:$8 sps:$4 sm:$0xff]  }
  0x66   : > { %2118 = vmatprep.subr.bf16.mxu0 %v2858_v47  ;;  %v2942_v47 = vld [vmem:[%s4015_s1 + $0x664] ss:$8 sps:$4 sm:$0xff]  }
  0x68   : > { %1947 = vmatpush1.bf16.msra.mxu1 %v2853_v48  ;;  %v2937_v48 = vld [vmem:[%s4015_s1 + $0x260] ss:$8 sps:$4 sm:$0xff]  }
  0x69   : > { %2119 = vmatpush1.bf16.msra.mxu0 %v2856_v49  ;;  %1948 = vmatprep.subr.bf16.mxu1 %v2861_v50  ;;  %v2940_v49 = vld [vmem:[%s4015_s1 + $0x660] ss:$8 sps:$4 sm:$0xff]   ;;  %v2945_v50 = vld [vmem:[%s4015_s1 + $0x274] ss:$8 sps:$4 sm:$0xff]  }
  0x6a   : > { %2120 = vmatprep.subr.bf16.mxu0 %v2864_v51  ;;  %v2948_v51 = vld [vmem:[%s4015_s1 + $0x674] ss:$8 sps:$4 sm:$0xff]  }
  0x6c   : > { %1949 = vmatpush1.bf16.msra.mxu1 %v2859_v52  ;;  %v2943_v52 = vld [vmem:[%s4015_s1 + $0x270] ss:$8 sps:$4 sm:$0xff]  }
  0x6d   : > { %2121 = vmatpush1.bf16.msra.mxu0 %v2862_v53  ;;  %1950 = vmatprep.subr.bf16.mxu1 %v2867_v54  ;;  %v2946_v53 = vld [vmem:[%s4015_s1 + $0x670] ss:$8 sps:$4 sm:$0xff]   ;;  %v2951_v54 = vld [vmem:[%s4015_s1 + $0x284] ss:$8 sps:$4 sm:$0xff]  }
  0x6e   : > { %2122 = vmatprep.subr.bf16.mxu0 %v2870_v55  ;;  %v2954_v55 = vld [vmem:[%s4015_s1 + $0x684] ss:$8 sps:$4 sm:$0xff]  }
  0x70   : > { %1951 = vmatpush1.bf16.msra.mxu1 %v2865_v56  ;;  %v2949_v56 = vld [vmem:[%s4015_s1 + $0x280] ss:$8 sps:$4 sm:$0xff]  }
  0x71   : > { %2123 = vmatpush1.bf16.msra.mxu0 %v2868_v57  ;;  %1952 = vmatprep.subr.bf16.mxu1 %v2873_v58  ;;  %v2952_v57 = vld [vmem:[%s4015_s1 + $0x680] ss:$8 sps:$4 sm:$0xff]   ;;  %v2957_v58 = vld [vmem:[%s4015_s1 + $0x294] ss:$8 sps:$4 sm:$0xff]  }
  0x72   : > { %2124 = vmatprep.subr.bf16.mxu0 %v2876_v59  ;;  %v2960_v59 = vld [vmem:[%s4015_s1 + $0x694] ss:$8 sps:$4 sm:$0xff]  }
  0x74   : > { %1953 = vmatpush1.bf16.msra.mxu1 %v2871_v60  ;;  %v2955_v60 = vld [vmem:[%s4015_s1 + $0x290] ss:$8 sps:$4 sm:$0xff]  }
  0x75   : > { %2125 = vmatpush1.bf16.msra.mxu0 %v2874_v61  ;;  %1954 = vmatprep.subr.bf16.mxu1 %v2879_v62  ;;  %v2958_v61 = vld [vmem:[%s4015_s1 + $0x690] ss:$8 sps:$4 sm:$0xff]   ;;  %v2963_v62 = vld [vmem:[%s4015_s1 + $0x2a4] ss:$8 sps:$4 sm:$0xff]  }
  0x76   : > { %2126 = vmatprep.subr.bf16.mxu0 %v2882_v63  ;;  %v2966_v63 = vld [vmem:[%s4015_s1 + $0x6a4] ss:$8 sps:$4 sm:$0xff]  }
  0x78   : > { %1955 = vmatpush1.bf16.msra.mxu1 %v2877_v0  ;;  %v2961_v0 = vld [vmem:[%s4015_s1 + $0x2a0] ss:$8 sps:$4 sm:$0xff]  }
  0x79   : > { %2127 = vmatpush1.bf16.msra.mxu0 %v2880_v1  ;;  %1956 = vmatprep.subr.bf16.mxu1 %v2885_v2  ;;  %v2964_v1 = vld [vmem:[%s4015_s1 + $0x6a0] ss:$8 sps:$4 sm:$0xff]   ;;  %v2969_v2 = vld [vmem:[%s4015_s1 + $0x2b4] ss:$8 sps:$4 sm:$0xff]  }
  0x7a   : > { %2128 = vmatprep.subr.bf16.mxu0 %v2888_v3  ;;  %v2972_v3 = vld [vmem:[%s4015_s1 + $0x6b4] ss:$8 sps:$4 sm:$0xff]  }
  0x7c   : > { %1957 = vmatpush1.bf16.msra.mxu1 %v2883_v4  ;;  %v2967_v4 = vld [vmem:[%s4015_s1 + $0x2b0] ss:$8 sps:$4 sm:$0xff]  }
  0x7d   : > { %2129 = vmatpush1.bf16.msra.mxu0 %v2886_v5  ;;  %1958 = vmatprep.subr.bf16.mxu1 %v2891_v6  ;;  %v2970_v5 = vld [vmem:[%s4015_s1 + $0x6b0] ss:$8 sps:$4 sm:$0xff]   ;;  %v2975_v6 = vld [vmem:[%s4015_s1 + $0x2c4] ss:$8 sps:$4 sm:$0xff]  }
  0x7e   : > { %2130 = vmatprep.subr.bf16.mxu0 %v2894_v7  ;;  %v2978_v7 = vld [vmem:[%s4015_s1 + $0x6c4] ss:$8 sps:$4 sm:$0xff]  }
  0x80   : > { %1959 = vmatpush1.bf16.msra.mxu1 %v2889_v8  ;;  %v2973_v8 = vld [vmem:[%s4015_s1 + $0x2c0] ss:$8 sps:$4 sm:$0xff]  }
  0x81   : > { %2131 = vmatpush1.bf16.msra.mxu0 %v2892_v9  ;;  %1960 = vmatprep.subr.bf16.mxu1 %v2897_v10  ;;  %v2976_v9 = vld [vmem:[%s4015_s1 + $0x6c0] ss:$8 sps:$4 sm:$0xff]   ;;  %v2981_v10 = vld [vmem:[%s4015_s1 + $0x2d4] ss:$8 sps:$4 sm:$0xff]  }
  0x82   : > { %2132 = vmatprep.subr.bf16.mxu0 %v2900_v11  ;;  %v2984_v11 = vld [vmem:[%s4015_s1 + $0x6d4] ss:$8 sps:$4 sm:$0xff]  }
  0x84   : > { %1961 = vmatpush1.bf16.msra.mxu1 %v2895_v12  ;;  %v2979_v12 = vld [vmem:[%s4015_s1 + $0x2d0] ss:$8 sps:$4 sm:$0xff]  }
  0x85   : > { %2133 = vmatpush1.bf16.msra.mxu0 %v2898_v13  ;;  %1973 = vmatprep.subr.bf16.mxu1 %v2903_v14  ;;  %v2982_v13 = vld [vmem:[%s4015_s1 + $0x6d0] ss:$8 sps:$4 sm:$0xff]   ;;  %v2987_v14 = vld [vmem:[%s4015_s1 + $0x2e4] ss:$8 sps:$4 sm:$0xff]  }
  0x86   : > { %2145 = vmatprep.subr.bf16.mxu0 %v2906_v15  ;;  %v2990_v15 = vld [vmem:[%s4015_s1 + $0x6e4] ss:$8 sps:$4 sm:$0xff]  }
  0x87   : > { %1963 = vmatmul.mubr.bf16.vlgmr.msra.gmra.mrb[0].mxu1 %v2375_v16  ;;  %v2985_v16 = vld [vmem:[%s4015_s1 + $0x2e0] ss:$8 sps:$4 sm:$0xff]  }
  0x88   : > { %2135 = vmatmul.mubr.bf16.vlgmr.msra.gmra.mrb[0].mxu0 %v2383_v18  ;;  %1974 = vmatpush1.bf16.msra.mxu1 %v2901_v17  ;;  %v2988_v17 = vld [vmem:[%s4015_s1 + $0x6e0] ss:$8 sps:$4 sm:$0xff]   ;;  %v2993_v18 = vld [vmem:[%s4015_s1 + $0x2f4] ss:$8 sps:$4 sm:$0xff]  }
  0x89   : > { %2146 = vmatpush1.bf16.msra.mxu0 %v2904_v19  ;;  %1975 = vmatprep.subr.bf16.mxu1 %v2909_v20  ;;  %v2996_v19 = vld [vmem:[%s4015_s1 + $0x6f4] ss:$8 sps:$4 sm:$0xff]   ;;  %v2991_v20 = vld [vmem:[%s4015_s1 + $0x2f0] ss:$8 sps:$4 sm:$0xff]  }
  0x8a   : > { %2147 = vmatprep.subr.bf16.mxu0 %v2912_v21  ;;  %2005 = vmatprep.mubr.bf16.mxu1 %v2378_v28  ;;  %v2994_v21 = vld [vmem:[%s4015_s1 + $0x6f0] ss:$8 sps:$4 sm:$0xff]   ;;  %v2385_v28 = vcombine.low %v3613_v29, %v3616_v30 }
  0x8b   : > { %2177 = vmatprep.mubr.bf16.mxu0 %v2386_v31  ;;  %v3796_v31 = vld [vmem:[%s3296_s12 + $0x58] sm:$0xff] }
  0x8c   : > { %1976 = vmatpush1.bf16.msra.mxu1 %v2907_v22  ;;  %v2999_v22 = vld [vmem:[%s4015_s1 + $0x304] ss:$8 sps:$4 sm:$0xff]  }
  0x8d   : > { %2148 = vmatpush1.bf16.msra.mxu0 %v2910_v23  ;;  %1977 = vmatprep.subr.bf16.mxu1 %v2915_v26  ;;  %v3002_v23 = vld [vmem:[%s4015_s1 + $0x704] ss:$8 sps:$4 sm:$0xff]   ;;  %v3789_v26 = vld [vmem:[%s3296_s12 + $0x18] sm:$0xff] }
  0x8e   : > { %2149 = vmatprep.subr.bf16.mxu0 %v2918_v27  ;;  %v2377_v27 = vcombine.low %v3599_v24, %v3602_v25  ;;  %v3005_v24 = vld [vmem:[%s4015_s1 + $0x314] ss:$8 sps:$4 sm:$0xff]   ;;  %v2380_v29 = vcombine.high %v3789_v26, %v3796_v31 }
  0x8f   : > { %v3008_v25 = vld [vmem:[%s4015_s1 + $0x714] ss:$8 sps:$4 sm:$0xff]  }
  0x90   : > { %1978 = vmatpush1.bf16.msra.mxu1 %v2913_v32  ;;  %v3799_v32 = vld [vmem:[%s3296_s12 + $0x38] sm:$0xff] }
  0x91   : > { %2150 = vmatpush1.bf16.msra.mxu0 %v2916_v33  ;;  %1979 = vmatprep.subr.bf16.mxu1 %v2921_v34  ;;  %v3802_v33 = vld [vmem:[%s3296_s12 + $0x78] sm:$0xff]  ;;  %v2997_v34 = vld [vmem:[%s4015_s1 + $0x300] ss:$8 sps:$4 sm:$0xff]  }
  0x92   : > { %2151 = vmatprep.subr.bf16.mxu0 %v2924_v35  ;;  %v3000_v35 = vld [vmem:[%s4015_s1 + $0x700] ss:$8 sps:$4 sm:$0xff]   ;;  %v2388_v30 = vcombine.high %v3799_v32, %v3802_v33 }
  0x94   : > { %1980 = vmatpush1.bf16.msra.mxu1 %v2919_v36  ;;  %v3003_v36 = vld [vmem:[%s4015_s1 + $0x310] ss:$8 sps:$4 sm:$0xff]  }
  0x95   : > { %2152 = vmatpush1.bf16.msra.mxu0 %v2922_v37  ;;  %1981 = vmatprep.subr.bf16.mxu1 %v2927_v38  ;;  %v3006_v37 = vld [vmem:[%s4015_s1 + $0x710] ss:$8 sps:$4 sm:$0xff]   ;;  %v3011_v38 = vld [vmem:[%s4015_s1 + $0x324] ss:$8 sps:$4 sm:$0xff]  }
  0x96   : > { %2153 = vmatprep.subr.bf16.mxu0 %v2930_v39  ;;  %v3014_v39 = vld [vmem:[%s4015_s1 + $0x724] ss:$8 sps:$4 sm:$0xff]  }
  0x98   : > { %1982 = vmatpush1.bf16.msra.mxu1 %v2925_v40  ;;  %v3009_v40 = vld [vmem:[%s4015_s1 + $0x320] ss:$8 sps:$4 sm:$0xff]  }
  0x99   : > { %2154 = vmatpush1.bf16.msra.mxu0 %v2928_v41  ;;  %1983 = vmatprep.subr.bf16.mxu1 %v2933_v42  ;;  %v3012_v41 = vld [vmem:[%s4015_s1 + $0x720] ss:$8 sps:$4 sm:$0xff]   ;;  %v3017_v42 = vld [vmem:[%s4015_s1 + $0x334] ss:$8 sps:$4 sm:$0xff]  }
  0x9a   : > { %2155 = vmatprep.subr.bf16.mxu0 %v2936_v43  ;;  %v3020_v43 = vld [vmem:[%s4015_s1 + $0x734] ss:$8 sps:$4 sm:$0xff]  }
  0x9c   : > { %1984 = vmatpush1.bf16.msra.mxu1 %v2931_v44  ;;  %v3015_v44 = vld [vmem:[%s4015_s1 + $0x330] ss:$8 sps:$4 sm:$0xff]  }
  0x9d   : > { %2156 = vmatpush1.bf16.msra.mxu0 %v2934_v45  ;;  %1985 = vmatprep.subr.bf16.mxu1 %v2939_v46  ;;  %v3018_v45 = vld [vmem:[%s4015_s1 + $0x730] ss:$8 sps:$4 sm:$0xff]   ;;  %v3023_v46 = vld [vmem:[%s4015_s1 + $0x344] ss:$8 sps:$4 sm:$0xff]  }
  0x9e   : > { %2157 = vmatprep.subr.bf16.mxu0 %v2942_v47  ;;  %v3026_v47 = vld [vmem:[%s4015_s1 + $0x744] ss:$8 sps:$4 sm:$0xff]  }
  0xa0   : > { %1986 = vmatpush1.bf16.msra.mxu1 %v2937_v48  ;;  %v3021_v48 = vld [vmem:[%s4015_s1 + $0x340] ss:$8 sps:$4 sm:$0xff]  }
  0xa1   : > { %2158 = vmatpush1.bf16.msra.mxu0 %v2940_v49  ;;  %1987 = vmatprep.subr.bf16.mxu1 %v2945_v50  ;;  %v3024_v49 = vld [vmem:[%s4015_s1 + $0x740] ss:$8 sps:$4 sm:$0xff]   ;;  %v3029_v50 = vld [vmem:[%s4015_s1 + $0x354] ss:$8 sps:$4 sm:$0xff]  }
  0xa2   : > { %2159 = vmatprep.subr.bf16.mxu0 %v2948_v51  ;;  %v3032_v51 = vld [vmem:[%s4015_s1 + $0x754] ss:$8 sps:$4 sm:$0xff]  }
  0xa4   : > { %1988 = vmatpush1.bf16.msra.mxu1 %v2943_v52  ;;  %v3027_v52 = vld [vmem:[%s4015_s1 + $0x350] ss:$8 sps:$4 sm:$0xff]  }
  0xa5   : > { %2160 = vmatpush1.bf16.msra.mxu0 %v2946_v53  ;;  %1989 = vmatprep.subr.bf16.mxu1 %v2951_v54  ;;  %v3030_v53 = vld [vmem:[%s4015_s1 + $0x750] ss:$8 sps:$4 sm:$0xff]   ;;  %v3035_v54 = vld [vmem:[%s4015_s1 + $0x364] ss:$8 sps:$4 sm:$0xff]  }
  0xa6   : > { %2161 = vmatprep.subr.bf16.mxu0 %v2954_v55  ;;  %v3038_v55 = vld [vmem:[%s4015_s1 + $0x764] ss:$8 sps:$4 sm:$0xff]  }
  0xa8   : > { %1990 = vmatpush1.bf16.msra.mxu1 %v2949_v56  ;;  %v3033_v56 = vld [vmem:[%s4015_s1 + $0x360] ss:$8 sps:$4 sm:$0xff]  }
  0xa9   : > { %2162 = vmatpush1.bf16.msra.mxu0 %v2952_v57  ;;  %1991 = vmatprep.subr.bf16.mxu1 %v2957_v58  ;;  %v3036_v57 = vld [vmem:[%s4015_s1 + $0x760] ss:$8 sps:$4 sm:$0xff]   ;;  %v3041_v58 = vld [vmem:[%s4015_s1 + $0x374] ss:$8 sps:$4 sm:$0xff]  }
  0xaa   : > { %2163 = vmatprep.subr.bf16.mxu0 %v2960_v59  ;;  %v3044_v59 = vld [vmem:[%s4015_s1 + $0x774] ss:$8 sps:$4 sm:$0xff]  }
  0xac   : > { %1992 = vmatpush1.bf16.msra.mxu1 %v2955_v60  ;;  %v3039_v60 = vld [vmem:[%s4015_s1 + $0x370] ss:$8 sps:$4 sm:$0xff]  }
  0xad   : > { %2164 = vmatpush1.bf16.msra.mxu0 %v2958_v61  ;;  %1993 = vmatprep.subr.bf16.mxu1 %v2963_v62  ;;  %v3042_v61 = vld [vmem:[%s4015_s1 + $0x770] ss:$8 sps:$4 sm:$0xff]   ;;  %v3047_v62 = vld [vmem:[%s4015_s1 + $0x384] ss:$8 sps:$4 sm:$0xff]  }
  0xae   : > { %2165 = vmatprep.subr.bf16.mxu0 %v2966_v63  ;;  %v3050_v63 = vld [vmem:[%s4015_s1 + $0x784] ss:$8 sps:$4 sm:$0xff]  }
  0xb0   : > { %1994 = vmatpush1.bf16.msra.mxu1 %v2961_v0  ;;  %v3045_v0 = vld [vmem:[%s4015_s1 + $0x380] ss:$8 sps:$4 sm:$0xff]  }
  0xb1   : > { %2166 = vmatpush1.bf16.msra.mxu0 %v2964_v1  ;;  %1995 = vmatprep.subr.bf16.mxu1 %v2969_v2  ;;  %v3048_v1 = vld [vmem:[%s4015_s1 + $0x780] ss:$8 sps:$4 sm:$0xff]   ;;  %v3053_v2 = vld [vmem:[%s4015_s1 + $0x394] ss:$8 sps:$4 sm:$0xff]  }
  0xb2   : > { %2167 = vmatprep.subr.bf16.mxu0 %v2972_v3  ;;  %v3056_v3 = vld [vmem:[%s4015_s1 + $0x794] ss:$8 sps:$4 sm:$0xff]  }
  0xb4   : > { %1996 = vmatpush1.bf16.msra.mxu1 %v2967_v4  ;;  %v3051_v4 = vld [vmem:[%s4015_s1 + $0x390] ss:$8 sps:$4 sm:$0xff]  }
  0xb5   : > { %2168 = vmatpush1.bf16.msra.mxu0 %v2970_v5  ;;  %1997 = vmatprep.subr.bf16.mxu1 %v2975_v6  ;;  %v3054_v5 = vld [vmem:[%s4015_s1 + $0x790] ss:$8 sps:$4 sm:$0xff]   ;;  %v3059_v6 = vld [vmem:[%s4015_s1 + $0x3a4] ss:$8 sps:$4 sm:$0xff]  }
  0xb6   : > { %2169 = vmatprep.subr.bf16.mxu0 %v2978_v7  ;;  %v3062_v7 = vld [vmem:[%s4015_s1 + $0x7a4] ss:$8 sps:$4 sm:$0xff]  }
  0xb8   : > { %1998 = vmatpush1.bf16.msra.mxu1 %v2973_v8  ;;  %v3057_v8 = vld [vmem:[%s4015_s1 + $0x3a0] ss:$8 sps:$4 sm:$0xff]  }
  0xb9   : > { %2170 = vmatpush1.bf16.msra.mxu0 %v2976_v9  ;;  %1999 = vmatprep.subr.bf16.mxu1 %v2981_v10  ;;  %v3060_v9 = vld [vmem:[%s4015_s1 + $0x7a0] ss:$8 sps:$4 sm:$0xff]   ;;  %v3065_v10 = vld [vmem:[%s4015_s1 + $0x3b4] ss:$8 sps:$4 sm:$0xff]  }
  0xba   : > { %2171 = vmatprep.subr.bf16.mxu0 %v2984_v11  ;;  %v3068_v11 = vld [vmem:[%s4015_s1 + $0x7b4] ss:$8 sps:$4 sm:$0xff]  }
  0xbc   : > { %2000 = vmatpush1.bf16.msra.mxu1 %v2979_v12  ;;  %v3063_v12 = vld [vmem:[%s4015_s1 + $0x3b0] ss:$8 sps:$4 sm:$0xff]  }
  0xbd   : > { %2172 = vmatpush1.bf16.msra.mxu0 %v2982_v13  ;;  %2001 = vmatprep.subr.bf16.mxu1 %v2987_v14  ;;  %v3066_v13 = vld [vmem:[%s4015_s1 + $0x7b0] ss:$8 sps:$4 sm:$0xff]   ;;  %v3071_v14 = vld [vmem:[%s4015_s1 + $0x3c4] ss:$8 sps:$4 sm:$0xff]  }
  0xbe   : > { %2173 = vmatprep.subr.bf16.mxu0 %v2990_v15  ;;  %v3074_v15 = vld [vmem:[%s4015_s1 + $0x7c4] ss:$8 sps:$4 sm:$0xff]  }
  0xc0   : > { %2002 = vmatpush1.bf16.msra.mxu1 %v2985_v16  ;;  %v3069_v16 = vld [vmem:[%s4015_s1 + $0x3c0] ss:$8 sps:$4 sm:$0xff]  }
  0xc1   : > { %2174 = vmatpush1.bf16.msra.mxu0 %v2988_v17  ;;  %2003 = vmatprep.subr.bf16.mxu1 %v2993_v18  ;;  %v3072_v17 = vld [vmem:[%s4015_s1 + $0x7c0] ss:$8 sps:$4 sm:$0xff]   ;;  %v3077_v18 = vld [vmem:[%s4015_s1 + $0x3d4] ss:$8 sps:$4 sm:$0xff]  }
  0xc2   : > { %2175 = vmatprep.subr.bf16.mxu0 %v2996_v19  ;;  %v3080_v19 = vld [vmem:[%s4015_s1 + $0x7d4] ss:$8 sps:$4 sm:$0xff]  }
  0xc4   : > { %2004 = vmatpush1.bf16.msra.mxu1 %v2991_v20  ;;  %v3075_v20 = vld [vmem:[%s4015_s1 + $0x3d0] ss:$8 sps:$4 sm:$0xff]  }
  0xc5   : > { %2176 = vmatpush1.bf16.msra.mxu0 %v2994_v21  ;;  %2016 = vmatprep.subr.bf16.mxu1 %v2999_v22  ;;  %v3078_v21 = vld [vmem:[%s4015_s1 + $0x7d0] ss:$8 sps:$4 sm:$0xff]   ;;  %v3083_v22 = vld [vmem:[%s4015_s1 + $0x3e4] ss:$8 sps:$4 sm:$0xff]  }
  0xc6   : > { %2188 = vmatprep.subr.bf16.mxu0 %v3002_v23  ;;  %v3086_v23 = vld [vmem:[%s4015_s1 + $0x7e4] ss:$8 sps:$4 sm:$0xff]  }
  0xc7   : > { %2006 = vmatmul.mubr.bf16.vlgmr.msra.gmra.mrb[0].mxu1 %v2377_v27  ;;  %v3081_v27 = vld [vmem:[%s4015_s1 + $0x3e0] ss:$8 sps:$4 sm:$0xff]  }
  0xc8   : > { %2178 = vmatmul.mubr.bf16.vlgmr.msra.gmra.mrb[0].mxu0 %v2385_v28  ;;  %2017 = vmatpush1.bf16.msra.mxu1 %v2997_v34  ;;  %v3084_v28 = vld [vmem:[%s4015_s1 + $0x7e0] ss:$8 sps:$4 sm:$0xff]   ;;  %v3089_v34 = vld [vmem:[%s4015_s1 + $0x3f4] ss:$8 sps:$4 sm:$0xff]  }
  0xc9   : > { %2189 = vmatpush1.bf16.msra.mxu0 %v3000_v35  ;;  %2018 = vmatprep.subr.bf16.mxu1 %v3005_v24  ;;  %v3092_v35 = vld [vmem:[%s4015_s1 + $0x7f4] ss:$8 sps:$4 sm:$0xff]   ;;  %v3087_v24 = vld [vmem:[%s4015_s1 + $0x3f0] ss:$8 sps:$4 sm:$0xff]  }
  0xca   : > { %2190 = vmatprep.subr.bf16.mxu0 %v3008_v25  ;;  %2048 = vmatprep.mubr.bf16.mxu1 %v2380_v29  ;;  %v3090_v25 = vld [vmem:[%s4015_s1 + $0x7f0] ss:$8 sps:$4 sm:$0xff]   ;;  %v2379_v29 = vcombine.low %v3789_v26, %v3796_v31 }
  0xcb   : > { %2220 = vmatprep.mubr.bf16.mxu0 %v2388_v30  ;;  %v2387_v30 = vcombine.low %v3799_v32, %v3802_v33 }
  0xcc   : > { %2019 = vmatpush1.bf16.msra.mxu1 %v3003_v36  ;;  %v517_v36 = vlaneseq }
  0xcd   : > { %2191 = vmatpush1.bf16.msra.mxu0 %v3006_v37  ;;  %2020 = vmatprep.subr.bf16.mxu1 %v3011_v38 }
  0xce   : > { %2192 = vmatprep.subr.bf16.mxu0 %v3014_v39  ;;  %v518_v37 = vshrl.u32 %v517_v36, 7  ;;  %v515_v39 = vld [vmem:[%s4016_s2] sm:$0x3] }
  0xd0   : > { %2021 = vmatpush1.bf16.msra.mxu1 %v3009_v40  ;;  %v519_v38 = vsub.s32 0, %v518_v37  ;;  %v523_v40 = vsub.s32 1, %v518_v37 }
  0xd1   : > { %2193 = vmatpush1.bf16.msra.mxu0 %v3012_v41  ;;  %2022 = vmatprep.subr.bf16.mxu1 %v3017_v42 }
  0xd2   : > { %2194 = vmatprep.subr.bf16.mxu0 %v3020_v43  ;;  %v520_v41 = vrot.slane %v515_v39, %v519_v38  ;;  %v524_v42 = vrot.slane %v515_v39, %v523_v40 }
  0xd4   : > { %2023 = vmatpush1.bf16.msra.mxu1 %v3015_v44 }
  0xd5   : > { %2195 = vmatpush1.bf16.msra.mxu0 %v3018_v45  ;;  %2024 = vmatprep.subr.bf16.mxu1 %v3023_v46 }
  0xd6   : > { %2196 = vmatprep.subr.bf16.mxu0 %v3026_v47 }
  0xd8   : > { %2025 = vmatpush1.bf16.msra.mxu1 %v3021_v48 }
  0xd9   : > { %2197 = vmatpush1.bf16.msra.mxu0 %v3024_v49  ;;  %2026 = vmatprep.subr.bf16.mxu1 %v3029_v50 }
  0xda   : > { %2198 = vmatprep.subr.bf16.mxu0 %v3032_v51 }
  0xdc   : > { %2027 = vmatpush1.bf16.msra.mxu1 %v3027_v52 }
  0xdd   : > { %2199 = vmatpush1.bf16.msra.mxu0 %v3030_v53  ;;  %2028 = vmatprep.subr.bf16.mxu1 %v3035_v54 }
  0xde   : > { %2200 = vmatprep.subr.bf16.mxu0 %v3038_v55 }
  0xe0   : > { %2029 = vmatpush1.bf16.msra.mxu1 %v3033_v56 }
  0xe1   : > { %2201 = vmatpush1.bf16.msra.mxu0 %v3036_v57  ;;  %2030 = vmatprep.subr.bf16.mxu1 %v3041_v58 }
  0xe2   : > { %2202 = vmatprep.subr.bf16.mxu0 %v3044_v59 }
  0xe4   : > { %2031 = vmatpush1.bf16.msra.mxu1 %v3039_v60 }
  0xe5   : > { %2203 = vmatpush1.bf16.msra.mxu0 %v3042_v61  ;;  %2032 = vmatprep.subr.bf16.mxu1 %v3047_v62 }
  0xe6   : > { %2204 = vmatprep.subr.bf16.mxu0 %v3050_v63 }
  0xe8   : > { %2033 = vmatpush1.bf16.msra.mxu1 %v3045_v0 }
  0xe9   : > { %2205 = vmatpush1.bf16.msra.mxu0 %v3048_v1  ;;  %2034 = vmatprep.subr.bf16.mxu1 %v3053_v2 }
  0xea   : > { %2206 = vmatprep.subr.bf16.mxu0 %v3056_v3 }
  0xec   : > { %2035 = vmatpush1.bf16.msra.mxu1 %v3051_v4 }
  0xed   : > { %2207 = vmatpush1.bf16.msra.mxu0 %v3054_v5  ;;  %2036 = vmatprep.subr.bf16.mxu1 %v3059_v6 }
  0xee   : > { %2208 = vmatprep.subr.bf16.mxu0 %v3062_v7 }
  0xf0   : > { %2037 = vmatpush1.bf16.msra.mxu1 %v3057_v8 }
  0xf1   : > { %2209 = vmatpush1.bf16.msra.mxu0 %v3060_v9  ;;  %2038 = vmatprep.subr.bf16.mxu1 %v3065_v10 }
  0xf2   : > { %2210 = vmatprep.subr.bf16.mxu0 %v3068_v11 }
  0xf4   : > { %2039 = vmatpush1.bf16.msra.mxu1 %v3063_v12 }
  0xf5   : > { %2211 = vmatpush1.bf16.msra.mxu0 %v3066_v13  ;;  %2040 = vmatprep.subr.bf16.mxu1 %v3071_v14 }
  0xf6   : > { %2212 = vmatprep.subr.bf16.mxu0 %v3074_v15 }
  0xf8   : > { %2041 = vmatpush1.bf16.msra.mxu1 %v3069_v16 }
  0xf9   : > { %2213 = vmatpush1.bf16.msra.mxu0 %v3072_v17  ;;  %2042 = vmatprep.subr.bf16.mxu1 %v3077_v18 }
  0xfa   : > { %2214 = vmatprep.subr.bf16.mxu0 %v3080_v19 }
  0xfc   : > { %2043 = vmatpush1.bf16.msra.mxu1 %v3075_v20 }
  0xfd   : > { %2215 = vmatpush1.bf16.msra.mxu0 %v3078_v21  ;;  %2044 = vmatprep.subr.bf16.mxu1 %v3083_v22 }
  0xfe   : > { %2216 = vmatprep.subr.bf16.mxu0 %v3086_v23 }
 0x100   : > { %2045 = vmatpush1.bf16.msra.mxu1 %v3081_v27 }
 0x101   : > { %2217 = vmatpush1.bf16.msra.mxu0 %v3084_v28  ;;  %2046 = vmatprep.subr.bf16.mxu1 %v3089_v34 }
 0x102   : > { %2218 = vmatprep.subr.bf16.mxu0 %v3092_v35 }
 0x104   : > { %2047 = vmatpush1.bf16.msra.mxu1 %v3087_v24 }
 0x105   : > { %2219 = vmatpush1.bf16.msra.mxu0 %v3090_v25 }
 0x107   : > { %2049 = vmatmul.mubr.bf16.vlgmr.msra.gmra.mrb[0].mxu1 %v2379_v29 }
 0x108   : > { %2221 = vmatmul.mubr.bf16.vlgmr.msra.gmra.mrb[0].mxu0 %v2387_v30 }
 0x1da   : > { %v2050_v43 = vpop.f32.mrb[0].mxu1 }
 0x1db   : > { %v2222_v26 = vpop.f32.mrb[0].mxu0  ;;  %v2653_v31 = vadd.f32 %v2050_v43, %v520_v41  ;;  %v2052_v44 = vpop.f32.mrb[1].mxu1 }
 0x1dc   : > { %v2224_v32 = vpop.f32.mrb[1].mxu0  ;;  %v2655_v33 = vadd.f32 %v2052_v44, %v524_v42  ;;  %v2054_v45 = vpop.f32.mrb[2].mxu1 }
 0x1dd   : > { %v2226_v46 = vpop.f32.mrb[2].mxu0  ;;  %v2654_v47 = vadd.f32 %v2653_v31, %v2222_v26  ;;  %v2657_v48 = vadd.f32 %v2054_v45, %v520_v41  ;;  %v2056_v49 = vpop.f32.mrb[3].mxu1 }
 0x1de   : > { %v2228_v50 = vpop.f32.mrb[3].mxu0  ;;  %v2656_v51 = vadd.f32 %v2655_v33, %v2224_v32  ;;  %v2659_v52 = vadd.f32 %v2056_v49, %v524_v42 }
 0x1df   : > { %v2231_v53 = vmax.f32 %v2654_v47, 0.0  ;;  %v2658_v54 = vadd.f32 %v2657_v48, %v2226_v46 }
 0x1e0   : > { %v2232_v55 = vmax.f32 %v2656_v51, 0.0  ;;  %v2660_v56 = vadd.f32 %v2659_v52, %v2228_v50 }
 0x1e1   : > { %v2233_v57 = vmax.f32 %v2658_v54, 0.0 }
 0x1e2   : > { %v2651_v58 = vpack.c.bf16 %v2232_v55, %v2231_v53  ;;  %v2234_v59 = vmax.f32 %v2660_v56, 0.0 }
 0x1e4   : > { %2247 = vst [vmem:[%s240_s21] sm:$0xff] %v2651_v58  ;;  %v2652_v60 = vpack.c.bf16 %v2234_v59, %v2233_v57 }
 0x1e6   : > { %2248 = vst [vmem:[%s240_s21 + $0x8] sm:$0xff] %v2652_v60 }
 0x1e7 PF: > { %s13_s14 = sadd.s32 1, %s3115_s14   ;;  %s4018_s12 = smov %s3111_s13 }
 0x1e8   : > { %p10_p5 = scmp.ge.s32.totalorder %s13_s14, 4   ;;  %s4019_s13 = smov %s4021_s15 }
 0x1ea   :  { %12 = sbr.rel (!%p10_p5) target bundleno = 2 (0x2), region = 68 }

// kernel: autoencoder_forward.10
= control target key start
LH: loop header
LB: loop body
LE: loop exit
PB: predicated region body
PF: predicated region fallthrough
CT: control target
= control target key end

     0   :  { %v555_v28 = vlaneseq  ;;  %v6803_v36 = vmov 1966171168   ;;  %s8626_s0 = inlined_call_operand.vmem [shape: bf16[2,4096], index: 0, kind: input, shape index: {}]   ;;  %s8627_s1 = inlined_call_operand.vmem [shape: bf16[4096,128], index: 1, kind: input, shape index: {}]   ;;  %s8628_s2 = inlined_call_operand.vmem [shape: f32[1,128], index: 2, kind: input, shape index: {}]   ;;  %s8629_s3 = inlined_call_operand.vmem [shape: bf16[128,4096], index: 3, kind: input, shape index: {}]   ;;  %s8630_s4 = inlined_call_operand.vmem [shape: f32[1,4096], index: 4, kind: input, shape index: {}]   ;;  %s8631_s5 = inlined_call_operand.hbm [shape: f32[2,128], index: 5, kind: output, shape index: {0}]   ;;  %s8632_s6 = inlined_call_operand.vmem [shape: bf16[2,4096], index: 6, kind: output, shape index: {1}]  }
   0x1   :  { %v6519_v0 = vld [vmem:[%s8627_s1 + $0x40] sm:$0xff]   ;;  %v6523_v4 = vld [vmem:[%s8627_s1 + $0x48] sm:$0xff]   ;;  %v6527_v8 = vld [vmem:[%s8627_s1 + $0x50] sm:$0xff]   ;;  %v553_v37 = vunpack.c.l.s4 %v6803_v36 }
   0x2   :  { %v6520_v1 = vld [vmem:[%s8627_s1 + $0xc0] sm:$0xff]   ;;  %6164 = vmatprep.subr.bf16.mxu0 %v6519_v0  ;;  %v6524_v5 = vld [vmem:[%s8627_s1 + $0xc8] sm:$0xff]   ;;  %v6528_v9 = vld [vmem:[%s8627_s1 + $0xd0] sm:$0xff]   ;;  %v6937_v33 = vshrl.u32 %v555_v28, 7 }
   0x3   :  { %v6521_v2 = vld [vmem:[%s8627_s1] sm:$0xff]   ;;  %6186 = vmatprep.subr.bf16.mxu1 %v6520_v1  ;;  %v6525_v6 = vld [vmem:[%s8627_s1 + $0x8] sm:$0xff]   ;;  %v6529_v10 = vld [vmem:[%s8627_s1 + $0x10] sm:$0xff]   ;;  %v554_v40 = vunpack.c.0.s8 %v553_v37 }
   0x4   :  { %v6522_v3 = vld [vmem:[%s8627_s1 + $0x80] sm:$0xff]   ;;  %6165 = vmatpush3.bf16.msra.mxu0 %v6521_v2  ;;  %v6526_v7 = vld [vmem:[%s8627_s1 + $0x88] sm:$0xff]   ;;  %v6530_v11 = vld [vmem:[%s8627_s1 + $0x90] sm:$0xff]  }
   0x5   :  { %6187 = vmatpush3.bf16.msra.mxu1 %v6522_v3  ;;  %6166 = vmatprep.subr.bf16.mxu0 %v6523_v4  ;;  %v6531_v12 = vld [vmem:[%s8627_s1 + $0x58] sm:$0xff]   ;;  %v6535_v16 = vld [vmem:[%s8627_s1 + $0x60] sm:$0xff]   ;;  %v6539_v20 = vld [vmem:[%s8627_s1 + $0x68] sm:$0xff]   ;;  %v6949_v41 = vsub.s32 %v554_v40, %v6937_v33 }
   0x6   :  { %6188 = vmatprep.subr.bf16.mxu1 %v6524_v5  ;;  %v6532_v13 = vld [vmem:[%s8627_s1 + $0xd8] sm:$0xff]   ;;  %v6536_v17 = vld [vmem:[%s8627_s1 + $0xe0] sm:$0xff]   ;;  %v6540_v21 = vld [vmem:[%s8627_s1 + $0xe8] sm:$0xff]  }
   0x7   :  { %v6533_v14 = vld [vmem:[%s8627_s1 + $0x18] sm:$0xff]   ;;  %v6537_v18 = vld [vmem:[%s8627_s1 + $0x20] sm:$0xff]   ;;  %v6541_v22 = vld [vmem:[%s8627_s1 + $0x28] sm:$0xff]  }
   0x8   :  { %6167 = vmatpush3.bf16.msra.mxu0 %v6525_v6  ;;  %v6534_v15 = vld [vmem:[%s8627_s1 + $0x98] sm:$0xff]   ;;  %v6538_v19 = vld [vmem:[%s8627_s1 + $0xa0] sm:$0xff]   ;;  %v6542_v23 = vld [vmem:[%s8627_s1 + $0xa8] sm:$0xff]  }
   0x9   :  { %6189 = vmatpush3.bf16.msra.mxu1 %v6526_v7  ;;  %6168 = vmatprep.subr.bf16.mxu0 %v6527_v8  ;;  %v6543_v24 = vld [vmem:[%s8627_s1 + $0x70] sm:$0xff]   ;;  %v6547_v29 = vld [vmem:[%s8627_s1 + $0x78] sm:$0xff]   ;;  %v24_v34 = vld [vmem:[%s8626_s0] sm:$0xff] }
   0xa   :  { %6190 = vmatprep.subr.bf16.mxu1 %v6528_v9  ;;  %v6544_v25 = vld [vmem:[%s8627_s1 + $0xf0] sm:$0xff]   ;;  %v6548_v30 = vld [vmem:[%s8627_s1 + $0xf8] sm:$0xff]   ;;  %v6552_v35 = vld [vmem:[%s8627_s1 + $0x140] sm:$0xff]   ;;  %v551_v39 = vcombine.high %v24_v34, %v24_v34  ;;  %v558_v42 = vrot.slane %v24_v34, %v6949_v41 }
   0xb   :  { %v6545_v26 = vld [vmem:[%s8627_s1 + $0x30] sm:$0xff]   ;;  %v6549_v31 = vld [vmem:[%s8627_s1 + $0x38] sm:$0xff]   ;;  %v6553_v38 = vld [vmem:[%s8627_s1 + $0x1c0] sm:$0xff]  }
   0xc   :  { %6169 = vmatpush3.bf16.msra.mxu0 %v6529_v10  ;;  %v6546_v27 = vld [vmem:[%s8627_s1 + $0xb0] sm:$0xff]   ;;  %v6550_v32 = vld [vmem:[%s8627_s1 + $0xb8] sm:$0xff]   ;;  %v6953_v43 = vrot.slane %v551_v39, %v6949_v41  ;;  %v566_v44 = vcombine.high %v558_v42, %v558_v42  ;;  %v574_v45 = vrot.slane %v558_v42, %v6949_v41  ;;  %v6554_v47 = vld [vmem:[%s8627_s1 + $0x100] sm:$0xff]  }
   0xd   :  { %6191 = vmatpush3.bf16.msra.mxu1 %v6530_v11  ;;  %6170 = vmatprep.subr.bf16.mxu0 %v6531_v12  ;;  %v6555_v49 = vld [vmem:[%s8627_s1 + $0x180] sm:$0xff]   ;;  %v6556_v52 = vld [vmem:[%s8627_s1 + $0x148] sm:$0xff]   ;;  %v6560_v58 = vld [vmem:[%s8627_s1 + $0x150] sm:$0xff]  }
   0xe   :  { %6192 = vmatprep.subr.bf16.mxu1 %v6532_v13  ;;  %v567_v46 = vcombine.high %v6953_v43, %v6953_v43  ;;  %v588_v48 = vrot.slane %v566_v44, %v6949_v41  ;;  %v596_v51 = vcombine.high %v574_v45, %v574_v45  ;;  %v6557_v54 = vld [vmem:[%s8627_s1 + $0x1c8] sm:$0xff]   ;;  %v6561_v59 = vld [vmem:[%s8627_s1 + $0x1d0] sm:$0xff]   ;;  %v6564_v62 = vld [vmem:[%s8627_s1 + $0x158] sm:$0xff]  }
   0xf   :  { %v6558_v55 = vld [vmem:[%s8627_s1 + $0x108] sm:$0xff]   ;;  %v6562_v60 = vld [vmem:[%s8627_s1 + $0x110] sm:$0xff]   ;;  %v6565_v63 = vld [vmem:[%s8627_s1 + $0x1d8] sm:$0xff]  }
  0x10   :  { %6171 = vmatpush3.bf16.msra.mxu0 %v6533_v14  ;;  %v595_v50 = vrot.slane %v567_v46, %v6949_v41  ;;  %2347 = vmatprep.mubr.bf16.mxu0 %v588_v48  ;;  %v598_v53 = vcombine.high %v588_v48, %v588_v48  ;;  %v6559_v57 = vld [vmem:[%s8627_s1 + $0x188] sm:$0xff]   ;;  %v6563_v61 = vld [vmem:[%s8627_s1 + $0x190] sm:$0xff]   ;;  %v6566_v0 = vld [vmem:[%s8627_s1 + $0x118] sm:$0xff]  }
  0x11   :  { %6193 = vmatpush3.bf16.msra.mxu1 %v6534_v15  ;;  %6172 = vmatprep.subr.bf16.mxu0 %v6535_v16  ;;  %v6567_v1 = vld [vmem:[%s8627_s1 + $0x198] sm:$0xff]   ;;  %v6568_v2 = vld [vmem:[%s8627_s1 + $0x160] sm:$0xff]   ;;  %v6572_v6 = vld [vmem:[%s8627_s1 + $0x168] sm:$0xff]  }
  0x12   :  { %6194 = vmatprep.subr.bf16.mxu1 %v6536_v17  ;;  %v599_v56 = vcombine.high %v595_v50, %v595_v50  ;;  %2387 = vmatprep.mubr.bf16.mxu1 %v598_v53  ;;  %v6569_v3 = vld [vmem:[%s8627_s1 + $0x1e0] sm:$0xff]   ;;  %v6573_v7 = vld [vmem:[%s8627_s1 + $0x1e8] sm:$0xff]   ;;  %v6576_v10 = vld [vmem:[%s8627_s1 + $0x170] sm:$0xff]  }
  0x13   :  { %v6570_v4 = vld [vmem:[%s8627_s1 + $0x120] sm:$0xff]   ;;  %v6574_v8 = vld [vmem:[%s8627_s1 + $0x128] sm:$0xff]   ;;  %v6577_v11 = vld [vmem:[%s8627_s1 + $0x1f0] sm:$0xff]  }
  0x14   :  { %6173 = vmatpush3.bf16.msra.mxu0 %v6537_v18  ;;  %v6571_v5 = vld [vmem:[%s8627_s1 + $0x1a0] sm:$0xff]   ;;  %v6575_v9 = vld [vmem:[%s8627_s1 + $0x1a8] sm:$0xff]   ;;  %v6578_v12 = vld [vmem:[%s8627_s1 + $0x130] sm:$0xff]   ;;  %v581_v18 = vrot.slane %v6953_v43, %v6949_v41 }
  0x15   :  { %6195 = vmatpush3.bf16.msra.mxu1 %v6538_v19  ;;  %6174 = vmatprep.subr.bf16.mxu0 %v6539_v20  ;;  %v6579_v13 = vld [vmem:[%s8627_s1 + $0x1b0] sm:$0xff]   ;;  %v6580_v14 = vld [vmem:[%s8627_s1 + $0x178] sm:$0xff]   ;;  %v6584_v19 = vld [vmem:[%s8627_s1 + $0x240] sm:$0xff]  }
  0x16   :  { %6196 = vmatprep.subr.bf16.mxu1 %v6540_v21  ;;  %v6581_v15 = vld [vmem:[%s8627_s1 + $0x1f8] sm:$0xff]   ;;  %v6585_v20 = vld [vmem:[%s8627_s1 + $0x2c0] sm:$0xff]   ;;  %v6592_v28 = vld [vmem:[%s8627_s1 + $0x250] sm:$0xff]  }
  0x17   :  { %v6582_v16 = vld [vmem:[%s8627_s1 + $0x138] sm:$0xff]   ;;  %v6586_v21 = vld [vmem:[%s8627_s1 + $0x200] sm:$0xff]   ;;  %v6604_v42 = vld [vmem:[%s8627_s1 + $0x268] sm:$0xff]  }
  0x18   :  { %6175 = vmatpush3.bf16.msra.mxu0 %v6541_v22  ;;  %v6583_v17 = vld [vmem:[%s8627_s1 + $0x1b8] sm:$0xff]   ;;  %v6587_v22 = vld [vmem:[%s8627_s1 + $0x280] sm:$0xff]   ;;  %v6605_v43 = vld [vmem:[%s8627_s1 + $0x2e8] sm:$0xff]  }
  0x19   :  { %6197 = vmatpush3.bf16.msra.mxu1 %v6542_v23  ;;  %6176 = vmatprep.subr.bf16.mxu0 %v6543_v24  ;;  %v597_v23 = vcombine.high %v581_v18, %v581_v18  ;;  %v6588_v24 = vld [vmem:[%s8627_s1 + $0x248] sm:$0xff]   ;;  %v6597_v34 = vld [vmem:[%s8627_s1 + $0x2d8] sm:$0xff]   ;;  %v6600_v37 = vld [vmem:[%s8627_s1 + $0x260] sm:$0xff]  }
  0x1a   :  { %6198 = vmatprep.subr.bf16.mxu1 %v6544_v25  ;;  %v6589_v25 = vld [vmem:[%s8627_s1 + $0x2c8] sm:$0xff]   ;;  %v6599_v36 = vld [vmem:[%s8627_s1 + $0x298] sm:$0xff]   ;;  %v6602_v39 = vld [vmem:[%s8627_s1 + $0x220] sm:$0xff]  }
  0x1b   :  { %v6603_v40 = vld [vmem:[%s8627_s1 + $0x2a0] sm:$0xff]   ;;  %v6606_v44 = vld [vmem:[%s8627_s1 + $0x228] sm:$0xff]   ;;  %v6608_v46 = vld [vmem:[%s8627_s1 + $0x270] sm:$0xff]  }
  0x1c   :  { %6177 = vmatpush3.bf16.msra.mxu0 %v6545_v26  ;;  %v6590_v26 = vld [vmem:[%s8627_s1 + $0x208] sm:$0xff]   ;;  %v6609_v48 = vld [vmem:[%s8627_s1 + $0x2f0] sm:$0xff]  }
  0x1d   :  { %6199 = vmatpush3.bf16.msra.mxu1 %v6546_v27  ;;  %6178 = vmatprep.subr.bf16.mxu0 %v6547_v29  ;;  %v6591_v27 = vld [vmem:[%s8627_s1 + $0x288] sm:$0xff]   ;;  %v6593_v29 = vld [vmem:[%s8627_s1 + $0x2d0] sm:$0xff]  }
  0x1e   :  { %6200 = vmatprep.subr.bf16.mxu1 %v6548_v30  ;;  %v6594_v30 = vld [vmem:[%s8627_s1 + $0x210] sm:$0xff]  }
  0x20   :  { %6179 = vmatpush3.bf16.msra.mxu0 %v6549_v31  ;;  %v6595_v31 = vld [vmem:[%s8627_s1 + $0x290] sm:$0xff]  }
  0x21   :  { %6201 = vmatpush3.bf16.msra.mxu1 %v6550_v32  ;;  %6208 = vmatprep.subr.bf16.mxu0 %v6552_v35  ;;  %v6596_v32 = vld [vmem:[%s8627_s1 + $0x258] sm:$0xff]  }
  0x22   :  { %6230 = vmatprep.subr.bf16.mxu1 %v6553_v38  ;;  %v6598_v35 = vld [vmem:[%s8627_s1 + $0x218] sm:$0xff]   ;;  %v6601_v38 = vld [vmem:[%s8627_s1 + $0x2e0] sm:$0xff]  }
  0x23   :  { %2348 = vmatmul.mubr.bf16.vlgmr.msra.gmra.mrb[0].mxu0 %v574_v45  ;;  %v6607_v45 = vld [vmem:[%s8627_s1 + $0x2a8] sm:$0xff]  }
  0x24   :  { %6209 = vmatpush3.bf16.msra.mxu0 %v6554_v47  ;;  %2388 = vmatmul.mubr.bf16.vlgmr.msra.gmra.mrb[0].mxu1 %v596_v51  ;;  %v25_v47 = vld [vmem:[%s8626_s0 + $0x8] sm:$0xff]  ;;  %v6610_v51 = vld [vmem:[%s8627_s1 + $0x230] sm:$0xff]  }
  0x25   :  { %6210 = vmatprep.subr.bf16.mxu0 %v6556_v52  ;;  %6231 = vmatpush3.bf16.msra.mxu1 %v6555_v49  ;;  %v607_v49 = vrot.slane %v25_v47, %v6949_v41  ;;  %v6611_v52 = vld [vmem:[%s8627_s1 + $0x2b0] sm:$0xff]  }
  0x26   :  { %2427 = vmatprep.mubr.bf16.mxu0 %v595_v50  ;;  %6232 = vmatprep.subr.bf16.mxu1 %v6557_v54  ;;  %v600_v50 = vcombine.high %v25_v47, %v25_v47  ;;  %v6658_v47 = vld [vmem:[%s8627_s1 + $0x4d0] sm:$0xff]  }
  0x27   :  { %2467 = vmatprep.mubr.bf16.mxu1 %v599_v56  ;;  %v615_v53 = vcombine.high %v607_v49, %v607_v49  ;;  %v6613_v56 = vld [vmem:[%s8627_s1 + $0x2f8] sm:$0xff]  }
  0x28   :  { %6211 = vmatpush3.bf16.msra.mxu0 %v6558_v55  ;;  %v7141_v54 = vrot.slane %v600_v50, %v6949_v41  ;;  %v6612_v55 = vld [vmem:[%s8627_s1 + $0x278] sm:$0xff]  }
  0x29   :  { %6212 = vmatprep.subr.bf16.mxu0 %v6560_v58  ;;  %6233 = vmatpush3.bf16.msra.mxu1 %v6559_v57  ;;  %v637_v57 = vrot.slane %v615_v53, %v6949_v41  ;;  %v6661_v50 = vld [vmem:[%s8627_s1 + $0x458] sm:$0xff]  }
  0x2a   :  { %6234 = vmatprep.subr.bf16.mxu1 %v6561_v59  ;;  %v616_v58 = vcombine.high %v7141_v54, %v7141_v54  ;;  %v6614_v59 = vld [vmem:[%s8627_s1 + $0x238] sm:$0xff]  }
  0x2b   :  { %v6664_v53 = vld [vmem:[%s8627_s1 + $0x498] sm:$0xff]  }
  0x2c   :  { %6213 = vmatpush3.bf16.msra.mxu0 %v6562_v60  ;;  %v6615_v60 = vld [vmem:[%s8627_s1 + $0x2b8] sm:$0xff]  }
  0x2d   :  { %6214 = vmatprep.subr.bf16.mxu0 %v6564_v62  ;;  %6235 = vmatpush3.bf16.msra.mxu1 %v6563_v61  ;;  %v647_v61 = vcombine.high %v637_v57, %v637_v57  ;;  %v623_v62 = vrot.slane %v607_v49, %v6949_v41  ;;  %v6660_v49 = vld [vmem:[%s8627_s1 + $0x490] sm:$0xff]  }
  0x2e   :  { %6236 = vmatprep.subr.bf16.mxu1 %v6565_v63  ;;  %v6616_v63 = vld [vmem:[%s8627_s1 + $0x340] sm:$0xff]  }
  0x30   :  { %6215 = vmatpush3.bf16.msra.mxu0 %v6566_v0  ;;  %v6617_v0 = vld [vmem:[%s8627_s1 + $0x3c0] sm:$0xff]  }
  0x31   :  { %6216 = vmatprep.subr.bf16.mxu0 %v6568_v2  ;;  %6237 = vmatpush3.bf16.msra.mxu1 %v6567_v1  ;;  %v644_v1 = vrot.slane %v616_v58, %v6949_v41  ;;  %v6618_v2 = vld [vmem:[%s8627_s1 + $0x300] sm:$0xff]   ;;  %v6669_v58 = vld [vmem:[%s8627_s1 + $0x468] sm:$0xff]  }
  0x32   :  { %6238 = vmatprep.subr.bf16.mxu1 %v6569_v3  ;;  %v6619_v3 = vld [vmem:[%s8627_s1 + $0x380] sm:$0xff]  }
  0x34   :  { %6217 = vmatpush3.bf16.msra.mxu0 %v6570_v4  ;;  %v645_v4 = vcombine.high %v623_v62, %v623_v62 }
  0x35   :  { %6218 = vmatprep.subr.bf16.mxu0 %v6572_v6  ;;  %6239 = vmatpush3.bf16.msra.mxu1 %v6571_v5  ;;  %v6620_v5 = vld [vmem:[%s8627_s1 + $0x348] sm:$0xff]  }
  0x36   :  { %6240 = vmatprep.subr.bf16.mxu1 %v6573_v7  ;;  %v6621_v6 = vld [vmem:[%s8627_s1 + $0x3c8] sm:$0xff]   ;;  %v648_v7 = vcombine.high %v644_v1, %v644_v1 }
  0x38   :  { %6219 = vmatpush3.bf16.msra.mxu0 %v6574_v8  ;;  %v6622_v8 = vld [vmem:[%s8627_s1 + $0x308] sm:$0xff]  }
  0x39   :  { %6220 = vmatprep.subr.bf16.mxu0 %v6576_v10  ;;  %6241 = vmatpush3.bf16.msra.mxu1 %v6575_v9  ;;  %v6623_v9 = vld [vmem:[%s8627_s1 + $0x388] sm:$0xff]   ;;  %v6624_v10 = vld [vmem:[%s8627_s1 + $0x350] sm:$0xff]  }
  0x3a   :  { %6242 = vmatprep.subr.bf16.mxu1 %v6577_v11  ;;  %v6625_v11 = vld [vmem:[%s8627_s1 + $0x3d0] sm:$0xff]  }
  0x3c   :  { %6221 = vmatpush3.bf16.msra.mxu0 %v6578_v12  ;;  %v6626_v12 = vld [vmem:[%s8627_s1 + $0x310] sm:$0xff]  }
  0x3d   :  { %6222 = vmatprep.subr.bf16.mxu0 %v6580_v14  ;;  %6243 = vmatpush3.bf16.msra.mxu1 %v6579_v13  ;;  %v6627_v13 = vld [vmem:[%s8627_s1 + $0x390] sm:$0xff]   ;;  %v6628_v14 = vld [vmem:[%s8627_s1 + $0x358] sm:$0xff]  }
  0x3e   :  { %6244 = vmatprep.subr.bf16.mxu1 %v6581_v15  ;;  %v6629_v15 = vld [vmem:[%s8627_s1 + $0x3d8] sm:$0xff]  }
  0x40   :  { %6223 = vmatpush3.bf16.msra.mxu0 %v6582_v16  ;;  %v6630_v16 = vld [vmem:[%s8627_s1 + $0x318] sm:$0xff]  }
  0x41   :  { %6252 = vmatprep.subr.bf16.mxu0 %v6584_v19  ;;  %6245 = vmatpush3.bf16.msra.mxu1 %v6583_v17  ;;  %v6631_v17 = vld [vmem:[%s8627_s1 + $0x398] sm:$0xff]   ;;  %v6633_v19 = vld [vmem:[%s8627_s1 + $0x3e0] sm:$0xff]  }
  0x42   :  { %6274 = vmatprep.subr.bf16.mxu1 %v6585_v20  ;;  %v6634_v20 = vld [vmem:[%s8627_s1 + $0x320] sm:$0xff]  }
  0x43   :  { %2428 = vmatmul.mubr.bf16.vlgmr.msra.gmra.mrb[4].mxu0 %v581_v18  ;;  %v6632_v18 = vld [vmem:[%s8627_s1 + $0x360] sm:$0xff]  }
  0x44   :  { %6253 = vmatpush3.bf16.msra.mxu0 %v6586_v21  ;;  %2468 = vmatmul.mubr.bf16.vlgmr.msra.gmra.mrb[4].mxu1 %v597_v23  ;;  %v6635_v21 = vld [vmem:[%s8627_s1 + $0x3a0] sm:$0xff]   ;;  %v6637_v23 = vld [vmem:[%s8627_s1 + $0x3e8] sm:$0xff]  }
  0x45   :  { %6254 = vmatprep.subr.bf16.mxu0 %v6588_v24  ;;  %6275 = vmatpush3.bf16.msra.mxu1 %v6587_v22  ;;  %v6636_v22 = vld [vmem:[%s8627_s1 + $0x368] sm:$0xff]  }
  0x46   :  { %6276 = vmatprep.subr.bf16.mxu1 %v6589_v25  ;;  %2507 = vmatprep.mubr.bf16.mxu0 %v637_v57  ;;  %v6638_v24 = vld [vmem:[%s8627_s1 + $0x328] sm:$0xff]   ;;  %v6668_v57 = vld [vmem:[%s8627_s1 + $0x4a0] sm:$0xff]  }
  0x47   :  { %2547 = vmatprep.mubr.bf16.mxu1 %v647_v61  ;;  %v6639_v25 = vld [vmem:[%s8627_s1 + $0x3a8] sm:$0xff]  }
  0x48   :  { %6255 = vmatpush3.bf16.msra.mxu0 %v6590_v26  ;;  %v6640_v26 = vld [vmem:[%s8627_s1 + $0x370] sm:$0xff]   ;;  %v6672_v61 = vld [vmem:[%s8627_s1 + $0x4a8] sm:$0xff]  }
  0x49   :  { %6256 = vmatprep.subr.bf16.mxu0 %v6592_v28  ;;  %6277 = vmatpush3.bf16.msra.mxu1 %v6591_v27  ;;  %v6641_v27 = vld [vmem:[%s8627_s1 + $0x3f0] sm:$0xff]  }
  0x4a   :  { %6278 = vmatprep.subr.bf16.mxu1 %v6593_v29  ;;  %v6642_v28 = vld [vmem:[%s8627_s1 + $0x330] sm:$0xff]  }
  0x4b   :  { %v6643_v29 = vld [vmem:[%s8627_s1 + $0x3b0] sm:$0xff]  }
  0x4c   :  { %6257 = vmatpush3.bf16.msra.mxu0 %v6594_v30  ;;  %v6644_v30 = vld [vmem:[%s8627_s1 + $0x378] sm:$0xff]  }
  0x4d   :  { %6258 = vmatprep.subr.bf16.mxu0 %v6596_v32  ;;  %6279 = vmatpush3.bf16.msra.mxu1 %v6595_v31  ;;  %v6645_v31 = vld [vmem:[%s8627_s1 + $0x3f8] sm:$0xff]  }
  0x4e   :  { %6280 = vmatprep.subr.bf16.mxu1 %v6597_v34  ;;  %v6646_v32 = vld [vmem:[%s8627_s1 + $0x338] sm:$0xff]  }
  0x4f   :  { %v6647_v34 = vld [vmem:[%s8627_s1 + $0x3b8] sm:$0xff]  }
  0x50   :  { %6259 = vmatpush3.bf16.msra.mxu0 %v6598_v35  ;;  %v630_v35 = vrot.slane %v7141_v54, %v6949_v41  ;;  %v6665_v54 = vld [vmem:[%s8627_s1 + $0x460] sm:$0xff]  }
  0x51   :  { %6260 = vmatprep.subr.bf16.mxu0 %v6600_v37  ;;  %6281 = vmatpush3.bf16.msra.mxu1 %v6599_v36  ;;  %v6649_v36 = vld [vmem:[%s8627_s1 + $0x440] sm:$0xff]  }
  0x52   :  { %6282 = vmatprep.subr.bf16.mxu1 %v6601_v38  ;;  %v6650_v37 = vld [vmem:[%s8627_s1 + $0x4c0] sm:$0xff]  }
  0x53   :  { %v6651_v38 = vld [vmem:[%s8627_s1 + $0x400] sm:$0xff]  }
  0x54   :  { %6261 = vmatpush3.bf16.msra.mxu0 %v6602_v39  ;;  %v6652_v39 = vld [vmem:[%s8627_s1 + $0x480] sm:$0xff]  }
  0x55   :  { %6262 = vmatprep.subr.bf16.mxu0 %v6604_v42  ;;  %6283 = vmatpush3.bf16.msra.mxu1 %v6603_v40  ;;  %v646_v40 = vcombine.high %v630_v35, %v630_v35  ;;  %v6653_v42 = vld [vmem:[%s8627_s1 + $0x448] sm:$0xff]  }
  0x56   :  { %6284 = vmatprep.subr.bf16.mxu1 %v6605_v43  ;;  %v6654_v43 = vld [vmem:[%s8627_s1 + $0x4c8] sm:$0xff]  }
  0x58   :  { %6263 = vmatpush3.bf16.msra.mxu0 %v6606_v44  ;;  %v6655_v44 = vld [vmem:[%s8627_s1 + $0x408] sm:$0xff]  }
  0x59   :  { %6264 = vmatprep.subr.bf16.mxu0 %v6608_v46  ;;  %6285 = vmatpush3.bf16.msra.mxu1 %v6607_v45  ;;  %v6656_v45 = vld [vmem:[%s8627_s1 + $0x488] sm:$0xff]   ;;  %v6657_v46 = vld [vmem:[%s8627_s1 + $0x450] sm:$0xff]  }
  0x5a   :  { %6286 = vmatprep.subr.bf16.mxu1 %v6609_v48  ;;  %v6659_v48 = vld [vmem:[%s8627_s1 + $0x410] sm:$0xff]  }
  0x5c   :  { %6265 = vmatpush3.bf16.msra.mxu0 %v6610_v51  ;;  %v6662_v51 = vld [vmem:[%s8627_s1 + $0x4d8] sm:$0xff]  }
  0x5d   :  { %6266 = vmatprep.subr.bf16.mxu0 %v6612_v55  ;;  %6287 = vmatpush3.bf16.msra.mxu1 %v6611_v52  ;;  %v6663_v52 = vld [vmem:[%s8627_s1 + $0x418] sm:$0xff]   ;;  %v6666_v55 = vld [vmem:[%s8627_s1 + $0x4e0] sm:$0xff]  }
  0x5e   :  { %6288 = vmatprep.subr.bf16.mxu1 %v6613_v56  ;;  %v6667_v56 = vld [vmem:[%s8627_s1 + $0x420] sm:$0xff]  }
  0x60   :  { %6267 = vmatpush3.bf16.msra.mxu0 %v6614_v59  ;;  %v6670_v59 = vld [vmem:[%s8627_s1 + $0x4e8] sm:$0xff]  }
  0x61   :  { %6296 = vmatprep.subr.bf16.mxu0 %v6616_v63  ;;  %6289 = vmatpush3.bf16.msra.mxu1 %v6615_v60  ;;  %v6671_v60 = vld [vmem:[%s8627_s1 + $0x428] sm:$0xff]   ;;  %v26_v63 = vld [vmem:[%s8626_s0 + $0x10] sm:$0xff] }
  0x62   :  { %6318 = vmatprep.subr.bf16.mxu1 %v6617_v0  ;;  %v6674_v0 = vld [vmem:[%s8627_s1 + $0x4f0] sm:$0xff]  }
  0x63   :  { %2508 = vmatmul.mubr.bf16.vlgmr.msra.gmra.mrb[8].mxu0 %v623_v62  ;;  %v6673_v62 = vld [vmem:[%s8627_s1 + $0x470] sm:$0xff]  }
  0x64   :  { %6297 = vmatpush3.bf16.msra.mxu0 %v6618_v2  ;;  %2587 = vmatprep.mubr.bf16.mxu0 %v644_v1  ;;  %v656_v1 = vrot.slane %v26_v63, %v6949_v41  ;;  %v649_v2 = vcombine.high %v26_v63, %v26_v63  ;;  %v6723_v63 = vld [vmem:[%s8627_s1 + $0x6d0] sm:$0xff]  }
  0x65   :  { %2548 = vmatmul.mubr.bf16.vlgmr.msra.gmra.mrb[8].mxu1 %v645_v4  ;;  %6298 = vmatprep.subr.bf16.mxu0 %v6620_v5  ;;  %v6676_v4 = vld [vmem:[%s8627_s1 + $0x4b0] sm:$0xff]  }
  0x66   :  { %6319 = vmatpush3.bf16.msra.mxu1 %v6619_v3  ;;  %2627 = vmatprep.mubr.bf16.mxu1 %v648_v7  ;;  %v6675_v3 = vld [vmem:[%s8627_s1 + $0x430] sm:$0xff]   ;;  %v664_v5 = vcombine.high %v656_v1, %v656_v1  ;;  %v6677_v7 = vld [vmem:[%s8627_s1 + $0x478] sm:$0xff]  }
  0x67   :  { %6320 = vmatprep.subr.bf16.mxu1 %v6621_v6  ;;  %v7347_v6 = vrot.slane %v649_v2, %v6949_v41  ;;  %v6726_v2 = vld [vmem:[%s8627_s1 + $0x658] sm:$0xff]  }
  0x68   :  { %6299 = vmatpush3.bf16.msra.mxu0 %v6622_v8  ;;  %v6678_v8 = vld [vmem:[%s8627_s1 + $0x4f8] sm:$0xff]  }
  0x69   :  { %6300 = vmatprep.subr.bf16.mxu0 %v6624_v10  ;;  %v665_v10 = vcombine.high %v7347_v6, %v7347_v6 }
  0x6a   :  { %6321 = vmatpush3.bf16.msra.mxu1 %v6623_v9  ;;  %v686_v9 = vrot.slane %v664_v5, %v6949_v41  ;;  %v6729_v5 = vld [vmem:[%s8627_s1 + $0x698] sm:$0xff]  }
  0x6b   :  { %6322 = vmatprep.subr.bf16.mxu1 %v6625_v11  ;;  %v6679_v11 = vld [vmem:[%s8627_s1 + $0x438] sm:$0xff]  }
  0x6c   :  { %6301 = vmatpush3.bf16.msra.mxu0 %v6626_v12  ;;  %v6680_v12 = vld [vmem:[%s8627_s1 + $0x4b8] sm:$0xff]  }
  0x6d   :  { %6302 = vmatprep.subr.bf16.mxu0 %v6628_v14  ;;  %v672_v14 = vrot.slane %v656_v1, %v6949_v41  ;;  %v6725_v1 = vld [vmem:[%s8627_s1 + $0x690] sm:$0xff]  }
  0x6e   :  { %6323 = vmatpush3.bf16.msra.mxu1 %v6627_v13  ;;  %v696_v13 = vcombine.high %v686_v9, %v686_v9 }
  0x6f   :  { %6324 = vmatprep.subr.bf16.mxu1 %v6629_v15  ;;  %v6681_v15 = vld [vmem:[%s8627_s1 + $0x540] sm:$0xff]  }
  0x70   :  { %6303 = vmatpush3.bf16.msra.mxu0 %v6630_v16  ;;  %v6682_v16 = vld [vmem:[%s8627_s1 + $0x5c0] sm:$0xff]  }
  0x71   :  { %6304 = vmatprep.subr.bf16.mxu0 %v6632_v18  ;;  %v6683_v18 = vld [vmem:[%s8627_s1 + $0x500] sm:$0xff]  }
  0x72   :  { %6325 = vmatpush3.bf16.msra.mxu1 %v6631_v17  ;;  %v693_v17 = vrot.slane %v665_v10, %v6949_v41  ;;  %v6734_v10 = vld [vmem:[%s8627_s1 + $0x668] sm:$0xff]  }
  0x73   :  { %6326 = vmatprep.subr.bf16.mxu1 %v6633_v19  ;;  %v6684_v19 = vld [vmem:[%s8627_s1 + $0x580] sm:$0xff]  }
  0x74   :  { %6305 = vmatpush3.bf16.msra.mxu0 %v6634_v20  ;;  %v694_v20 = vcombine.high %v672_v14, %v672_v14 }
  0x75   :  { %6306 = vmatprep.subr.bf16.mxu0 %v6636_v22  ;;  %v6686_v22 = vld [vmem:[%s8627_s1 + $0x5c8] sm:$0xff]  }
  0x76   :  { %6327 = vmatpush3.bf16.msra.mxu1 %v6635_v21  ;;  %v6685_v21 = vld [vmem:[%s8627_s1 + $0x548] sm:$0xff]  }
  0x77   :  { %6328 = vmatprep.subr.bf16.mxu1 %v6637_v23  ;;  %v697_v23 = vcombine.high %v693_v17, %v693_v17 }
  0x78   :  { %6307 = vmatpush3.bf16.msra.mxu0 %v6638_v24  ;;  %v6687_v24 = vld [vmem:[%s8627_s1 + $0x508] sm:$0xff]  }
  0x79   :  { %6308 = vmatprep.subr.bf16.mxu0 %v6640_v26  ;;  %v6689_v26 = vld [vmem:[%s8627_s1 + $0x550] sm:$0xff]  }
  0x7a   :  { %6329 = vmatpush3.bf16.msra.mxu1 %v6639_v25  ;;  %v6688_v25 = vld [vmem:[%s8627_s1 + $0x588] sm:$0xff]  }
  0x7b   :  { %6330 = vmatprep.subr.bf16.mxu1 %v6641_v27  ;;  %v6690_v27 = vld [vmem:[%s8627_s1 + $0x5d0] sm:$0xff]  }
  0x7c   :  { %6309 = vmatpush3.bf16.msra.mxu0 %v6642_v28  ;;  %v6691_v28 = vld [vmem:[%s8627_s1 + $0x510] sm:$0xff]  }
  0x7d   :  { %6310 = vmatprep.subr.bf16.mxu0 %v6644_v30  ;;  %v6693_v30 = vld [vmem:[%s8627_s1 + $0x558] sm:$0xff]  }
  0x7e   :  { %6331 = vmatpush3.bf16.msra.mxu1 %v6643_v29  ;;  %v6692_v29 = vld [vmem:[%s8627_s1 + $0x590] sm:$0xff]  }
  0x7f   :  { %6332 = vmatprep.subr.bf16.mxu1 %v6645_v31  ;;  %v6694_v31 = vld [vmem:[%s8627_s1 + $0x5d8] sm:$0xff]  }
  0x80   :  { %6311 = vmatpush3.bf16.msra.mxu0 %v6646_v32  ;;  %v6695_v32 = vld [vmem:[%s8627_s1 + $0x518] sm:$0xff]  }
  0x81   :  { %6340 = vmatprep.subr.bf16.mxu0 %v6649_v36  ;;  %v6698_v36 = vld [vmem:[%s8627_s1 + $0x5e0] sm:$0xff]  }
  0x82   :  { %6333 = vmatpush3.bf16.msra.mxu1 %v6647_v34  ;;  %v6696_v34 = vld [vmem:[%s8627_s1 + $0x598] sm:$0xff]  }
  0x83   :  { %2588 = vmatmul.mubr.bf16.vlgmr.msra.gmra.mrb[12].mxu0 %v630_v35  ;;  %6362 = vmatprep.subr.bf16.mxu1 %v6650_v37  ;;  %v6697_v35 = vld [vmem:[%s8627_s1 + $0x560] sm:$0xff]  }
  0x84   :  { %6341 = vmatpush3.bf16.msra.mxu0 %v6651_v38  ;;  %2667 = vmatprep.mubr.bf16.mxu0 %v686_v9  ;;  %v6699_v37 = vld [vmem:[%s8627_s1 + $0x520] sm:$0xff]  }
  0x85   :  { %2628 = vmatmul.mubr.bf16.vlgmr.msra.gmra.mrb[12].mxu1 %v646_v40  ;;  %6342 = vmatprep.subr.bf16.mxu0 %v6653_v42  ;;  %v6700_v38 = vld [vmem:[%s8627_s1 + $0x5a0] sm:$0xff]   ;;  %v6702_v40 = vld [vmem:[%s8627_s1 + $0x5e8] sm:$0xff]  }
  0x86   :  { %6363 = vmatpush3.bf16.msra.mxu1 %v6652_v39  ;;  %2707 = vmatprep.mubr.bf16.mxu1 %v696_v13  ;;  %v6701_v39 = vld [vmem:[%s8627_s1 + $0x568] sm:$0xff]   ;;  %v6733_v9 = vld [vmem:[%s8627_s1 + $0x6a0] sm:$0xff]  }
  0x87   :  { %6364 = vmatprep.subr.bf16.mxu1 %v6654_v43  ;;  %v6703_v42 = vld [vmem:[%s8627_s1 + $0x528] sm:$0xff]  }
  0x88   :  { %6343 = vmatpush3.bf16.msra.mxu0 %v6655_v44  ;;  %v6704_v43 = vld [vmem:[%s8627_s1 + $0x5a8] sm:$0xff]   ;;  %v6705_v44 = vld [vmem:[%s8627_s1 + $0x570] sm:$0xff]  }
  0x89   :  { %6344 = vmatprep.subr.bf16.mxu0 %v6657_v46  ;;  %v6707_v46 = vld [vmem:[%s8627_s1 + $0x530] sm:$0xff]   ;;  %v6737_v13 = vld [vmem:[%s8627_s1 + $0x6a8] sm:$0xff]  }
  0x8a   :  { %6365 = vmatpush3.bf16.msra.mxu1 %v6656_v45  ;;  %v6706_v45 = vld [vmem:[%s8627_s1 + $0x5f0] sm:$0xff]  }
  0x8b   :  { %6366 = vmatprep.subr.bf16.mxu1 %v6658_v47  ;;  %v6708_v47 = vld [vmem:[%s8627_s1 + $0x5b0] sm:$0xff]  }
  0x8c   :  { %6345 = vmatpush3.bf16.msra.mxu0 %v6659_v48  ;;  %v6709_v48 = vld [vmem:[%s8627_s1 + $0x578] sm:$0xff]  }
  0x8d   :  { %6346 = vmatprep.subr.bf16.mxu0 %v6661_v50  ;;  %v6711_v50 = vld [vmem:[%s8627_s1 + $0x538] sm:$0xff]  }
  0x8e   :  { %6367 = vmatpush3.bf16.msra.mxu1 %v6660_v49  ;;  %v6710_v49 = vld [vmem:[%s8627_s1 + $0x5f8] sm:$0xff]  }
  0x8f   :  { %6368 = vmatprep.subr.bf16.mxu1 %v6662_v51  ;;  %v6712_v51 = vld [vmem:[%s8627_s1 + $0x5b8] sm:$0xff]  }
  0x90   :  { %6347 = vmatpush3.bf16.msra.mxu0 %v6663_v52  ;;  %v679_v52 = vrot.slane %v7347_v6, %v6949_v41  ;;  %v6730_v6 = vld [vmem:[%s8627_s1 + $0x660] sm:$0xff]  }
  0x91   :  { %6348 = vmatprep.subr.bf16.mxu0 %v6665_v54  ;;  %v6715_v54 = vld [vmem:[%s8627_s1 + $0x6c0] sm:$0xff]  }
  0x92   :  { %6369 = vmatpush3.bf16.msra.mxu1 %v6664_v53  ;;  %v6714_v53 = vld [vmem:[%s8627_s1 + $0x640] sm:$0xff]  }
  0x93   :  { %6370 = vmatprep.subr.bf16.mxu1 %v6666_v55  ;;  %v6716_v55 = vld [vmem:[%s8627_s1 + $0x600] sm:$0xff]  }
  0x94   :  { %6349 = vmatpush3.bf16.msra.mxu0 %v6667_v56  ;;  %v6717_v56 = vld [vmem:[%s8627_s1 + $0x680] sm:$0xff]  }
  0x95   :  { %6350 = vmatprep.subr.bf16.mxu0 %v6669_v58  ;;  %v6718_v58 = vld [vmem:[%s8627_s1 + $0x648] sm:$0xff]  }
  0x96   :  { %6371 = vmatpush3.bf16.msra.mxu1 %v6668_v57  ;;  %v695_v57 = vcombine.high %v679_v52, %v679_v52 }
  0x97   :  { %6372 = vmatprep.subr.bf16.mxu1 %v6670_v59  ;;  %v6719_v59 = vld [vmem:[%s8627_s1 + $0x6c8] sm:$0xff]  }
  0x98   :  { %6351 = vmatpush3.bf16.msra.mxu0 %v6671_v60  ;;  %v6720_v60 = vld [vmem:[%s8627_s1 + $0x608] sm:$0xff]  }
  0x99   :  { %6352 = vmatprep.subr.bf16.mxu0 %v6673_v62  ;;  %v6722_v62 = vld [vmem:[%s8627_s1 + $0x650] sm:$0xff]  }
  0x9a   :  { %6373 = vmatpush3.bf16.msra.mxu1 %v6672_v61  ;;  %v6721_v61 = vld [vmem:[%s8627_s1 + $0x688] sm:$0xff]  }
  0x9b   :  { %6374 = vmatprep.subr.bf16.mxu1 %v6674_v0  ;;  %v6724_v0 = vld [vmem:[%s8627_s1 + $0x610] sm:$0xff]  }
  0x9c   :  { %6353 = vmatpush3.bf16.msra.mxu0 %v6675_v3  ;;  %v6727_v3 = vld [vmem:[%s8627_s1 + $0x6d8] sm:$0xff]  }
  0x9d   :  { %6354 = vmatprep.subr.bf16.mxu0 %v6677_v7  ;;  %v6731_v7 = vld [vmem:[%s8627_s1 + $0x6e0] sm:$0xff]  }
  0x9e   :  { %6375 = vmatpush3.bf16.msra.mxu1 %v6676_v4  ;;  %v6728_v4 = vld [vmem:[%s8627_s1 + $0x618] sm:$0xff]  }
  0x9f   :  { %6376 = vmatprep.subr.bf16.mxu1 %v6678_v8  ;;  %v6732_v8 = vld [vmem:[%s8627_s1 + $0x620] sm:$0xff]  }
  0xa0   :  { %6355 = vmatpush3.bf16.msra.mxu0 %v6679_v11  ;;  %v6735_v11 = vld [vmem:[%s8627_s1 + $0x6e8] sm:$0xff]  }
  0xa1   :  { %6384 = vmatprep.subr.bf16.mxu0 %v6681_v15  ;;  %v27_v15 = vld [vmem:[%s8626_s0 + $0x18] sm:$0xff] }
  0xa2   :  { %6377 = vmatpush3.bf16.msra.mxu1 %v6680_v12  ;;  %v6736_v12 = vld [vmem:[%s8627_s1 + $0x628] sm:$0xff]  }
  0xa3   :  { %2668 = vmatmul.mubr.bf16.vlgmr.msra.gmra.mrb[16].mxu0 %v672_v14  ;;  %6406 = vmatprep.subr.bf16.mxu1 %v6682_v16  ;;  %v6738_v14 = vld [vmem:[%s8627_s1 + $0x670] sm:$0xff]  }
  0xa4   :  { %6385 = vmatpush3.bf16.msra.mxu0 %v6683_v18  ;;  %2747 = vmatprep.mubr.bf16.mxu0 %v693_v17  ;;  %v6739_v16 = vld [vmem:[%s8627_s1 + $0x6f0] sm:$0xff]   ;;  %v705_v17 = vrot.slane %v27_v15, %v6949_v41  ;;  %v698_v18 = vcombine.high %v27_v15, %v27_v15 }
  0xa5   :  { %2708 = vmatmul.mubr.bf16.vlgmr.msra.gmra.mrb[16].mxu1 %v694_v20  ;;  %6386 = vmatprep.subr.bf16.mxu0 %v6685_v21  ;;  %v6742_v20 = vld [vmem:[%s8627_s1 + $0x678] sm:$0xff]  }
  0xa6   :  { %6407 = vmatpush3.bf16.msra.mxu1 %v6684_v19  ;;  %2787 = vmatprep.mubr.bf16.mxu1 %v697_v23  ;;  %v6740_v19 = vld [vmem:[%s8627_s1 + $0x630] sm:$0xff]   ;;  %v713_v21 = vcombine.high %v705_v17, %v705_v17 }
  0xa7   :  { %6408 = vmatprep.subr.bf16.mxu1 %v6686_v22  ;;  %v7553_v22 = vrot.slane %v698_v18, %v6949_v41  ;;  %v6741_v23 = vld [vmem:[%s8627_s1 + $0x6b0] sm:$0xff]  }
  0xa8   :  { %6387 = vmatpush3.bf16.msra.mxu0 %v6687_v24  ;;  %v6743_v24 = vld [vmem:[%s8627_s1 + $0x6f8] sm:$0xff]  }
  0xa9   :  { %6388 = vmatprep.subr.bf16.mxu0 %v6689_v26  ;;  %v714_v26 = vcombine.high %v7553_v22, %v7553_v22 }
  0xaa   :  { %6409 = vmatpush3.bf16.msra.mxu1 %v6688_v25  ;;  %v735_v25 = vrot.slane %v713_v21, %v6949_v41 }
  0xab   :  { %6410 = vmatprep.subr.bf16.mxu1 %v6690_v27  ;;  %v6744_v27 = vld [vmem:[%s8627_s1 + $0x638] sm:$0xff]  }
  0xac   :  { %6389 = vmatpush3.bf16.msra.mxu0 %v6691_v28  ;;  %v745_v28 = vcombine.high %v735_v25, %v735_v25 }
  0xad   :  { %6390 = vmatprep.subr.bf16.mxu0 %v6693_v30  ;;  %v6746_v30 = vld [vmem:[%s8627_s1 + $0x740] sm:$0xff]  }
  0xae   :  { %6411 = vmatpush3.bf16.msra.mxu1 %v6692_v29  ;;  %v721_v29 = vrot.slane %v705_v17, %v6949_v41 }
  0xaf   :  { %6412 = vmatprep.subr.bf16.mxu1 %v6694_v31  ;;  %v6745_v31 = vld [vmem:[%s8627_s1 + $0x6b8] sm:$0xff]  }
  0xb0   :  { %6391 = vmatpush3.bf16.msra.mxu0 %v6695_v32  ;;  %v742_v32 = vrot.slane %v714_v26, %v6949_v41 }
  0xb1   :  { %6392 = vmatprep.subr.bf16.mxu0 %v6697_v35  ;;  %v6748_v35 = vld [vmem:[%s8627_s1 + $0x700] sm:$0xff]  }
  0xb2   :  { %6413 = vmatpush3.bf16.msra.mxu1 %v6696_v34  ;;  %v6747_v34 = vld [vmem:[%s8627_s1 + $0x7c0] sm:$0xff]  }
  0xb3   :  { %6414 = vmatprep.subr.bf16.mxu1 %v6698_v36  ;;  %v743_v36 = vcombine.high %v721_v29, %v721_v29 }
  0xb4   :  { %6393 = vmatpush3.bf16.msra.mxu0 %v6699_v37  ;;  %v6750_v37 = vld [vmem:[%s8627_s1 + $0x748] sm:$0xff]  }
  0xb5   :  { %6394 = vmatprep.subr.bf16.mxu0 %v6701_v39  ;;  %v746_v39 = vcombine.high %v742_v32, %v742_v32 }
  0xb6   :  { %6415 = vmatpush3.bf16.msra.mxu1 %v6700_v38  ;;  %v6749_v38 = vld [vmem:[%s8627_s1 + $0x780] sm:$0xff]  }
  0xb7   :  { %6416 = vmatprep.subr.bf16.mxu1 %v6702_v40  ;;  %v6751_v40 = vld [vmem:[%s8627_s1 + $0x7c8] sm:$0xff]  }
  0xb8   :  { %6395 = vmatpush3.bf16.msra.mxu0 %v6703_v42  ;;  %v6752_v42 = vld [vmem:[%s8627_s1 + $0x708] sm:$0xff]  }
  0xb9   :  { %6396 = vmatprep.subr.bf16.mxu0 %v6705_v44  ;;  %v6753_v44 = vld [vmem:[%s8627_s1 + $0x788] sm:$0xff]  }
  0xba   :  { %6417 = vmatpush3.bf16.msra.mxu1 %v6704_v43  ;;  %v6754_v43 = vld [vmem:[%s8627_s1 + $0x750] sm:$0xff]  }
  0xbb   :  { %6418 = vmatprep.subr.bf16.mxu1 %v6706_v45  ;;  %v6755_v45 = vld [vmem:[%s8627_s1 + $0x7d0] sm:$0xff]  }
  0xbc   :  { %6397 = vmatpush3.bf16.msra.mxu0 %v6707_v46  ;;  %v6756_v46 = vld [vmem:[%s8627_s1 + $0x710] sm:$0xff]  }
  0xbd   :  { %6398 = vmatprep.subr.bf16.mxu0 %v6709_v48  ;;  %v6757_v48 = vld [vmem:[%s8627_s1 + $0x790] sm:$0xff]  }
  0xbe   :  { %6419 = vmatpush3.bf16.msra.mxu1 %v6708_v47  ;;  %v6758_v47 = vld [vmem:[%s8627_s1 + $0x758] sm:$0xff]  }
  0xbf   :  { %6420 = vmatprep.subr.bf16.mxu1 %v6710_v49  ;;  %v6759_v49 = vld [vmem:[%s8627_s1 + $0x7d8] sm:$0xff]  }
  0xc0   :  { %6399 = vmatpush3.bf16.msra.mxu0 %v6711_v50  ;;  %v6760_v50 = vld [vmem:[%s8627_s1 + $0x718] sm:$0xff]  }
  0xc1   :  { %6428 = vmatprep.subr.bf16.mxu0 %v6714_v53  ;;  %v6763_v53 = vld [vmem:[%s8627_s1 + $0x7e0] sm:$0xff]  }
  0xc2   :  { %6421 = vmatpush3.bf16.msra.mxu1 %v6712_v51  ;;  %v6762_v51 = vld [vmem:[%s8627_s1 + $0x760] sm:$0xff]  }
  0xc3   :  { %2748 = vmatmul.mubr.bf16.vlgmr.msra.gmra.mrb[20].mxu0 %v679_v52  ;;  %6450 = vmatprep.subr.bf16.mxu1 %v6715_v54  ;;  %v6761_v52 = vld [vmem:[%s8627_s1 + $0x798] sm:$0xff]   ;;  %v6764_v54 = vld [vmem:[%s8627_s1 + $0x720] sm:$0xff]  }
  0xc4   :  { %6429 = vmatpush3.bf16.msra.mxu0 %v6716_v55  ;;  %2827 = vmatprep.mubr.bf16.mxu0 %v735_v25  ;;  %v6766_v55 = vld [vmem:[%s8627_s1 + $0x768] sm:$0xff]  }
  0xc5   :  { %2788 = vmatmul.mubr.bf16.vlgmr.msra.gmra.mrb[20].mxu1 %v695_v57  ;;  %6430 = vmatprep.subr.bf16.mxu0 %v6718_v58  ;;  %v6767_v57 = vld [vmem:[%s8627_s1 + $0x7e8] sm:$0xff]  }
  0xc6   :  { %6451 = vmatpush3.bf16.msra.mxu1 %v6717_v56  ;;  %2867 = vmatprep.mubr.bf16.mxu1 %v745_v28  ;;  %v6765_v56 = vld [vmem:[%s8627_s1 + $0x7a0] sm:$0xff]   ;;  %v6768_v58 = vld [vmem:[%s8627_s1 + $0x728] sm:$0xff]  }
  0xc7   :  { %6452 = vmatprep.subr.bf16.mxu1 %v6719_v59  ;;  %v6770_v59 = vld [vmem:[%s8627_s1 + $0x770] sm:$0xff]  }
  0xc8   :  { %6431 = vmatpush3.bf16.msra.mxu0 %v6720_v60 }
  0xc9   :  { %6432 = vmatprep.subr.bf16.mxu0 %v6722_v62 }
  0xca   :  { %6453 = vmatpush3.bf16.msra.mxu1 %v6721_v61  ;;  %v6769_v61 = vld [vmem:[%s8627_s1 + $0x7a8] sm:$0xff]  }
  0xcb   :  { %6454 = vmatprep.subr.bf16.mxu1 %v6723_v63 }
  0xcc   :  { %6433 = vmatpush3.bf16.msra.mxu0 %v6724_v0 }
  0xcd   :  { %6434 = vmatprep.subr.bf16.mxu0 %v6726_v2 }
  0xce   :  { %6455 = vmatpush3.bf16.msra.mxu1 %v6725_v1 }
  0xcf   :  { %6456 = vmatprep.subr.bf16.mxu1 %v6727_v3 }
  0xd0   :  { %6435 = vmatpush3.bf16.msra.mxu0 %v6728_v4 }
  0xd1   :  { %6436 = vmatprep.subr.bf16.mxu0 %v6730_v6 }
  0xd2   :  { %6457 = vmatpush3.bf16.msra.mxu1 %v6729_v5 }
  0xd3   :  { %6458 = vmatprep.subr.bf16.mxu1 %v6731_v7 }
  0xd4   :  { %6437 = vmatpush3.bf16.msra.mxu0 %v6732_v8 }
  0xd5   :  { %6438 = vmatprep.subr.bf16.mxu0 %v6734_v10 }
  0xd6   :  { %6459 = vmatpush3.bf16.msra.mxu1 %v6733_v9 }
  0xd7   :  { %6460 = vmatprep.subr.bf16.mxu1 %v6735_v11 }
  0xd8   :  { %6439 = vmatpush3.bf16.msra.mxu0 %v6736_v12 }
  0xd9   :  { %6440 = vmatprep.subr.bf16.mxu0 %v6738_v14 }
  0xda   :  { %6461 = vmatpush3.bf16.msra.mxu1 %v6737_v13 }
  0xdb   :  { %6462 = vmatprep.subr.bf16.mxu1 %v6739_v16 }
  0xdc   :  { %6441 = vmatpush3.bf16.msra.mxu0 %v6740_v19 }
  0xdd   :  { %6442 = vmatprep.subr.bf16.mxu0 %v6742_v20 }
  0xde   :  { %6463 = vmatpush3.bf16.msra.mxu1 %v6741_v23 }
  0xdf   :  { %6464 = vmatprep.subr.bf16.mxu1 %v6743_v24 }
  0xe0   :  { %6443 = vmatpush3.bf16.msra.mxu0 %v6744_v27 }
  0xe1   :  { %6472 = vmatprep.subr.bf16.mxu0 %v6746_v30 }
  0xe2   :  { %6465 = vmatpush3.bf16.msra.mxu1 %v6745_v31 }
  0xe3   :  { %2828 = vmatmul.mubr.bf16.vlgmr.msra.gmra.mrb[24].mxu0 %v721_v29  ;;  %6494 = vmatprep.subr.bf16.mxu1 %v6747_v34 }
  0xe4   :  { %6473 = vmatpush3.bf16.msra.mxu0 %v6748_v35  ;;  %2907 = vmatprep.mubr.bf16.mxu0 %v742_v32 }
  0xe5   :  { %2868 = vmatmul.mubr.bf16.vlgmr.msra.gmra.mrb[24].mxu1 %v743_v36  ;;  %6474 = vmatprep.subr.bf16.mxu0 %v6750_v37 }
  0xe6   :  { %6495 = vmatpush3.bf16.msra.mxu1 %v6749_v38  ;;  %2947 = vmatprep.mubr.bf16.mxu1 %v746_v39 }
  0xe7   :  { %6496 = vmatprep.subr.bf16.mxu1 %v6751_v40 }
  0xe8   :  { %6475 = vmatpush3.bf16.msra.mxu0 %v6752_v42 }
  0xe9   :  { %6476 = vmatprep.subr.bf16.mxu0 %v6754_v43 }
  0xea   :  { %6497 = vmatpush3.bf16.msra.mxu1 %v6753_v44 }
  0xeb   :  { %6498 = vmatprep.subr.bf16.mxu1 %v6755_v45 }
  0xec   :  { %6477 = vmatpush3.bf16.msra.mxu0 %v6756_v46 }
  0xed   :  { %6478 = vmatprep.subr.bf16.mxu0 %v6758_v47 }
  0xee   :  { %6499 = vmatpush3.bf16.msra.mxu1 %v6757_v48 }
  0xef   :  { %6500 = vmatprep.subr.bf16.mxu1 %v6759_v49 }
  0xf0   :  { %6479 = vmatpush3.bf16.msra.mxu0 %v6760_v50 }
  0xf1   :  { %6480 = vmatprep.subr.bf16.mxu0 %v6762_v51 }
  0xf2   :  { %6501 = vmatpush3.bf16.msra.mxu1 %v6761_v52 }
  0xf3   :  { %6502 = vmatprep.subr.bf16.mxu1 %v6763_v53 }
  0xf4   :  { %6481 = vmatpush3.bf16.msra.mxu0 %v6764_v54 }
  0xf5   :  { %6482 = vmatprep.subr.bf16.mxu0 %v6766_v55 }
  0xf6   :  { %6503 = vmatpush3.bf16.msra.mxu1 %v6765_v56  ;;  %v6180_v60 = vpop.f32.mrb[0].mxu0 }
  0xf7   :  { %12 = vsyncpa [#allocation3], 0  ;;  %v5635_v62 = vld [vmem:[%s8628_s2] ss:$0 sm:$0xff]  ;;  %v6181_v63 = vpop.f32.mrb[1].mxu0  ;;  %6504 = vmatprep.subr.bf16.mxu1 %v6767_v57  ;;  %v6771_v0 = vld [vmem:[%s8627_s1 + $0x7f0] sm:$0xff]   ;;  %v728_v16 = vrot.slane %v7553_v22, %v6949_v41 }
  0xf8   :  { %v6202_v1 = vpop.f32.mrb[0].mxu1  ;;  %v6182_v2 = vadd.f32 %v6181_v63, %v6180_v60  ;;  %v6183_v3 = vpop.f32.mrb[2].mxu0  ;;  %6483 = vmatpush3.bf16.msra.mxu0 %v6768_v58  ;;  %v6772_v4 = vld [vmem:[%s8627_s1 + $0x730] sm:$0xff]   ;;  %v6774_v7 = vld [vmem:[%s8627_s1 + $0x778] sm:$0xff]   ;;  %v2957_v45 = vld [vmem:[%s8629_s3] sm:$0xff]  ;;  %s6805_s13 = smov [#allocation2]  }
  0xf9   :  { %v6203_v5 = vpop.f32.mrb[1].mxu1  ;;  %v6184_v6 = vpop.f32.mrb[3].mxu0  ;;  %6484 = vmatprep.subr.bf16.mxu0 %v6770_v59  ;;  %v6773_v11 = vld [vmem:[%s8627_s1 + $0x7b0] sm:$0xff]   ;;  %v6775_v13 = vld [vmem:[%s8627_s1 + $0x7f8] sm:$0xff]   ;;  %v744_v18 = vcombine.high %v728_v16, %v728_v16  ;;  %v2973_v46 = vld [vmem:[%s8629_s3 + $0x80] sm:$0xff]  ;;  %s5623_s14 = sshll.u32 %s6805_s13, 4  ;;  %s5624_s14 = int_to_ptr.vmem [resolvable:$true] %s5623_s14 }
  0xfa   :  { %v2350_v8 = vadd.f32 %v6182_v2, %v5635_v62  ;;  %v6204_v9 = vadd.f32 %v6203_v5, %v6202_v1  ;;  %v6205_v10 = vpop.f32.mrb[2].mxu1  ;;  %6505 = vmatpush3.bf16.msra.mxu1 %v6769_v61  ;;  %v6776_v15 = vld [vmem:[%s8627_s1 + $0x738] sm:$0xff]   ;;  %v2958_v47 = vld [vmem:[%s8629_s3 + $0x8] sm:$0xff]  ;;  %v5892_v48 = vcombine.low %v2957_v45, %v2973_v46  ;;  %v5893_v49 = vcombine.high %v2957_v45, %v2973_v46  ;;  %v2989_v51 = vld [vmem:[%s8629_s3 + $0x100] sm:$0xff]  ;;  %s6779_s17 = scalar_lea.vmem %s5624_s14, 32  ;;  %p6784_p1 = scmp.lt.s32.totalorder %s5624_s14, %s5624_s14 }
  0xfb   :  { %v6206_v12 = vpop.f32.mrb[3].mxu1  ;;  %6506 = vmatprep.subr.bf16.mxu1 %v6771_v0  ;;  %v6777_v17 = vld [vmem:[%s8627_s1 + $0x7b8] sm:$0xff]   ;;  %v2974_v50 = vld [vmem:[%s8629_s3 + $0x88] sm:$0xff]  ;;  %v3005_v52 = vld [vmem:[%s8629_s3 + $0x180] sm:$0xff]  ;;  %p6780_p0 = scmp.ne.s32.totalorder %s5624_s14, %s6779_s17  ;;  %p6785_p2 = scmp.lt.s32.totalorder %s6779_s17, %s6779_s17 }
  0xfc   :  { %v2390_v14 = vadd.f32 %v6204_v9, %v2350_v8  ;;  %6485 = vmatpush3.bf16.msra.mxu0 %v6772_v4  ;;  %v5894_v53 = vcombine.low %v2958_v47, %v2974_v50  ;;  %v5895_v54 = vcombine.high %v2958_v47, %v2974_v50  ;;  %v5925_v55 = vcombine.high %v2989_v51, %v3005_v52  ;;  %v2990_v56 = vld [vmem:[%s8629_s3 + $0x108] sm:$0xff]  ;;  %v3021_v58 = vld [vmem:[%s8629_s3 + $0x200] sm:$0xff] }
  0xfd   :  { %6486 = vmatprep.subr.bf16.mxu0 %v6774_v7  ;;  %v3006_v57 = vld [vmem:[%s8629_s3 + $0x188] sm:$0xff]  ;;  %v3037_v60 = vld [vmem:[%s8629_s3 + $0x280] sm:$0xff]  ;;  %v5924_v63 = vcombine.low %v2989_v51, %v3005_v52  ;;  %p6786_p3 = por %p6785_p2, %p6784_p1 }
  0xfe   :  { %6507 = vmatpush3.bf16.msra.mxu1 %v6773_v11  ;;  %v5927_v59 = vcombine.high %v2990_v56, %v3006_v57  ;;  %v3022_v61 = vld [vmem:[%s8629_s3 + $0x208] sm:$0xff]  ;;  %v5926_v0 = vcombine.low %v2990_v56, %v3006_v57  ;;  %v5957_v1 = vcombine.high %v3021_v58, %v3037_v60  ;;  %v3053_v3 = vld [vmem:[%s8629_s3 + $0x300] sm:$0xff]  ;;  %v5956_v7 = vcombine.low %v3021_v58, %v3037_v60  ;;  %v7780_v60 = vld [vmem:[%s8629_s3 + $0x90] sm:$0xff] }
  0xff   :  { %6508 = vmatprep.subr.bf16.mxu1 %v6775_v13  ;;  %v3038_v62 = vld [vmem:[%s8629_s3 + $0x288] sm:$0xff]  ;;  %v3069_v4 = vld [vmem:[%s8629_s3 + $0x380] sm:$0xff]  ;;  %p6787_p4 = pnand %p6786_p3, %p6780_p0 }
 0x100   :  { %6487 = vmatpush3.bf16.msra.mxu0 %v6776_v15  ;;  %v5959_v2 = vcombine.high %v3022_v61, %v3038_v62  ;;  %v3054_v5 = vld [vmem:[%s8629_s3 + $0x308] sm:$0xff]  ;;  %v5958_v8 = vcombine.low %v3022_v61, %v3038_v62  ;;  %v5989_v9 = vcombine.high %v3053_v3, %v3069_v4  ;;  %v3085_v11 = vld [vmem:[%s8629_s3 + $0x400] sm:$0xff]  ;;  %v5988_v15 = vcombine.low %v3053_v3, %v3069_v4  ;;  %v7785_v61 = vld [vmem:[%s8629_s3 + $0x18] sm:$0xff] }
 0x101   :  { %4661 = vmatprep.subr.bf16.mxu0 %v5893_v49  ;;  %v3070_v6 = vld [vmem:[%s8629_s3 + $0x388] sm:$0xff]  ;;  %v3101_v12 = vld [vmem:[%s8629_s3 + $0x480] sm:$0xff]  ;;  %v6804_v62 = vmov 0  }
 0x102   :  { %6509 = vmatpush3.bf16.msra.mxu1 %v6777_v17  ;;  %v5991_v10 = vcombine.high %v3054_v5, %v3070_v6  ;;  %v3086_v13 = vld [vmem:[%s8629_s3 + $0x408] sm:$0xff]  ;;  %v6021_v17 = vcombine.high %v3085_v11, %v3101_v12  ;;  %v3181_v50 = vld [vmem:[%s8629_s3 + $0x700] sm:$0xff] }
 0x103   :  { %2908 = vmatmul.mubr.bf16.vlgmr.msra.gmra.mrb[28].mxu0 %v728_v16  ;;  %4702 = vmatprep.subr.bf16.mxu1 %v5895_v54  ;;  %v5990_v16 = vcombine.low %v3054_v5, %v3070_v6  ;;  %v3197_v51 = vld [vmem:[%s8629_s3 + $0x780] sm:$0xff]  ;;  %v3182_v52 = vld [vmem:[%s8629_s3 + $0x708] sm:$0xff] }
 0x104   :  { %4662 = vmatpush1.bf16.msra.mxu0 %v5892_v48  ;;  %v6117_v54 = vcombine.high %v3181_v50, %v3197_v51  ;;  %v6116_v56 = vcombine.low %v3181_v50, %v3197_v51  ;;  %4693 = vmatprep.mubr.bf16.mxu0 %v6804_v62 }
 0x105   :  { %2948 = vmatmul.mubr.bf16.vlgmr.msra.gmra.mrb[28].mxu1 %v744_v18  ;;  %4663 = vmatprep.subr.bf16.mxu0 %v5925_v55 }
 0x106   :  { %4703 = vmatpush1.bf16.msra.mxu1 %v5894_v53  ;;  %4734 = vmatprep.mubr.bf16.mxu1 %v6804_v62 }
 0x107   :  { %4704 = vmatprep.subr.bf16.mxu1 %v5927_v59  ;;  %v7775_v59 = vld [vmem:[%s8629_s3 + $0x10] sm:$0xff] }
 0x108   :  { %4664 = vmatpush1.bf16.msra.mxu0 %v5924_v63  ;;  %v5896_v63 = vcombine.low %v7775_v59, %v7780_v60 }
 0x109   :  { %4665 = vmatprep.subr.bf16.mxu0 %v5957_v1  ;;  %v7795_v1 = vld [vmem:[%s8629_s3 + $0x98] sm:$0xff] }
 0x10a   :  { %4705 = vmatpush1.bf16.msra.mxu1 %v5926_v0  ;;  %v5897_v0 = vcombine.high %v7775_v59, %v7780_v60  ;;  %v5899_v3 = vcombine.high %v7785_v61, %v7795_v1  ;;  %v3056_v59 = vld [vmem:[%s8629_s3 + $0x318] sm:$0xff] }
 0x10b   :  { %4706 = vmatprep.subr.bf16.mxu1 %v5959_v2  ;;  %v5898_v2 = vcombine.low %v7785_v61, %v7795_v1  ;;  %v3072_v60 = vld [vmem:[%s8629_s3 + $0x398] sm:$0xff] }
 0x10c   :  { %4666 = vmatpush1.bf16.msra.mxu0 %v5956_v7 }
 0x10d   :  { %4667 = vmatprep.subr.bf16.mxu0 %v5989_v9 }
 0x10e   :  { %4707 = vmatpush1.bf16.msra.mxu1 %v5958_v8 }
 0x10f   :  { %4708 = vmatprep.subr.bf16.mxu1 %v5991_v10 }
 0x110   :  { %4668 = vmatpush1.bf16.msra.mxu0 %v5988_v15 }
 0x111   :  { %4669 = vmatprep.subr.bf16.mxu0 %v6021_v17 }
 0x112   :  { %4709 = vmatpush1.bf16.msra.mxu1 %v5990_v16 }
 0x116   :  { %v6224_v19 = vpop.f32.mrb[4].mxu0 }
 0x117   :  { %v6225_v20 = vpop.f32.mrb[5].mxu0  ;;  %v6246_v21 = vpop.f32.mrb[4].mxu1 }
 0x118   :  { %v6226_v23 = vadd.f32 %v6225_v20, %v6224_v19  ;;  %v6227_v24 = vpop.f32.mrb[6].mxu0  ;;  %v6247_v25 = vpop.f32.mrb[5].mxu1  ;;  %v3117_v19 = vld [vmem:[%s8629_s3 + $0x500] sm:$0xff] }
 0x119   :  { %v6228_v26 = vpop.f32.mrb[7].mxu0  ;;  %v6248_v22 = vadd.f32 %v6247_v25, %v6246_v21  ;;  %v6249_v28 = vpop.f32.mrb[6].mxu1  ;;  %v3133_v20 = vld [vmem:[%s8629_s3 + $0x580] sm:$0xff]  ;;  %v3118_v21 = vld [vmem:[%s8629_s3 + $0x508] sm:$0xff]  ;;  %v6020_v24 = vcombine.low %v3085_v11, %v3101_v12 }
 0x11a   :  { %v2430_v27 = vadd.f32 %v6226_v23, %v2390_v14  ;;  %v6250_v29 = vpop.f32.mrb[7].mxu1  ;;  %v3102_v14 = vld [vmem:[%s8629_s3 + $0x488] sm:$0xff]  ;;  %v6053_v26 = vcombine.high %v3117_v19, %v3133_v20 }
 0x11b   :  { %v6023_v18 = vcombine.high %v3086_v13, %v3102_v14  ;;  %v3134_v23 = vld [vmem:[%s8629_s3 + $0x588] sm:$0xff]  ;;  %v6022_v25 = vcombine.low %v3086_v13, %v3102_v14  ;;  %4670 = vmatpush1.bf16.msra.mxu0 %v6020_v24 }
 0x11c   :  { %v2470_v30 = vadd.f32 %v6248_v22, %v2430_v27  ;;  %v6055_v27 = vcombine.high %v3118_v21, %v3134_v23  ;;  %v6052_v22 = vcombine.low %v3117_v19, %v3133_v20  ;;  %4671 = vmatprep.subr.bf16.mxu0 %v6053_v26  ;;  %v6054_v28 = vcombine.low %v3118_v21, %v3134_v23 }
 0x11d   :  { %4710 = vmatprep.subr.bf16.mxu1 %v6023_v18 }
 0x11e   :  { %4711 = vmatpush1.bf16.msra.mxu1 %v6022_v25 }
 0x11f   :  { %4712 = vmatprep.subr.bf16.mxu1 %v6055_v27  ;;  %4672 = vmatpush1.bf16.msra.mxu0 %v6052_v22 }
 0x122   :  { %4713 = vmatpush1.bf16.msra.mxu1 %v6054_v28 }
 0x136   :  { %v6268_v31 = vpop.f32.mrb[8].mxu0 }
 0x137   :  { %v6269_v32 = vpop.f32.mrb[9].mxu0 }
 0x138   :  { %v6290_v34 = vpop.f32.mrb[8].mxu1  ;;  %v6270_v35 = vadd.f32 %v6269_v32, %v6268_v31  ;;  %v6271_v36 = vpop.f32.mrb[10].mxu0  ;;  %v3165_v31 = vld [vmem:[%s8629_s3 + $0x680] sm:$0xff]  ;;  %v3150_v32 = vld [vmem:[%s8629_s3 + $0x608] sm:$0xff] }
 0x139   :  { %v6291_v37 = vpop.f32.mrb[9].mxu1  ;;  %v6272_v38 = vpop.f32.mrb[11].mxu0  ;;  %v3166_v36 = vld [vmem:[%s8629_s3 + $0x688] sm:$0xff] }
 0x13a   :  { %v2510_v39 = vadd.f32 %v6270_v35, %v2470_v30  ;;  %v6292_v40 = vadd.f32 %v6291_v37, %v6290_v34  ;;  %v6293_v42 = vpop.f32.mrb[10].mxu1  ;;  %v3149_v30 = vld [vmem:[%s8629_s3 + $0x600] sm:$0xff] }
 0x13b   :  { %v6294_v43 = vpop.f32.mrb[11].mxu1  ;;  %v6085_v35 = vcombine.high %v3149_v30, %v3165_v31  ;;  %v6086_v42 = vcombine.low %v3150_v32, %v3166_v36 }
 0x13c   :  { %v7673_v44 = vadd.f32 %v6292_v40, %v2510_v39  ;;  %v6084_v40 = vcombine.low %v3149_v30, %v3165_v31  ;;  %v6087_v43 = vcombine.high %v3150_v32, %v3166_v36 }
 0x13d   :  { %4673 = vmatprep.subr.bf16.mxu0 %v6085_v35 }
 0x13e   :  { %4714 = vmatprep.subr.bf16.mxu1 %v6087_v43  ;;  %4674 = vmatpush1.bf16.msra.mxu0 %v6084_v40 }
 0x13f   :  { %4715 = vmatpush1.bf16.msra.mxu1 %v6086_v42  ;;  %4675 = vmatprep.subr.bf16.mxu0 %v6117_v54 }
 0x142   :  { %4676 = vmatpush1.bf16.msra.mxu0 %v6116_v56  ;;  %v3008_v56 = vld [vmem:[%s8629_s3 + $0x198] sm:$0xff] }
 0x143   :  { %4743 = vmatprep.subr.bf16.mxu0 %v5897_v0 }
 0x156   :  { %v6312_v29 = vpop.f32.mrb[12].mxu0 }
 0x157   :  { %v6313_v34 = vpop.f32.mrb[13].mxu0 }
 0x158   :  { %v6334_v37 = vpop.f32.mrb[12].mxu1  ;;  %v6314_v38 = vadd.f32 %v6313_v34, %v6312_v29  ;;  %v6315_v39 = vpop.f32.mrb[14].mxu0 }
 0x159   :  { %v6335_v45 = vpop.f32.mrb[13].mxu1  ;;  %v6316_v46 = vpop.f32.mrb[15].mxu0 }
 0x15a   :  { %v2590_v47 = vadd.f32 %v6314_v38, %v7673_v44  ;;  %v6336_v48 = vadd.f32 %v6335_v45, %v6334_v37  ;;  %v6337_v49 = vpop.f32.mrb[14].mxu1  ;;  %v3198_v44 = vld [vmem:[%s8629_s3 + $0x788] sm:$0xff] }
 0x15b   :  { %v6338_v53 = vpop.f32.mrb[15].mxu1  ;;  %v6118_v57 = vcombine.low %v3182_v52, %v3198_v44  ;;  %v6119_v58 = vcombine.high %v3182_v52, %v3198_v44  ;;  %v3007_v44 = vld [vmem:[%s8629_s3 + $0x190] sm:$0xff] }
 0x15c   :  { %v2630_v55 = vadd.f32 %v6336_v48, %v2590_v47  ;;  %v2991_v53 = vld [vmem:[%s8629_s3 + $0x110] sm:$0xff] }
 0x15d   :  { %4716 = vmatprep.subr.bf16.mxu1 %v6119_v58  ;;  %v5929_v0 = vcombine.high %v2991_v53, %v3007_v44 }
 0x15e   :  { %4717 = vmatpush1.bf16.msra.mxu1 %v6118_v57 }
 0x15f   :  { %4784 = vmatprep.subr.bf16.mxu1 %v5899_v3 }
 0x176   :  { %v6356_v4 = vpop.f32.mrb[16].mxu0 }
 0x177   :  { %v6357_v5 = vpop.f32.mrb[17].mxu0 }
 0x178   :  { %v6378_v6 = vpop.f32.mrb[16].mxu1  ;;  %v6358_v7 = vadd.f32 %v6357_v5, %v6356_v4  ;;  %v6359_v8 = vpop.f32.mrb[18].mxu0  ;;  %v3023_v4 = vld [vmem:[%s8629_s3 + $0x210] sm:$0xff] }
 0x179   :  { %v6379_v9 = vpop.f32.mrb[17].mxu1  ;;  %v6360_v10 = vpop.f32.mrb[19].mxu0  ;;  %v3039_v5 = vld [vmem:[%s8629_s3 + $0x290] sm:$0xff]  ;;  %v5928_v8 = vcombine.low %v2991_v53, %v3007_v44 }
 0x17a   :  { %v2670_v11 = vadd.f32 %v6358_v7, %v2630_v55  ;;  %v6380_v12 = vadd.f32 %v6379_v9, %v6378_v6  ;;  %v6381_v13 = vpop.f32.mrb[18].mxu1  ;;  %v2992_v55 = vld [vmem:[%s8629_s3 + $0x118] sm:$0xff]  ;;  %v5961_v10 = vcombine.high %v3023_v4, %v3039_v5  ;;  %v5960_v61 = vcombine.low %v3023_v4, %v3039_v5 }
 0x17b   :  { %v6382_v14 = vpop.f32.mrb[19].mxu1  ;;  %v5931_v3 = vcombine.high %v2992_v55, %v3008_v56  ;;  %v3024_v6 = vld [vmem:[%s8629_s3 + $0x218] sm:$0xff]  ;;  %v5930_v9 = vcombine.low %v2992_v55, %v3008_v56  ;;  %v3071_v13 = vld [vmem:[%s8629_s3 + $0x390] sm:$0xff]  ;;  %v2993_v56 = vld [vmem:[%s8629_s3 + $0x120] sm:$0xff] }
 0x17c   :  { %v2710_v15 = vadd.f32 %v6380_v12, %v2670_v11  ;;  %v3040_v7 = vld [vmem:[%s8629_s3 + $0x298] sm:$0xff]  ;;  %v3055_v12 = vld [vmem:[%s8629_s3 + $0x310] sm:$0xff] }
 0x17d   :  { %v5963_v11 = vcombine.high %v3024_v6, %v3040_v7  ;;  %v5993_v1 = vcombine.high %v3055_v12, %v3071_v13  ;;  %v3087_v14 = vld [vmem:[%s8629_s3 + $0x410] sm:$0xff] }
 0x196   :  { %v6400_v16 = vpop.f32.mrb[20].mxu0 }
 0x197   :  { %v6401_v17 = vpop.f32.mrb[21].mxu0 }
 0x198   :  { %v6422_v18 = vpop.f32.mrb[20].mxu1  ;;  %v6402_v19 = vadd.f32 %v6401_v17, %v6400_v16  ;;  %v6403_v20 = vpop.f32.mrb[22].mxu0  ;;  %v3088_v16 = vld [vmem:[%s8629_s3 + $0x418] sm:$0xff] }
 0x199   :  { %v6423_v21 = vpop.f32.mrb[21].mxu1  ;;  %v6404_v23 = vpop.f32.mrb[23].mxu0  ;;  %v3104_v17 = vld [vmem:[%s8629_s3 + $0x498] sm:$0xff] }
 0x19a   :  { %v2750_v24 = vadd.f32 %v6402_v19, %v2710_v15  ;;  %v6424_v25 = vadd.f32 %v6423_v21, %v6422_v18  ;;  %v6425_v26 = vpop.f32.mrb[22].mxu1  ;;  %v3103_v15 = vld [vmem:[%s8629_s3 + $0x490] sm:$0xff]  ;;  %v5992_v18 = vcombine.low %v3055_v12, %v3071_v13  ;;  %v5994_v19 = vcombine.low %v3056_v59, %v3072_v60 }
 0x19b   :  { %v6426_v27 = vpop.f32.mrb[23].mxu1  ;;  %v6025_v20 = vcombine.high %v3087_v14, %v3103_v15  ;;  %v6027_v21 = vcombine.high %v3088_v16, %v3104_v17  ;;  %v3119_v23 = vld [vmem:[%s8629_s3 + $0x510] sm:$0xff]  ;;  %v3136_v26 = vld [vmem:[%s8629_s3 + $0x598] sm:$0xff] }
 0x19c   :  { %v2790_v22 = vadd.f32 %v6424_v25, %v2750_v24  ;;  %v3135_v24 = vld [vmem:[%s8629_s3 + $0x590] sm:$0xff]  ;;  %v3120_v25 = vld [vmem:[%s8629_s3 + $0x518] sm:$0xff]  ;;  %v6024_v27 = vcombine.low %v3087_v14, %v3103_v15 }
 0x1b6   :  { %v6444_v28 = vpop.f32.mrb[24].mxu0 }
 0x1b7   :  { %v6445_v29 = vpop.f32.mrb[25].mxu0 }
 0x1b8   :  { %v6466_v30 = vpop.f32.mrb[24].mxu1  ;;  %v6446_v31 = vadd.f32 %v6445_v29, %v6444_v28  ;;  %v6447_v32 = vpop.f32.mrb[26].mxu0  ;;  %v6057_v28 = vcombine.high %v3119_v23, %v3135_v24  ;;  %v6059_v29 = vcombine.high %v3120_v25, %v3136_v26 }
 0x1b9   :  { %v6467_v34 = vpop.f32.mrb[25].mxu1  ;;  %v6448_v35 = vpop.f32.mrb[27].mxu0  ;;  %v3152_v32 = vld [vmem:[%s8629_s3 + $0x618] sm:$0xff] }
 0x1ba   :  { %v2830_v36 = vadd.f32 %v6446_v31, %v2790_v22  ;;  %v6468_v37 = vadd.f32 %v6467_v34, %v6466_v30  ;;  %v6469_v38 = vpop.f32.mrb[26].mxu1  ;;  %v6026_v22 = vcombine.low %v3088_v16, %v3104_v17  ;;  %v3151_v30 = vld [vmem:[%s8629_s3 + $0x610] sm:$0xff]  ;;  %v3168_v34 = vld [vmem:[%s8629_s3 + $0x698] sm:$0xff]  ;;  %v6056_v35 = vcombine.low %v3119_v23, %v3135_v24 }
 0x1bb   :  { %v6470_v39 = vpop.f32.mrb[27].mxu1  ;;  %v3167_v31 = vld [vmem:[%s8629_s3 + $0x690] sm:$0xff]  ;;  %v6091_v38 = vcombine.high %v3152_v32, %v3168_v34 }
 0x1bc   :  { %v2870_v40 = vadd.f32 %v6468_v37, %v2830_v36  ;;  %v6058_v36 = vcombine.low %v3120_v25, %v3136_v26  ;;  %v6089_v37 = vcombine.high %v3151_v30, %v3167_v31  ;;  %v3183_v39 = vld [vmem:[%s8629_s3 + $0x710] sm:$0xff] }
 0x1d6   :  { %v6488_v42 = vpop.f32.mrb[28].mxu0 }
 0x1d7   :  { %v6489_v43 = vpop.f32.mrb[29].mxu0 }
 0x1d8   :  { %v6510_v45 = vpop.f32.mrb[28].mxu1  ;;  %v6490_v46 = vadd.f32 %v6489_v43, %v6488_v42  ;;  %v6491_v47 = vpop.f32.mrb[30].mxu0  ;;  %v3184_v42 = vld [vmem:[%s8629_s3 + $0x718] sm:$0xff] }
 0x1d9   :  { %v6511_v48 = vpop.f32.mrb[29].mxu1  ;;  %v6492_v49 = vpop.f32.mrb[31].mxu0  ;;  %v3200_v43 = vld [vmem:[%s8629_s3 + $0x798] sm:$0xff] }
 0x1da   :  { %v2910_v50 = vadd.f32 %v6490_v46, %v2870_v40  ;;  %v6512_v51 = vadd.f32 %v6511_v48, %v6510_v45  ;;  %v6513_v52 = vpop.f32.mrb[30].mxu1  ;;  %v3199_v40 = vld [vmem:[%s8629_s3 + $0x790] sm:$0xff]  ;;  %v6088_v45 = vcombine.low %v3151_v30, %v3167_v31  ;;  %v6090_v46 = vcombine.low %v3152_v32, %v3168_v34  ;;  %v2961_v49 = vld [vmem:[%s8629_s3 + $0x20] sm:$0xff] }
 0x1db   :  { %v6514_v54 = vpop.f32.mrb[31].mxu1  ;;  %v6121_v47 = vcombine.high %v3183_v39, %v3199_v40  ;;  %v6123_v48 = vcombine.high %v3184_v42, %v3200_v43  ;;  %v2978_v52 = vld [vmem:[%s8629_s3 + $0xa8] sm:$0xff]  ;;  %v6120_v53 = vcombine.low %v3183_v39, %v3199_v40 }
 0x1dc   :  { %v2950_v57 = vadd.f32 %v6512_v51, %v2910_v50  ;;  %v2977_v50 = vld [vmem:[%s8629_s3 + $0xa0] sm:$0xff]  ;;  %v2962_v51 = vld [vmem:[%s8629_s3 + $0x28] sm:$0xff]  ;;  %v6122_v54 = vcombine.low %v3184_v42, %v3200_v43 }
 0x1dd   :  { %v5901_v44 = vcombine.high %v2961_v49, %v2977_v50  ;;  %v5903_v55 = vcombine.high %v2962_v51, %v2978_v52  ;;  %v5900_v4 = vcombine.low %v2961_v49, %v2977_v50  ;;  %v5902_v5 = vcombine.low %v2962_v51, %v2978_v52 }
 0x1de   :  { %v7814_v58 = vpack.c.bf16 %v2950_v57, %v2950_v57  ;;  %2955 = vst [vmem:[#allocation2] sm:$0x3] %v2950_v57  ;;  %v3009_v57 = vld [vmem:[%s8629_s3 + $0x1a0] sm:$0xff] }
 0x1df   :  { %v5932_v12 = vcombine.low %v2993_v56, %v3009_v57 }
 0x1e0   :  { %4694 = vmatmul.mubr.bf16.vlgmr.msra.gmra.mrb[32].mxu0 %v7814_v58  ;;  %4735 = vmatmul.mubr.bf16.vlgmr.msra.gmra.mrb[32].mxu1 %v7814_v58 }
 0x1e1   :  { %4744 = vmatpush1.bf16.msra.mxu0 %v5896_v63  ;;  %4785 = vmatpush1.bf16.msra.mxu1 %v5898_v2  ;;  %v5962_v63 = vcombine.low %v3024_v6, %v3040_v7  ;;  %v5995_v2 = vcombine.high %v3056_v59, %v3072_v60  ;;  %v5933_v6 = vcombine.high %v2993_v56, %v3009_v57 }
 0x1e2   :  { %4745 = vmatprep.subr.bf16.mxu0 %v5929_v0  ;;  %4786 = vmatprep.subr.bf16.mxu1 %v5931_v3  ;;  %v2994_v0 = vld [vmem:[%s8629_s3 + $0x128] sm:$0xff] }
 0x1e3   :  { %4775 = vmatprep.mubr.bf16.mxu0 %v6804_v62  ;;  %4816 = vmatprep.mubr.bf16.mxu1 %v6804_v62  ;;  %v3010_v3 = vld [vmem:[%s8629_s3 + $0x1a8] sm:$0xff] }
 0x1e4   :  { %v5935_v7 = vcombine.high %v2994_v0, %v3010_v3  ;;  %v5934_v13 = vcombine.low %v2994_v0, %v3010_v3 }
 0x1e5   :  { %4746 = vmatpush1.bf16.msra.mxu0 %v5928_v8  ;;  %4787 = vmatpush1.bf16.msra.mxu1 %v5930_v9  ;;  %v3025_v8 = vld [vmem:[%s8629_s3 + $0x220] sm:$0xff] }
 0x1e6   :  { %4747 = vmatprep.subr.bf16.mxu0 %v5961_v10  ;;  %4788 = vmatprep.subr.bf16.mxu1 %v5963_v11  ;;  %v3041_v9 = vld [vmem:[%s8629_s3 + $0x2a0] sm:$0xff]  ;;  %v3026_v10 = vld [vmem:[%s8629_s3 + $0x228] sm:$0xff] }
 0x1e7   :  { %v3042_v11 = vld [vmem:[%s8629_s3 + $0x2a8] sm:$0xff]  ;;  %v5965_v59 = vcombine.high %v3025_v8, %v3041_v9  ;;  %v5964_v14 = vcombine.low %v3025_v8, %v3041_v9 }
 0x1e8   :  { %v5967_v60 = vcombine.high %v3026_v10, %v3042_v11  ;;  %v5966_v15 = vcombine.low %v3026_v10, %v3042_v11 }
 0x1e9   :  { %4748 = vmatpush1.bf16.msra.mxu0 %v5960_v61  ;;  %4789 = vmatpush1.bf16.msra.mxu1 %v5962_v63  ;;  %v3057_v61 = vld [vmem:[%s8629_s3 + $0x320] sm:$0xff] }
 0x1ea   :  { %4749 = vmatprep.subr.bf16.mxu0 %v5993_v1  ;;  %4790 = vmatprep.subr.bf16.mxu1 %v5995_v2  ;;  %v3073_v63 = vld [vmem:[%s8629_s3 + $0x3a0] sm:$0xff]  ;;  %v3058_v1 = vld [vmem:[%s8629_s3 + $0x328] sm:$0xff] }
 0x1eb   :  { %v3074_v2 = vld [vmem:[%s8629_s3 + $0x3a8] sm:$0xff]  ;;  %v5997_v16 = vcombine.high %v3057_v61, %v3073_v63  ;;  %v5996_v23 = vcombine.low %v3057_v61, %v3073_v63 }
 0x1ec   :  { %v5999_v17 = vcombine.high %v3058_v1, %v3074_v2  ;;  %v5998_v24 = vcombine.low %v3058_v1, %v3074_v2 }
 0x1ed   :  { %4750 = vmatpush1.bf16.msra.mxu0 %v5992_v18  ;;  %4791 = vmatpush1.bf16.msra.mxu1 %v5994_v19  ;;  %v3089_v18 = vld [vmem:[%s8629_s3 + $0x420] sm:$0xff] }
 0x1ee   :  { %4751 = vmatprep.subr.bf16.mxu0 %v6025_v20  ;;  %4792 = vmatprep.subr.bf16.mxu1 %v6027_v21  ;;  %v3105_v19 = vld [vmem:[%s8629_s3 + $0x4a0] sm:$0xff]  ;;  %v3090_v20 = vld [vmem:[%s8629_s3 + $0x428] sm:$0xff] }
 0x1ef   :  { %v3106_v21 = vld [vmem:[%s8629_s3 + $0x4a8] sm:$0xff]  ;;  %v6029_v25 = vcombine.high %v3089_v18, %v3105_v19  ;;  %v6028_v30 = vcombine.low %v3089_v18, %v3105_v19 }
 0x1f0   :  { %v6031_v26 = vcombine.high %v3090_v20, %v3106_v21  ;;  %v6030_v31 = vcombine.low %v3090_v20, %v3106_v21 }
 0x1f1   :  { %4752 = vmatpush1.bf16.msra.mxu0 %v6024_v27  ;;  %4793 = vmatpush1.bf16.msra.mxu1 %v6026_v22  ;;  %v3121_v27 = vld [vmem:[%s8629_s3 + $0x520] sm:$0xff] }
 0x1f2   :  { %4753 = vmatprep.subr.bf16.mxu0 %v6057_v28  ;;  %4794 = vmatprep.subr.bf16.mxu1 %v6059_v29  ;;  %v3137_v22 = vld [vmem:[%s8629_s3 + $0x5a0] sm:$0xff]  ;;  %v3122_v28 = vld [vmem:[%s8629_s3 + $0x528] sm:$0xff] }
 0x1f3   :  { %v3138_v29 = vld [vmem:[%s8629_s3 + $0x5a8] sm:$0xff]  ;;  %v6061_v32 = vcombine.high %v3121_v27, %v3137_v22  ;;  %v6060_v39 = vcombine.low %v3121_v27, %v3137_v22 }
 0x1f4   :  { %v6063_v34 = vcombine.high %v3122_v28, %v3138_v29  ;;  %v6062_v40 = vcombine.low %v3122_v28, %v3138_v29 }
 0x1f5   :  { %4754 = vmatpush1.bf16.msra.mxu0 %v6056_v35  ;;  %4795 = vmatpush1.bf16.msra.mxu1 %v6058_v36  ;;  %v3153_v35 = vld [vmem:[%s8629_s3 + $0x620] sm:$0xff] }
 0x1f6   :  { %4755 = vmatprep.subr.bf16.mxu0 %v6089_v37  ;;  %4796 = vmatprep.subr.bf16.mxu1 %v6091_v38  ;;  %v3169_v36 = vld [vmem:[%s8629_s3 + $0x6a0] sm:$0xff]  ;;  %v3154_v37 = vld [vmem:[%s8629_s3 + $0x628] sm:$0xff] }
 0x1f7   :  { %v3170_v38 = vld [vmem:[%s8629_s3 + $0x6a8] sm:$0xff]  ;;  %v6093_v42 = vcombine.high %v3153_v35, %v3169_v36  ;;  %v6092_v49 = vcombine.low %v3153_v35, %v3169_v36 }
 0x1f8   :  { %v6095_v43 = vcombine.high %v3154_v37, %v3170_v38  ;;  %v6094_v50 = vcombine.low %v3154_v37, %v3170_v38 }
 0x1f9   :  { %4756 = vmatpush1.bf16.msra.mxu0 %v6088_v45  ;;  %4797 = vmatpush1.bf16.msra.mxu1 %v6090_v46  ;;  %v3185_v45 = vld [vmem:[%s8629_s3 + $0x720] sm:$0xff] }
 0x1fa   :  { %4757 = vmatprep.subr.bf16.mxu0 %v6121_v47  ;;  %4798 = vmatprep.subr.bf16.mxu1 %v6123_v48  ;;  %v3201_v46 = vld [vmem:[%s8629_s3 + $0x7a0] sm:$0xff]  ;;  %v3186_v47 = vld [vmem:[%s8629_s3 + $0x728] sm:$0xff] }
 0x1fb   :  { %v3202_v48 = vld [vmem:[%s8629_s3 + $0x7a8] sm:$0xff]  ;;  %v6125_v51 = vcombine.high %v3185_v45, %v3201_v46  ;;  %v6124_v56 = vcombine.low %v3185_v45, %v3201_v46 }
 0x1fc   :  { %v6127_v52 = vcombine.high %v3186_v47, %v3202_v48  ;;  %v6126_v57 = vcombine.low %v3186_v47, %v3202_v48 }
 0x1fd   :  { %4758 = vmatpush1.bf16.msra.mxu0 %v6120_v53  ;;  %4799 = vmatpush1.bf16.msra.mxu1 %v6122_v54  ;;  %v2963_v53 = vld [vmem:[%s8629_s3 + $0x30] sm:$0xff] }
 0x1fe   :  { %4825 = vmatprep.subr.bf16.mxu0 %v5901_v44  ;;  %4866 = vmatprep.subr.bf16.mxu1 %v5903_v55  ;;  %v2979_v54 = vld [vmem:[%s8629_s3 + $0xb0] sm:$0xff]  ;;  %v2964_v44 = vld [vmem:[%s8629_s3 + $0x38] sm:$0xff] }
 0x1ff   :  { %v2980_v55 = vld [vmem:[%s8629_s3 + $0xb8] sm:$0xff]  ;;  %v5905_v0 = vcombine.high %v2963_v53, %v2979_v54  ;;  %v5904_v8 = vcombine.low %v2963_v53, %v2979_v54 }
 0x200   :  { %4776 = vmatmul.mubr.bf16.vlgmr.msra.gmra.mrb[36].mxu0 %v7814_v58  ;;  %4817 = vmatmul.mubr.bf16.vlgmr.msra.gmra.mrb[36].mxu1 %v7814_v58  ;;  %v5907_v3 = vcombine.high %v2964_v44, %v2980_v55  ;;  %v5906_v9 = vcombine.low %v2964_v44, %v2980_v55 }
 0x201   :  { %4826 = vmatpush1.bf16.msra.mxu0 %v5900_v4  ;;  %4867 = vmatpush1.bf16.msra.mxu1 %v5902_v5  ;;  %v2995_v4 = vld [vmem:[%s8629_s3 + $0x130] sm:$0xff] }
 0x202   :  { %4827 = vmatprep.subr.bf16.mxu0 %v5933_v6  ;;  %4868 = vmatprep.subr.bf16.mxu1 %v5935_v7  ;;  %v3011_v5 = vld [vmem:[%s8629_s3 + $0x1b0] sm:$0xff]  ;;  %v2996_v6 = vld [vmem:[%s8629_s3 + $0x138] sm:$0xff] }
 0x203   :  { %4857 = vmatprep.mubr.bf16.mxu0 %v6804_v62  ;;  %4898 = vmatprep.mubr.bf16.mxu1 %v6804_v62  ;;  %v3012_v7 = vld [vmem:[%s8629_s3 + $0x1b8] sm:$0xff]  ;;  %v5937_v10 = vcombine.high %v2995_v4, %v3011_v5  ;;  %v5936_v61 = vcombine.low %v2995_v4, %v3011_v5 }
 0x204   :  { %v5939_v11 = vcombine.high %v2996_v6, %v3012_v7  ;;  %v5938_v63 = vcombine.low %v2996_v6, %v3012_v7 }
 0x205   :  { %4828 = vmatpush1.bf16.msra.mxu0 %v5932_v12  ;;  %4869 = vmatpush1.bf16.msra.mxu1 %v5934_v13  ;;  %v3027_v12 = vld [vmem:[%s8629_s3 + $0x230] sm:$0xff] }
 0x206   :  { %4829 = vmatprep.subr.bf16.mxu0 %v5965_v59  ;;  %4870 = vmatprep.subr.bf16.mxu1 %v5967_v60  ;;  %v3043_v13 = vld [vmem:[%s8629_s3 + $0x2b0] sm:$0xff]  ;;  %v3028_v59 = vld [vmem:[%s8629_s3 + $0x238] sm:$0xff] }
 0x207   :  { %v3044_v60 = vld [vmem:[%s8629_s3 + $0x2b8] sm:$0xff]  ;;  %v5969_v1 = vcombine.high %v3027_v12, %v3043_v13  ;;  %v5968_v18 = vcombine.low %v3027_v12, %v3043_v13 }
 0x208   :  { %v5971_v2 = vcombine.high %v3028_v59, %v3044_v60  ;;  %v5970_v19 = vcombine.low %v3028_v59, %v3044_v60 }
 0x209   :  { %4830 = vmatpush1.bf16.msra.mxu0 %v5964_v14  ;;  %4871 = vmatpush1.bf16.msra.mxu1 %v5966_v15  ;;  %v3059_v14 = vld [vmem:[%s8629_s3 + $0x330] sm:$0xff] }
 0x20a   :  { %4831 = vmatprep.subr.bf16.mxu0 %v5997_v16  ;;  %4872 = vmatprep.subr.bf16.mxu1 %v5999_v17  ;;  %v3075_v15 = vld [vmem:[%s8629_s3 + $0x3b0] sm:$0xff]  ;;  %v3060_v16 = vld [vmem:[%s8629_s3 + $0x338] sm:$0xff] }
 0x20b   :  { %v3076_v17 = vld [vmem:[%s8629_s3 + $0x3b8] sm:$0xff]  ;;  %v6001_v20 = vcombine.high %v3059_v14, %v3075_v15  ;;  %v6000_v27 = vcombine.low %v3059_v14, %v3075_v15 }
 0x20c   :  { %v6003_v21 = vcombine.high %v3060_v16, %v3076_v17  ;;  %v6002_v22 = vcombine.low %v3060_v16, %v3076_v17 }
 0x20d   :  { %4832 = vmatpush1.bf16.msra.mxu0 %v5996_v23  ;;  %4873 = vmatpush1.bf16.msra.mxu1 %v5998_v24  ;;  %v3091_v23 = vld [vmem:[%s8629_s3 + $0x430] sm:$0xff] }
 0x20e   :  { %4833 = vmatprep.subr.bf16.mxu0 %v6029_v25  ;;  %4874 = vmatprep.subr.bf16.mxu1 %v6031_v26  ;;  %v3107_v24 = vld [vmem:[%s8629_s3 + $0x4b0] sm:$0xff]  ;;  %v3092_v25 = vld [vmem:[%s8629_s3 + $0x438] sm:$0xff] }
 0x20f   :  { %v3108_v26 = vld [vmem:[%s8629_s3 + $0x4b8] sm:$0xff]  ;;  %v6033_v28 = vcombine.high %v3091_v23, %v3107_v24  ;;  %v6032_v35 = vcombine.low %v3091_v23, %v3107_v24 }
 0x210   :  { %v6035_v29 = vcombine.high %v3092_v25, %v3108_v26  ;;  %v6034_v36 = vcombine.low %v3092_v25, %v3108_v26 }
 0x211   :  { %4834 = vmatpush1.bf16.msra.mxu0 %v6028_v30  ;;  %4875 = vmatpush1.bf16.msra.mxu1 %v6030_v31  ;;  %v3123_v30 = vld [vmem:[%s8629_s3 + $0x530] sm:$0xff] }
 0x212   :  { %4835 = vmatprep.subr.bf16.mxu0 %v6061_v32  ;;  %4876 = vmatprep.subr.bf16.mxu1 %v6063_v34  ;;  %v3139_v31 = vld [vmem:[%s8629_s3 + $0x5b0] sm:$0xff]  ;;  %v3124_v32 = vld [vmem:[%s8629_s3 + $0x538] sm:$0xff] }
 0x213   :  { %v3140_v34 = vld [vmem:[%s8629_s3 + $0x5b8] sm:$0xff]  ;;  %v6065_v37 = vcombine.high %v3123_v30, %v3139_v31  ;;  %v6064_v45 = vcombine.low %v3123_v30, %v3139_v31 }
 0x214   :  { %v6067_v38 = vcombine.high %v3124_v32, %v3140_v34  ;;  %v6066_v46 = vcombine.low %v3124_v32, %v3140_v34 }
 0x215   :  { %4836 = vmatpush1.bf16.msra.mxu0 %v6060_v39  ;;  %4877 = vmatpush1.bf16.msra.mxu1 %v6062_v40  ;;  %v3155_v39 = vld [vmem:[%s8629_s3 + $0x630] sm:$0xff] }
 0x216   :  { %4837 = vmatprep.subr.bf16.mxu0 %v6093_v42  ;;  %4878 = vmatprep.subr.bf16.mxu1 %v6095_v43  ;;  %v3171_v40 = vld [vmem:[%s8629_s3 + $0x6b0] sm:$0xff]  ;;  %v3156_v42 = vld [vmem:[%s8629_s3 + $0x638] sm:$0xff] }
 0x217   :  { %v3172_v43 = vld [vmem:[%s8629_s3 + $0x6b8] sm:$0xff]  ;;  %v6097_v47 = vcombine.high %v3155_v39, %v3171_v40  ;;  %v6096_v53 = vcombine.low %v3155_v39, %v3171_v40 }
 0x218   :  { %v6099_v48 = vcombine.high %v3156_v42, %v3172_v43  ;;  %v6098_v54 = vcombine.low %v3156_v42, %v3172_v43 }
 0x219   :  { %4838 = vmatpush1.bf16.msra.mxu0 %v6092_v49  ;;  %4879 = vmatpush1.bf16.msra.mxu1 %v6094_v50  ;;  %v3187_v49 = vld [vmem:[%s8629_s3 + $0x730] sm:$0xff] }
 0x21a   :  { %4839 = vmatprep.subr.bf16.mxu0 %v6125_v51  ;;  %4880 = vmatprep.subr.bf16.mxu1 %v6127_v52  ;;  %v3203_v50 = vld [vmem:[%s8629_s3 + $0x7b0] sm:$0xff]  ;;  %v3188_v51 = vld [vmem:[%s8629_s3 + $0x738] sm:$0xff] }
 0x21b   :  { %v3204_v52 = vld [vmem:[%s8629_s3 + $0x7b8] sm:$0xff]  ;;  %v6129_v44 = vcombine.high %v3187_v49, %v3203_v50  ;;  %v6128_v4 = vcombine.low %v3187_v49, %v3203_v50 }
 0x21c   :  { %v6131_v55 = vcombine.high %v3188_v51, %v3204_v52  ;;  %v6130_v5 = vcombine.low %v3188_v51, %v3204_v52 }
 0x21d   :  { %4840 = vmatpush1.bf16.msra.mxu0 %v6124_v56  ;;  %4881 = vmatpush1.bf16.msra.mxu1 %v6126_v57  ;;  %v2965_v56 = vld [vmem:[%s8629_s3 + $0x40] sm:$0xff] }
 0x21e   :  { %4907 = vmatprep.subr.bf16.mxu0 %v5905_v0  ;;  %4948 = vmatprep.subr.bf16.mxu1 %v5907_v3  ;;  %v2981_v57 = vld [vmem:[%s8629_s3 + $0xc0] sm:$0xff]  ;;  %v2966_v0 = vld [vmem:[%s8629_s3 + $0x48] sm:$0xff] }
 0x21f   :  { %v2982_v3 = vld [vmem:[%s8629_s3 + $0xc8] sm:$0xff]  ;;  %v5909_v6 = vcombine.high %v2965_v56, %v2981_v57  ;;  %v5908_v12 = vcombine.low %v2965_v56, %v2981_v57 }
 0x220   :  { %4858 = vmatmul.mubr.bf16.vlgmr.msra.gmra.mrb[40].mxu0 %v7814_v58  ;;  %4899 = vmatmul.mubr.bf16.vlgmr.msra.gmra.mrb[40].mxu1 %v7814_v58  ;;  %v5911_v7 = vcombine.high %v2966_v0, %v2982_v3  ;;  %v5910_v13 = vcombine.low %v2966_v0, %v2982_v3 }
 0x221   :  { %4908 = vmatpush1.bf16.msra.mxu0 %v5904_v8  ;;  %4949 = vmatpush1.bf16.msra.mxu1 %v5906_v9  ;;  %v2997_v8 = vld [vmem:[%s8629_s3 + $0x140] sm:$0xff] }
 0x222   :  { %4909 = vmatprep.subr.bf16.mxu0 %v5937_v10  ;;  %4950 = vmatprep.subr.bf16.mxu1 %v5939_v11  ;;  %v3013_v9 = vld [vmem:[%s8629_s3 + $0x1c0] sm:$0xff]  ;;  %v2998_v10 = vld [vmem:[%s8629_s3 + $0x148] sm:$0xff] }
 0x223   :  { %4939 = vmatprep.mubr.bf16.mxu0 %v6804_v62  ;;  %4980 = vmatprep.mubr.bf16.mxu1 %v6804_v62  ;;  %v3014_v11 = vld [vmem:[%s8629_s3 + $0x1c8] sm:$0xff]  ;;  %v5941_v59 = vcombine.high %v2997_v8, %v3013_v9  ;;  %v5940_v14 = vcombine.low %v2997_v8, %v3013_v9 }
 0x224   :  { %v5943_v60 = vcombine.high %v2998_v10, %v3014_v11  ;;  %v5942_v15 = vcombine.low %v2998_v10, %v3014_v11 }
 0x225   :  { %4910 = vmatpush1.bf16.msra.mxu0 %v5936_v61  ;;  %4951 = vmatpush1.bf16.msra.mxu1 %v5938_v63  ;;  %v3029_v61 = vld [vmem:[%s8629_s3 + $0x240] sm:$0xff] }
 0x226   :  { %4911 = vmatprep.subr.bf16.mxu0 %v5969_v1  ;;  %4952 = vmatprep.subr.bf16.mxu1 %v5971_v2  ;;  %v3045_v63 = vld [vmem:[%s8629_s3 + $0x2c0] sm:$0xff]  ;;  %v3030_v1 = vld [vmem:[%s8629_s3 + $0x248] sm:$0xff] }
 0x227   :  { %v3046_v2 = vld [vmem:[%s8629_s3 + $0x2c8] sm:$0xff]  ;;  %v5973_v16 = vcombine.high %v3029_v61, %v3045_v63  ;;  %v5972_v23 = vcombine.low %v3029_v61, %v3045_v63 }
 0x228   :  { %v5975_v17 = vcombine.high %v3030_v1, %v3046_v2  ;;  %v5974_v24 = vcombine.low %v3030_v1, %v3046_v2 }
 0x229   :  { %4912 = vmatpush1.bf16.msra.mxu0 %v5968_v18  ;;  %4953 = vmatpush1.bf16.msra.mxu1 %v5970_v19  ;;  %v3061_v18 = vld [vmem:[%s8629_s3 + $0x340] sm:$0xff] }
 0x22a   :  { %4913 = vmatprep.subr.bf16.mxu0 %v6001_v20  ;;  %4954 = vmatprep.subr.bf16.mxu1 %v6003_v21  ;;  %v3077_v19 = vld [vmem:[%s8629_s3 + $0x3c0] sm:$0xff]  ;;  %v3062_v20 = vld [vmem:[%s8629_s3 + $0x348] sm:$0xff] }
 0x22b   :  { %v3078_v21 = vld [vmem:[%s8629_s3 + $0x3c8] sm:$0xff]  ;;  %v6005_v25 = vcombine.high %v3061_v18, %v3077_v19  ;;  %v6004_v30 = vcombine.low %v3061_v18, %v3077_v19 }
 0x22c   :  { %v6007_v26 = vcombine.high %v3062_v20, %v3078_v21  ;;  %v6006_v31 = vcombine.low %v3062_v20, %v3078_v21 }
 0x22d   :  { %4914 = vmatpush1.bf16.msra.mxu0 %v6000_v27  ;;  %4955 = vmatpush1.bf16.msra.mxu1 %v6002_v22  ;;  %v3093_v27 = vld [vmem:[%s8629_s3 + $0x440] sm:$0xff] }
 0x22e   :  { %4915 = vmatprep.subr.bf16.mxu0 %v6033_v28  ;;  %4956 = vmatprep.subr.bf16.mxu1 %v6035_v29  ;;  %v3109_v22 = vld [vmem:[%s8629_s3 + $0x4c0] sm:$0xff]  ;;  %v3094_v28 = vld [vmem:[%s8629_s3 + $0x448] sm:$0xff] }
 0x22f   :  { %v3110_v29 = vld [vmem:[%s8629_s3 + $0x4c8] sm:$0xff]  ;;  %v6037_v32 = vcombine.high %v3093_v27, %v3109_v22  ;;  %v6036_v39 = vcombine.low %v3093_v27, %v3109_v22 }
 0x230   :  { %v6039_v34 = vcombine.high %v3094_v28, %v3110_v29  ;;  %v6038_v40 = vcombine.low %v3094_v28, %v3110_v29 }
 0x231   :  { %4916 = vmatpush1.bf16.msra.mxu0 %v6032_v35  ;;  %4957 = vmatpush1.bf16.msra.mxu1 %v6034_v36  ;;  %v3125_v35 = vld [vmem:[%s8629_s3 + $0x540] sm:$0xff] }
 0x232   :  { %4917 = vmatprep.subr.bf16.mxu0 %v6065_v37  ;;  %4958 = vmatprep.subr.bf16.mxu1 %v6067_v38  ;;  %v3141_v36 = vld [vmem:[%s8629_s3 + $0x5c0] sm:$0xff]  ;;  %v3126_v37 = vld [vmem:[%s8629_s3 + $0x548] sm:$0xff] }
 0x233   :  { %v3142_v38 = vld [vmem:[%s8629_s3 + $0x5c8] sm:$0xff]  ;;  %v6069_v42 = vcombine.high %v3125_v35, %v3141_v36  ;;  %v6068_v49 = vcombine.low %v3125_v35, %v3141_v36 }
 0x234   :  { %v6071_v43 = vcombine.high %v3126_v37, %v3142_v38  ;;  %v6070_v50 = vcombine.low %v3126_v37, %v3142_v38 }
 0x235   :  { %4918 = vmatpush1.bf16.msra.mxu0 %v6064_v45  ;;  %4959 = vmatpush1.bf16.msra.mxu1 %v6066_v46  ;;  %v3157_v45 = vld [vmem:[%s8629_s3 + $0x640] sm:$0xff] }
 0x236   :  { %4919 = vmatprep.subr.bf16.mxu0 %v6097_v47  ;;  %4960 = vmatprep.subr.bf16.mxu1 %v6099_v48  ;;  %v3173_v46 = vld [vmem:[%s8629_s3 + $0x6c0] sm:$0xff]  ;;  %v3158_v47 = vld [vmem:[%s8629_s3 + $0x648] sm:$0xff] }
 0x237   :  { %v3174_v48 = vld [vmem:[%s8629_s3 + $0x6c8] sm:$0xff]  ;;  %v6101_v51 = vcombine.high %v3157_v45, %v3173_v46  ;;  %v6100_v56 = vcombine.low %v3157_v45, %v3173_v46 }
 0x238   :  { %v6103_v52 = vcombine.high %v3158_v47, %v3174_v48  ;;  %v6102_v57 = vcombine.low %v3158_v47, %v3174_v48 }
 0x239   :  { %4920 = vmatpush1.bf16.msra.mxu0 %v6096_v53  ;;  %4961 = vmatpush1.bf16.msra.mxu1 %v6098_v54  ;;  %v3189_v53 = vld [vmem:[%s8629_s3 + $0x740] sm:$0xff] }
 0x23a   :  { %4921 = vmatprep.subr.bf16.mxu0 %v6129_v44  ;;  %4962 = vmatprep.subr.bf16.mxu1 %v6131_v55  ;;  %v3205_v54 = vld [vmem:[%s8629_s3 + $0x7c0] sm:$0xff]  ;;  %v3190_v44 = vld [vmem:[%s8629_s3 + $0x748] sm:$0xff] }
 0x23b   :  { %v3206_v55 = vld [vmem:[%s8629_s3 + $0x7c8] sm:$0xff]  ;;  %v6133_v0 = vcombine.high %v3189_v53, %v3205_v54  ;;  %v6132_v8 = vcombine.low %v3189_v53, %v3205_v54 }
 0x23c   :  { %v6135_v3 = vcombine.high %v3190_v44, %v3206_v55  ;;  %v6134_v9 = vcombine.low %v3190_v44, %v3206_v55 }
 0x23d   :  { %4922 = vmatpush1.bf16.msra.mxu0 %v6128_v4  ;;  %4963 = vmatpush1.bf16.msra.mxu1 %v6130_v5  ;;  %v2967_v4 = vld [vmem:[%s8629_s3 + $0x50] sm:$0xff] }
 0x23e   :  { %4989 = vmatprep.subr.bf16.mxu0 %v5909_v6  ;;  %5030 = vmatprep.subr.bf16.mxu1 %v5911_v7  ;;  %v2983_v5 = vld [vmem:[%s8629_s3 + $0xd0] sm:$0xff]  ;;  %v2968_v6 = vld [vmem:[%s8629_s3 + $0x58] sm:$0xff] }
 0x23f   :  { %v2984_v7 = vld [vmem:[%s8629_s3 + $0xd8] sm:$0xff]  ;;  %v5913_v10 = vcombine.high %v2967_v4, %v2983_v5  ;;  %v5912_v61 = vcombine.low %v2967_v4, %v2983_v5 }
 0x240   :  { %4940 = vmatmul.mubr.bf16.vlgmr.msra.gmra.mrb[44].mxu0 %v7814_v58  ;;  %4981 = vmatmul.mubr.bf16.vlgmr.msra.gmra.mrb[44].mxu1 %v7814_v58  ;;  %v5915_v11 = vcombine.high %v2968_v6, %v2984_v7  ;;  %v5914_v63 = vcombine.low %v2968_v6, %v2984_v7 }
 0x241   :  { %4990 = vmatpush1.bf16.msra.mxu0 %v5908_v12  ;;  %5031 = vmatpush1.bf16.msra.mxu1 %v5910_v13  ;;  %v2999_v12 = vld [vmem:[%s8629_s3 + $0x150] sm:$0xff] }
 0x242   :  { %4991 = vmatprep.subr.bf16.mxu0 %v5941_v59  ;;  %5032 = vmatprep.subr.bf16.mxu1 %v5943_v60  ;;  %v3015_v13 = vld [vmem:[%s8629_s3 + $0x1d0] sm:$0xff]  ;;  %v3000_v59 = vld [vmem:[%s8629_s3 + $0x158] sm:$0xff] }
 0x243   :  { %5021 = vmatprep.mubr.bf16.mxu0 %v6804_v62  ;;  %5062 = vmatprep.mubr.bf16.mxu1 %v6804_v62  ;;  %v3016_v60 = vld [vmem:[%s8629_s3 + $0x1d8] sm:$0xff]  ;;  %v5945_v1 = vcombine.high %v2999_v12, %v3015_v13  ;;  %v5944_v18 = vcombine.low %v2999_v12, %v3015_v13 }
 0x244   :  { %v5947_v2 = vcombine.high %v3000_v59, %v3016_v60  ;;  %v5946_v19 = vcombine.low %v3000_v59, %v3016_v60 }
 0x245   :  { %4992 = vmatpush1.bf16.msra.mxu0 %v5940_v14  ;;  %5033 = vmatpush1.bf16.msra.mxu1 %v5942_v15  ;;  %v3031_v14 = vld [vmem:[%s8629_s3 + $0x250] sm:$0xff] }
 0x246   :  { %4993 = vmatprep.subr.bf16.mxu0 %v5973_v16  ;;  %5034 = vmatprep.subr.bf16.mxu1 %v5975_v17  ;;  %v3047_v15 = vld [vmem:[%s8629_s3 + $0x2d0] sm:$0xff]  ;;  %v3032_v16 = vld [vmem:[%s8629_s3 + $0x258] sm:$0xff] }
 0x247   :  { %v3048_v17 = vld [vmem:[%s8629_s3 + $0x2d8] sm:$0xff]  ;;  %v5977_v20 = vcombine.high %v3031_v14, %v3047_v15  ;;  %v5976_v27 = vcombine.low %v3031_v14, %v3047_v15 }
 0x248   :  { %v5979_v21 = vcombine.high %v3032_v16, %v3048_v17  ;;  %v5978_v22 = vcombine.low %v3032_v16, %v3048_v17 }
 0x249   :  { %4994 = vmatpush1.bf16.msra.mxu0 %v5972_v23  ;;  %5035 = vmatpush1.bf16.msra.mxu1 %v5974_v24  ;;  %v3063_v23 = vld [vmem:[%s8629_s3 + $0x350] sm:$0xff] }
 0x24a   :  { %4995 = vmatprep.subr.bf16.mxu0 %v6005_v25  ;;  %5036 = vmatprep.subr.bf16.mxu1 %v6007_v26  ;;  %v3079_v24 = vld [vmem:[%s8629_s3 + $0x3d0] sm:$0xff]  ;;  %v3064_v25 = vld [vmem:[%s8629_s3 + $0x358] sm:$0xff] }
 0x24b   :  { %v3080_v26 = vld [vmem:[%s8629_s3 + $0x3d8] sm:$0xff]  ;;  %v6009_v28 = vcombine.high %v3063_v23, %v3079_v24  ;;  %v6008_v35 = vcombine.low %v3063_v23, %v3079_v24 }
 0x24c   :  { %v6011_v29 = vcombine.high %v3064_v25, %v3080_v26  ;;  %v6010_v36 = vcombine.low %v3064_v25, %v3080_v26 }
 0x24d   :  { %4996 = vmatpush1.bf16.msra.mxu0 %v6004_v30  ;;  %5037 = vmatpush1.bf16.msra.mxu1 %v6006_v31  ;;  %v3095_v30 = vld [vmem:[%s8629_s3 + $0x450] sm:$0xff] }
 0x24e   :  { %4997 = vmatprep.subr.bf16.mxu0 %v6037_v32  ;;  %5038 = vmatprep.subr.bf16.mxu1 %v6039_v34  ;;  %v3111_v31 = vld [vmem:[%s8629_s3 + $0x4d0] sm:$0xff]  ;;  %v3096_v32 = vld [vmem:[%s8629_s3 + $0x458] sm:$0xff] }
 0x24f   :  { %v3112_v34 = vld [vmem:[%s8629_s3 + $0x4d8] sm:$0xff]  ;;  %v6041_v37 = vcombine.high %v3095_v30, %v3111_v31  ;;  %v6040_v45 = vcombine.low %v3095_v30, %v3111_v31 }
 0x250   :  { %v6043_v38 = vcombine.high %v3096_v32, %v3112_v34  ;;  %v6042_v46 = vcombine.low %v3096_v32, %v3112_v34 }
 0x251   :  { %4998 = vmatpush1.bf16.msra.mxu0 %v6036_v39  ;;  %5039 = vmatpush1.bf16.msra.mxu1 %v6038_v40  ;;  %v3127_v39 = vld [vmem:[%s8629_s3 + $0x550] sm:$0xff] }
 0x252   :  { %4999 = vmatprep.subr.bf16.mxu0 %v6069_v42  ;;  %5040 = vmatprep.subr.bf16.mxu1 %v6071_v43  ;;  %v3143_v40 = vld [vmem:[%s8629_s3 + $0x5d0] sm:$0xff]  ;;  %v3128_v42 = vld [vmem:[%s8629_s3 + $0x558] sm:$0xff] }
 0x253   :  { %v3144_v43 = vld [vmem:[%s8629_s3 + $0x5d8] sm:$0xff]  ;;  %v6073_v47 = vcombine.high %v3127_v39, %v3143_v40  ;;  %v6072_v53 = vcombine.low %v3127_v39, %v3143_v40 }
 0x254   :  { %v6075_v48 = vcombine.high %v3128_v42, %v3144_v43  ;;  %v6074_v54 = vcombine.low %v3128_v42, %v3144_v43 }
 0x255   :  { %5000 = vmatpush1.bf16.msra.mxu0 %v6068_v49  ;;  %5041 = vmatpush1.bf16.msra.mxu1 %v6070_v50  ;;  %v3159_v49 = vld [vmem:[%s8629_s3 + $0x650] sm:$0xff] }
 0x256   :  { %5001 = vmatprep.subr.bf16.mxu0 %v6101_v51  ;;  %5042 = vmatprep.subr.bf16.mxu1 %v6103_v52  ;;  %v3175_v50 = vld [vmem:[%s8629_s3 + $0x6d0] sm:$0xff]  ;;  %v3160_v51 = vld [vmem:[%s8629_s3 + $0x658] sm:$0xff] }
 0x257   :  { %v3176_v52 = vld [vmem:[%s8629_s3 + $0x6d8] sm:$0xff]  ;;  %v6105_v44 = vcombine.high %v3159_v49, %v3175_v50  ;;  %v6104_v4 = vcombine.low %v3159_v49, %v3175_v50 }
 0x258   :  { %v6107_v55 = vcombine.high %v3160_v51, %v3176_v52  ;;  %v6106_v5 = vcombine.low %v3160_v51, %v3176_v52 }
 0x259   :  { %5002 = vmatpush1.bf16.msra.mxu0 %v6100_v56  ;;  %5043 = vmatpush1.bf16.msra.mxu1 %v6102_v57  ;;  %v3191_v56 = vld [vmem:[%s8629_s3 + $0x750] sm:$0xff] }
 0x25a   :  { %5003 = vmatprep.subr.bf16.mxu0 %v6133_v0  ;;  %5044 = vmatprep.subr.bf16.mxu1 %v6135_v3  ;;  %v3207_v57 = vld [vmem:[%s8629_s3 + $0x7d0] sm:$0xff]  ;;  %v3192_v0 = vld [vmem:[%s8629_s3 + $0x758] sm:$0xff] }
 0x25b   :  { %v3208_v3 = vld [vmem:[%s8629_s3 + $0x7d8] sm:$0xff]  ;;  %v6137_v6 = vcombine.high %v3191_v56, %v3207_v57  ;;  %v6136_v12 = vcombine.low %v3191_v56, %v3207_v57 }
 0x25c   :  { %v6139_v7 = vcombine.high %v3192_v0, %v3208_v3  ;;  %v6138_v13 = vcombine.low %v3192_v0, %v3208_v3 }
 0x25d   :  { %5004 = vmatpush1.bf16.msra.mxu0 %v6132_v8  ;;  %5045 = vmatpush1.bf16.msra.mxu1 %v6134_v9  ;;  %v2969_v8 = vld [vmem:[%s8629_s3 + $0x60] sm:$0xff] }
 0x25e   :  { %5071 = vmatprep.subr.bf16.mxu0 %v5913_v10  ;;  %5112 = vmatprep.subr.bf16.mxu1 %v5915_v11  ;;  %v2985_v9 = vld [vmem:[%s8629_s3 + $0xe0] sm:$0xff]  ;;  %v2970_v10 = vld [vmem:[%s8629_s3 + $0x68] sm:$0xff] }
 0x25f   :  { %v2986_v11 = vld [vmem:[%s8629_s3 + $0xe8] sm:$0xff]  ;;  %v5917_v59 = vcombine.high %v2969_v8, %v2985_v9  ;;  %v5916_v14 = vcombine.low %v2969_v8, %v2985_v9 }
 0x260   :  { %5022 = vmatmul.mubr.bf16.vlgmr.msra.gmra.mrb[48].mxu0 %v7814_v58  ;;  %5063 = vmatmul.mubr.bf16.vlgmr.msra.gmra.mrb[48].mxu1 %v7814_v58  ;;  %v5919_v60 = vcombine.high %v2970_v10, %v2986_v11  ;;  %v5918_v15 = vcombine.low %v2970_v10, %v2986_v11 }
 0x261   :  { %5072 = vmatpush1.bf16.msra.mxu0 %v5912_v61  ;;  %5113 = vmatpush1.bf16.msra.mxu1 %v5914_v63  ;;  %v3001_v61 = vld [vmem:[%s8629_s3 + $0x160] sm:$0xff] }
 0x262   :  { %5073 = vmatprep.subr.bf16.mxu0 %v5945_v1  ;;  %5114 = vmatprep.subr.bf16.mxu1 %v5947_v2  ;;  %v3017_v63 = vld [vmem:[%s8629_s3 + $0x1e0] sm:$0xff]  ;;  %v3002_v1 = vld [vmem:[%s8629_s3 + $0x168] sm:$0xff] }
 0x263   :  { %5103 = vmatprep.mubr.bf16.mxu0 %v6804_v62  ;;  %5144 = vmatprep.mubr.bf16.mxu1 %v6804_v62  ;;  %v3018_v2 = vld [vmem:[%s8629_s3 + $0x1e8] sm:$0xff]  ;;  %v5949_v16 = vcombine.high %v3001_v61, %v3017_v63  ;;  %v5948_v23 = vcombine.low %v3001_v61, %v3017_v63 }
 0x264   :  { %v5951_v17 = vcombine.high %v3002_v1, %v3018_v2  ;;  %v5950_v24 = vcombine.low %v3002_v1, %v3018_v2 }
 0x265   :  { %5074 = vmatpush1.bf16.msra.mxu0 %v5944_v18  ;;  %5115 = vmatpush1.bf16.msra.mxu1 %v5946_v19  ;;  %v3033_v18 = vld [vmem:[%s8629_s3 + $0x260] sm:$0xff] }
 0x266   :  { %5075 = vmatprep.subr.bf16.mxu0 %v5977_v20  ;;  %5116 = vmatprep.subr.bf16.mxu1 %v5979_v21  ;;  %v3049_v19 = vld [vmem:[%s8629_s3 + $0x2e0] sm:$0xff]  ;;  %v3034_v20 = vld [vmem:[%s8629_s3 + $0x268] sm:$0xff] }
 0x267   :  { %v3050_v21 = vld [vmem:[%s8629_s3 + $0x2e8] sm:$0xff]  ;;  %v5981_v25 = vcombine.high %v3033_v18, %v3049_v19  ;;  %v5980_v30 = vcombine.low %v3033_v18, %v3049_v19 }
 0x268   :  { %v5983_v26 = vcombine.high %v3034_v20, %v3050_v21  ;;  %v5982_v31 = vcombine.low %v3034_v20, %v3050_v21 }
 0x269   :  { %5076 = vmatpush1.bf16.msra.mxu0 %v5976_v27  ;;  %5117 = vmatpush1.bf16.msra.mxu1 %v5978_v22  ;;  %v3065_v27 = vld [vmem:[%s8629_s3 + $0x360] sm:$0xff] }
 0x26a   :  { %5077 = vmatprep.subr.bf16.mxu0 %v6009_v28  ;;  %5118 = vmatprep.subr.bf16.mxu1 %v6011_v29  ;;  %v3081_v22 = vld [vmem:[%s8629_s3 + $0x3e0] sm:$0xff]  ;;  %v3066_v28 = vld [vmem:[%s8629_s3 + $0x368] sm:$0xff] }
 0x26b   :  { %v3082_v29 = vld [vmem:[%s8629_s3 + $0x3e8] sm:$0xff]  ;;  %v6013_v32 = vcombine.high %v3065_v27, %v3081_v22  ;;  %v6012_v39 = vcombine.low %v3065_v27, %v3081_v22 }
 0x26c   :  { %v6015_v34 = vcombine.high %v3066_v28, %v3082_v29  ;;  %v6014_v40 = vcombine.low %v3066_v28, %v3082_v29 }
 0x26d   :  { %5078 = vmatpush1.bf16.msra.mxu0 %v6008_v35  ;;  %5119 = vmatpush1.bf16.msra.mxu1 %v6010_v36  ;;  %v3097_v35 = vld [vmem:[%s8629_s3 + $0x460] sm:$0xff] }
 0x26e   :  { %5079 = vmatprep.subr.bf16.mxu0 %v6041_v37  ;;  %5120 = vmatprep.subr.bf16.mxu1 %v6043_v38  ;;  %v3113_v36 = vld [vmem:[%s8629_s3 + $0x4e0] sm:$0xff]  ;;  %v3098_v37 = vld [vmem:[%s8629_s3 + $0x468] sm:$0xff] }
 0x26f   :  { %v3114_v38 = vld [vmem:[%s8629_s3 + $0x4e8] sm:$0xff]  ;;  %v6045_v42 = vcombine.high %v3097_v35, %v3113_v36  ;;  %v6044_v49 = vcombine.low %v3097_v35, %v3113_v36 }
 0x270   :  { %v6047_v43 = vcombine.high %v3098_v37, %v3114_v38  ;;  %v6046_v50 = vcombine.low %v3098_v37, %v3114_v38 }
 0x271   :  { %5080 = vmatpush1.bf16.msra.mxu0 %v6040_v45  ;;  %5121 = vmatpush1.bf16.msra.mxu1 %v6042_v46  ;;  %v3129_v45 = vld [vmem:[%s8629_s3 + $0x560] sm:$0xff] }
 0x272   :  { %5081 = vmatprep.subr.bf16.mxu0 %v6073_v47  ;;  %5122 = vmatprep.subr.bf16.mxu1 %v6075_v48  ;;  %v3145_v46 = vld [vmem:[%s8629_s3 + $0x5e0] sm:$0xff]  ;;  %v3130_v47 = vld [vmem:[%s8629_s3 + $0x568] sm:$0xff] }
 0x273   :  { %v3146_v48 = vld [vmem:[%s8629_s3 + $0x5e8] sm:$0xff]  ;;  %v6077_v51 = vcombine.high %v3129_v45, %v3145_v46  ;;  %v6076_v56 = vcombine.low %v3129_v45, %v3145_v46 }
 0x274   :  { %v6079_v52 = vcombine.high %v3130_v47, %v3146_v48  ;;  %v6078_v57 = vcombine.low %v3130_v47, %v3146_v48  ;;  %v3131_v48 = vld [vmem:[%s8629_s3 + $0x570] sm:$0xff] }
 0x275   :  { %5082 = vmatpush1.bf16.msra.mxu0 %v6072_v53  ;;  %5123 = vmatpush1.bf16.msra.mxu1 %v6074_v54  ;;  %v3161_v53 = vld [vmem:[%s8629_s3 + $0x660] sm:$0xff] }
 0x276   :  { %5083 = vmatprep.subr.bf16.mxu0 %v6105_v44  ;;  %5124 = vmatprep.subr.bf16.mxu1 %v6107_v55  ;;  %v3177_v54 = vld [vmem:[%s8629_s3 + $0x6e0] sm:$0xff]  ;;  %v3162_v44 = vld [vmem:[%s8629_s3 + $0x668] sm:$0xff] }
 0x277   :  { %v3178_v55 = vld [vmem:[%s8629_s3 + $0x6e8] sm:$0xff]  ;;  %v6109_v0 = vcombine.high %v3161_v53, %v3177_v54  ;;  %v6108_v8 = vcombine.low %v3161_v53, %v3177_v54  ;;  %v8478_v53 = vsub.s32 2, %v6937_v33 }
 0x278   :  { %v6111_v3 = vcombine.high %v3162_v44, %v3178_v55  ;;  %v6110_v9 = vcombine.low %v3162_v44, %v3178_v55  ;;  %v8483_v55 = vld [vmem:[%s8630_s4] sm:$0xff] }
 0x279   :  { %5084 = vmatpush1.bf16.msra.mxu0 %v6104_v4  ;;  %5125 = vmatpush1.bf16.msra.mxu1 %v6106_v5  ;;  %v3193_v4 = vld [vmem:[%s8629_s3 + $0x760] sm:$0xff] }
 0x27a   :  { %5085 = vmatprep.subr.bf16.mxu0 %v6137_v6  ;;  %5126 = vmatprep.subr.bf16.mxu1 %v6139_v7  ;;  %v3209_v5 = vld [vmem:[%s8629_s3 + $0x7e0] sm:$0xff]  ;;  %v3194_v6 = vld [vmem:[%s8629_s3 + $0x768] sm:$0xff] }
 0x27b   :  { %v3210_v7 = vld [vmem:[%s8629_s3 + $0x7e8] sm:$0xff]  ;;  %v6141_v10 = vcombine.high %v3193_v4, %v3209_v5  ;;  %v6140_v61 = vcombine.low %v3193_v4, %v3209_v5  ;;  %v3163_v4 = vld [vmem:[%s8629_s3 + $0x670] sm:$0xff] }
 0x27c   :  { %v6143_v11 = vcombine.high %v3194_v6, %v3210_v7  ;;  %v6142_v63 = vcombine.low %v3194_v6, %v3210_v7  ;;  %v3179_v5 = vld [vmem:[%s8629_s3 + $0x6f0] sm:$0xff]  ;;  %v3164_v6 = vld [vmem:[%s8629_s3 + $0x678] sm:$0xff] }
 0x27d   :  { %5086 = vmatpush1.bf16.msra.mxu0 %v6136_v12  ;;  %5127 = vmatpush1.bf16.msra.mxu1 %v6138_v13  ;;  %v2971_v12 = vld [vmem:[%s8629_s3 + $0x70] sm:$0xff]  ;;  %v3180_v7 = vld [vmem:[%s8629_s3 + $0x6f8] sm:$0xff] }
 0x27e   :  { %5153 = vmatprep.subr.bf16.mxu0 %v5917_v59  ;;  %5194 = vmatprep.subr.bf16.mxu1 %v5919_v60  ;;  %v2987_v13 = vld [vmem:[%s8629_s3 + $0xf0] sm:$0xff]  ;;  %v2972_v59 = vld [vmem:[%s8629_s3 + $0x78] sm:$0xff] }
 0x27f   :  { %v2988_v60 = vld [vmem:[%s8629_s3 + $0xf8] sm:$0xff]  ;;  %v5921_v1 = vcombine.high %v2971_v12, %v2987_v13  ;;  %v5920_v18 = vcombine.low %v2971_v12, %v2987_v13 }
 0x280   :  { %5104 = vmatmul.mubr.bf16.vlgmr.msra.gmra.mrb[52].mxu0 %v7814_v58  ;;  %5145 = vmatmul.mubr.bf16.vlgmr.msra.gmra.mrb[52].mxu1 %v7814_v58  ;;  %v5923_v2 = vcombine.high %v2972_v59, %v2988_v60  ;;  %v5922_v19 = vcombine.low %v2972_v59, %v2988_v60  ;;  %v6113_v59 = vcombine.high %v3163_v4, %v3179_v5 }
 0x281   :  { %5154 = vmatpush1.bf16.msra.mxu0 %v5916_v14  ;;  %5195 = vmatpush1.bf16.msra.mxu1 %v5918_v15  ;;  %v3003_v14 = vld [vmem:[%s8629_s3 + $0x170] sm:$0xff]  ;;  %v6115_v60 = vcombine.high %v3164_v6, %v3180_v7 }
 0x282   :  { %5155 = vmatprep.subr.bf16.mxu0 %v5949_v16  ;;  %5196 = vmatprep.subr.bf16.mxu1 %v5951_v17  ;;  %v3019_v15 = vld [vmem:[%s8629_s3 + $0x1f0] sm:$0xff]  ;;  %v3004_v16 = vld [vmem:[%s8629_s3 + $0x178] sm:$0xff] }
 0x283   :  { %5185 = vmatprep.mubr.bf16.mxu0 %v6804_v62  ;;  %5226 = vmatprep.mubr.bf16.mxu1 %v6804_v62  ;;  %v3020_v17 = vld [vmem:[%s8629_s3 + $0x1f8] sm:$0xff]  ;;  %v5953_v20 = vcombine.high %v3003_v14, %v3019_v15  ;;  %v5952_v27 = vcombine.low %v3003_v14, %v3019_v15 }
 0x284   :  { %v5955_v21 = vcombine.high %v3004_v16, %v3020_v17  ;;  %v5954_v22 = vcombine.low %v3004_v16, %v3020_v17  ;;  %v3196_v14 = vld [vmem:[%s8629_s3 + $0x778] sm:$0xff] }
 0x285   :  { %5156 = vmatpush1.bf16.msra.mxu0 %v5948_v23  ;;  %5197 = vmatpush1.bf16.msra.mxu1 %v5950_v24  ;;  %v3035_v23 = vld [vmem:[%s8629_s3 + $0x270] sm:$0xff]  ;;  %v3212_v15 = vld [vmem:[%s8629_s3 + $0x7f8] sm:$0xff] }
 0x286   :  { %5157 = vmatprep.subr.bf16.mxu0 %v5981_v25  ;;  %5198 = vmatprep.subr.bf16.mxu1 %v5983_v26  ;;  %v3051_v24 = vld [vmem:[%s8629_s3 + $0x2f0] sm:$0xff]  ;;  %v3036_v25 = vld [vmem:[%s8629_s3 + $0x278] sm:$0xff] }
 0x287   :  { %v3052_v26 = vld [vmem:[%s8629_s3 + $0x2f8] sm:$0xff]  ;;  %v5985_v28 = vcombine.high %v3035_v23, %v3051_v24  ;;  %v5984_v35 = vcombine.low %v3035_v23, %v3051_v24 }
 0x288   :  { %v5987_v29 = vcombine.high %v3036_v25, %v3052_v26  ;;  %v5986_v36 = vcombine.low %v3036_v25, %v3052_v26  ;;  %v6114_v26 = vcombine.low %v3164_v6, %v3180_v7 }
 0x289   :  { %5158 = vmatpush1.bf16.msra.mxu0 %v5980_v30  ;;  %5199 = vmatpush1.bf16.msra.mxu1 %v5982_v31  ;;  %v3067_v30 = vld [vmem:[%s8629_s3 + $0x370] sm:$0xff] }
 0x28a   :  { %5159 = vmatprep.subr.bf16.mxu0 %v6013_v32  ;;  %5200 = vmatprep.subr.bf16.mxu1 %v6015_v34  ;;  %v3083_v31 = vld [vmem:[%s8629_s3 + $0x3f0] sm:$0xff]  ;;  %v3068_v32 = vld [vmem:[%s8629_s3 + $0x378] sm:$0xff] }
 0x28b   :  { %v3084_v34 = vld [vmem:[%s8629_s3 + $0x3f8] sm:$0xff]  ;;  %v6017_v37 = vcombine.high %v3067_v30, %v3083_v31 }
 0x28c   :  { %v6019_v38 = vcombine.high %v3068_v32, %v3084_v34  ;;  %v6018_v45 = vcombine.low %v3068_v32, %v3084_v34 }
 0x28d   :  { %5160 = vmatpush1.bf16.msra.mxu0 %v6012_v39  ;;  %5201 = vmatpush1.bf16.msra.mxu1 %v6014_v40  ;;  %v3099_v39 = vld [vmem:[%s8629_s3 + $0x470] sm:$0xff] }
 0x28e   :  { %5161 = vmatprep.subr.bf16.mxu0 %v6045_v42  ;;  %5202 = vmatprep.subr.bf16.mxu1 %v6047_v43  ;;  %v3115_v40 = vld [vmem:[%s8629_s3 + $0x4f0] sm:$0xff]  ;;  %v3116_v42 = vld [vmem:[%s8629_s3 + $0x4f8] sm:$0xff]  ;;  %v6016_v43 = vcombine.low %v3067_v30, %v3083_v31  ;;  %v6147_v31 = vcombine.high %v3196_v14, %v3212_v15 }
 0x28f   :  { %v6049_v46 = vcombine.high %v3099_v39, %v3115_v40  ;;  %v6048_v54 = vcombine.low %v3099_v39, %v3115_v40 }
 0x291   :  { %5162 = vmatpush1.bf16.msra.mxu0 %v6044_v49  ;;  %5203 = vmatpush1.bf16.msra.mxu1 %v6046_v50  ;;  %v3147_v49 = vld [vmem:[%s8629_s3 + $0x5f0] sm:$0xff]  ;;  %v3132_v50 = vld [vmem:[%s8629_s3 + $0x578] sm:$0xff] }
 0x292   :  { %5163 = vmatprep.subr.bf16.mxu0 %v6077_v51  ;;  %5204 = vmatprep.subr.bf16.mxu1 %v6079_v52  ;;  %v3148_v51 = vld [vmem:[%s8629_s3 + $0x5f8] sm:$0xff]  ;;  %v8475_v52 = vsub.s32 0, %v6937_v33 }
 0x295   :  { %5164 = vmatpush1.bf16.msra.mxu0 %v6076_v56  ;;  %5205 = vmatpush1.bf16.msra.mxu1 %v6078_v57  ;;  %v8486_v56 = vsub.s32 1, %v6937_v33  ;;  %v8489_v57 = vsub.s32 3, %v6937_v33 }
 0x296   :  { %5165 = vmatprep.subr.bf16.mxu0 %v6109_v0  ;;  %5206 = vmatprep.subr.bf16.mxu1 %v6111_v3  ;;  %v6081_v0 = vcombine.high %v3131_v48, %v3147_v49  ;;  %v6083_v3 = vcombine.high %v3132_v50, %v3148_v51 }
 0x297   :  { %v3228_v12 = vrot.slane %v8483_v55, %v8486_v56  ;;  %v3236_v13 = vrot.slane %v8483_v55, %v8489_v57 }
 0x299   :  { %5166 = vmatpush1.bf16.msra.mxu0 %v6108_v8  ;;  %5207 = vmatpush1.bf16.msra.mxu1 %v6110_v9  ;;  %v3224_v8 = vrot.slane %v8483_v55, %v8475_v52  ;;  %v3232_v9 = vrot.slane %v8483_v55, %v8478_v53 }
 0x29a   :  { %5167 = vmatprep.subr.bf16.mxu0 %v6141_v10  ;;  %5208 = vmatprep.subr.bf16.mxu1 %v6143_v11  ;;  %v6080_v10 = vcombine.low %v3131_v48, %v3147_v49  ;;  %v6082_v11 = vcombine.low %v3132_v50, %v3148_v51 }
 0x29d   :  { %5168 = vmatpush1.bf16.msra.mxu0 %v6140_v61  ;;  %5209 = vmatpush1.bf16.msra.mxu1 %v6142_v63  ;;  %v3195_v61 = vld [vmem:[%s8629_s3 + $0x770] sm:$0xff] }
 0x29e   :  { %5235 = vmatprep.subr.bf16.mxu0 %v5921_v1  ;;  %5276 = vmatprep.subr.bf16.mxu1 %v5923_v2  ;;  %v3211_v2 = vld [vmem:[%s8629_s3 + $0x7f0] sm:$0xff] }
 0x29f   :  { %v6145_v30 = vcombine.high %v3195_v61, %v3211_v2 }
 0x2a0   :  { %5186 = vmatmul.mubr.bf16.vlgmr.msra.gmra.mrb[56].mxu0 %v7814_v58  ;;  %5227 = vmatmul.mubr.bf16.vlgmr.msra.gmra.mrb[56].mxu1 %v7814_v58 }
 0x2a1   :  { %5236 = vmatpush1.bf16.msra.mxu0 %v5920_v18  ;;  %5277 = vmatpush1.bf16.msra.mxu1 %v5922_v19 }
 0x2a2   :  { %5237 = vmatprep.subr.bf16.mxu0 %v5953_v20  ;;  %5278 = vmatprep.subr.bf16.mxu1 %v5955_v21  ;;  %v6112_v20 = vcombine.low %v3163_v4, %v3179_v5 }
 0x2a3   :  { %5267 = vmatprep.mubr.bf16.mxu0 %v6804_v62  ;;  %5308 = vmatprep.mubr.bf16.mxu1 %v6804_v62  ;;  %v3100_v62 = vld [vmem:[%s8629_s3 + $0x478] sm:$0xff] }
 0x2a4   :  { %v6051_v47 = vcombine.high %v3100_v62, %v3116_v42  ;;  %v6050_v44 = vcombine.low %v3100_v62, %v3116_v42  ;;  %v8528_v42 = vsub.s32 4, %v6937_v33 }
 0x2a5   :  { %5238 = vmatpush1.bf16.msra.mxu0 %v5952_v27  ;;  %5279 = vmatpush1.bf16.msra.mxu1 %v5954_v22 }
 0x2a6   :  { %5239 = vmatprep.subr.bf16.mxu0 %v5985_v28  ;;  %5280 = vmatprep.subr.bf16.mxu1 %v5987_v29 }
 0x2a9   :  { %5240 = vmatpush1.bf16.msra.mxu0 %v5984_v35  ;;  %5281 = vmatpush1.bf16.msra.mxu1 %v5986_v36  ;;  %v6144_v35 = vcombine.low %v3195_v61, %v3211_v2 }
 0x2aa   :  { %5241 = vmatprep.subr.bf16.mxu0 %v6017_v37  ;;  %5282 = vmatprep.subr.bf16.mxu1 %v6019_v38  ;;  %v6146_v38 = vcombine.low %v3196_v14, %v3212_v15  ;;  %v3214_v14 = vld [vmem:[%s8630_s4 + $0x8] sm:$0xff] }
 0x2ab   :  { %v3256_v15 = vrot.slane %v3214_v14, %v8475_v52 }
 0x2ad   :  { %5242 = vmatpush1.bf16.msra.mxu0 %v6016_v43  ;;  %5283 = vmatpush1.bf16.msra.mxu1 %v6018_v45  ;;  %v8531_v43 = vsub.s32 6, %v6937_v33  ;;  %v8534_v45 = vsub.s32 5, %v6937_v33 }
 0x2ae   :  { %5243 = vmatprep.subr.bf16.mxu0 %v6049_v46  ;;  %5284 = vmatprep.subr.bf16.mxu1 %v6051_v47  ;;  %v8537_v46 = vsub.s32 7, %v6937_v33  ;;  %v3240_v47 = vrot.slane %v8483_v55, %v8528_v42 }
 0x2af   :  { %v3248_v48 = vrot.slane %v8483_v55, %v8531_v43 }
 0x2b0   :  { %v3252_v49 = vrot.slane %v8483_v55, %v8537_v46 }
 0x2b1   :  { %5244 = vmatpush1.bf16.msra.mxu0 %v6048_v54  ;;  %5285 = vmatpush1.bf16.msra.mxu1 %v6050_v44 }
 0x2b2   :  { %5245 = vmatprep.subr.bf16.mxu0 %v6081_v0  ;;  %5286 = vmatprep.subr.bf16.mxu1 %v6083_v3 }
 0x2b3   :  { %v4695_v63 = vpop.f32.mrb[32].mxu0  ;;  %v4736_v1 = vpop.f32.mrb[32].mxu1 }
 0x2b4   :  { %v4696_v16 = vadd.f32 %v4695_v63, %v3224_v8  ;;  %v4737_v17 = vadd.f32 %v4736_v1, %v3232_v9  ;;  %v4697_v18 = vpop.f32.mrb[33].mxu0  ;;  %v4738_v19 = vpop.f32.mrb[33].mxu1 }
 0x2b5   :  { %v4698_v21 = vadd.f32 %v4697_v18, %v3228_v12  ;;  %v4739_v23 = vadd.f32 %v4738_v19, %v3236_v13  ;;  %5246 = vmatpush1.bf16.msra.mxu0 %v6080_v10  ;;  %5287 = vmatpush1.bf16.msra.mxu1 %v6082_v11  ;;  %v4699_v24 = vpop.f32.mrb[34].mxu0  ;;  %v4740_v25 = vpop.f32.mrb[34].mxu1  ;;  %v3268_v18 = vrot.slane %v3214_v14, %v8489_v57 }
 0x2b6   :  { %v5317_v27 = vmax.f32 %v4696_v16, 0.0  ;;  %v5319_v22 = vmax.f32 %v4737_v17, 0.0  ;;  %v4700_v28 = vpop.f32.mrb[35].mxu0  ;;  %v4741_v29 = vpop.f32.mrb[35].mxu1  ;;  %5247 = vmatprep.subr.bf16.mxu0 %v6113_v59  ;;  %5288 = vmatprep.subr.bf16.mxu1 %v6115_v60  ;;  %v3264_v16 = vrot.slane %v3214_v14, %v8478_v53  ;;  %v3260_v17 = vrot.slane %v3214_v14, %v8486_v56 }
 0x2b7   :  { %v5318_v32 = vmax.f32 %v4698_v21, 0.0  ;;  %v5320_v34 = vmax.f32 %v4739_v23, 0.0 }
 0x2b9   :  { %v6148_v36 = vpack.c.bf16 %v5318_v32, %v5317_v27  ;;  %v6149_v37 = vpack.c.bf16 %v5320_v34, %v5319_v22  ;;  %5248 = vmatpush1.bf16.msra.mxu0 %v6112_v20  ;;  %5289 = vmatpush1.bf16.msra.mxu1 %v6114_v26 }
 0x2ba   :  { %5249 = vmatprep.subr.bf16.mxu0 %v6145_v30  ;;  %5290 = vmatprep.subr.bf16.mxu1 %v6147_v31 }
 0x2bb   :  { %v5423_v39 = vrot.slane %v6148_v36, %v6949_v41  ;;  %v5430_v40 = vrot.slane %v6149_v37, %v6949_v41 }
 0x2bd   :  { %v5445_v62 = vcombine.low %v5423_v39, %v5430_v40  ;;  %5250 = vmatpush1.bf16.msra.mxu0 %v6144_v35  ;;  %5291 = vmatpush1.bf16.msra.mxu1 %v6146_v38 }
 0x2bf   :  { %v5453_v63 = vrot.slane %v5445_v62, %v6949_v41  ;;  %v3272_v62 = vrot.slane %v3214_v14, %v8528_v42 }
 0x2c0   :  { %5268 = vmatmul.mubr.bf16.vlgmr.msra.gmra.mrb[60].mxu0 %v7814_v58  ;;  %5309 = vmatmul.mubr.bf16.vlgmr.msra.gmra.mrb[60].mxu1 %v7814_v58  ;;  %v3244_v58 = vrot.slane %v8483_v55, %v8534_v45 }
 0x2d3   :  { %v4777_v50 = vpop.f32.mrb[36].mxu0  ;;  %v4818_v51 = vpop.f32.mrb[36].mxu1 }
 0x2d4   :  { %v4778_v54 = vadd.f32 %v4777_v50, %v3240_v47  ;;  %v4819_v44 = vadd.f32 %v4818_v51, %v3248_v48  ;;  %v4779_v0 = vpop.f32.mrb[37].mxu0  ;;  %v4820_v3 = vpop.f32.mrb[37].mxu1  ;;  %v3280_v47 = vrot.slane %v3214_v14, %v8531_v43  ;;  %v3276_v48 = vrot.slane %v3214_v14, %v8534_v45 }
 0x2d5   :  { %v4780_v33 = vadd.f32 %v4779_v0, %v3244_v58  ;;  %v4821_v4 = vadd.f32 %v4820_v3, %v3252_v49  ;;  %v4781_v5 = vpop.f32.mrb[38].mxu0  ;;  %v4822_v6 = vpop.f32.mrb[38].mxu1  ;;  %v3284_v58 = vrot.slane %v3214_v14, %v8537_v46 }
 0x2d6   :  { %v5321_v7 = vmax.f32 %v4778_v54, 0.0  ;;  %v5323_v8 = vmax.f32 %v4819_v44, 0.0  ;;  %v4782_v9 = vpop.f32.mrb[39].mxu0  ;;  %v4823_v10 = vpop.f32.mrb[39].mxu1 }
 0x2d7   :  { %v5322_v11 = vmax.f32 %v4780_v33, 0.0  ;;  %v5324_v12 = vmax.f32 %v4821_v4, 0.0 }
 0x2d9   :  { %v6150_v13 = vpack.c.bf16 %v5322_v11, %v5321_v7  ;;  %v6151_v59 = vpack.c.bf16 %v5324_v12, %v5323_v8 }
 0x2db   :  { %v5437_v55 = vrot.slane %v6150_v13, %v6949_v41  ;;  %v5444_v60 = vrot.slane %v6151_v59, %v6949_v41 }
 0x2dd   :  { %v5446_v61 = vcombine.low %v5437_v55, %v5444_v60 }
 0x2df   :  { %v5460_v1 = vrot.slane %v5446_v61, %v6949_v41 }
 0x2e1   :  { %v5461_v2 = vcombine.low %v5453_v63, %v5460_v1 }
 0x2e3   :  { %5613 = vst [vmem:[%s8632_s6] sm:$0xff] %v5461_v2 }
 0x2f3   :  { %v4859_v19 = vpop.f32.mrb[40].mxu0  ;;  %v4900_v20 = vpop.f32.mrb[40].mxu1 }
 0x2f4   :  { %v4860_v21 = vadd.f32 %v4859_v19, %v3256_v15  ;;  %v4901_v23 = vadd.f32 %v4900_v20, %v3264_v16  ;;  %v4861_v24 = vpop.f32.mrb[41].mxu0  ;;  %v4902_v25 = vpop.f32.mrb[41].mxu1 }
 0x2f5   :  { %v4862_v26 = vadd.f32 %v4861_v24, %v3260_v17  ;;  %v4903_v27 = vadd.f32 %v4902_v25, %v3268_v18  ;;  %v4863_v22 = vpop.f32.mrb[42].mxu0  ;;  %v4904_v28 = vpop.f32.mrb[42].mxu1 }
 0x2f6   :  { %v5325_v29 = vmax.f32 %v4860_v21, 0.0  ;;  %v5327_v30 = vmax.f32 %v4901_v23, 0.0  ;;  %v4864_v31 = vpop.f32.mrb[43].mxu0  ;;  %v4905_v32 = vpop.f32.mrb[43].mxu1 }
 0x2f7   :  { %v5326_v34 = vmax.f32 %v4862_v26, 0.0  ;;  %v5328_v35 = vmax.f32 %v4903_v27, 0.0 }
 0x2f9   :  { %v6152_v36 = vpack.c.bf16 %v5326_v34, %v5325_v29  ;;  %v6153_v37 = vpack.c.bf16 %v5328_v35, %v5327_v30 }
 0x2fb   :  { %v5472_v38 = vrot.slane %v6152_v36, %v6949_v41  ;;  %v5479_v39 = vrot.slane %v6153_v37, %v6949_v41 }
 0x2fd   :  { %v5494_v40 = vcombine.low %v5472_v38, %v5479_v39 }
 0x2ff   :  { %v5502_v61 = vrot.slane %v5494_v40, %v6949_v41 }
 0x313   :  { %v4941_v49 = vpop.f32.mrb[44].mxu0  ;;  %v4982_v50 = vpop.f32.mrb[44].mxu1 }
 0x314   :  { %v4942_v51 = vadd.f32 %v4941_v49, %v3272_v62  ;;  %v4983_v54 = vadd.f32 %v4982_v50, %v3280_v47  ;;  %v4943_v44 = vpop.f32.mrb[45].mxu0  ;;  %v4984_v0 = vpop.f32.mrb[45].mxu1 }
 0x315   :  { %v4944_v3 = vadd.f32 %v4943_v44, %v3276_v48  ;;  %v4985_v33 = vadd.f32 %v4984_v0, %v3284_v58  ;;  %v4945_v4 = vpop.f32.mrb[46].mxu0  ;;  %v4986_v5 = vpop.f32.mrb[46].mxu1 }
 0x316   :  { %v5329_v6 = vmax.f32 %v4942_v51, 0.0  ;;  %v5331_v7 = vmax.f32 %v4983_v54, 0.0  ;;  %v4946_v8 = vpop.f32.mrb[47].mxu0  ;;  %v4987_v9 = vpop.f32.mrb[47].mxu1 }
 0x317   :  { %v5330_v10 = vmax.f32 %v4944_v3, 0.0  ;;  %v5332_v11 = vmax.f32 %v4985_v33, 0.0 }
 0x319   :  { %v6154_v12 = vpack.c.bf16 %v5330_v10, %v5329_v6  ;;  %v6155_v13 = vpack.c.bf16 %v5332_v11, %v5331_v7 }
 0x31b   :  { %v5486_v59 = vrot.slane %v6154_v12, %v6949_v41  ;;  %v5493_v55 = vrot.slane %v6155_v13, %v6949_v41 }
 0x31d   :  { %v5495_v60 = vcombine.low %v5486_v59, %v5493_v55 }
 0x31f   :  { %v5509_v63 = vrot.slane %v5495_v60, %v6949_v41 }
 0x321   :  { %v5510_v1 = vcombine.low %v5502_v61, %v5509_v63 }
 0x323   :  { %5614 = vst [vmem:[%s8632_s6 + $0x8] sm:$0xff] %v5510_v1 }
 0x324   :  { %6790 = shalt.err (!%p6787_p4)
}
 0x325   :  { %s6791_s20 = scalar_lea.hbm %s8631_s5, 32 }
 0x326   :  { %p6792_p5 = scmp.ne.s32.totalorder %s8631_s5, %s6791_s20  ;;  %p6795_p6 = scmp.lt.u32.totalorder %s6791_s20, %s8631_s5 }
 0x328   :  { %p6797_p7 = pnand %p6795_p6, %p6792_p5 }
 0x32a   :  { %6800 = shalt.err (!%p6797_p7)
}
 0x32b   :  { %5626 = dma.vmem_to_hbm [thread:$0]  %s5624_s14, 32, %s8631_s5, [#allocation3]   ;;  %v3215_v2 = vld [vmem:[%s8630_s4 + $0x10] sm:$0xff]  ;;  %v3216_v1 = vld [vmem:[%s8630_s4 + $0x18] sm:$0xff] }
 0x32c   :  { %v3288_v14 = vrot.slane %v3215_v2, %v8475_v52  ;;  %v3296_v15 = vrot.slane %v3215_v2, %v8478_v53  ;;  %v3292_v16 = vrot.slane %v3215_v2, %v8486_v56  ;;  %v3300_v17 = vrot.slane %v3215_v2, %v8489_v57 }
 0x32d   :  { %v3304_v40 = vrot.slane %v3215_v2, %v8528_v42  ;;  %v3312_v62 = vrot.slane %v3215_v2, %v8531_v43  ;;  %v3308_v47 = vrot.slane %v3215_v2, %v8534_v45  ;;  %v3316_v48 = vrot.slane %v3215_v2, %v8537_v46 }
 0x32e   :  { %v3320_v2 = vrot.slane %v3216_v1, %v8475_v52 }
 0x333   :  { %v5023_v18 = vpop.f32.mrb[48].mxu0  ;;  %v5064_v19 = vpop.f32.mrb[48].mxu1 }
 0x334   :  { %v5024_v20 = vadd.f32 %v5023_v18, %v3288_v14  ;;  %v5065_v21 = vadd.f32 %v5064_v19, %v3296_v15  ;;  %v5025_v23 = vpop.f32.mrb[49].mxu0  ;;  %v5066_v24 = vpop.f32.mrb[49].mxu1  ;;  %v3328_v14 = vrot.slane %v3216_v1, %v8478_v53  ;;  %v3324_v15 = vrot.slane %v3216_v1, %v8486_v56 }
 0x335   :  { %v5026_v25 = vadd.f32 %v5025_v23, %v3292_v16  ;;  %v5067_v26 = vadd.f32 %v5066_v24, %v3300_v17  ;;  %v5027_v27 = vpop.f32.mrb[50].mxu0  ;;  %v5068_v22 = vpop.f32.mrb[50].mxu1  ;;  %v3332_v16 = vrot.slane %v3216_v1, %v8489_v57 }
 0x336   :  { %v5333_v28 = vmax.f32 %v5024_v20, 0.0  ;;  %v5335_v29 = vmax.f32 %v5065_v21, 0.0  ;;  %v5028_v30 = vpop.f32.mrb[51].mxu0  ;;  %v5069_v31 = vpop.f32.mrb[51].mxu1 }
 0x337   :  { %v5334_v32 = vmax.f32 %v5026_v25, 0.0  ;;  %v5336_v34 = vmax.f32 %v5067_v26, 0.0 }
 0x339   :  { %v6156_v35 = vpack.c.bf16 %v5334_v32, %v5333_v28  ;;  %v6157_v36 = vpack.c.bf16 %v5336_v34, %v5335_v29 }
 0x33b   :  { %v5521_v37 = vrot.slane %v6156_v35, %v6949_v41  ;;  %v5528_v38 = vrot.slane %v6157_v36, %v6949_v41  ;;  %v3336_v35 = vrot.slane %v3216_v1, %v8528_v42  ;;  %v3344_v36 = vrot.slane %v3216_v1, %v8531_v43 }
 0x33d   :  { %v5543_v39 = vcombine.low %v5521_v37, %v5528_v38  ;;  %v3340_v37 = vrot.slane %v3216_v1, %v8534_v45  ;;  %v3348_v38 = vrot.slane %v3216_v1, %v8537_v46 }
 0x33f   :  { %v5551_v60 = vrot.slane %v5543_v39, %v6949_v41 }
 0x353   :  { %v5105_v58 = vpop.f32.mrb[52].mxu0  ;;  %v5146_v49 = vpop.f32.mrb[52].mxu1 }
 0x354   :  { %v5106_v50 = vadd.f32 %v5105_v58, %v3304_v40  ;;  %v5147_v51 = vadd.f32 %v5146_v49, %v3312_v62  ;;  %v5107_v54 = vpop.f32.mrb[53].mxu0  ;;  %v5148_v44 = vpop.f32.mrb[53].mxu1 }
 0x355   :  { %v5108_v0 = vadd.f32 %v5107_v54, %v3308_v47  ;;  %v5149_v3 = vadd.f32 %v5148_v44, %v3316_v48  ;;  %v5109_v33 = vpop.f32.mrb[54].mxu0  ;;  %v5150_v4 = vpop.f32.mrb[54].mxu1 }
 0x356   :  { %v5337_v5 = vmax.f32 %v5106_v50, 0.0  ;;  %v5339_v6 = vmax.f32 %v5147_v51, 0.0  ;;  %v5110_v7 = vpop.f32.mrb[55].mxu0  ;;  %v5151_v8 = vpop.f32.mrb[55].mxu1 }
 0x357   :  { %v5338_v9 = vmax.f32 %v5108_v0, 0.0  ;;  %v5340_v10 = vmax.f32 %v5149_v3, 0.0 }
 0x359   :  { %v6158_v11 = vpack.c.bf16 %v5338_v9, %v5337_v5  ;;  %v6159_v12 = vpack.c.bf16 %v5340_v10, %v5339_v6 }
 0x35b   :  { %v5535_v13 = vrot.slane %v6158_v11, %v6949_v41  ;;  %v5542_v59 = vrot.slane %v6159_v12, %v6949_v41 }
 0x35d   :  { %v5544_v55 = vcombine.low %v5535_v13, %v5542_v59 }
 0x35f   :  { %v5558_v61 = vrot.slane %v5544_v55, %v6949_v41 }
 0x361   :  { %v5559_v63 = vcombine.low %v5551_v60, %v5558_v61 }
 0x363   :  { %5615 = vst [vmem:[%s8632_s6 + $0x10] sm:$0xff] %v5559_v63 }
 0x373   :  { %v5187_v17 = vpop.f32.mrb[56].mxu0  ;;  %v5228_v18 = vpop.f32.mrb[56].mxu1 }
 0x374   :  { %v5188_v19 = vadd.f32 %v5187_v17, %v3320_v2  ;;  %v5229_v20 = vadd.f32 %v5228_v18, %v3328_v14  ;;  %v5189_v21 = vpop.f32.mrb[57].mxu0  ;;  %v5230_v23 = vpop.f32.mrb[57].mxu1 }
 0x375   :  { %v5190_v24 = vadd.f32 %v5189_v21, %v3324_v15  ;;  %v5231_v25 = vadd.f32 %v5230_v23, %v3332_v16  ;;  %v5191_v26 = vpop.f32.mrb[58].mxu0  ;;  %v5232_v27 = vpop.f32.mrb[58].mxu1 }
 0x376   :  { %v5341_v22 = vmax.f32 %v5188_v19, 0.0  ;;  %v5343_v28 = vmax.f32 %v5229_v20, 0.0  ;;  %v5192_v29 = vpop.f32.mrb[59].mxu0  ;;  %v5233_v52 = vpop.f32.mrb[59].mxu1 }
 0x377   :  { %v5342_v30 = vmax.f32 %v5190_v24, 0.0  ;;  %v5344_v53 = vmax.f32 %v5231_v25, 0.0 }
 0x379   :  { %v6160_v31 = vpack.c.bf16 %v5342_v30, %v5341_v22  ;;  %v6161_v56 = vpack.c.bf16 %v5344_v53, %v5343_v28 }
 0x37b   :  { %v5570_v57 = vrot.slane %v6160_v31, %v6949_v41  ;;  %v5577_v32 = vrot.slane %v6161_v56, %v6949_v41 }
 0x37d   :  { %v5592_v34 = vcombine.low %v5570_v57, %v5577_v32 }
 0x37f   :  { %v5600_v7 = vrot.slane %v5592_v34, %v6949_v41 }
 0x393   :  { %v5269_v39 = vpop.f32.mrb[60].mxu0  ;;  %v5310_v40 = vpop.f32.mrb[60].mxu1 }
 0x394   :  { %v5270_v62 = vadd.f32 %v5269_v39, %v3336_v35  ;;  %v5311_v47 = vadd.f32 %v5310_v40, %v3344_v36  ;;  %v5271_v48 = vpop.f32.mrb[61].mxu0  ;;  %v5312_v58 = vpop.f32.mrb[61].mxu1 }
 0x395   :  { %v5272_v49 = vadd.f32 %v5271_v48, %v3340_v37  ;;  %v5313_v50 = vadd.f32 %v5312_v58, %v3348_v38  ;;  %v5273_v51 = vpop.f32.mrb[62].mxu0  ;;  %v5314_v54 = vpop.f32.mrb[62].mxu1 }
 0x396   :  { %v5345_v44 = vmax.f32 %v5270_v62, 0.0  ;;  %v5347_v0 = vmax.f32 %v5311_v47, 0.0  ;;  %v5274_v3 = vpop.f32.mrb[63].mxu0  ;;  %v5315_v42 = vpop.f32.mrb[63].mxu1 }
 0x397   :  { %v5346_v33 = vmax.f32 %v5272_v49, 0.0  ;;  %v5348_v43 = vmax.f32 %v5313_v50, 0.0 }
 0x399   :  { %v6162_v4 = vpack.c.bf16 %v5346_v33, %v5345_v44  ;;  %v6163_v45 = vpack.c.bf16 %v5348_v43, %v5347_v0 }
 0x39b   :  { %v5584_v46 = vrot.slane %v6162_v4, %v6949_v41  ;;  %v5591_v5 = vrot.slane %v6163_v45, %v6949_v41 }
 0x39d   :  { %v5593_v6 = vcombine.low %v5584_v46, %v5591_v5 }
 0x39f   :  { %v5607_v8 = vrot.slane %v5593_v6, %v6949_v41 }
 0x3a1   :  { %v5608_v9 = vcombine.low %v5600_v7, %v5607_v8 }
 0x3a3   :  { %5616 = vst [vmem:[%s8632_s6 + $0x18] sm:$0xff] %v5608_v9 }
 0x3a4   :  { %6801 = dma.done.wait [#allocation3], 32  }
 0x3a5   :  { %6802 = vsyncadd [#allocation3], 4294967264 }
 0x3a6   :  { %5634 = vsyncpa [#allocation3], 1 }

// kernel: autoencoder_forward.12
= control target key start
LH: loop header
LB: loop body
LE: loop exit
PB: predicated region body
PF: predicated region fallthrough
CT: control target
= control target key end

     0   :  { %s2538_s12 = smov 0   ;;  %s2540_s13 = smov 0   ;;  %s3093_s0 = inlined_call_operand.vmem [shape: bf16[128,1152], index: 0, kind: input, shape index: {}]   ;;  %s3094_s1 = inlined_call_operand.vmem [shape: bf16[1152,256], index: 1, kind: input, shape index: {}]   ;;  %s3095_s2 = inlined_call_operand.vmem [shape: f32[1,256], index: 2, kind: input, shape index: {}]   ;;  %s3096_s3 = inlined_call_operand.vmem [shape: bf16[128,256], index: 3, kind: output, shape index: {}]  }
   0x1   :  { %s2542_s14 = smov 0  }
   0x2 LB: > { %s25_s15 = sadd.s32 1, %s2511_s13  ;;  %p1898_p0 = scmp.ge.s32.totalorder %s2515_s14, 1  ;;  %s2515_s14 = sphi %s2542_s14, %s13_s14   ;;  %s2511_s13 = sphi %s2540_s13, %s3098_s13   ;;  %s2507_s12 = sphi %s2538_s12, %s3097_s12  }
   0x3   : > { %p27_p1 = scmp.ge.s32.totalorder %s25_s15, 2  ;;  %p174_p2 = scmp.lt.s32.totalorder %s2515_s14, 3 }
   0x5   : > { %s3100_s15 = smov (%p27_p1, %s25_s15), 0  ;;  %p175_p3 = pnand %p1898_p0, %p174_p2 }
   0x6   : > { %v2225_v0 = vld [vmem:[%s3094_s1 + $0x4] ss:$8 sps:$4 sm:$0xff] (!%p175_p3)   ;;  %v2229_v2 = vld [vmem:[%s3094_s1] ss:$8 sps:$4 sm:$0xff] (!%p175_p3)   ;;  %v2231_v4 = vld [vmem:[%s3094_s1 + $0x14] ss:$8 sps:$4 sm:$0xff] (!%p175_p3)  }
   0x7   : > { %178 = sbr.rel (%p175_p3) target bundleno = 398 (0x18e), region = 32  ;;  %v2227_v1 = vld [vmem:[%s3094_s1 + $0x204] ss:$8 sps:$4 sm:$0xff] (!%p175_p3)   ;;  %1344 = vmatprep.subr.bf16.mxu1 (!%p175_p3), %v2225_v0  ;;  %v2230_v3 = vld [vmem:[%s3094_s1 + $0x200] ss:$8 sps:$4 sm:$0xff] (!%p175_p3)   ;;  %s1899_s30 = sshll.u32 (!%p175_p3), %s2507_s12, 3 }
   0x8   : > { %1490 = vmatprep.subr.bf16.mxu0 (!%p175_p3), %v2227_v1  ;;  %1345 = vmatpush1.bf16.msra.mxu1 (!%p175_p3), %v2229_v2  ;;  %v2233_v5 = vld [vmem:[%s3094_s1 + $0x214] ss:$8 sps:$4 sm:$0xff] (!%p175_p3)   ;;  %v2235_v6 = vld [vmem:[%s3094_s1 + $0x10] ss:$8 sps:$4 sm:$0xff] (!%p175_p3)   ;;  %v2237_v8 = vld [vmem:[%s3094_s1 + $0x24] ss:$8 sps:$4 sm:$0xff] (!%p175_p3)  }
   0x9   : > { %1491 = vmatpush1.bf16.msra.mxu0 (!%p175_p3), %v2230_v3  ;;  %1346 = vmatprep.subr.bf16.mxu1 (!%p175_p3), %v2231_v4  ;;  %v2236_v7 = vld [vmem:[%s3094_s1 + $0x210] ss:$8 sps:$4 sm:$0xff] (!%p175_p3)   ;;  %v2239_v9 = vld [vmem:[%s3094_s1 + $0x224] ss:$8 sps:$4 sm:$0xff] (!%p175_p3)   ;;  %v2241_v10 = vld [vmem:[%s3094_s1 + $0x20] ss:$8 sps:$4 sm:$0xff] (!%p175_p3)  }
   0xa   : > { %1492 = vmatprep.subr.bf16.mxu0 (!%p175_p3), %v2233_v5  ;;  %v2242_v11 = vld [vmem:[%s3094_s1 + $0x220] ss:$8 sps:$4 sm:$0xff] (!%p175_p3)   ;;  %v2243_v12 = vld [vmem:[%s3094_s1 + $0x34] ss:$8 sps:$4 sm:$0xff] (!%p175_p3)   ;;  %v2247_v14 = vld [vmem:[%s3094_s1 + $0x30] ss:$8 sps:$4 sm:$0xff] (!%p175_p3)  }
   0xb   : > { %v2245_v13 = vld [vmem:[%s3094_s1 + $0x234] ss:$8 sps:$4 sm:$0xff] (!%p175_p3)   ;;  %v2248_v15 = vld [vmem:[%s3094_s1 + $0x230] ss:$8 sps:$4 sm:$0xff] (!%p175_p3)   ;;  %v2249_v16 = vld [vmem:[%s3094_s1 + $0x44] ss:$8 sps:$4 sm:$0xff] (!%p175_p3)  }
   0xc   : > { %1347 = vmatpush1.bf16.msra.mxu1 (!%p175_p3), %v2235_v6  ;;  %v2251_v17 = vld [vmem:[%s3094_s1 + $0x244] ss:$8 sps:$4 sm:$0xff] (!%p175_p3)   ;;  %v2253_v18 = vld [vmem:[%s3094_s1 + $0x40] ss:$8 sps:$4 sm:$0xff] (!%p175_p3)   ;;  %v2255_v20 = vld [vmem:[%s3094_s1 + $0x54] ss:$8 sps:$4 sm:$0xff] (!%p175_p3)  }
   0xd   : > { %1493 = vmatpush1.bf16.msra.mxu0 (!%p175_p3), %v2236_v7  ;;  %1348 = vmatprep.subr.bf16.mxu1 (!%p175_p3), %v2237_v8  ;;  %v2254_v19 = vld [vmem:[%s3094_s1 + $0x240] ss:$8 sps:$4 sm:$0xff] (!%p175_p3)   ;;  %v2257_v21 = vld [vmem:[%s3094_s1 + $0x254] ss:$8 sps:$4 sm:$0xff] (!%p175_p3)   ;;  %v2259_v22 = vld [vmem:[%s3094_s1 + $0x50] ss:$8 sps:$4 sm:$0xff] (!%p175_p3)  }
   0xe   : > { %1494 = vmatprep.subr.bf16.mxu0 %v2239_v9  ;;  %v2260_v23 = vld [vmem:[%s3094_s1 + $0x250] ss:$8 sps:$4 sm:$0xff]   ;;  %v2261_v24 = vld [vmem:[%s3094_s1 + $0x64] ss:$8 sps:$4 sm:$0xff]   ;;  %v2265_v26 = vld [vmem:[%s3094_s1 + $0x60] ss:$8 sps:$4 sm:$0xff]  }
   0xf   : > { %v2263_v25 = vld [vmem:[%s3094_s1 + $0x264] ss:$8 sps:$4 sm:$0xff]   ;;  %v2266_v27 = vld [vmem:[%s3094_s1 + $0x260] ss:$8 sps:$4 sm:$0xff]   ;;  %v2267_v28 = vld [vmem:[%s3094_s1 + $0x74] ss:$8 sps:$4 sm:$0xff]  }
  0x10   : > { %1349 = vmatpush1.bf16.msra.mxu1 %v2241_v10  ;;  %v2269_v29 = vld [vmem:[%s3094_s1 + $0x274] ss:$8 sps:$4 sm:$0xff]   ;;  %v2271_v30 = vld [vmem:[%s3094_s1 + $0x70] ss:$8 sps:$4 sm:$0xff]   ;;  %v2273_v32 = vld [vmem:[%s3094_s1 + $0x84] ss:$8 sps:$4 sm:$0xff]  }
  0x11   : > { %1495 = vmatpush1.bf16.msra.mxu0 %v2242_v11  ;;  %1350 = vmatprep.subr.bf16.mxu1 %v2243_v12  ;;  %v2272_v31 = vld [vmem:[%s3094_s1 + $0x270] ss:$8 sps:$4 sm:$0xff]   ;;  %p214_p4 = scmp.lt.s32.totalorder %s1899_s30, 15  ;;  %v2275_v33 = vld [vmem:[%s3094_s1 + $0x284] ss:$8 sps:$4 sm:$0xff]  }
  0x12   : > { %1496 = vmatprep.subr.bf16.mxu0 %v2245_v13  ;;  %v2277_v34 = vld [vmem:[%s3094_s1 + $0x80] ss:$8 sps:$4 sm:$0xff]   ;;  %v2279_v36 = vld [vmem:[%s3094_s1 + $0x94] ss:$8 sps:$4 sm:$0xff]   ;;  %v2283_v38 = vld [vmem:[%s3094_s1 + $0x90] ss:$8 sps:$4 sm:$0xff]  }
  0x13   : > { %v2278_v35 = vld [vmem:[%s3094_s1 + $0x280] ss:$8 sps:$4 sm:$0xff]   ;;  %s3102_s30 = smov (!%p214_p4, %s1899_s30), 15  ;;  %v2281_v37 = vld [vmem:[%s3094_s1 + $0x294] ss:$8 sps:$4 sm:$0xff]  }
  0x14   : > { %1351 = vmatpush1.bf16.msra.mxu1 %v2247_v14  ;;  %v2284_v39 = vld [vmem:[%s3094_s1 + $0x290] ss:$8 sps:$4 sm:$0xff]   ;;  %v2285_v40 = vld [vmem:[%s3094_s1 + $0xa4] ss:$8 sps:$4 sm:$0xff]   ;;  %s2199_s29 = smul.u32 36, %s3102_s30 }
  0x15   : > { %1497 = vmatpush1.bf16.msra.mxu0 %v2248_v15  ;;  %1352 = vmatprep.subr.bf16.mxu1 %v2249_v16  ;;  %v2287_v41 = vld [vmem:[%s3094_s1 + $0x2a4] ss:$8 sps:$4 sm:$0xff]   ;;  %v2289_v42 = vld [vmem:[%s3094_s1 + $0xa0] ss:$8 sps:$4 sm:$0xff]   ;;  %v2291_v44 = vld [vmem:[%s3094_s1 + $0xb4] ss:$8 sps:$4 sm:$0xff]  }
  0x16   : > { %1498 = vmatprep.subr.bf16.mxu0 %v2251_v17  ;;  %v2290_v43 = vld [vmem:[%s3094_s1 + $0x2a0] ss:$8 sps:$4 sm:$0xff]   ;;  %s2700_s17 = scalar_lea.vmem %s3093_s0, %s2199_s29  ;;  %v2293_v45 = vld [vmem:[%s3094_s1 + $0x2b4] ss:$8 sps:$4 sm:$0xff]   ;;  %v2295_v46 = vld [vmem:[%s3094_s1 + $0xb0] ss:$8 sps:$4 sm:$0xff]  }
  0x17   : > { %v2296_v47 = vld [vmem:[%s3094_s1 + $0x2b0] ss:$8 sps:$4 sm:$0xff]   ;;  %v2323_v48 = vld [vmem:[%s2700_s17 + $0x4] ss:$36 sps:$4 sm:$0xff]   ;;  %v2303_v54 = vld [vmem:[%s3094_s1 + $0xd4] ss:$8 sps:$4 sm:$0xff]  }
  0x18   : > { %1353 = vmatpush1.bf16.msra.mxu1 %v2253_v18  ;;  %v2297_v49 = vld [vmem:[%s3094_s1 + $0xc4] ss:$8 sps:$4 sm:$0xff]   ;;  %1376 = vmatprep.mubr.bf16.mxu1 %v2323_v48  ;;  %v2329_v51 = vld [vmem:[%s2700_s17 + $0x14] ss:$36 sps:$4 sm:$0xff]   ;;  %v2301_v52 = vld [vmem:[%s3094_s1 + $0xc0] ss:$8 sps:$4 sm:$0xff]  }
  0x19   : > { %1499 = vmatpush1.bf16.msra.mxu0 %v2254_v19  ;;  %1354 = vmatprep.subr.bf16.mxu1 %v2255_v20  ;;  %v2299_v50 = vld [vmem:[%s3094_s1 + $0x2c4] ss:$8 sps:$4 sm:$0xff]   ;;  %v2302_v53 = vld [vmem:[%s3094_s1 + $0x2c0] ss:$8 sps:$4 sm:$0xff]   ;;  %v2305_v55 = vld [vmem:[%s3094_s1 + $0x2d4] ss:$8 sps:$4 sm:$0xff]  }
  0x1a   : > { %1500 = vmatprep.subr.bf16.mxu0 %v2257_v21  ;;  %1522 = vmatprep.mubr.bf16.mxu0 %v2329_v51  ;;  %v2307_v56 = vld [vmem:[%s3094_s1 + $0xd0] ss:$8 sps:$4 sm:$0xff]   ;;  %v2309_v58 = vld [vmem:[%s3094_s1 + $0xe4] ss:$8 sps:$4 sm:$0xff]   ;;  %v2313_v60 = vld [vmem:[%s3094_s1 + $0xe0] ss:$8 sps:$4 sm:$0xff]  }
  0x1b   : > { %v2308_v57 = vld [vmem:[%s3094_s1 + $0x2d0] ss:$8 sps:$4 sm:$0xff]   ;;  %v2311_v59 = vld [vmem:[%s3094_s1 + $0x2e4] ss:$8 sps:$4 sm:$0xff]   ;;  %v2314_v61 = vld [vmem:[%s3094_s1 + $0x2e0] ss:$8 sps:$4 sm:$0xff]  }
  0x1c   : > { %1355 = vmatpush1.bf16.msra.mxu1 %v2259_v22  ;;  %v2315_v62 = vld [vmem:[%s3094_s1 + $0xf4] ss:$8 sps:$4 sm:$0xff]   ;;  %v2319_v0 = vld [vmem:[%s3094_s1 + $0xf0] ss:$8 sps:$4 sm:$0xff]   ;;  %v2326_v2 = vld [vmem:[%s3094_s1 + $0x104] ss:$8 sps:$4 sm:$0xff]  }
  0x1d   : > { %1501 = vmatpush1.bf16.msra.mxu0 %v2260_v23  ;;  %1356 = vmatprep.subr.bf16.mxu1 %v2261_v24  ;;  %v2317_v63 = vld [vmem:[%s3094_s1 + $0x2f4] ss:$8 sps:$4 sm:$0xff]   ;;  %v2320_v1 = vld [vmem:[%s3094_s1 + $0x2f0] ss:$8 sps:$4 sm:$0xff]   ;;  %v2332_v3 = vld [vmem:[%s3094_s1 + $0x304] ss:$8 sps:$4 sm:$0xff]  }
  0x1e   : > { %1502 = vmatprep.subr.bf16.mxu0 %v2263_v25  ;;  %v2321_v4 = vld [vmem:[%s2700_s17] ss:$36 sps:$4 sm:$0xff]   ;;  %v2327_v6 = vld [vmem:[%s2700_s17 + $0x10] ss:$36 sps:$4 sm:$0xff]   ;;  %v2391_v20 = vld [vmem:[%s2700_s17 + $0x48] ss:$36 sps:$4 sm:$0xff]  }
  0x1f   : > { %v2324_v5 = vld [vmem:[%s3094_s1 + $0x100] ss:$8 sps:$4 sm:$0xff]   ;;  %v2335_v8 = vld [vmem:[%s3094_s1 + $0x114] ss:$8 sps:$4 sm:$0xff]   ;;  %v2333_v10 = vld [vmem:[%s3094_s1 + $0x110] ss:$8 sps:$4 sm:$0xff]  }
  0x20   : > { %1357 = vmatpush1.bf16.msra.mxu1 %v2265_v26  ;;  %v2330_v7 = vld [vmem:[%s3094_s1 + $0x300] ss:$8 sps:$4 sm:$0xff]   ;;  %v2338_v9 = vld [vmem:[%s3094_s1 + $0x314] ss:$8 sps:$4 sm:$0xff]   ;;  %v2336_v11 = vld [vmem:[%s3094_s1 + $0x310] ss:$8 sps:$4 sm:$0xff]  }
  0x21   : > { %1503 = vmatpush1.bf16.msra.mxu0 %v2266_v27  ;;  %1358 = vmatprep.subr.bf16.mxu1 %v2267_v28  ;;  %v2341_v12 = vld [vmem:[%s3094_s1 + $0x124] ss:$8 sps:$4 sm:$0xff]   ;;  %v2339_v14 = vld [vmem:[%s3094_s1 + $0x120] ss:$8 sps:$4 sm:$0xff]   ;;  %v2347_v16 = vld [vmem:[%s3094_s1 + $0x134] ss:$8 sps:$4 sm:$0xff]  }
  0x22   : > { %1504 = vmatprep.subr.bf16.mxu0 %v2269_v29  ;;  %v2344_v13 = vld [vmem:[%s3094_s1 + $0x324] ss:$8 sps:$4 sm:$0xff]   ;;  %v2342_v15 = vld [vmem:[%s3094_s1 + $0x320] ss:$8 sps:$4 sm:$0xff]   ;;  %v2350_v17 = vld [vmem:[%s3094_s1 + $0x334] ss:$8 sps:$4 sm:$0xff]  }
  0x23   : > { %v2387_v18 = vld [vmem:[%s2700_s17 + $0x4c] ss:$36 sps:$4 sm:$0xff]   ;;  %v2389_v19 = vld [vmem:[%s2700_s17 + $0x5c] ss:$36 sps:$4 sm:$0xff]  }
  0x24   : > { %1359 = vmatpush1.bf16.msra.mxu1 %v2271_v30  ;;  %v2345_v21 = vld [vmem:[%s3094_s1 + $0x130] ss:$8 sps:$4 sm:$0xff]   ;;  %v2353_v24 = vld [vmem:[%s3094_s1 + $0x144] ss:$8 sps:$4 sm:$0xff]   ;;  %v2351_v26 = vld [vmem:[%s3094_s1 + $0x140] ss:$8 sps:$4 sm:$0xff]  }
  0x25   : > { %1505 = vmatpush1.bf16.msra.mxu0 %v2272_v31  ;;  %1360 = vmatprep.subr.bf16.mxu1 %v2273_v32  ;;  %v2348_v22 = vld [vmem:[%s3094_s1 + $0x330] ss:$8 sps:$4 sm:$0xff]   ;;  %v2356_v25 = vld [vmem:[%s3094_s1 + $0x344] ss:$8 sps:$4 sm:$0xff]   ;;  %v2354_v27 = vld [vmem:[%s3094_s1 + $0x340] ss:$8 sps:$4 sm:$0xff]  }
  0x26   : > { %1506 = vmatprep.subr.bf16.mxu0 %v2275_v33  ;;  %v2395_v23 = vld [vmem:[%s2700_s17 + $0x58] ss:$36 sps:$4 sm:$0xff]   ;;  %v2407_v31 = vld [vmem:[%s2700_s17 + $0xa4] ss:$36 sps:$4 sm:$0xff]   ;;  %v2409_v32 = vld [vmem:[%s2700_s17 + $0x90] ss:$36 sps:$4 sm:$0xff]  }
  0x27   : > { %v2359_v28 = vld [vmem:[%s3094_s1 + $0x154] ss:$8 sps:$4 sm:$0xff]   ;;  %v2357_v33 = vld [vmem:[%s3094_s1 + $0x150] ss:$8 sps:$4 sm:$0xff]   ;;  %v2377_v48 = vld [vmem:[%s3094_s1 + $0x184] ss:$8 sps:$4 sm:$0xff]  }
  0x28   : > { %1361 = vmatpush1.bf16.msra.mxu1 %v2277_v34  ;;  %v2362_v29 = vld [vmem:[%s3094_s1 + $0x354] ss:$8 sps:$4 sm:$0xff]   ;;  %v2360_v34 = vld [vmem:[%s3094_s1 + $0x350] ss:$8 sps:$4 sm:$0xff]   ;;  %v2378_v51 = vld [vmem:[%s3094_s1 + $0x380] ss:$8 sps:$4 sm:$0xff]  }
  0x29   : > { %1507 = vmatpush1.bf16.msra.mxu0 %v2278_v35  ;;  %1362 = vmatprep.subr.bf16.mxu1 %v2279_v36  ;;  %v2405_v30 = vld [vmem:[%s2700_s17 + $0x94] ss:$36 sps:$4 sm:$0xff]   ;;  %v2413_v35 = vld [vmem:[%s2700_s17 + $0xa0] ss:$36 sps:$4 sm:$0xff]  }
  0x2a   : > { %1508 = vmatprep.subr.bf16.mxu0 %v2281_v37  ;;  %v2365_v36 = vld [vmem:[%s3094_s1 + $0x164] ss:$8 sps:$4 sm:$0xff]  }
  0x2b   : > { %v2368_v37 = vld [vmem:[%s3094_s1 + $0x364] ss:$8 sps:$4 sm:$0xff]  }
  0x2c   : > { %1363 = vmatpush1.bf16.msra.mxu1 %v2283_v38  ;;  %v2363_v38 = vld [vmem:[%s3094_s1 + $0x160] ss:$8 sps:$4 sm:$0xff]  }
  0x2d   : > { %1509 = vmatpush1.bf16.msra.mxu0 %v2284_v39  ;;  %1364 = vmatprep.subr.bf16.mxu1 %v2285_v40  ;;  %v2366_v39 = vld [vmem:[%s3094_s1 + $0x360] ss:$8 sps:$4 sm:$0xff]   ;;  %v2371_v40 = vld [vmem:[%s3094_s1 + $0x174] ss:$8 sps:$4 sm:$0xff]  }
  0x2e   : > { %1510 = vmatprep.subr.bf16.mxu0 %v2287_v41  ;;  %v2374_v41 = vld [vmem:[%s3094_s1 + $0x374] ss:$8 sps:$4 sm:$0xff]  }
  0x30   : > { %1365 = vmatpush1.bf16.msra.mxu1 %v2289_v42  ;;  %v2423_v42 = vld [vmem:[%s2700_s17 + $0xdc] ss:$36 sps:$4 sm:$0xff]  }
  0x31   : > { %1511 = vmatpush1.bf16.msra.mxu0 %v2290_v43  ;;  %1366 = vmatprep.subr.bf16.mxu1 %v2291_v44  ;;  %v2425_v43 = vld [vmem:[%s2700_s17 + $0xec] ss:$36 sps:$4 sm:$0xff]   ;;  %v2427_v44 = vld [vmem:[%s2700_s17 + $0xd8] ss:$36 sps:$4 sm:$0xff]  }
  0x32   : > { %1512 = vmatprep.subr.bf16.mxu0 %v2293_v45  ;;  %v2369_v45 = vld [vmem:[%s3094_s1 + $0x170] ss:$8 sps:$4 sm:$0xff]  }
  0x34   : > { %1367 = vmatpush1.bf16.msra.mxu1 %v2295_v46  ;;  %v2372_v46 = vld [vmem:[%s3094_s1 + $0x370] ss:$8 sps:$4 sm:$0xff]  }
  0x35   : > { %1513 = vmatpush1.bf16.msra.mxu0 %v2296_v47  ;;  %1368 = vmatprep.subr.bf16.mxu1 %v2297_v49  ;;  %v2431_v47 = vld [vmem:[%s2700_s17 + $0xe8] ss:$36 sps:$4 sm:$0xff]  }
  0x36   : > { %1514 = vmatprep.subr.bf16.mxu0 %v2299_v50  ;;  %v2380_v49 = vld [vmem:[%s3094_s1 + $0x384] ss:$8 sps:$4 sm:$0xff]   ;;  %v2375_v50 = vld [vmem:[%s3094_s1 + $0x180] ss:$8 sps:$4 sm:$0xff]  }
  0x38   : > { %1369 = vmatpush1.bf16.msra.mxu1 %v2301_v52  ;;  %v2383_v52 = vld [vmem:[%s3094_s1 + $0x194] ss:$8 sps:$4 sm:$0xff]  }
  0x39   : > { %1515 = vmatpush1.bf16.msra.mxu0 %v2302_v53  ;;  %1370 = vmatprep.subr.bf16.mxu1 %v2303_v54  ;;  %v2386_v53 = vld [vmem:[%s3094_s1 + $0x394] ss:$8 sps:$4 sm:$0xff]   ;;  %v2443_v54 = vld [vmem:[%s2700_s17 + $0xc] ss:$36 sps:$4 sm:$0xff]  }
  0x3a   : > { %1516 = vmatprep.subr.bf16.mxu0 %v2305_v55  ;;  %v2446_v55 = vld [vmem:[%s2700_s17 + $0x1c] ss:$36 sps:$4 sm:$0xff]  }
  0x3c   : > { %1371 = vmatpush1.bf16.msra.mxu1 %v2307_v56  ;;  %v2381_v56 = vld [vmem:[%s3094_s1 + $0x190] ss:$8 sps:$4 sm:$0xff]  }
  0x3d   : > { %1517 = vmatpush1.bf16.msra.mxu0 %v2308_v57  ;;  %1372 = vmatprep.subr.bf16.mxu1 %v2309_v58  ;;  %v2384_v57 = vld [vmem:[%s3094_s1 + $0x390] ss:$8 sps:$4 sm:$0xff]   ;;  %v2394_v58 = vld [vmem:[%s3094_s1 + $0x1a4] ss:$8 sps:$4 sm:$0xff]  }
  0x3e   : > { %1518 = vmatprep.subr.bf16.mxu0 %v2311_v59  ;;  %v2398_v59 = vld [vmem:[%s3094_s1 + $0x3a4] ss:$8 sps:$4 sm:$0xff]  }
  0x40   : > { %1373 = vmatpush1.bf16.msra.mxu1 %v2313_v60  ;;  %v2392_v60 = vld [vmem:[%s3094_s1 + $0x1a0] ss:$8 sps:$4 sm:$0xff]  }
  0x41   : > { %1519 = vmatpush1.bf16.msra.mxu0 %v2314_v61  ;;  %1374 = vmatprep.subr.bf16.mxu1 %v2315_v62  ;;  %v2396_v61 = vld [vmem:[%s3094_s1 + $0x3a0] ss:$8 sps:$4 sm:$0xff]   ;;  %v2401_v62 = vld [vmem:[%s3094_s1 + $0x1b4] ss:$8 sps:$4 sm:$0xff]  }
  0x42   : > { %1520 = vmatprep.subr.bf16.mxu0 %v2317_v63  ;;  %v2404_v63 = vld [vmem:[%s3094_s1 + $0x3b4] ss:$8 sps:$4 sm:$0xff]  }
  0x44   : > { %1375 = vmatpush1.bf16.msra.mxu1 %v2319_v0  ;;  %v2399_v0 = vld [vmem:[%s3094_s1 + $0x1b0] ss:$8 sps:$4 sm:$0xff]  }
  0x45   : > { %1521 = vmatpush1.bf16.msra.mxu0 %v2320_v1  ;;  %1417 = vmatprep.subr.bf16.mxu1 %v2326_v2  ;;  %v2402_v1 = vld [vmem:[%s3094_s1 + $0x3b0] ss:$8 sps:$4 sm:$0xff]   ;;  %v2412_v2 = vld [vmem:[%s3094_s1 + $0x1c4] ss:$8 sps:$4 sm:$0xff]  }
  0x46   : > { %1563 = vmatprep.subr.bf16.mxu0 %v2332_v3  ;;  %v2416_v3 = vld [vmem:[%s3094_s1 + $0x3c4] ss:$8 sps:$4 sm:$0xff]  }
  0x47   : > { %1377 = vmatmul.mubr.bf16.vlgmr.msra.gmra.mrb[0].mxu1 %v2321_v4  ;;  %v2410_v4 = vld [vmem:[%s3094_s1 + $0x1c0] ss:$8 sps:$4 sm:$0xff]  }
  0x48   : > { %1523 = vmatmul.mubr.bf16.vlgmr.msra.gmra.mrb[0].mxu0 %v2327_v6  ;;  %1418 = vmatpush1.bf16.msra.mxu1 %v2324_v5  ;;  %v2414_v5 = vld [vmem:[%s3094_s1 + $0x3c0] ss:$8 sps:$4 sm:$0xff]   ;;  %v2419_v6 = vld [vmem:[%s3094_s1 + $0x1d4] ss:$8 sps:$4 sm:$0xff]  }
  0x49   : > { %1564 = vmatpush1.bf16.msra.mxu0 %v2330_v7  ;;  %1419 = vmatprep.subr.bf16.mxu1 %v2335_v8  ;;  %v2422_v7 = vld [vmem:[%s3094_s1 + $0x3d4] ss:$8 sps:$4 sm:$0xff]   ;;  %v2417_v8 = vld [vmem:[%s3094_s1 + $0x1d0] ss:$8 sps:$4 sm:$0xff]  }
  0x4a   : > { %1565 = vmatprep.subr.bf16.mxu0 %v2338_v9  ;;  %1386 = vmatprep.mubr.bf16.mxu1 %v2387_v18  ;;  %v2420_v9 = vld [vmem:[%s3094_s1 + $0x3d0] ss:$8 sps:$4 sm:$0xff]   ;;  %v2449_v18 = vld [vmem:[%s3094_s1 + $0x404] ss:$8 sps:$4 sm:$0xff]  }
  0x4b   : > { %1532 = vmatprep.mubr.bf16.mxu0 %v2389_v19  ;;  %v2441_v19 = vld [vmem:[%s2700_s17 + $0x8] ss:$36 sps:$4 sm:$0xff]  }
  0x4c   : > { %1420 = vmatpush1.bf16.msra.mxu1 %v2333_v10  ;;  %v2430_v10 = vld [vmem:[%s3094_s1 + $0x1e4] ss:$8 sps:$4 sm:$0xff]  }
  0x4d   : > { %1566 = vmatpush1.bf16.msra.mxu0 %v2336_v11  ;;  %1421 = vmatprep.subr.bf16.mxu1 %v2341_v12  ;;  %v2434_v11 = vld [vmem:[%s3094_s1 + $0x3e4] ss:$8 sps:$4 sm:$0xff]   ;;  %v2428_v12 = vld [vmem:[%s3094_s1 + $0x1e0] ss:$8 sps:$4 sm:$0xff]  }
  0x4e   : > { %1567 = vmatprep.subr.bf16.mxu0 %v2344_v13  ;;  %v2432_v13 = vld [vmem:[%s3094_s1 + $0x3e0] ss:$8 sps:$4 sm:$0xff]  }
  0x4f   : > { %1387 = vmatmul.mubr.bf16.gmra.mrb[4].mxu1 %v2391_v20  ;;  %v2444_v20 = vld [vmem:[%s2700_s17 + $0x18] ss:$36 sps:$4 sm:$0xff]  }
  0x50   : > { %1422 = vmatpush1.bf16.msra.mxu1 %v2339_v14  ;;  %1533 = vmatmul.mubr.bf16.gmra.mrb[4].mxu0 %v2395_v23  ;;  %v2437_v14 = vld [vmem:[%s3094_s1 + $0x1f4] ss:$8 sps:$4 sm:$0xff]  }
  0x51   : > { %1568 = vmatpush1.bf16.msra.mxu0 %v2342_v15  ;;  %1423 = vmatprep.subr.bf16.mxu1 %v2347_v16  ;;  %v2440_v15 = vld [vmem:[%s3094_s1 + $0x3f4] ss:$8 sps:$4 sm:$0xff]   ;;  %v2435_v16 = vld [vmem:[%s3094_s1 + $0x1f0] ss:$8 sps:$4 sm:$0xff]  }
  0x52   : > { %1569 = vmatprep.subr.bf16.mxu0 %v2350_v17  ;;  %1396 = vmatprep.mubr.bf16.mxu1 %v2405_v30  ;;  %v2438_v17 = vld [vmem:[%s3094_s1 + $0x3f0] ss:$8 sps:$4 sm:$0xff]   ;;  %v2464_v30 = vld [vmem:[%s3094_s1 + $0x434] ss:$8 sps:$4 sm:$0xff]  }
  0x53   : > { %1542 = vmatprep.mubr.bf16.mxu0 %v2407_v31  ;;  %v2453_v23 = vld [vmem:[%s2700_s17 + $0x54] ss:$36 sps:$4 sm:$0xff]   ;;  %v2465_v31 = vld [vmem:[%s2700_s17 + $0x9c] ss:$36 sps:$4 sm:$0xff]  }
  0x54   : > { %1424 = vmatpush1.bf16.msra.mxu1 %v2345_v21  ;;  %v2447_v21 = vld [vmem:[%s3094_s1 + $0x400] ss:$8 sps:$4 sm:$0xff]  }
  0x55   : > { %1570 = vmatpush1.bf16.msra.mxu0 %v2348_v22  ;;  %1425 = vmatprep.subr.bf16.mxu1 %v2353_v24  ;;  %v2452_v22 = vld [vmem:[%s3094_s1 + $0x414] ss:$8 sps:$4 sm:$0xff]   ;;  %v2455_v24 = vld [vmem:[%s2700_s17 + $0x64] ss:$36 sps:$4 sm:$0xff]  }
  0x56   : > { %1571 = vmatprep.subr.bf16.mxu0 %v2356_v25  ;;  %v2450_v25 = vld [vmem:[%s3094_s1 + $0x410] ss:$8 sps:$4 sm:$0xff]  }
  0x57   : > { %1397 = vmatmul.mubr.bf16.gmra.mrb[8].mxu1 %v2409_v32  ;;  %v2467_v32 = vld [vmem:[%s2700_s17 + $0xac] ss:$36 sps:$4 sm:$0xff]  }
  0x58   : > { %1426 = vmatpush1.bf16.msra.mxu1 %v2351_v26  ;;  %1543 = vmatmul.mubr.bf16.gmra.mrb[8].mxu0 %v2413_v35  ;;  %v2461_v26 = vld [vmem:[%s3094_s1 + $0x424] ss:$8 sps:$4 sm:$0xff]   ;;  %v2469_v35 = vld [vmem:[%s2700_s17 + $0x98] ss:$36 sps:$4 sm:$0xff]  }
  0x59   : > { %1572 = vmatpush1.bf16.msra.mxu0 %v2354_v27  ;;  %1427 = vmatprep.subr.bf16.mxu1 %v2359_v28  ;;  %v2457_v27 = vld [vmem:[%s2700_s17 + $0x50] ss:$36 sps:$4 sm:$0xff]   ;;  %v2458_v28 = vld [vmem:[%s2700_s17 + $0x60] ss:$36 sps:$4 sm:$0xff]  }
  0x5a   : > { %1573 = vmatprep.subr.bf16.mxu0 %v2362_v29  ;;  %1406 = vmatprep.mubr.bf16.mxu1 %v2423_v42  ;;  %v2459_v29 = vld [vmem:[%s3094_s1 + $0x420] ss:$8 sps:$4 sm:$0xff]   ;;  %v2485_v42 = vld [vmem:[%s3094_s1 + $0x464] ss:$8 sps:$4 sm:$0xff]  }
  0x5b   : > { %1552 = vmatprep.mubr.bf16.mxu0 %v2425_v43  ;;  %v2481_v43 = vld [vmem:[%s2700_s17 + $0xe0] ss:$36 sps:$4 sm:$0xff]  }
  0x5c   : > { %1428 = vmatpush1.bf16.msra.mxu1 %v2357_v33  ;;  %v2462_v33 = vld [vmem:[%s3094_s1 + $0x430] ss:$8 sps:$4 sm:$0xff]  }
  0x5d   : > { %1574 = vmatpush1.bf16.msra.mxu0 %v2360_v34  ;;  %1429 = vmatprep.subr.bf16.mxu1 %v2365_v36  ;;  %v2473_v34 = vld [vmem:[%s3094_s1 + $0x444] ss:$8 sps:$4 sm:$0xff]  }
  0x5e   : > { %1575 = vmatprep.subr.bf16.mxu0 %v2368_v37  ;;  %v2470_v36 = vld [vmem:[%s2700_s17 + $0xa8] ss:$36 sps:$4 sm:$0xff]  }
  0x5f   : > { %1407 = vmatmul.mubr.bf16.gmra.mrb[12].mxu1 %v2427_v44  ;;  %v2471_v37 = vld [vmem:[%s3094_s1 + $0x440] ss:$8 sps:$4 sm:$0xff]   ;;  %v2482_v44 = vld [vmem:[%s2700_s17 + $0xf0] ss:$36 sps:$4 sm:$0xff]  }
  0x60   : > { %1430 = vmatpush1.bf16.msra.mxu1 %v2363_v38  ;;  %1553 = vmatmul.mubr.bf16.gmra.mrb[12].mxu0 %v2431_v47  ;;  %v2476_v38 = vld [vmem:[%s3094_s1 + $0x454] ss:$8 sps:$4 sm:$0xff]   ;;  %v2486_v47 = vld [vmem:[%s3094_s1 + $0x470] ss:$8 sps:$4 sm:$0xff]  }
  0x61   : > { %1576 = vmatpush1.bf16.msra.mxu0 %v2366_v39  ;;  %1431 = vmatprep.subr.bf16.mxu1 %v2371_v40  ;;  %v2477_v39 = vld [vmem:[%s2700_s17 + $0xe4] ss:$36 sps:$4 sm:$0xff]   ;;  %v2479_v40 = vld [vmem:[%s2700_s17 + $0xf4] ss:$36 sps:$4 sm:$0xff]  }
  0x62   : > { %1577 = vmatprep.subr.bf16.mxu0 %v2374_v41  ;;  %1449 = vmatprep.mubr.bf16.mxu1 %v2443_v54  ;;  %v2474_v41 = vld [vmem:[%s3094_s1 + $0x450] ss:$8 sps:$4 sm:$0xff]  }
  0x63   : > { %1595 = vmatprep.mubr.bf16.mxu0 %v2446_v55 }
  0x64   : > { %1432 = vmatpush1.bf16.msra.mxu1 %v2369_v45  ;;  %v2483_v45 = vld [vmem:[%s3094_s1 + $0x460] ss:$8 sps:$4 sm:$0xff]  }
  0x65   : > { %1578 = vmatpush1.bf16.msra.mxu0 %v2372_v46  ;;  %1433 = vmatprep.subr.bf16.mxu1 %v2377_v48  ;;  %v2488_v46 = vld [vmem:[%s3094_s1 + $0x474] ss:$8 sps:$4 sm:$0xff]   ;;  %v2517_v48 = vmov 0  }
  0x66   : > { %1579 = vmatprep.subr.bf16.mxu0 %v2380_v49  ;;  %v2489_v49 = vld [vmem:[%s2700_s17 + $0x20] ss:$36 sps:$4 sm:$0xff]  }
  0x68   : > { %1434 = vmatpush1.bf16.msra.mxu1 %v2375_v50  ;;  %v2490_v50 = vld [vmem:[%s2700_s17 + $0xb0] ss:$36 sps:$4 sm:$0xff]  }
  0x69   : > { %1580 = vmatpush1.bf16.msra.mxu0 %v2378_v51  ;;  %1435 = vmatprep.subr.bf16.mxu1 %v2383_v52  ;;  %v2491_v51 = vld [vmem:[%s2700_s17 + $0x68] ss:$36 sps:$4 sm:$0xff]   ;;  %v2492_v52 = vld [vmem:[%s2700_s17 + $0xf8] ss:$36 sps:$4 sm:$0xff]   ;;  %s2094_s17 = sshll.u32 %s3102_s30, 3 }
  0x6a   : > { %1581 = vmatprep.subr.bf16.mxu0 %v2386_v53  ;;  %s3066_s22 = scalar_lea.vmem %s3096_s3, %s2094_s17 }
  0x6c   : > { %1436 = vmatpush1.bf16.msra.mxu1 %v2381_v56  ;;  %v430_v56 = vlaneseq }
  0x6d   : > { %1582 = vmatpush1.bf16.msra.mxu0 %v2384_v57  ;;  %1437 = vmatprep.subr.bf16.mxu1 %v2394_v58 }
  0x6e   : > { %1583 = vmatprep.subr.bf16.mxu0 %v2398_v59  ;;  %v431_v58 = vshrl.u32 %v430_v56, 7 }
  0x70   : > { %1438 = vmatpush1.bf16.msra.mxu1 %v2392_v60 }
  0x71   : > { %1584 = vmatpush1.bf16.msra.mxu0 %v2396_v61  ;;  %1439 = vmatprep.subr.bf16.mxu1 %v2401_v62  ;;  %v432_v62 = vsub.s32 0, %v431_v58 }
  0x72   : > { %1585 = vmatprep.subr.bf16.mxu0 %v2404_v63 }
  0x74   : > { %1440 = vmatpush1.bf16.msra.mxu1 %v2399_v0  ;;  %v428_v0 = vld [vmem:[%s3095_s2] sm:$0x3] }
  0x75   : > { %1586 = vmatpush1.bf16.msra.mxu0 %v2402_v1  ;;  %1441 = vmatprep.subr.bf16.mxu1 %v2412_v2  ;;  %v436_v1 = vsub.s32 1, %v431_v58  ;;  %v3046_v2 = vrot.slane %v428_v0, %v432_v62 }
  0x76   : > { %1587 = vmatprep.subr.bf16.mxu0 %v2416_v3 }
  0x77   : > { %v3048_v3 = vrot.slane %v428_v0, %v436_v1 }
  0x78   : > { %1442 = vmatpush1.bf16.msra.mxu1 %v2410_v4 }
  0x79   : > { %1588 = vmatpush1.bf16.msra.mxu0 %v2414_v5  ;;  %1443 = vmatprep.subr.bf16.mxu1 %v2419_v6 }
  0x7a   : > { %1589 = vmatprep.subr.bf16.mxu0 %v2422_v7 }
  0x7c   : > { %1444 = vmatpush1.bf16.msra.mxu1 %v2417_v8 }
  0x7d   : > { %1590 = vmatpush1.bf16.msra.mxu0 %v2420_v9  ;;  %1445 = vmatprep.subr.bf16.mxu1 %v2430_v10 }
  0x7e   : > { %1591 = vmatprep.subr.bf16.mxu0 %v2434_v11 }
  0x80   : > { %1446 = vmatpush1.bf16.msra.mxu1 %v2428_v12 }
  0x81   : > { %1592 = vmatpush1.bf16.msra.mxu0 %v2432_v13  ;;  %1447 = vmatprep.subr.bf16.mxu1 %v2437_v14 }
  0x82   : > { %1593 = vmatprep.subr.bf16.mxu0 %v2440_v15 }
  0x84   : > { %1448 = vmatpush1.bf16.msra.mxu1 %v2435_v16 }
  0x85   : > { %1594 = vmatpush1.bf16.msra.mxu0 %v2438_v17  ;;  %2103 = vmatprep.subr.bf16.mxu1 %v2449_v18 }
  0x86   : > { %1636 = vmatprep.subr.bf16.mxu0 %v2449_v18 }
  0x87   : > { %1450 = vmatmul.mubr.bf16.vlgmr.msra.gmra.mrb[0].mxu1 %v2441_v19 }
  0x88   : > { %1596 = vmatmul.mubr.bf16.vlgmr.msra.gmra.mrb[0].mxu0 %v2444_v20  ;;  %2111 = vmatpush1.bf16.msra.mxu1 %v2447_v21 }
  0x89   : > { %1637 = vmatpush1.bf16.msra.mxu0 %v2447_v21  ;;  %2104 = vmatprep.subr.bf16.mxu1 %v2452_v22 }
  0x8a   : > { %1638 = vmatprep.subr.bf16.mxu0 %v2452_v22  ;;  %1459 = vmatprep.mubr.bf16.mxu1 %v2453_v23 }
  0x8b   : > { %1605 = vmatprep.mubr.bf16.mxu0 %v2455_v24 }
  0x8c   : > { %2112 = vmatpush1.bf16.msra.mxu1 %v2450_v25 }
  0x8d   : > { %1639 = vmatpush1.bf16.msra.mxu0 %v2450_v25  ;;  %2105 = vmatprep.subr.bf16.mxu1 %v2461_v26 }
  0x8e   : > { %1640 = vmatprep.subr.bf16.mxu0 %v2461_v26 }
  0x8f   : > { %1460 = vmatmul.mubr.bf16.gmra.mrb[4].mxu1 %v2457_v27 }
  0x90   : > { %1606 = vmatmul.mubr.bf16.gmra.mrb[4].mxu0 %v2458_v28  ;;  %2113 = vmatpush1.bf16.msra.mxu1 %v2459_v29 }
  0x91   : > { %1641 = vmatpush1.bf16.msra.mxu0 %v2459_v29  ;;  %2106 = vmatprep.subr.bf16.mxu1 %v2464_v30 }
  0x92   : > { %1642 = vmatprep.subr.bf16.mxu0 %v2464_v30  ;;  %1469 = vmatprep.mubr.bf16.mxu1 %v2465_v31 }
  0x93   : > { %1615 = vmatprep.mubr.bf16.mxu0 %v2467_v32 }
  0x94   : > { %2114 = vmatpush1.bf16.msra.mxu1 %v2462_v33 }
  0x95   : > { %1643 = vmatpush1.bf16.msra.mxu0 %v2462_v33  ;;  %2107 = vmatprep.subr.bf16.mxu1 %v2473_v34 }
  0x96   : > { %1644 = vmatprep.subr.bf16.mxu0 %v2473_v34 }
  0x97   : > { %1470 = vmatmul.mubr.bf16.gmra.mrb[8].mxu1 %v2469_v35 }
  0x98   : > { %1616 = vmatmul.mubr.bf16.gmra.mrb[8].mxu0 %v2470_v36  ;;  %2115 = vmatpush1.bf16.msra.mxu1 %v2471_v37 }
  0x99   : > { %1645 = vmatpush1.bf16.msra.mxu0 %v2471_v37  ;;  %2108 = vmatprep.subr.bf16.mxu1 %v2476_v38 }
  0x9a   : > { %1646 = vmatprep.subr.bf16.mxu0 %v2476_v38  ;;  %1479 = vmatprep.mubr.bf16.mxu1 %v2477_v39 }
  0x9b   : > { %1625 = vmatprep.mubr.bf16.mxu0 %v2479_v40 }
  0x9c   : > { %2116 = vmatpush1.bf16.msra.mxu1 %v2474_v41 }
  0x9d   : > { %1647 = vmatpush1.bf16.msra.mxu0 %v2474_v41  ;;  %2109 = vmatprep.subr.bf16.mxu1 %v2485_v42 }
  0x9e   : > { %1648 = vmatprep.subr.bf16.mxu0 %v2485_v42 }
  0x9f   : > { %1480 = vmatmul.mubr.bf16.gmra.mrb[12].mxu1 %v2481_v43 }
  0xa0   : > { %1626 = vmatmul.mubr.bf16.gmra.mrb[12].mxu0 %v2482_v44  ;;  %2117 = vmatpush1.bf16.msra.mxu1 %v2483_v45 }
  0xa1   : > { %1649 = vmatpush1.bf16.msra.mxu0 %v2483_v45  ;;  %2110 = vmatprep.subr.bf16.mxu1 %v2488_v46 }
  0xa2   : > { %1650 = vmatprep.subr.bf16.mxu0 %v2488_v46  ;;  %1668 = vmatprep.mubr.bf16.mxu0 %v2517_v48 }
  0xa3   : > { %1688 = vmatprep.mubr.bf16.mxu1 %v2517_v48 }
  0xa4   : > { %2118 = vmatpush1.bf16.msra.mxu1 %v2486_v47 }
  0xa5   : > { %1651 = vmatpush1.bf16.msra.mxu0 %v2486_v47 }
  0xa7   : > { %1689 = vmatmul.mubr.bf16.vlgmr.msra.gmra.mrb[16].mxu1 %v2490_v50 }
  0xa8   : > { %1669 = vmatmul.mubr.bf16.vlgmr.msra.gmra.mrb[0].mxu0 %v2489_v49  ;;  %1698 = vmatprep.mubr.bf16.mxu1 %v2517_v48 }
  0xa9   : > { %1678 = vmatprep.mubr.bf16.mxu0 %v2517_v48 }
  0xaf   : > { %1699 = vmatmul.mubr.bf16.gmra.mrb[20].mxu1 %v2492_v52 }
  0xb0   : > { %1679 = vmatmul.mubr.bf16.gmra.mrb[4].mxu0 %v2491_v51 }
 0x15a   : > { %v1451_v53 = vpop.f32.mrb[0].mxu1 }
 0x15b   : > { %v1453_v54 = vpop.f32.mrb[1].mxu1  ;;  %v2119_v36 = vadd.f32 %v1451_v53, %v3046_v2 }
 0x15c   : > { %v1455_v55 = vpop.f32.mrb[2].mxu1  ;;  %v2121_v37 = vadd.f32 %v1453_v54, %v3048_v3 }
 0x15d   : > { %v1457_v57 = vpop.f32.mrb[3].mxu1  ;;  %v2123_v40 = vadd.f32 %v1455_v55, %v3046_v2 }
 0x15e   : > { %v2125_v45 = vadd.f32 %v1457_v57, %v3048_v3 }
 0x162   : > { %v3035_v59 = vpop.f32.mrb[4].mxu1 }
 0x163   : > { %v3037_v60 = vpop.f32.mrb[5].mxu1 }
 0x164   : > { %v3039_v61 = vpop.f32.mrb[6].mxu1 }
 0x165   : > { %v3041_v63 = vpop.f32.mrb[7].mxu1 }
 0x16a   : > { %v1471_v4 = vpop.f32.mrb[8].mxu1 }
 0x16b   : > { %v1617_v5 = vpop.f32.mrb[8].mxu0  ;;  %v2135_v6 = vadd.f32 %v1471_v4, %v3046_v2  ;;  %v1473_v7 = vpop.f32.mrb[9].mxu1 }
 0x16c   : > { %v1619_v8 = vpop.f32.mrb[9].mxu0  ;;  %v2138_v9 = vadd.f32 %v1473_v7, %v3048_v3  ;;  %v1475_v10 = vpop.f32.mrb[10].mxu1 }
 0x16d   : > { %v1621_v11 = vpop.f32.mrb[10].mxu0  ;;  %v2136_v12 = vadd.f32 %v2135_v6, %v1617_v5  ;;  %v2141_v13 = vadd.f32 %v1475_v10, %v3046_v2  ;;  %v1477_v14 = vpop.f32.mrb[11].mxu1 }
 0x16e   : > { %v1623_v15 = vpop.f32.mrb[11].mxu0  ;;  %v2139_v16 = vadd.f32 %v2138_v9, %v1619_v8  ;;  %v2144_v17 = vadd.f32 %v1477_v14, %v3048_v3  ;;  %v2127_v8 = vadd.f32 %v3035_v59, %v3046_v2  ;;  %v2129_v9 = vadd.f32 %v3037_v60, %v3048_v3 }
 0x16f   : > { %v2142_v18 = vadd.f32 %v2141_v13, %v1621_v11  ;;  %v2131_v14 = vadd.f32 %v3039_v61, %v3046_v2 }
 0x170   : > { %v2145_v19 = vadd.f32 %v2144_v17, %v1623_v15 }
 0x172   : > { %v1481_v20 = vpop.f32.mrb[12].mxu1 }
 0x173   : > { %v1627_v21 = vpop.f32.mrb[12].mxu0  ;;  %v2147_v22 = vadd.f32 %v1481_v20, %v3046_v2  ;;  %v1483_v23 = vpop.f32.mrb[13].mxu1 }
 0x174   : > { %v1629_v24 = vpop.f32.mrb[13].mxu0  ;;  %v2150_v25 = vadd.f32 %v1483_v23, %v3048_v3  ;;  %v1485_v26 = vpop.f32.mrb[14].mxu1 }
 0x175   : > { %v1631_v27 = vpop.f32.mrb[14].mxu0  ;;  %v2148_v28 = vadd.f32 %v2147_v22, %v1627_v21  ;;  %v2153_v29 = vadd.f32 %v1485_v26, %v3046_v2  ;;  %v1487_v30 = vpop.f32.mrb[15].mxu1 }
 0x176   : > { %v1633_v31 = vpop.f32.mrb[15].mxu0  ;;  %v2151_v32 = vadd.f32 %v2150_v25, %v1629_v24  ;;  %v2156_v33 = vadd.f32 %v1487_v30, %v3048_v3 }
 0x177   : > { %v2154_v34 = vadd.f32 %v2153_v29, %v1631_v27 }
 0x178   : > { %v2157_v35 = vadd.f32 %v2156_v33, %v1633_v31 }
 0x17a   : > { %v1690_v39 = vpop.f32.mrb[16].mxu1 }
 0x17b   : > { %v1670_v38 = vpop.f32.mrb[0].mxu0  ;;  %v2137_v42 = vadd.f32 %v2136_v12, %v1690_v39  ;;  %v1692_v44 = vpop.f32.mrb[17].mxu1 }
 0x17c   : > { %v2120_v41 = vadd.f32 %v2119_v36, %v1670_v38  ;;  %v1672_v43 = vpop.f32.mrb[1].mxu0  ;;  %v2140_v47 = vadd.f32 %v2139_v16, %v1692_v44  ;;  %v1694_v49 = vpop.f32.mrb[18].mxu1 }
 0x17d   : > { %v2122_v46 = vadd.f32 %v2121_v37, %v1672_v43  ;;  %v1674_v48 = vpop.f32.mrb[2].mxu0  ;;  %v1717_v51 = vmax.f32 %v2137_v42, 0.0  ;;  %v2143_v53 = vadd.f32 %v2142_v18, %v1694_v49  ;;  %v1696_v56 = vpop.f32.mrb[19].mxu1 }
 0x17e   : > { %v1709_v50 = vmax.f32 %v2120_v41, 0.0  ;;  %v2124_v52 = vadd.f32 %v2123_v40, %v1674_v48  ;;  %v1676_v54 = vpop.f32.mrb[3].mxu0  ;;  %v1718_v62 = vmax.f32 %v2140_v47, 0.0  ;;  %v2146_v0 = vadd.f32 %v2145_v19, %v1696_v56 }
 0x17f   : > { %v1710_v58 = vmax.f32 %v2122_v46, 0.0  ;;  %v2126_v55 = vadd.f32 %v2125_v45, %v1676_v54  ;;  %v1719_v1 = vmax.f32 %v2143_v53, 0.0  ;;  %v2133_v19 = vadd.f32 %v3041_v63, %v3048_v3 }
 0x180   : > { %v1711_v57 = vmax.f32 %v2124_v52, 0.0  ;;  %v2099_v5 = vpack.c.bf16 %v1718_v62, %v1717_v51  ;;  %v1720_v7 = vmax.f32 %v2146_v0, 0.0 }
 0x181   : > { %v2095_v4 = vpack.c.bf16 %v1710_v58, %v1709_v50  ;;  %v1712_v6 = vmax.f32 %v2126_v55, 0.0 }
 0x182   : > { %1777 = vst [vmem:[%s3066_s22 + $0x20] sm:$0xff] %v2099_v5  ;;  %v2100_v11 = vpack.c.bf16 %v1720_v7, %v1719_v1  ;;  %v1700_v13 = vpop.f32.mrb[20].mxu1 }
 0x183   : > { %1773 = vst [vmem:[%s3066_s22] sm:$0xff] %v2095_v4  ;;  %v2096_v10 = vpack.c.bf16 %v1712_v6, %v1711_v57  ;;  %v1680_v12 = vpop.f32.mrb[4].mxu0  ;;  %v2149_v16 = vadd.f32 %v2148_v28, %v1700_v13  ;;  %v1702_v18 = vpop.f32.mrb[21].mxu1 }
 0x184   : > { %v2128_v15 = vadd.f32 %v2127_v8, %v1680_v12  ;;  %v1682_v17 = vpop.f32.mrb[5].mxu0  ;;  %1778 = vst [vmem:[%s3066_s22 + $0x28] sm:$0xff] %v2100_v11  ;;  %v2152_v60 = vadd.f32 %v2151_v32, %v1702_v18  ;;  %v1704_v21 = vpop.f32.mrb[22].mxu1 }
 0x185   : > { %1774 = vst [vmem:[%s3066_s22 + $0x8] sm:$0xff] %v2096_v10  ;;  %v2130_v59 = vadd.f32 %v2129_v9, %v1682_v17  ;;  %v1684_v20 = vpop.f32.mrb[6].mxu0  ;;  %v1721_v23 = vmax.f32 %v2149_v16, 0.0  ;;  %v2155_v25 = vadd.f32 %v2154_v34, %v1704_v21  ;;  %v1706_v2 = vpop.f32.mrb[23].mxu1 }
 0x186   : > { %v1713_v22 = vmax.f32 %v2128_v15, 0.0  ;;  %v2132_v24 = vadd.f32 %v2131_v14, %v1684_v20  ;;  %v1686_v61 = vpop.f32.mrb[7].mxu0  ;;  %v1722_v27 = vmax.f32 %v2152_v60, 0.0  ;;  %v2158_v63 = vadd.f32 %v2157_v35, %v1706_v2 }
 0x187   : > { %v1714_v26 = vmax.f32 %v2130_v59, 0.0  ;;  %v2134_v28 = vadd.f32 %v2133_v19, %v1686_v61  ;;  %v1723_v29 = vmax.f32 %v2155_v25, 0.0 }
 0x188   : > { %v1715_v3 = vmax.f32 %v2132_v24, 0.0  ;;  %v2101_v31 = vpack.c.bf16 %v1722_v27, %v1721_v23  ;;  %v1724_v33 = vmax.f32 %v2158_v63, 0.0 }
 0x189   : > { %v2097_v30 = vpack.c.bf16 %v1714_v26, %v1713_v22  ;;  %v1716_v32 = vmax.f32 %v2134_v28, 0.0 }
 0x18a   : > { %1779 = vst [vmem:[%s3066_s22 + $0x30] sm:$0xff] %v2101_v31  ;;  %v2102_v37 = vpack.c.bf16 %v1724_v33, %v1723_v29 }
 0x18b   : > { %1775 = vst [vmem:[%s3066_s22 + $0x10] sm:$0xff] %v2097_v30  ;;  %v2098_v36 = vpack.c.bf16 %v1716_v32, %v1715_v3 }
 0x18c   : > { %1780 = vst [vmem:[%s3066_s22 + $0x38] sm:$0xff] %v2102_v37 }
 0x18d   : > { %1776 = vst [vmem:[%s3066_s22 + $0x18] sm:$0xff] %v2098_v36 }
 0x18e PF: > { %s13_s14 = sadd.s32 1, %s2515_s14   ;;  %s3097_s12 = smov %s2511_s13 }
 0x18f   : > { %p10_p5 = scmp.ge.s32.totalorder %s13_s14, 4   ;;  %s3098_s13 = smov %s3100_s15 }
 0x191   :  { %12 = sbr.rel (!%p10_p5) target bundleno = 2 (0x2), region = 68 }

// kernel: autoencoder_forward.11
= control target key start
LH: loop header
LB: loop body
LE: loop exit
PB: predicated region body
PF: predicated region fallthrough
CT: control target
= control target key end

     0   :  { %s6399_s12 = smov 0   ;;  %s6401_s13 = smov 0   ;;  %s8190_s0 = inlined_call_operand.vmem [shape: bf16[32,2304], index: 0, kind: input, shape index: {}]   ;;  %s8191_s1 = inlined_call_operand.vmem [shape: bf16[2304,512], index: 1, kind: input, shape index: {}]   ;;  %s8192_s2 = inlined_call_operand.vmem [shape: f32[1,512], index: 2, kind: input, shape index: {}]   ;;  %s8193_s3 = inlined_call_operand.vmem [shape: bf16[32,512], index: 3, kind: output, shape index: {}]  }
   0x1   :  { %s6403_s14 = smov 0  }
   0x2 LB: > { %s25_s15 = sadd.s32 1, %s6373_s13  ;;  %p4756_p0 = scmp.ge.s32.totalorder %s6377_s14, 1  ;;  %s6377_s14 = sphi %s6403_s14, %s13_s14   ;;  %s6373_s13 = sphi %s6401_s13, %s8195_s13   ;;  %s6369_s12 = sphi %s6399_s12, %s8194_s12  }
   0x3   : > { %p27_p1 = scmp.ge.s32.totalorder %s25_s15, 2  ;;  %p174_p2 = scmp.lt.s32.totalorder %s6377_s14, 3 }
   0x5   : > { %s8197_s15 = smov (%p27_p1, %s25_s15), 0  ;;  %p175_p3 = pnand %p4756_p0, %p174_p2 }
   0x6   : > { %v5464_v0 = vld [vmem:[%s8191_s1 + $0x4] ss:$16 sps:$4 sm:$0xff] (!%p175_p3)   ;;  %v5466_v1 = vld [vmem:[%s8191_s1 + $0xc] ss:$16 sps:$4 sm:$0xff] (!%p175_p3)   ;;  %v5468_v2 = vld [vmem:[%s8191_s1] ss:$16 sps:$4 sm:$0xff] (!%p175_p3)  }
   0x7   : > { %178 = sbr.rel (%p175_p3) target bundleno = 805 (0x325), region = 32  ;;  %3829 = vmatprep.subr.bf16.mxu0 (!%p175_p3), %v5464_v0  ;;  %v5469_v3 = vld [vmem:[%s8191_s1 + $0x8] ss:$16 sps:$4 sm:$0xff] (!%p175_p3)   ;;  %4216 = vmatprep.subr.bf16.mxu1 (!%p175_p3), %v5466_v1  ;;  %v5470_v4 = vld [vmem:[%s8191_s1 + $0x24] ss:$16 sps:$4 sm:$0xff] (!%p175_p3)   ;;  %s4757_s30 = sshll.u32 (!%p175_p3), %s6369_s12, 1 }
   0x8   : > { %3830 = vmatpush1.bf16.msra.mxu0 (!%p175_p3), %v5468_v2  ;;  %4217 = vmatpush1.bf16.msra.mxu1 (!%p175_p3), %v5469_v3  ;;  %v5472_v5 = vld [vmem:[%s8191_s1 + $0x2c] ss:$16 sps:$4 sm:$0xff] (!%p175_p3)   ;;  %v5474_v6 = vld [vmem:[%s8191_s1 + $0x20] ss:$16 sps:$4 sm:$0xff] (!%p175_p3)   ;;  %v5475_v7 = vld [vmem:[%s8191_s1 + $0x28] ss:$16 sps:$4 sm:$0xff] (!%p175_p3)  }
   0x9   : > { %3831 = vmatprep.subr.bf16.mxu0 (!%p175_p3), %v5470_v4  ;;  %4218 = vmatprep.subr.bf16.mxu1 (!%p175_p3), %v5472_v5  ;;  %v5476_v8 = vld [vmem:[%s8191_s1 + $0x44] ss:$16 sps:$4 sm:$0xff] (!%p175_p3)   ;;  %v5478_v9 = vld [vmem:[%s8191_s1 + $0x4c] ss:$16 sps:$4 sm:$0xff] (!%p175_p3)   ;;  %v5480_v10 = vld [vmem:[%s8191_s1 + $0x40] ss:$16 sps:$4 sm:$0xff] (!%p175_p3)  }
   0xa   : > { %v5481_v11 = vld [vmem:[%s8191_s1 + $0x48] ss:$16 sps:$4 sm:$0xff] (!%p175_p3)   ;;  %v5482_v12 = vld [vmem:[%s8191_s1 + $0x64] ss:$16 sps:$4 sm:$0xff] (!%p175_p3)   ;;  %v5484_v13 = vld [vmem:[%s8191_s1 + $0x6c] ss:$16 sps:$4 sm:$0xff] (!%p175_p3)  }
   0xb   : > { %v5486_v14 = vld [vmem:[%s8191_s1 + $0x60] ss:$16 sps:$4 sm:$0xff] (!%p175_p3)   ;;  %v5487_v15 = vld [vmem:[%s8191_s1 + $0x68] ss:$16 sps:$4 sm:$0xff] (!%p175_p3)   ;;  %v5488_v16 = vld [vmem:[%s8191_s1 + $0x84] ss:$16 sps:$4 sm:$0xff] (!%p175_p3)  }
   0xc   : > { %3832 = vmatpush1.bf16.msra.mxu0 (!%p175_p3), %v5474_v6  ;;  %4219 = vmatpush1.bf16.msra.mxu1 (!%p175_p3), %v5475_v7  ;;  %v5490_v17 = vld [vmem:[%s8191_s1 + $0x8c] ss:$16 sps:$4 sm:$0xff] (!%p175_p3)   ;;  %v5492_v18 = vld [vmem:[%s8191_s1 + $0x80] ss:$16 sps:$4 sm:$0xff] (!%p175_p3)   ;;  %v5493_v19 = vld [vmem:[%s8191_s1 + $0x88] ss:$16 sps:$4 sm:$0xff] (!%p175_p3)  }
   0xd   : > { %3833 = vmatprep.subr.bf16.mxu0 (!%p175_p3), %v5476_v8  ;;  %4220 = vmatprep.subr.bf16.mxu1 (!%p175_p3), %v5478_v9  ;;  %v5494_v20 = vld [vmem:[%s8191_s1 + $0xa4] ss:$16 sps:$4 sm:$0xff] (!%p175_p3)   ;;  %v5496_v21 = vld [vmem:[%s8191_s1 + $0xac] ss:$16 sps:$4 sm:$0xff] (!%p175_p3)   ;;  %v5498_v22 = vld [vmem:[%s8191_s1 + $0xa0] ss:$16 sps:$4 sm:$0xff] (!%p175_p3)  }
   0xe   : > { %v5499_v23 = vld [vmem:[%s8191_s1 + $0xa8] ss:$16 sps:$4 sm:$0xff]   ;;  %v5500_v24 = vld [vmem:[%s8191_s1 + $0xc4] ss:$16 sps:$4 sm:$0xff]   ;;  %v5502_v25 = vld [vmem:[%s8191_s1 + $0xcc] ss:$16 sps:$4 sm:$0xff]  }
   0xf   : > { %v5504_v26 = vld [vmem:[%s8191_s1 + $0xc0] ss:$16 sps:$4 sm:$0xff]   ;;  %v5505_v27 = vld [vmem:[%s8191_s1 + $0xc8] ss:$16 sps:$4 sm:$0xff]   ;;  %v5506_v28 = vld [vmem:[%s8191_s1 + $0xe4] ss:$16 sps:$4 sm:$0xff]  }
  0x10   : > { %3834 = vmatpush1.bf16.msra.mxu0 %v5480_v10  ;;  %4221 = vmatpush1.bf16.msra.mxu1 %v5481_v11  ;;  %v5508_v29 = vld [vmem:[%s8191_s1 + $0xec] ss:$16 sps:$4 sm:$0xff]   ;;  %v5510_v30 = vld [vmem:[%s8191_s1 + $0xe0] ss:$16 sps:$4 sm:$0xff]   ;;  %v5511_v31 = vld [vmem:[%s8191_s1 + $0xe8] ss:$16 sps:$4 sm:$0xff]  }
  0x11   : > { %3835 = vmatprep.subr.bf16.mxu0 %v5482_v12  ;;  %4222 = vmatprep.subr.bf16.mxu1 %v5484_v13  ;;  %v5512_v32 = vld [vmem:[%s8191_s1 + $0x104] ss:$16 sps:$4 sm:$0xff]   ;;  %p214_p4 = scmp.lt.s32.totalorder %s4757_s30, 3  ;;  %v5514_v33 = vld [vmem:[%s8191_s1 + $0x10c] ss:$16 sps:$4 sm:$0xff]  }
  0x12   : > { %v5516_v34 = vld [vmem:[%s8191_s1 + $0x100] ss:$16 sps:$4 sm:$0xff]   ;;  %v5517_v35 = vld [vmem:[%s8191_s1 + $0x108] ss:$16 sps:$4 sm:$0xff]   ;;  %v5518_v36 = vld [vmem:[%s8191_s1 + $0x124] ss:$16 sps:$4 sm:$0xff]  }
  0x13   : > { %s8199_s30 = smov (!%p214_p4, %s4757_s30), 3  ;;  %v5520_v37 = vld [vmem:[%s8191_s1 + $0x12c] ss:$16 sps:$4 sm:$0xff]   ;;  %v5522_v38 = vld [vmem:[%s8191_s1 + $0x120] ss:$16 sps:$4 sm:$0xff]  }
  0x14   : > { %3836 = vmatpush1.bf16.msra.mxu0 %v5486_v14  ;;  %4223 = vmatpush1.bf16.msra.mxu1 %v5487_v15  ;;  %v5523_v39 = vld [vmem:[%s8191_s1 + $0x128] ss:$16 sps:$4 sm:$0xff]   ;;  %v5524_v40 = vld [vmem:[%s8191_s1 + $0x144] ss:$16 sps:$4 sm:$0xff]   ;;  %s5439_s29 = smul.u32 72, %s8199_s30 }
  0x15   : > { %3837 = vmatprep.subr.bf16.mxu0 %v5488_v16  ;;  %4224 = vmatprep.subr.bf16.mxu1 %v5490_v17  ;;  %v5526_v41 = vld [vmem:[%s8191_s1 + $0x14c] ss:$16 sps:$4 sm:$0xff]   ;;  %v5528_v42 = vld [vmem:[%s8191_s1 + $0x140] ss:$16 sps:$4 sm:$0xff]   ;;  %v5529_v43 = vld [vmem:[%s8191_s1 + $0x148] ss:$16 sps:$4 sm:$0xff]  }
  0x16   : > { %v5530_v44 = vld [vmem:[%s8191_s1 + $0x164] ss:$16 sps:$4 sm:$0xff]   ;;  %s6561_s17 = scalar_lea.vmem %s8190_s0, %s5439_s29  ;;  %v5532_v45 = vld [vmem:[%s8191_s1 + $0x16c] ss:$16 sps:$4 sm:$0xff]   ;;  %v5534_v46 = vld [vmem:[%s8191_s1 + $0x160] ss:$16 sps:$4 sm:$0xff]  }
  0x17   : > { %v5535_v47 = vld [vmem:[%s8191_s1 + $0x168] ss:$16 sps:$4 sm:$0xff]   ;;  %v5562_v48 = vld [vmem:[%s6561_s17 + $0x4] ss:$72 sps:$4 sm:$0xff]   ;;  %v5540_v51 = vld [vmem:[%s8191_s1 + $0x180] ss:$16 sps:$4 sm:$0xff]  }
  0x18   : > { %3838 = vmatpush1.bf16.msra.mxu0 %v5492_v18  ;;  %4225 = vmatpush1.bf16.msra.mxu1 %v5493_v19  ;;  %v5536_v49 = vld [vmem:[%s8191_s1 + $0x184] ss:$16 sps:$4 sm:$0xff]   ;;  %v5538_v50 = vld [vmem:[%s8191_s1 + $0x18c] ss:$16 sps:$4 sm:$0xff]   ;;  %v5541_v52 = vld [vmem:[%s8191_s1 + $0x188] ss:$16 sps:$4 sm:$0xff]  }
  0x19   : > { %3839 = vmatprep.subr.bf16.mxu0 %v5494_v20  ;;  %4226 = vmatprep.subr.bf16.mxu1 %v5496_v21  ;;  %v5542_v53 = vld [vmem:[%s8191_s1 + $0x1a4] ss:$16 sps:$4 sm:$0xff]   ;;  %v5544_v54 = vld [vmem:[%s8191_s1 + $0x1ac] ss:$16 sps:$4 sm:$0xff]   ;;  %v5546_v55 = vld [vmem:[%s8191_s1 + $0x1a0] ss:$16 sps:$4 sm:$0xff]  }
  0x1a   : > { %3861 = vmatprep.mubr.bf16.mxu0 %v5562_v48  ;;  %4248 = vmatprep.mubr.bf16.mxu1 %v5562_v48  ;;  %v5547_v56 = vld [vmem:[%s8191_s1 + $0x1a8] ss:$16 sps:$4 sm:$0xff]   ;;  %v5548_v57 = vld [vmem:[%s8191_s1 + $0x1c4] ss:$16 sps:$4 sm:$0xff]   ;;  %v5550_v58 = vld [vmem:[%s8191_s1 + $0x1cc] ss:$16 sps:$4 sm:$0xff]  }
  0x1b   : > { %v5552_v59 = vld [vmem:[%s8191_s1 + $0x1c0] ss:$16 sps:$4 sm:$0xff]   ;;  %v5553_v60 = vld [vmem:[%s8191_s1 + $0x1c8] ss:$16 sps:$4 sm:$0xff]   ;;  %v5554_v61 = vld [vmem:[%s8191_s1 + $0x1e4] ss:$16 sps:$4 sm:$0xff]  }
  0x1c   : > { %3840 = vmatpush1.bf16.msra.mxu0 %v5498_v22  ;;  %4227 = vmatpush1.bf16.msra.mxu1 %v5499_v23  ;;  %v5556_v62 = vld [vmem:[%s8191_s1 + $0x1ec] ss:$16 sps:$4 sm:$0xff]   ;;  %v5558_v63 = vld [vmem:[%s8191_s1 + $0x1e0] ss:$16 sps:$4 sm:$0xff]   ;;  %v5559_v0 = vld [vmem:[%s8191_s1 + $0x1e8] ss:$16 sps:$4 sm:$0xff]  }
  0x1d   : > { %3841 = vmatprep.subr.bf16.mxu0 %v5500_v24  ;;  %4228 = vmatprep.subr.bf16.mxu1 %v5502_v25  ;;  %v5565_v1 = vld [vmem:[%s8191_s1 + $0x204] ss:$16 sps:$4 sm:$0xff]   ;;  %v5568_v2 = vld [vmem:[%s8191_s1 + $0x20c] ss:$16 sps:$4 sm:$0xff]   ;;  %v5560_v3 = vld [vmem:[%s6561_s17] ss:$72 sps:$4 sm:$0xff]  }
  0x1e   : > { %v5563_v4 = vld [vmem:[%s8191_s1 + $0x200] ss:$16 sps:$4 sm:$0xff]   ;;  %v5566_v5 = vld [vmem:[%s8191_s1 + $0x208] ss:$16 sps:$4 sm:$0xff]   ;;  %v5571_v6 = vld [vmem:[%s8191_s1 + $0x224] ss:$16 sps:$4 sm:$0xff]  }
  0x1f   : > { %v5574_v7 = vld [vmem:[%s8191_s1 + $0x22c] ss:$16 sps:$4 sm:$0xff]   ;;  %v5569_v8 = vld [vmem:[%s8191_s1 + $0x220] ss:$16 sps:$4 sm:$0xff]   ;;  %v5572_v9 = vld [vmem:[%s8191_s1 + $0x228] ss:$16 sps:$4 sm:$0xff]  }
  0x20   : > { %3842 = vmatpush1.bf16.msra.mxu0 %v5504_v26  ;;  %4229 = vmatpush1.bf16.msra.mxu1 %v5505_v27  ;;  %v5577_v10 = vld [vmem:[%s8191_s1 + $0x244] ss:$16 sps:$4 sm:$0xff]   ;;  %v5580_v11 = vld [vmem:[%s8191_s1 + $0x24c] ss:$16 sps:$4 sm:$0xff]   ;;  %v5575_v12 = vld [vmem:[%s8191_s1 + $0x240] ss:$16 sps:$4 sm:$0xff]  }
  0x21   : > { %3843 = vmatprep.subr.bf16.mxu0 %v5506_v28  ;;  %4230 = vmatprep.subr.bf16.mxu1 %v5508_v29  ;;  %v5578_v13 = vld [vmem:[%s8191_s1 + $0x248] ss:$16 sps:$4 sm:$0xff]   ;;  %v5583_v14 = vld [vmem:[%s8191_s1 + $0x264] ss:$16 sps:$4 sm:$0xff]   ;;  %v5586_v15 = vld [vmem:[%s8191_s1 + $0x26c] ss:$16 sps:$4 sm:$0xff]  }
  0x22   : > { %v5581_v16 = vld [vmem:[%s8191_s1 + $0x260] ss:$16 sps:$4 sm:$0xff]   ;;  %v5584_v17 = vld [vmem:[%s8191_s1 + $0x268] ss:$16 sps:$4 sm:$0xff]   ;;  %v5589_v18 = vld [vmem:[%s8191_s1 + $0x284] ss:$16 sps:$4 sm:$0xff]  }
  0x23   : > { %v5592_v19 = vld [vmem:[%s8191_s1 + $0x28c] ss:$16 sps:$4 sm:$0xff]   ;;  %v5587_v20 = vld [vmem:[%s8191_s1 + $0x280] ss:$16 sps:$4 sm:$0xff]   ;;  %v5590_v21 = vld [vmem:[%s8191_s1 + $0x288] ss:$16 sps:$4 sm:$0xff]  }
  0x24   : > { %3844 = vmatpush1.bf16.msra.mxu0 %v5510_v30  ;;  %4231 = vmatpush1.bf16.msra.mxu1 %v5511_v31  ;;  %v5595_v22 = vld [vmem:[%s8191_s1 + $0x2a4] ss:$16 sps:$4 sm:$0xff]   ;;  %v5598_v23 = vld [vmem:[%s8191_s1 + $0x2ac] ss:$16 sps:$4 sm:$0xff]   ;;  %v5593_v24 = vld [vmem:[%s8191_s1 + $0x2a0] ss:$16 sps:$4 sm:$0xff]  }
  0x25   : > { %3845 = vmatprep.subr.bf16.mxu0 %v5512_v32  ;;  %4232 = vmatprep.subr.bf16.mxu1 %v5514_v33  ;;  %v5596_v25 = vld [vmem:[%s8191_s1 + $0x2a8] ss:$16 sps:$4 sm:$0xff]   ;;  %v5601_v26 = vld [vmem:[%s8191_s1 + $0x2c4] ss:$16 sps:$4 sm:$0xff]   ;;  %v5604_v27 = vld [vmem:[%s8191_s1 + $0x2cc] ss:$16 sps:$4 sm:$0xff]  }
  0x26   : > { %v5599_v28 = vld [vmem:[%s8191_s1 + $0x2c0] ss:$16 sps:$4 sm:$0xff]   ;;  %v5602_v29 = vld [vmem:[%s8191_s1 + $0x2c8] ss:$16 sps:$4 sm:$0xff]   ;;  %v5661_v30 = vld [vmem:[%s6561_s17 + $0xc] ss:$72 sps:$4 sm:$0xff]  }
  0x27   : > { %v5607_v31 = vld [vmem:[%s8191_s1 + $0x2e4] ss:$16 sps:$4 sm:$0xff]   ;;  %v5610_v32 = vld [vmem:[%s8191_s1 + $0x2ec] ss:$16 sps:$4 sm:$0xff]   ;;  %v5605_v33 = vld [vmem:[%s8191_s1 + $0x2e0] ss:$16 sps:$4 sm:$0xff]  }
  0x28   : > { %3846 = vmatpush1.bf16.msra.mxu0 %v5516_v34  ;;  %4233 = vmatpush1.bf16.msra.mxu1 %v5517_v35  ;;  %v5608_v34 = vld [vmem:[%s8191_s1 + $0x2e8] ss:$16 sps:$4 sm:$0xff]   ;;  %v5613_v35 = vld [vmem:[%s8191_s1 + $0x304] ss:$16 sps:$4 sm:$0xff]   ;;  %v5634_v48 = vld [vmem:[%s8191_s1 + $0x36c] ss:$16 sps:$4 sm:$0xff]  }
  0x29   : > { %3847 = vmatprep.subr.bf16.mxu0 %v5518_v36  ;;  %4234 = vmatprep.subr.bf16.mxu1 %v5520_v37  ;;  %v5616_v36 = vld [vmem:[%s8191_s1 + $0x30c] ss:$16 sps:$4 sm:$0xff]   ;;  %v5611_v37 = vld [vmem:[%s8191_s1 + $0x300] ss:$16 sps:$4 sm:$0xff]  }
  0x2c   : > { %3848 = vmatpush1.bf16.msra.mxu0 %v5522_v38  ;;  %4235 = vmatpush1.bf16.msra.mxu1 %v5523_v39  ;;  %v5614_v38 = vld [vmem:[%s8191_s1 + $0x308] ss:$16 sps:$4 sm:$0xff]   ;;  %v5619_v39 = vld [vmem:[%s8191_s1 + $0x324] ss:$16 sps:$4 sm:$0xff]  }
  0x2d   : > { %3849 = vmatprep.subr.bf16.mxu0 %v5524_v40  ;;  %4236 = vmatprep.subr.bf16.mxu1 %v5526_v41  ;;  %v5622_v40 = vld [vmem:[%s8191_s1 + $0x32c] ss:$16 sps:$4 sm:$0xff]   ;;  %v5617_v41 = vld [vmem:[%s8191_s1 + $0x320] ss:$16 sps:$4 sm:$0xff]  }
  0x30   : > { %3850 = vmatpush1.bf16.msra.mxu0 %v5528_v42  ;;  %4237 = vmatpush1.bf16.msra.mxu1 %v5529_v43  ;;  %v5620_v42 = vld [vmem:[%s8191_s1 + $0x328] ss:$16 sps:$4 sm:$0xff]   ;;  %v5625_v43 = vld [vmem:[%s8191_s1 + $0x344] ss:$16 sps:$4 sm:$0xff]  }
  0x31   : > { %3851 = vmatprep.subr.bf16.mxu0 %v5530_v44  ;;  %4238 = vmatprep.subr.bf16.mxu1 %v5532_v45  ;;  %v5628_v44 = vld [vmem:[%s8191_s1 + $0x34c] ss:$16 sps:$4 sm:$0xff]   ;;  %v5623_v45 = vld [vmem:[%s8191_s1 + $0x340] ss:$16 sps:$4 sm:$0xff]  }
  0x34   : > { %3852 = vmatpush1.bf16.msra.mxu0 %v5534_v46  ;;  %4239 = vmatpush1.bf16.msra.mxu1 %v5535_v47  ;;  %v5626_v46 = vld [vmem:[%s8191_s1 + $0x348] ss:$16 sps:$4 sm:$0xff]   ;;  %v5631_v47 = vld [vmem:[%s8191_s1 + $0x364] ss:$16 sps:$4 sm:$0xff]  }
  0x35   : > { %3853 = vmatprep.subr.bf16.mxu0 %v5536_v49  ;;  %4240 = vmatprep.subr.bf16.mxu1 %v5538_v50  ;;  %v5629_v49 = vld [vmem:[%s8191_s1 + $0x360] ss:$16 sps:$4 sm:$0xff]   ;;  %v5632_v50 = vld [vmem:[%s8191_s1 + $0x368] ss:$16 sps:$4 sm:$0xff]  }
  0x38   : > { %3854 = vmatpush1.bf16.msra.mxu0 %v5540_v51  ;;  %4241 = vmatpush1.bf16.msra.mxu1 %v5541_v52  ;;  %v5637_v51 = vld [vmem:[%s8191_s1 + $0x384] ss:$16 sps:$4 sm:$0xff]   ;;  %v5640_v52 = vld [vmem:[%s8191_s1 + $0x38c] ss:$16 sps:$4 sm:$0xff]  }
  0x39   : > { %3855 = vmatprep.subr.bf16.mxu0 %v5542_v53  ;;  %4242 = vmatprep.subr.bf16.mxu1 %v5544_v54  ;;  %v5635_v53 = vld [vmem:[%s8191_s1 + $0x380] ss:$16 sps:$4 sm:$0xff]   ;;  %v5638_v54 = vld [vmem:[%s8191_s1 + $0x388] ss:$16 sps:$4 sm:$0xff]  }
  0x3c   : > { %3856 = vmatpush1.bf16.msra.mxu0 %v5546_v55  ;;  %4243 = vmatpush1.bf16.msra.mxu1 %v5547_v56  ;;  %v5643_v55 = vld [vmem:[%s8191_s1 + $0x3a4] ss:$16 sps:$4 sm:$0xff]   ;;  %v5646_v56 = vld [vmem:[%s8191_s1 + $0x3ac] ss:$16 sps:$4 sm:$0xff]  }
  0x3d   : > { %3857 = vmatprep.subr.bf16.mxu0 %v5548_v57  ;;  %4244 = vmatprep.subr.bf16.mxu1 %v5550_v58  ;;  %v5641_v57 = vld [vmem:[%s8191_s1 + $0x3a0] ss:$16 sps:$4 sm:$0xff]   ;;  %v5644_v58 = vld [vmem:[%s8191_s1 + $0x3a8] ss:$16 sps:$4 sm:$0xff]  }
  0x40   : > { %3858 = vmatpush1.bf16.msra.mxu0 %v5552_v59  ;;  %4245 = vmatpush1.bf16.msra.mxu1 %v5553_v60  ;;  %v5649_v59 = vld [vmem:[%s8191_s1 + $0x3c4] ss:$16 sps:$4 sm:$0xff]   ;;  %v5652_v60 = vld [vmem:[%s8191_s1 + $0x3cc] ss:$16 sps:$4 sm:$0xff]  }
  0x41   : > { %3859 = vmatprep.subr.bf16.mxu0 %v5554_v61  ;;  %4246 = vmatprep.subr.bf16.mxu1 %v5556_v62  ;;  %v5647_v61 = vld [vmem:[%s8191_s1 + $0x3c0] ss:$16 sps:$4 sm:$0xff]   ;;  %v5650_v62 = vld [vmem:[%s8191_s1 + $0x3c8] ss:$16 sps:$4 sm:$0xff]  }
  0x44   : > { %3860 = vmatpush1.bf16.msra.mxu0 %v5558_v63  ;;  %4247 = vmatpush1.bf16.msra.mxu1 %v5559_v0  ;;  %v5655_v63 = vld [vmem:[%s8191_s1 + $0x3e4] ss:$16 sps:$4 sm:$0xff]   ;;  %v5658_v0 = vld [vmem:[%s8191_s1 + $0x3ec] ss:$16 sps:$4 sm:$0xff]  }
  0x45   : > { %3872 = vmatprep.subr.bf16.mxu0 %v5565_v1  ;;  %4259 = vmatprep.subr.bf16.mxu1 %v5568_v2  ;;  %v5653_v1 = vld [vmem:[%s8191_s1 + $0x3e0] ss:$16 sps:$4 sm:$0xff]   ;;  %v5656_v2 = vld [vmem:[%s8191_s1 + $0x3e8] ss:$16 sps:$4 sm:$0xff]  }
  0x47   : > { %3862 = vmatmul.mubr.bf16.vlgmr.msra.gmra.mrb[0].mxu0 %v5560_v3  ;;  %4249 = vmatmul.mubr.bf16.vlgmr.msra.gmra.mrb[0].mxu1 %v5560_v3  ;;  %v5664_v3 = vld [vmem:[%s8191_s1 + $0x404] ss:$16 sps:$4 sm:$0xff]  }
  0x48   : > { %3873 = vmatpush1.bf16.msra.mxu0 %v5563_v4  ;;  %4260 = vmatpush1.bf16.msra.mxu1 %v5566_v5  ;;  %v5667_v4 = vld [vmem:[%s8191_s1 + $0x40c] ss:$16 sps:$4 sm:$0xff]   ;;  %v5659_v5 = vld [vmem:[%s6561_s17 + $0x8] ss:$72 sps:$4 sm:$0xff]  }
  0x49   : > { %3874 = vmatprep.subr.bf16.mxu0 %v5571_v6  ;;  %4261 = vmatprep.subr.bf16.mxu1 %v5574_v7  ;;  %v5662_v6 = vld [vmem:[%s8191_s1 + $0x400] ss:$16 sps:$4 sm:$0xff]   ;;  %v5665_v7 = vld [vmem:[%s8191_s1 + $0x408] ss:$16 sps:$4 sm:$0xff]  }
  0x4a   : > { %3904 = vmatprep.mubr.bf16.mxu0 %v5661_v30  ;;  %4291 = vmatprep.mubr.bf16.mxu1 %v5661_v30  ;;  %v5703_v30 = vld [vmem:[%s8191_s1 + $0x4cc] ss:$16 sps:$4 sm:$0xff]  }
  0x4c   : > { %3875 = vmatpush1.bf16.msra.mxu0 %v5569_v8  ;;  %4262 = vmatpush1.bf16.msra.mxu1 %v5572_v9  ;;  %v5670_v8 = vld [vmem:[%s8191_s1 + $0x424] ss:$16 sps:$4 sm:$0xff]   ;;  %v5673_v9 = vld [vmem:[%s8191_s1 + $0x42c] ss:$16 sps:$4 sm:$0xff]  }
  0x4d   : > { %3876 = vmatprep.subr.bf16.mxu0 %v5577_v10  ;;  %4263 = vmatprep.subr.bf16.mxu1 %v5580_v11  ;;  %v5668_v10 = vld [vmem:[%s8191_s1 + $0x420] ss:$16 sps:$4 sm:$0xff]   ;;  %v5671_v11 = vld [vmem:[%s8191_s1 + $0x428] ss:$16 sps:$4 sm:$0xff]  }
  0x50   : > { %3877 = vmatpush1.bf16.msra.mxu0 %v5575_v12  ;;  %4264 = vmatpush1.bf16.msra.mxu1 %v5578_v13  ;;  %v5760_v12 = vld [vmem:[%s6561_s17 + $0x14] ss:$72 sps:$4 sm:$0xff]  }
  0x51   : > { %3878 = vmatprep.subr.bf16.mxu0 %v5583_v14  ;;  %4265 = vmatprep.subr.bf16.mxu1 %v5586_v15  ;;  %v5676_v13 = vld [vmem:[%s8191_s1 + $0x444] ss:$16 sps:$4 sm:$0xff]   ;;  %v5679_v14 = vld [vmem:[%s8191_s1 + $0x44c] ss:$16 sps:$4 sm:$0xff]   ;;  %v5674_v15 = vld [vmem:[%s8191_s1 + $0x440] ss:$16 sps:$4 sm:$0xff]  }
  0x54   : > { %3879 = vmatpush1.bf16.msra.mxu0 %v5581_v16  ;;  %4266 = vmatpush1.bf16.msra.mxu1 %v5584_v17  ;;  %v5677_v16 = vld [vmem:[%s8191_s1 + $0x448] ss:$16 sps:$4 sm:$0xff]   ;;  %v5682_v17 = vld [vmem:[%s8191_s1 + $0x464] ss:$16 sps:$4 sm:$0xff]  }
  0x55   : > { %3880 = vmatprep.subr.bf16.mxu0 %v5589_v18  ;;  %4267 = vmatprep.subr.bf16.mxu1 %v5592_v19  ;;  %v5685_v18 = vld [vmem:[%s8191_s1 + $0x46c] ss:$16 sps:$4 sm:$0xff]   ;;  %v5680_v19 = vld [vmem:[%s8191_s1 + $0x460] ss:$16 sps:$4 sm:$0xff]  }
  0x58   : > { %3881 = vmatpush1.bf16.msra.mxu0 %v5587_v20  ;;  %4268 = vmatpush1.bf16.msra.mxu1 %v5590_v21  ;;  %v5683_v20 = vld [vmem:[%s8191_s1 + $0x468] ss:$16 sps:$4 sm:$0xff]   ;;  %v5688_v21 = vld [vmem:[%s8191_s1 + $0x484] ss:$16 sps:$4 sm:$0xff]  }
  0x59   : > { %3882 = vmatprep.subr.bf16.mxu0 %v5595_v22  ;;  %4269 = vmatprep.subr.bf16.mxu1 %v5598_v23  ;;  %v5691_v22 = vld [vmem:[%s8191_s1 + $0x48c] ss:$16 sps:$4 sm:$0xff]   ;;  %v5686_v23 = vld [vmem:[%s8191_s1 + $0x480] ss:$16 sps:$4 sm:$0xff]  }
  0x5c   : > { %3883 = vmatpush1.bf16.msra.mxu0 %v5593_v24  ;;  %4270 = vmatpush1.bf16.msra.mxu1 %v5596_v25  ;;  %v5689_v24 = vld [vmem:[%s8191_s1 + $0x488] ss:$16 sps:$4 sm:$0xff]   ;;  %v5694_v25 = vld [vmem:[%s8191_s1 + $0x4a4] ss:$16 sps:$4 sm:$0xff]  }
  0x5d   : > { %3884 = vmatprep.subr.bf16.mxu0 %v5601_v26  ;;  %4271 = vmatprep.subr.bf16.mxu1 %v5604_v27  ;;  %v5697_v26 = vld [vmem:[%s8191_s1 + $0x4ac] ss:$16 sps:$4 sm:$0xff]   ;;  %v5692_v27 = vld [vmem:[%s8191_s1 + $0x4a0] ss:$16 sps:$4 sm:$0xff]  }
  0x60   : > { %3885 = vmatpush1.bf16.msra.mxu0 %v5599_v28  ;;  %4272 = vmatpush1.bf16.msra.mxu1 %v5602_v29  ;;  %v5695_v28 = vld [vmem:[%s8191_s1 + $0x4a8] ss:$16 sps:$4 sm:$0xff]   ;;  %v5700_v29 = vld [vmem:[%s8191_s1 + $0x4c4] ss:$16 sps:$4 sm:$0xff]  }
  0x61   : > { %3886 = vmatprep.subr.bf16.mxu0 %v5607_v31  ;;  %4273 = vmatprep.subr.bf16.mxu1 %v5610_v32  ;;  %v5698_v31 = vld [vmem:[%s8191_s1 + $0x4c0] ss:$16 sps:$4 sm:$0xff]   ;;  %v5701_v32 = vld [vmem:[%s8191_s1 + $0x4c8] ss:$16 sps:$4 sm:$0xff]  }
  0x64   : > { %3887 = vmatpush1.bf16.msra.mxu0 %v5605_v33  ;;  %4274 = vmatpush1.bf16.msra.mxu1 %v5608_v34  ;;  %v5706_v33 = vld [vmem:[%s8191_s1 + $0x4e4] ss:$16 sps:$4 sm:$0xff]   ;;  %v5709_v34 = vld [vmem:[%s8191_s1 + $0x4ec] ss:$16 sps:$4 sm:$0xff]  }
  0x65   : > { %3888 = vmatprep.subr.bf16.mxu0 %v5613_v35  ;;  %4275 = vmatprep.subr.bf16.mxu1 %v5616_v36  ;;  %v5704_v35 = vld [vmem:[%s8191_s1 + $0x4e0] ss:$16 sps:$4 sm:$0xff]   ;;  %v5707_v36 = vld [vmem:[%s8191_s1 + $0x4e8] ss:$16 sps:$4 sm:$0xff]  }
  0x68   : > { %3889 = vmatpush1.bf16.msra.mxu0 %v5611_v37  ;;  %4276 = vmatpush1.bf16.msra.mxu1 %v5614_v38  ;;  %v5712_v37 = vld [vmem:[%s8191_s1 + $0x504] ss:$16 sps:$4 sm:$0xff]   ;;  %v5715_v38 = vld [vmem:[%s8191_s1 + $0x50c] ss:$16 sps:$4 sm:$0xff]  }
  0x69   : > { %3890 = vmatprep.subr.bf16.mxu0 %v5619_v39  ;;  %4277 = vmatprep.subr.bf16.mxu1 %v5622_v40  ;;  %v5710_v39 = vld [vmem:[%s8191_s1 + $0x500] ss:$16 sps:$4 sm:$0xff]   ;;  %v5713_v40 = vld [vmem:[%s8191_s1 + $0x508] ss:$16 sps:$4 sm:$0xff]  }
  0x6c   : > { %3891 = vmatpush1.bf16.msra.mxu0 %v5617_v41  ;;  %4278 = vmatpush1.bf16.msra.mxu1 %v5620_v42  ;;  %v5718_v41 = vld [vmem:[%s8191_s1 + $0x524] ss:$16 sps:$4 sm:$0xff]   ;;  %v5721_v42 = vld [vmem:[%s8191_s1 + $0x52c] ss:$16 sps:$4 sm:$0xff]  }
  0x6d   : > { %3892 = vmatprep.subr.bf16.mxu0 %v5625_v43  ;;  %4279 = vmatprep.subr.bf16.mxu1 %v5628_v44  ;;  %v5716_v43 = vld [vmem:[%s8191_s1 + $0x520] ss:$16 sps:$4 sm:$0xff]   ;;  %v5719_v44 = vld [vmem:[%s8191_s1 + $0x528] ss:$16 sps:$4 sm:$0xff]  }
  0x70   : > { %3893 = vmatpush1.bf16.msra.mxu0 %v5623_v45  ;;  %4280 = vmatpush1.bf16.msra.mxu1 %v5626_v46  ;;  %v5724_v45 = vld [vmem:[%s8191_s1 + $0x544] ss:$16 sps:$4 sm:$0xff]   ;;  %v5727_v46 = vld [vmem:[%s8191_s1 + $0x54c] ss:$16 sps:$4 sm:$0xff]  }
  0x71   : > { %3894 = vmatprep.subr.bf16.mxu0 %v5631_v47  ;;  %4281 = vmatprep.subr.bf16.mxu1 %v5634_v48  ;;  %v5722_v47 = vld [vmem:[%s8191_s1 + $0x540] ss:$16 sps:$4 sm:$0xff]   ;;  %v5725_v48 = vld [vmem:[%s8191_s1 + $0x548] ss:$16 sps:$4 sm:$0xff]  }
  0x74   : > { %3895 = vmatpush1.bf16.msra.mxu0 %v5629_v49  ;;  %4282 = vmatpush1.bf16.msra.mxu1 %v5632_v50  ;;  %v5730_v49 = vld [vmem:[%s8191_s1 + $0x564] ss:$16 sps:$4 sm:$0xff]   ;;  %v5733_v50 = vld [vmem:[%s8191_s1 + $0x56c] ss:$16 sps:$4 sm:$0xff]  }
  0x75   : > { %3896 = vmatprep.subr.bf16.mxu0 %v5637_v51  ;;  %4283 = vmatprep.subr.bf16.mxu1 %v5640_v52  ;;  %v5728_v51 = vld [vmem:[%s8191_s1 + $0x560] ss:$16 sps:$4 sm:$0xff]   ;;  %v5731_v52 = vld [vmem:[%s8191_s1 + $0x568] ss:$16 sps:$4 sm:$0xff]  }
  0x78   : > { %3897 = vmatpush1.bf16.msra.mxu0 %v5635_v53  ;;  %4284 = vmatpush1.bf16.msra.mxu1 %v5638_v54  ;;  %v5736_v53 = vld [vmem:[%s8191_s1 + $0x584] ss:$16 sps:$4 sm:$0xff]   ;;  %v5739_v54 = vld [vmem:[%s8191_s1 + $0x58c] ss:$16 sps:$4 sm:$0xff]  }
  0x79   : > { %3898 = vmatprep.subr.bf16.mxu0 %v5643_v55  ;;  %4285 = vmatprep.subr.bf16.mxu1 %v5646_v56  ;;  %v5734_v55 = vld [vmem:[%s8191_s1 + $0x580] ss:$16 sps:$4 sm:$0xff]   ;;  %v5737_v56 = vld [vmem:[%s8191_s1 + $0x588] ss:$16 sps:$4 sm:$0xff]  }
  0x7c   : > { %3899 = vmatpush1.bf16.msra.mxu0 %v5641_v57  ;;  %4286 = vmatpush1.bf16.msra.mxu1 %v5644_v58  ;;  %v5742_v57 = vld [vmem:[%s8191_s1 + $0x5a4] ss:$16 sps:$4 sm:$0xff]   ;;  %v5745_v58 = vld [vmem:[%s8191_s1 + $0x5ac] ss:$16 sps:$4 sm:$0xff]  }
  0x7d   : > { %3900 = vmatprep.subr.bf16.mxu0 %v5649_v59  ;;  %4287 = vmatprep.subr.bf16.mxu1 %v5652_v60  ;;  %v5740_v59 = vld [vmem:[%s8191_s1 + $0x5a0] ss:$16 sps:$4 sm:$0xff]   ;;  %v5743_v60 = vld [vmem:[%s8191_s1 + $0x5a8] ss:$16 sps:$4 sm:$0xff]  }
  0x80   : > { %3901 = vmatpush1.bf16.msra.mxu0 %v5647_v61  ;;  %4288 = vmatpush1.bf16.msra.mxu1 %v5650_v62  ;;  %v5748_v61 = vld [vmem:[%s8191_s1 + $0x5c4] ss:$16 sps:$4 sm:$0xff]   ;;  %v5751_v62 = vld [vmem:[%s8191_s1 + $0x5cc] ss:$16 sps:$4 sm:$0xff]  }
  0x81   : > { %3902 = vmatprep.subr.bf16.mxu0 %v5655_v63  ;;  %4289 = vmatprep.subr.bf16.mxu1 %v5658_v0  ;;  %v5746_v63 = vld [vmem:[%s8191_s1 + $0x5c0] ss:$16 sps:$4 sm:$0xff]   ;;  %v5749_v0 = vld [vmem:[%s8191_s1 + $0x5c8] ss:$16 sps:$4 sm:$0xff]  }
  0x84   : > { %3903 = vmatpush1.bf16.msra.mxu0 %v5653_v1  ;;  %4290 = vmatpush1.bf16.msra.mxu1 %v5656_v2  ;;  %v5754_v1 = vld [vmem:[%s8191_s1 + $0x5e4] ss:$16 sps:$4 sm:$0xff]   ;;  %v5757_v2 = vld [vmem:[%s8191_s1 + $0x5ec] ss:$16 sps:$4 sm:$0xff]  }
  0x85   : > { %3915 = vmatprep.subr.bf16.mxu0 %v5664_v3  ;;  %4302 = vmatprep.subr.bf16.mxu1 %v5667_v4  ;;  %v5752_v3 = vld [vmem:[%s8191_s1 + $0x5e0] ss:$16 sps:$4 sm:$0xff]   ;;  %v5755_v4 = vld [vmem:[%s8191_s1 + $0x5e8] ss:$16 sps:$4 sm:$0xff]  }
  0x87   : > { %3905 = vmatmul.mubr.bf16.vlgmr.msra.gmra.mrb[0].mxu0 %v5659_v5  ;;  %4292 = vmatmul.mubr.bf16.vlgmr.msra.gmra.mrb[0].mxu1 %v5659_v5  ;;  %v5763_v5 = vld [vmem:[%s8191_s1 + $0x604] ss:$16 sps:$4 sm:$0xff]  }
  0x88   : > { %3916 = vmatpush1.bf16.msra.mxu0 %v5662_v6  ;;  %4303 = vmatpush1.bf16.msra.mxu1 %v5665_v7  ;;  %v5766_v6 = vld [vmem:[%s8191_s1 + $0x60c] ss:$16 sps:$4 sm:$0xff]   ;;  %v5758_v7 = vld [vmem:[%s6561_s17 + $0x10] ss:$72 sps:$4 sm:$0xff]  }
  0x89   : > { %3917 = vmatprep.subr.bf16.mxu0 %v5670_v8  ;;  %4304 = vmatprep.subr.bf16.mxu1 %v5673_v9  ;;  %v5761_v8 = vld [vmem:[%s8191_s1 + $0x600] ss:$16 sps:$4 sm:$0xff]   ;;  %v5764_v9 = vld [vmem:[%s8191_s1 + $0x608] ss:$16 sps:$4 sm:$0xff]  }
  0x8a   : > { %3947 = vmatprep.mubr.bf16.mxu0 %v5760_v12  ;;  %4334 = vmatprep.mubr.bf16.mxu1 %v5760_v12  ;;  %v5859_v12 = vld [vmem:[%s6561_s17 + $0x1c] ss:$72 sps:$4 sm:$0xff]  }
  0x8c   : > { %3918 = vmatpush1.bf16.msra.mxu0 %v5668_v10  ;;  %4305 = vmatpush1.bf16.msra.mxu1 %v5671_v11  ;;  %v5769_v10 = vld [vmem:[%s8191_s1 + $0x624] ss:$16 sps:$4 sm:$0xff]   ;;  %v5772_v11 = vld [vmem:[%s8191_s1 + $0x62c] ss:$16 sps:$4 sm:$0xff]  }
  0x8d   : > { %3919 = vmatprep.subr.bf16.mxu0 %v5676_v13  ;;  %4306 = vmatprep.subr.bf16.mxu1 %v5679_v14  ;;  %v5767_v13 = vld [vmem:[%s8191_s1 + $0x620] ss:$16 sps:$4 sm:$0xff]   ;;  %v5770_v14 = vld [vmem:[%s8191_s1 + $0x628] ss:$16 sps:$4 sm:$0xff]  }
  0x90   : > { %3920 = vmatpush1.bf16.msra.mxu0 %v5674_v15  ;;  %4307 = vmatpush1.bf16.msra.mxu1 %v5677_v16  ;;  %v5775_v15 = vld [vmem:[%s8191_s1 + $0x644] ss:$16 sps:$4 sm:$0xff]   ;;  %v5778_v16 = vld [vmem:[%s8191_s1 + $0x64c] ss:$16 sps:$4 sm:$0xff]  }
  0x91   : > { %3921 = vmatprep.subr.bf16.mxu0 %v5682_v17  ;;  %4308 = vmatprep.subr.bf16.mxu1 %v5685_v18  ;;  %v5773_v17 = vld [vmem:[%s8191_s1 + $0x640] ss:$16 sps:$4 sm:$0xff]   ;;  %v5776_v18 = vld [vmem:[%s8191_s1 + $0x648] ss:$16 sps:$4 sm:$0xff]  }
  0x94   : > { %3922 = vmatpush1.bf16.msra.mxu0 %v5680_v19  ;;  %4309 = vmatpush1.bf16.msra.mxu1 %v5683_v20  ;;  %v5781_v19 = vld [vmem:[%s8191_s1 + $0x664] ss:$16 sps:$4 sm:$0xff]   ;;  %v5784_v20 = vld [vmem:[%s8191_s1 + $0x66c] ss:$16 sps:$4 sm:$0xff]  }
  0x95   : > { %3923 = vmatprep.subr.bf16.mxu0 %v5688_v21  ;;  %4310 = vmatprep.subr.bf16.mxu1 %v5691_v22  ;;  %v5779_v21 = vld [vmem:[%s8191_s1 + $0x660] ss:$16 sps:$4 sm:$0xff]   ;;  %v5782_v22 = vld [vmem:[%s8191_s1 + $0x668] ss:$16 sps:$4 sm:$0xff]  }
  0x98   : > { %3924 = vmatpush1.bf16.msra.mxu0 %v5686_v23  ;;  %4311 = vmatpush1.bf16.msra.mxu1 %v5689_v24  ;;  %v5787_v23 = vld [vmem:[%s8191_s1 + $0x684] ss:$16 sps:$4 sm:$0xff]   ;;  %v5790_v24 = vld [vmem:[%s8191_s1 + $0x68c] ss:$16 sps:$4 sm:$0xff]  }
  0x99   : > { %3925 = vmatprep.subr.bf16.mxu0 %v5694_v25  ;;  %4312 = vmatprep.subr.bf16.mxu1 %v5697_v26  ;;  %v5785_v25 = vld [vmem:[%s8191_s1 + $0x680] ss:$16 sps:$4 sm:$0xff]   ;;  %v5788_v26 = vld [vmem:[%s8191_s1 + $0x688] ss:$16 sps:$4 sm:$0xff]  }
  0x9c   : > { %3926 = vmatpush1.bf16.msra.mxu0 %v5692_v27  ;;  %4313 = vmatpush1.bf16.msra.mxu1 %v5695_v28  ;;  %v5793_v27 = vld [vmem:[%s8191_s1 + $0x6a4] ss:$16 sps:$4 sm:$0xff]   ;;  %v5796_v28 = vld [vmem:[%s8191_s1 + $0x6ac] ss:$16 sps:$4 sm:$0xff]  }
  0x9d   : > { %3927 = vmatprep.subr.bf16.mxu0 %v5700_v29  ;;  %4314 = vmatprep.subr.bf16.mxu1 %v5703_v30  ;;  %v5791_v29 = vld [vmem:[%s8191_s1 + $0x6a0] ss:$16 sps:$4 sm:$0xff]   ;;  %v5794_v30 = vld [vmem:[%s8191_s1 + $0x6a8] ss:$16 sps:$4 sm:$0xff]  }
  0xa0   : > { %3928 = vmatpush1.bf16.msra.mxu0 %v5698_v31  ;;  %4315 = vmatpush1.bf16.msra.mxu1 %v5701_v32  ;;  %v5799_v31 = vld [vmem:[%s8191_s1 + $0x6c4] ss:$16 sps:$4 sm:$0xff]   ;;  %v5802_v32 = vld [vmem:[%s8191_s1 + $0x6cc] ss:$16 sps:$4 sm:$0xff]  }
  0xa1   : > { %3929 = vmatprep.subr.bf16.mxu0 %v5706_v33  ;;  %4316 = vmatprep.subr.bf16.mxu1 %v5709_v34  ;;  %v5797_v33 = vld [vmem:[%s8191_s1 + $0x6c0] ss:$16 sps:$4 sm:$0xff]   ;;  %v5800_v34 = vld [vmem:[%s8191_s1 + $0x6c8] ss:$16 sps:$4 sm:$0xff]  }
  0xa4   : > { %3930 = vmatpush1.bf16.msra.mxu0 %v5704_v35  ;;  %4317 = vmatpush1.bf16.msra.mxu1 %v5707_v36  ;;  %v5805_v35 = vld [vmem:[%s8191_s1 + $0x6e4] ss:$16 sps:$4 sm:$0xff]   ;;  %v5808_v36 = vld [vmem:[%s8191_s1 + $0x6ec] ss:$16 sps:$4 sm:$0xff]  }
  0xa5   : > { %3931 = vmatprep.subr.bf16.mxu0 %v5712_v37  ;;  %4318 = vmatprep.subr.bf16.mxu1 %v5715_v38  ;;  %v5803_v37 = vld [vmem:[%s8191_s1 + $0x6e0] ss:$16 sps:$4 sm:$0xff]   ;;  %v5806_v38 = vld [vmem:[%s8191_s1 + $0x6e8] ss:$16 sps:$4 sm:$0xff]  }
  0xa8   : > { %3932 = vmatpush1.bf16.msra.mxu0 %v5710_v39  ;;  %4319 = vmatpush1.bf16.msra.mxu1 %v5713_v40  ;;  %v5811_v39 = vld [vmem:[%s8191_s1 + $0x704] ss:$16 sps:$4 sm:$0xff]   ;;  %v5814_v40 = vld [vmem:[%s8191_s1 + $0x70c] ss:$16 sps:$4 sm:$0xff]  }
  0xa9   : > { %3933 = vmatprep.subr.bf16.mxu0 %v5718_v41  ;;  %4320 = vmatprep.subr.bf16.mxu1 %v5721_v42  ;;  %v5809_v41 = vld [vmem:[%s8191_s1 + $0x700] ss:$16 sps:$4 sm:$0xff]   ;;  %v5812_v42 = vld [vmem:[%s8191_s1 + $0x708] ss:$16 sps:$4 sm:$0xff]  }
  0xac   : > { %3934 = vmatpush1.bf16.msra.mxu0 %v5716_v43  ;;  %4321 = vmatpush1.bf16.msra.mxu1 %v5719_v44  ;;  %v5817_v43 = vld [vmem:[%s8191_s1 + $0x724] ss:$16 sps:$4 sm:$0xff]   ;;  %v5820_v44 = vld [vmem:[%s8191_s1 + $0x72c] ss:$16 sps:$4 sm:$0xff]  }
  0xad   : > { %3935 = vmatprep.subr.bf16.mxu0 %v5724_v45  ;;  %4322 = vmatprep.subr.bf16.mxu1 %v5727_v46  ;;  %v5815_v45 = vld [vmem:[%s8191_s1 + $0x720] ss:$16 sps:$4 sm:$0xff]   ;;  %v5818_v46 = vld [vmem:[%s8191_s1 + $0x728] ss:$16 sps:$4 sm:$0xff]  }
  0xb0   : > { %3936 = vmatpush1.bf16.msra.mxu0 %v5722_v47  ;;  %4323 = vmatpush1.bf16.msra.mxu1 %v5725_v48  ;;  %v5823_v47 = vld [vmem:[%s8191_s1 + $0x744] ss:$16 sps:$4 sm:$0xff]   ;;  %v5826_v48 = vld [vmem:[%s8191_s1 + $0x74c] ss:$16 sps:$4 sm:$0xff]  }
  0xb1   : > { %3937 = vmatprep.subr.bf16.mxu0 %v5730_v49  ;;  %4324 = vmatprep.subr.bf16.mxu1 %v5733_v50  ;;  %v5821_v49 = vld [vmem:[%s8191_s1 + $0x740] ss:$16 sps:$4 sm:$0xff]   ;;  %v5824_v50 = vld [vmem:[%s8191_s1 + $0x748] ss:$16 sps:$4 sm:$0xff]  }
  0xb4   : > { %3938 = vmatpush1.bf16.msra.mxu0 %v5728_v51  ;;  %4325 = vmatpush1.bf16.msra.mxu1 %v5731_v52  ;;  %v5829_v51 = vld [vmem:[%s8191_s1 + $0x764] ss:$16 sps:$4 sm:$0xff]   ;;  %v5832_v52 = vld [vmem:[%s8191_s1 + $0x76c] ss:$16 sps:$4 sm:$0xff]  }
  0xb5   : > { %3939 = vmatprep.subr.bf16.mxu0 %v5736_v53  ;;  %4326 = vmatprep.subr.bf16.mxu1 %v5739_v54  ;;  %v5827_v53 = vld [vmem:[%s8191_s1 + $0x760] ss:$16 sps:$4 sm:$0xff]   ;;  %v5830_v54 = vld [vmem:[%s8191_s1 + $0x768] ss:$16 sps:$4 sm:$0xff]  }
  0xb8   : > { %3940 = vmatpush1.bf16.msra.mxu0 %v5734_v55  ;;  %4327 = vmatpush1.bf16.msra.mxu1 %v5737_v56  ;;  %v5835_v55 = vld [vmem:[%s8191_s1 + $0x784] ss:$16 sps:$4 sm:$0xff]   ;;  %v5838_v56 = vld [vmem:[%s8191_s1 + $0x78c] ss:$16 sps:$4 sm:$0xff]  }
  0xb9   : > { %3941 = vmatprep.subr.bf16.mxu0 %v5742_v57  ;;  %4328 = vmatprep.subr.bf16.mxu1 %v5745_v58  ;;  %v5833_v57 = vld [vmem:[%s8191_s1 + $0x780] ss:$16 sps:$4 sm:$0xff]   ;;  %v5836_v58 = vld [vmem:[%s8191_s1 + $0x788] ss:$16 sps:$4 sm:$0xff]  }
  0xbc   : > { %3942 = vmatpush1.bf16.msra.mxu0 %v5740_v59  ;;  %4329 = vmatpush1.bf16.msra.mxu1 %v5743_v60  ;;  %v5841_v59 = vld [vmem:[%s8191_s1 + $0x7a4] ss:$16 sps:$4 sm:$0xff]   ;;  %v5844_v60 = vld [vmem:[%s8191_s1 + $0x7ac] ss:$16 sps:$4 sm:$0xff]  }
  0xbd   : > { %3943 = vmatprep.subr.bf16.mxu0 %v5748_v61  ;;  %4330 = vmatprep.subr.bf16.mxu1 %v5751_v62  ;;  %v5839_v61 = vld [vmem:[%s8191_s1 + $0x7a0] ss:$16 sps:$4 sm:$0xff]   ;;  %v5842_v62 = vld [vmem:[%s8191_s1 + $0x7a8] ss:$16 sps:$4 sm:$0xff]  }
  0xc0   : > { %3944 = vmatpush1.bf16.msra.mxu0 %v5746_v63  ;;  %4331 = vmatpush1.bf16.msra.mxu1 %v5749_v0  ;;  %v5847_v63 = vld [vmem:[%s8191_s1 + $0x7c4] ss:$16 sps:$4 sm:$0xff]   ;;  %v5850_v0 = vld [vmem:[%s8191_s1 + $0x7cc] ss:$16 sps:$4 sm:$0xff]  }
  0xc1   : > { %3945 = vmatprep.subr.bf16.mxu0 %v5754_v1  ;;  %4332 = vmatprep.subr.bf16.mxu1 %v5757_v2  ;;  %v5845_v1 = vld [vmem:[%s8191_s1 + $0x7c0] ss:$16 sps:$4 sm:$0xff]   ;;  %v5848_v2 = vld [vmem:[%s8191_s1 + $0x7c8] ss:$16 sps:$4 sm:$0xff]  }
  0xc4   : > { %3946 = vmatpush1.bf16.msra.mxu0 %v5752_v3  ;;  %4333 = vmatpush1.bf16.msra.mxu1 %v5755_v4  ;;  %v5853_v3 = vld [vmem:[%s8191_s1 + $0x7e4] ss:$16 sps:$4 sm:$0xff]   ;;  %v5856_v4 = vld [vmem:[%s8191_s1 + $0x7ec] ss:$16 sps:$4 sm:$0xff]  }
  0xc5   : > { %3958 = vmatprep.subr.bf16.mxu0 %v5763_v5  ;;  %4345 = vmatprep.subr.bf16.mxu1 %v5766_v6  ;;  %v5851_v5 = vld [vmem:[%s8191_s1 + $0x7e0] ss:$16 sps:$4 sm:$0xff]   ;;  %v5854_v6 = vld [vmem:[%s8191_s1 + $0x7e8] ss:$16 sps:$4 sm:$0xff]  }
  0xc7   : > { %3948 = vmatmul.mubr.bf16.vlgmr.msra.gmra.mrb[0].mxu0 %v5758_v7  ;;  %4335 = vmatmul.mubr.bf16.vlgmr.msra.gmra.mrb[0].mxu1 %v5758_v7  ;;  %v5862_v7 = vld [vmem:[%s8191_s1 + $0x804] ss:$16 sps:$4 sm:$0xff]  }
  0xc8   : > { %3959 = vmatpush1.bf16.msra.mxu0 %v5761_v8  ;;  %4346 = vmatpush1.bf16.msra.mxu1 %v5764_v9  ;;  %v5865_v8 = vld [vmem:[%s8191_s1 + $0x80c] ss:$16 sps:$4 sm:$0xff]   ;;  %v5857_v9 = vld [vmem:[%s6561_s17 + $0x18] ss:$72 sps:$4 sm:$0xff]  }
  0xc9   : > { %3960 = vmatprep.subr.bf16.mxu0 %v5769_v10  ;;  %4347 = vmatprep.subr.bf16.mxu1 %v5772_v11  ;;  %v5860_v10 = vld [vmem:[%s8191_s1 + $0x800] ss:$16 sps:$4 sm:$0xff]   ;;  %v5863_v11 = vld [vmem:[%s8191_s1 + $0x808] ss:$16 sps:$4 sm:$0xff]  }
  0xca   : > { %3990 = vmatprep.mubr.bf16.mxu0 %v5859_v12  ;;  %4377 = vmatprep.mubr.bf16.mxu1 %v5859_v12  ;;  %v5868_v12 = vld [vmem:[%s8191_s1 + $0x824] ss:$16 sps:$4 sm:$0xff]  }
  0xcc   : > { %3961 = vmatpush1.bf16.msra.mxu0 %v5767_v13  ;;  %4348 = vmatpush1.bf16.msra.mxu1 %v5770_v14  ;;  %v5871_v13 = vld [vmem:[%s8191_s1 + $0x82c] ss:$16 sps:$4 sm:$0xff]  }
  0xcd   : > { %3962 = vmatprep.subr.bf16.mxu0 %v5775_v15  ;;  %4349 = vmatprep.subr.bf16.mxu1 %v5778_v16  ;;  %v5958_v14 = vld [vmem:[%s6561_s17 + $0x24] ss:$72 sps:$4 sm:$0xff]   ;;  %v5866_v15 = vld [vmem:[%s8191_s1 + $0x820] ss:$16 sps:$4 sm:$0xff]   ;;  %v5869_v16 = vld [vmem:[%s8191_s1 + $0x828] ss:$16 sps:$4 sm:$0xff]  }
  0xd0   : > { %3963 = vmatpush1.bf16.msra.mxu0 %v5773_v17  ;;  %4350 = vmatpush1.bf16.msra.mxu1 %v5776_v18  ;;  %v5874_v17 = vld [vmem:[%s8191_s1 + $0x844] ss:$16 sps:$4 sm:$0xff]   ;;  %v5877_v18 = vld [vmem:[%s8191_s1 + $0x84c] ss:$16 sps:$4 sm:$0xff]  }
  0xd1   : > { %3964 = vmatprep.subr.bf16.mxu0 %v5781_v19  ;;  %4351 = vmatprep.subr.bf16.mxu1 %v5784_v20  ;;  %v5872_v19 = vld [vmem:[%s8191_s1 + $0x840] ss:$16 sps:$4 sm:$0xff]   ;;  %v5875_v20 = vld [vmem:[%s8191_s1 + $0x848] ss:$16 sps:$4 sm:$0xff]  }
  0xd4   : > { %3965 = vmatpush1.bf16.msra.mxu0 %v5779_v21  ;;  %4352 = vmatpush1.bf16.msra.mxu1 %v5782_v22  ;;  %v5880_v21 = vld [vmem:[%s8191_s1 + $0x864] ss:$16 sps:$4 sm:$0xff]   ;;  %v5883_v22 = vld [vmem:[%s8191_s1 + $0x86c] ss:$16 sps:$4 sm:$0xff]  }
  0xd5   : > { %3966 = vmatprep.subr.bf16.mxu0 %v5787_v23  ;;  %4353 = vmatprep.subr.bf16.mxu1 %v5790_v24  ;;  %v5878_v23 = vld [vmem:[%s8191_s1 + $0x860] ss:$16 sps:$4 sm:$0xff]   ;;  %v5881_v24 = vld [vmem:[%s8191_s1 + $0x868] ss:$16 sps:$4 sm:$0xff]  }
  0xd8   : > { %3967 = vmatpush1.bf16.msra.mxu0 %v5785_v25  ;;  %4354 = vmatpush1.bf16.msra.mxu1 %v5788_v26  ;;  %v5886_v25 = vld [vmem:[%s8191_s1 + $0x884] ss:$16 sps:$4 sm:$0xff]   ;;  %v5889_v26 = vld [vmem:[%s8191_s1 + $0x88c] ss:$16 sps:$4 sm:$0xff]  }
  0xd9   : > { %3968 = vmatprep.subr.bf16.mxu0 %v5793_v27  ;;  %4355 = vmatprep.subr.bf16.mxu1 %v5796_v28  ;;  %v5884_v27 = vld [vmem:[%s8191_s1 + $0x880] ss:$16 sps:$4 sm:$0xff]   ;;  %v5887_v28 = vld [vmem:[%s8191_s1 + $0x888] ss:$16 sps:$4 sm:$0xff]  }
  0xdc   : > { %3969 = vmatpush1.bf16.msra.mxu0 %v5791_v29  ;;  %4356 = vmatpush1.bf16.msra.mxu1 %v5794_v30  ;;  %v5892_v29 = vld [vmem:[%s8191_s1 + $0x8a4] ss:$16 sps:$4 sm:$0xff]   ;;  %v5895_v30 = vld [vmem:[%s8191_s1 + $0x8ac] ss:$16 sps:$4 sm:$0xff]  }
  0xdd   : > { %3970 = vmatprep.subr.bf16.mxu0 %v5799_v31  ;;  %4357 = vmatprep.subr.bf16.mxu1 %v5802_v32  ;;  %v5890_v31 = vld [vmem:[%s8191_s1 + $0x8a0] ss:$16 sps:$4 sm:$0xff]   ;;  %v5893_v32 = vld [vmem:[%s8191_s1 + $0x8a8] ss:$16 sps:$4 sm:$0xff]  }
  0xe0   : > { %3971 = vmatpush1.bf16.msra.mxu0 %v5797_v33  ;;  %4358 = vmatpush1.bf16.msra.mxu1 %v5800_v34  ;;  %v5898_v33 = vld [vmem:[%s8191_s1 + $0x8c4] ss:$16 sps:$4 sm:$0xff]   ;;  %v5901_v34 = vld [vmem:[%s8191_s1 + $0x8cc] ss:$16 sps:$4 sm:$0xff]  }
  0xe1   : > { %3972 = vmatprep.subr.bf16.mxu0 %v5805_v35  ;;  %4359 = vmatprep.subr.bf16.mxu1 %v5808_v36  ;;  %v5896_v35 = vld [vmem:[%s8191_s1 + $0x8c0] ss:$16 sps:$4 sm:$0xff]   ;;  %v5899_v36 = vld [vmem:[%s8191_s1 + $0x8c8] ss:$16 sps:$4 sm:$0xff]  }
  0xe4   : > { %3973 = vmatpush1.bf16.msra.mxu0 %v5803_v37  ;;  %4360 = vmatpush1.bf16.msra.mxu1 %v5806_v38  ;;  %v5904_v37 = vld [vmem:[%s8191_s1 + $0x8e4] ss:$16 sps:$4 sm:$0xff]   ;;  %v5907_v38 = vld [vmem:[%s8191_s1 + $0x8ec] ss:$16 sps:$4 sm:$0xff]  }
  0xe5   : > { %3974 = vmatprep.subr.bf16.mxu0 %v5811_v39  ;;  %4361 = vmatprep.subr.bf16.mxu1 %v5814_v40  ;;  %v5902_v39 = vld [vmem:[%s8191_s1 + $0x8e0] ss:$16 sps:$4 sm:$0xff]   ;;  %v5905_v40 = vld [vmem:[%s8191_s1 + $0x8e8] ss:$16 sps:$4 sm:$0xff]  }
  0xe8   : > { %3975 = vmatpush1.bf16.msra.mxu0 %v5809_v41  ;;  %4362 = vmatpush1.bf16.msra.mxu1 %v5812_v42  ;;  %v5910_v41 = vld [vmem:[%s8191_s1 + $0x904] ss:$16 sps:$4 sm:$0xff]   ;;  %v5913_v42 = vld [vmem:[%s8191_s1 + $0x90c] ss:$16 sps:$4 sm:$0xff]  }
  0xe9   : > { %3976 = vmatprep.subr.bf16.mxu0 %v5817_v43  ;;  %4363 = vmatprep.subr.bf16.mxu1 %v5820_v44  ;;  %v5908_v43 = vld [vmem:[%s8191_s1 + $0x900] ss:$16 sps:$4 sm:$0xff]   ;;  %v5911_v44 = vld [vmem:[%s8191_s1 + $0x908] ss:$16 sps:$4 sm:$0xff]  }
  0xec   : > { %3977 = vmatpush1.bf16.msra.mxu0 %v5815_v45  ;;  %4364 = vmatpush1.bf16.msra.mxu1 %v5818_v46  ;;  %v5916_v45 = vld [vmem:[%s8191_s1 + $0x924] ss:$16 sps:$4 sm:$0xff]   ;;  %v5919_v46 = vld [vmem:[%s8191_s1 + $0x92c] ss:$16 sps:$4 sm:$0xff]  }
  0xed   : > { %3978 = vmatprep.subr.bf16.mxu0 %v5823_v47  ;;  %4365 = vmatprep.subr.bf16.mxu1 %v5826_v48  ;;  %v5914_v47 = vld [vmem:[%s8191_s1 + $0x920] ss:$16 sps:$4 sm:$0xff]   ;;  %v5917_v48 = vld [vmem:[%s8191_s1 + $0x928] ss:$16 sps:$4 sm:$0xff]  }
  0xf0   : > { %3979 = vmatpush1.bf16.msra.mxu0 %v5821_v49  ;;  %4366 = vmatpush1.bf16.msra.mxu1 %v5824_v50  ;;  %v5922_v49 = vld [vmem:[%s8191_s1 + $0x944] ss:$16 sps:$4 sm:$0xff]   ;;  %v5925_v50 = vld [vmem:[%s8191_s1 + $0x94c] ss:$16 sps:$4 sm:$0xff]  }
  0xf1   : > { %3980 = vmatprep.subr.bf16.mxu0 %v5829_v51  ;;  %4367 = vmatprep.subr.bf16.mxu1 %v5832_v52  ;;  %v5920_v51 = vld [vmem:[%s8191_s1 + $0x940] ss:$16 sps:$4 sm:$0xff]   ;;  %v5923_v52 = vld [vmem:[%s8191_s1 + $0x948] ss:$16 sps:$4 sm:$0xff]  }
  0xf4   : > { %3981 = vmatpush1.bf16.msra.mxu0 %v5827_v53  ;;  %4368 = vmatpush1.bf16.msra.mxu1 %v5830_v54  ;;  %v5928_v53 = vld [vmem:[%s8191_s1 + $0x964] ss:$16 sps:$4 sm:$0xff]   ;;  %v5931_v54 = vld [vmem:[%s8191_s1 + $0x96c] ss:$16 sps:$4 sm:$0xff]  }
  0xf5   : > { %3982 = vmatprep.subr.bf16.mxu0 %v5835_v55  ;;  %4369 = vmatprep.subr.bf16.mxu1 %v5838_v56  ;;  %v5926_v55 = vld [vmem:[%s8191_s1 + $0x960] ss:$16 sps:$4 sm:$0xff]   ;;  %v5929_v56 = vld [vmem:[%s8191_s1 + $0x968] ss:$16 sps:$4 sm:$0xff]  }
  0xf8   : > { %3983 = vmatpush1.bf16.msra.mxu0 %v5833_v57  ;;  %4370 = vmatpush1.bf16.msra.mxu1 %v5836_v58  ;;  %v5934_v57 = vld [vmem:[%s8191_s1 + $0x984] ss:$16 sps:$4 sm:$0xff]   ;;  %v5937_v58 = vld [vmem:[%s8191_s1 + $0x98c] ss:$16 sps:$4 sm:$0xff]  }
  0xf9   : > { %3984 = vmatprep.subr.bf16.mxu0 %v5841_v59  ;;  %4371 = vmatprep.subr.bf16.mxu1 %v5844_v60  ;;  %v5932_v59 = vld [vmem:[%s8191_s1 + $0x980] ss:$16 sps:$4 sm:$0xff]   ;;  %v5935_v60 = vld [vmem:[%s8191_s1 + $0x988] ss:$16 sps:$4 sm:$0xff]  }
  0xfc   : > { %3985 = vmatpush1.bf16.msra.mxu0 %v5839_v61  ;;  %4372 = vmatpush1.bf16.msra.mxu1 %v5842_v62  ;;  %v5940_v61 = vld [vmem:[%s8191_s1 + $0x9a4] ss:$16 sps:$4 sm:$0xff]   ;;  %v5943_v62 = vld [vmem:[%s8191_s1 + $0x9ac] ss:$16 sps:$4 sm:$0xff]  }
  0xfd   : > { %3986 = vmatprep.subr.bf16.mxu0 %v5847_v63  ;;  %4373 = vmatprep.subr.bf16.mxu1 %v5850_v0  ;;  %v5938_v63 = vld [vmem:[%s8191_s1 + $0x9a0] ss:$16 sps:$4 sm:$0xff]   ;;  %v5941_v0 = vld [vmem:[%s8191_s1 + $0x9a8] ss:$16 sps:$4 sm:$0xff]  }
 0x100   : > { %3987 = vmatpush1.bf16.msra.mxu0 %v5845_v1  ;;  %4374 = vmatpush1.bf16.msra.mxu1 %v5848_v2  ;;  %v5946_v1 = vld [vmem:[%s8191_s1 + $0x9c4] ss:$16 sps:$4 sm:$0xff]   ;;  %v5949_v2 = vld [vmem:[%s8191_s1 + $0x9cc] ss:$16 sps:$4 sm:$0xff]  }
 0x101   : > { %3988 = vmatprep.subr.bf16.mxu0 %v5853_v3  ;;  %4375 = vmatprep.subr.bf16.mxu1 %v5856_v4  ;;  %v5944_v3 = vld [vmem:[%s8191_s1 + $0x9c0] ss:$16 sps:$4 sm:$0xff]   ;;  %v5947_v4 = vld [vmem:[%s8191_s1 + $0x9c8] ss:$16 sps:$4 sm:$0xff]  }
 0x104   : > { %3989 = vmatpush1.bf16.msra.mxu0 %v5851_v5  ;;  %4376 = vmatpush1.bf16.msra.mxu1 %v5854_v6  ;;  %v5952_v5 = vld [vmem:[%s8191_s1 + $0x9e4] ss:$16 sps:$4 sm:$0xff]   ;;  %v5955_v6 = vld [vmem:[%s8191_s1 + $0x9ec] ss:$16 sps:$4 sm:$0xff]  }
 0x105   : > { %4001 = vmatprep.subr.bf16.mxu0 %v5862_v7  ;;  %4388 = vmatprep.subr.bf16.mxu1 %v5865_v8  ;;  %v5950_v7 = vld [vmem:[%s8191_s1 + $0x9e0] ss:$16 sps:$4 sm:$0xff]   ;;  %v5953_v8 = vld [vmem:[%s8191_s1 + $0x9e8] ss:$16 sps:$4 sm:$0xff]  }
 0x107   : > { %3991 = vmatmul.mubr.bf16.vlgmr.msra.gmra.mrb[0].mxu0 %v5857_v9  ;;  %4378 = vmatmul.mubr.bf16.vlgmr.msra.gmra.mrb[0].mxu1 %v5857_v9  ;;  %v5956_v9 = vld [vmem:[%s6561_s17 + $0x20] ss:$72 sps:$4 sm:$0xff]  }
 0x108   : > { %4002 = vmatpush1.bf16.msra.mxu0 %v5860_v10  ;;  %4389 = vmatpush1.bf16.msra.mxu1 %v5863_v11  ;;  %v5961_v10 = vld [vmem:[%s8191_s1 + $0xa04] ss:$16 sps:$4 sm:$0xff]   ;;  %v5964_v11 = vld [vmem:[%s8191_s1 + $0xa0c] ss:$16 sps:$4 sm:$0xff]  }
 0x109   : > { %4003 = vmatprep.subr.bf16.mxu0 %v5868_v12  ;;  %4390 = vmatprep.subr.bf16.mxu1 %v5871_v13  ;;  %v5959_v12 = vld [vmem:[%s8191_s1 + $0xa00] ss:$16 sps:$4 sm:$0xff]   ;;  %v5962_v13 = vld [vmem:[%s8191_s1 + $0xa08] ss:$16 sps:$4 sm:$0xff]  }
 0x10a   : > { %4033 = vmatprep.mubr.bf16.mxu0 %v5958_v14  ;;  %4420 = vmatprep.mubr.bf16.mxu1 %v5958_v14  ;;  %v5967_v14 = vld [vmem:[%s8191_s1 + $0xa24] ss:$16 sps:$4 sm:$0xff]  }
 0x10c   : > { %4004 = vmatpush1.bf16.msra.mxu0 %v5866_v15  ;;  %4391 = vmatpush1.bf16.msra.mxu1 %v5869_v16  ;;  %v5970_v15 = vld [vmem:[%s8191_s1 + $0xa2c] ss:$16 sps:$4 sm:$0xff]  }
 0x10d   : > { %4005 = vmatprep.subr.bf16.mxu0 %v5874_v17  ;;  %4392 = vmatprep.subr.bf16.mxu1 %v5877_v18  ;;  %v6057_v16 = vld [vmem:[%s6561_s17 + $0x2c] ss:$72 sps:$4 sm:$0xff]   ;;  %v5965_v17 = vld [vmem:[%s8191_s1 + $0xa20] ss:$16 sps:$4 sm:$0xff]   ;;  %v5968_v18 = vld [vmem:[%s8191_s1 + $0xa28] ss:$16 sps:$4 sm:$0xff]  }
 0x110   : > { %4006 = vmatpush1.bf16.msra.mxu0 %v5872_v19  ;;  %4393 = vmatpush1.bf16.msra.mxu1 %v5875_v20  ;;  %v5973_v19 = vld [vmem:[%s8191_s1 + $0xa44] ss:$16 sps:$4 sm:$0xff]   ;;  %v5976_v20 = vld [vmem:[%s8191_s1 + $0xa4c] ss:$16 sps:$4 sm:$0xff]  }
 0x111   : > { %4007 = vmatprep.subr.bf16.mxu0 %v5880_v21  ;;  %4394 = vmatprep.subr.bf16.mxu1 %v5883_v22  ;;  %v5971_v21 = vld [vmem:[%s8191_s1 + $0xa40] ss:$16 sps:$4 sm:$0xff]   ;;  %v5974_v22 = vld [vmem:[%s8191_s1 + $0xa48] ss:$16 sps:$4 sm:$0xff]  }
 0x114   : > { %4008 = vmatpush1.bf16.msra.mxu0 %v5878_v23  ;;  %4395 = vmatpush1.bf16.msra.mxu1 %v5881_v24  ;;  %v5979_v23 = vld [vmem:[%s8191_s1 + $0xa64] ss:$16 sps:$4 sm:$0xff]   ;;  %v5982_v24 = vld [vmem:[%s8191_s1 + $0xa6c] ss:$16 sps:$4 sm:$0xff]  }
 0x115   : > { %4009 = vmatprep.subr.bf16.mxu0 %v5886_v25  ;;  %4396 = vmatprep.subr.bf16.mxu1 %v5889_v26  ;;  %v5977_v25 = vld [vmem:[%s8191_s1 + $0xa60] ss:$16 sps:$4 sm:$0xff]   ;;  %v5980_v26 = vld [vmem:[%s8191_s1 + $0xa68] ss:$16 sps:$4 sm:$0xff]  }
 0x118   : > { %4010 = vmatpush1.bf16.msra.mxu0 %v5884_v27  ;;  %4397 = vmatpush1.bf16.msra.mxu1 %v5887_v28  ;;  %v5985_v27 = vld [vmem:[%s8191_s1 + $0xa84] ss:$16 sps:$4 sm:$0xff]   ;;  %v5988_v28 = vld [vmem:[%s8191_s1 + $0xa8c] ss:$16 sps:$4 sm:$0xff]  }
 0x119   : > { %4011 = vmatprep.subr.bf16.mxu0 %v5892_v29  ;;  %4398 = vmatprep.subr.bf16.mxu1 %v5895_v30  ;;  %v5983_v29 = vld [vmem:[%s8191_s1 + $0xa80] ss:$16 sps:$4 sm:$0xff]   ;;  %v5986_v30 = vld [vmem:[%s8191_s1 + $0xa88] ss:$16 sps:$4 sm:$0xff]  }
 0x11c   : > { %4012 = vmatpush1.bf16.msra.mxu0 %v5890_v31  ;;  %4399 = vmatpush1.bf16.msra.mxu1 %v5893_v32  ;;  %v5991_v31 = vld [vmem:[%s8191_s1 + $0xaa4] ss:$16 sps:$4 sm:$0xff]   ;;  %v5994_v32 = vld [vmem:[%s8191_s1 + $0xaac] ss:$16 sps:$4 sm:$0xff]  }
 0x11d   : > { %4013 = vmatprep.subr.bf16.mxu0 %v5898_v33  ;;  %4400 = vmatprep.subr.bf16.mxu1 %v5901_v34  ;;  %v5989_v33 = vld [vmem:[%s8191_s1 + $0xaa0] ss:$16 sps:$4 sm:$0xff]   ;;  %v5992_v34 = vld [vmem:[%s8191_s1 + $0xaa8] ss:$16 sps:$4 sm:$0xff]  }
 0x120   : > { %4014 = vmatpush1.bf16.msra.mxu0 %v5896_v35  ;;  %4401 = vmatpush1.bf16.msra.mxu1 %v5899_v36  ;;  %v5997_v35 = vld [vmem:[%s8191_s1 + $0xac4] ss:$16 sps:$4 sm:$0xff]   ;;  %v6000_v36 = vld [vmem:[%s8191_s1 + $0xacc] ss:$16 sps:$4 sm:$0xff]  }
 0x121   : > { %4015 = vmatprep.subr.bf16.mxu0 %v5904_v37  ;;  %4402 = vmatprep.subr.bf16.mxu1 %v5907_v38  ;;  %v5995_v37 = vld [vmem:[%s8191_s1 + $0xac0] ss:$16 sps:$4 sm:$0xff]   ;;  %v5998_v38 = vld [vmem:[%s8191_s1 + $0xac8] ss:$16 sps:$4 sm:$0xff]  }
 0x124   : > { %4016 = vmatpush1.bf16.msra.mxu0 %v5902_v39  ;;  %4403 = vmatpush1.bf16.msra.mxu1 %v5905_v40  ;;  %v6003_v39 = vld [vmem:[%s8191_s1 + $0xae4] ss:$16 sps:$4 sm:$0xff]   ;;  %v6006_v40 = vld [vmem:[%s8191_s1 + $0xaec] ss:$16 sps:$4 sm:$0xff]  }
 0x125   : > { %4017 = vmatprep.subr.bf16.mxu0 %v5910_v41  ;;  %4404 = vmatprep.subr.bf16.mxu1 %v5913_v42  ;;  %v6001_v41 = vld [vmem:[%s8191_s1 + $0xae0] ss:$16 sps:$4 sm:$0xff]   ;;  %v6004_v42 = vld [vmem:[%s8191_s1 + $0xae8] ss:$16 sps:$4 sm:$0xff]  }
 0x128   : > { %4018 = vmatpush1.bf16.msra.mxu0 %v5908_v43  ;;  %4405 = vmatpush1.bf16.msra.mxu1 %v5911_v44  ;;  %v6009_v43 = vld [vmem:[%s8191_s1 + $0xb04] ss:$16 sps:$4 sm:$0xff]   ;;  %v6012_v44 = vld [vmem:[%s8191_s1 + $0xb0c] ss:$16 sps:$4 sm:$0xff]  }
 0x129   : > { %4019 = vmatprep.subr.bf16.mxu0 %v5916_v45  ;;  %4406 = vmatprep.subr.bf16.mxu1 %v5919_v46  ;;  %v6007_v45 = vld [vmem:[%s8191_s1 + $0xb00] ss:$16 sps:$4 sm:$0xff]   ;;  %v6010_v46 = vld [vmem:[%s8191_s1 + $0xb08] ss:$16 sps:$4 sm:$0xff]  }
 0x12c   : > { %4020 = vmatpush1.bf16.msra.mxu0 %v5914_v47  ;;  %4407 = vmatpush1.bf16.msra.mxu1 %v5917_v48  ;;  %v6015_v47 = vld [vmem:[%s8191_s1 + $0xb24] ss:$16 sps:$4 sm:$0xff]   ;;  %v6018_v48 = vld [vmem:[%s8191_s1 + $0xb2c] ss:$16 sps:$4 sm:$0xff]  }
 0x12d   : > { %4021 = vmatprep.subr.bf16.mxu0 %v5922_v49  ;;  %4408 = vmatprep.subr.bf16.mxu1 %v5925_v50  ;;  %v6013_v49 = vld [vmem:[%s8191_s1 + $0xb20] ss:$16 sps:$4 sm:$0xff]   ;;  %v6016_v50 = vld [vmem:[%s8191_s1 + $0xb28] ss:$16 sps:$4 sm:$0xff]  }
 0x130   : > { %4022 = vmatpush1.bf16.msra.mxu0 %v5920_v51  ;;  %4409 = vmatpush1.bf16.msra.mxu1 %v5923_v52  ;;  %v6021_v51 = vld [vmem:[%s8191_s1 + $0xb44] ss:$16 sps:$4 sm:$0xff]   ;;  %v6024_v52 = vld [vmem:[%s8191_s1 + $0xb4c] ss:$16 sps:$4 sm:$0xff]  }
 0x131   : > { %4023 = vmatprep.subr.bf16.mxu0 %v5928_v53  ;;  %4410 = vmatprep.subr.bf16.mxu1 %v5931_v54  ;;  %v6019_v53 = vld [vmem:[%s8191_s1 + $0xb40] ss:$16 sps:$4 sm:$0xff]   ;;  %v6022_v54 = vld [vmem:[%s8191_s1 + $0xb48] ss:$16 sps:$4 sm:$0xff]  }
 0x134   : > { %4024 = vmatpush1.bf16.msra.mxu0 %v5926_v55  ;;  %4411 = vmatpush1.bf16.msra.mxu1 %v5929_v56  ;;  %v6027_v55 = vld [vmem:[%s8191_s1 + $0xb64] ss:$16 sps:$4 sm:$0xff]   ;;  %v6030_v56 = vld [vmem:[%s8191_s1 + $0xb6c] ss:$16 sps:$4 sm:$0xff]  }
 0x135   : > { %4025 = vmatprep.subr.bf16.mxu0 %v5934_v57  ;;  %4412 = vmatprep.subr.bf16.mxu1 %v5937_v58  ;;  %v6025_v57 = vld [vmem:[%s8191_s1 + $0xb60] ss:$16 sps:$4 sm:$0xff]   ;;  %v6028_v58 = vld [vmem:[%s8191_s1 + $0xb68] ss:$16 sps:$4 sm:$0xff]  }
 0x138   : > { %4026 = vmatpush1.bf16.msra.mxu0 %v5932_v59  ;;  %4413 = vmatpush1.bf16.msra.mxu1 %v5935_v60  ;;  %v6033_v59 = vld [vmem:[%s8191_s1 + $0xb84] ss:$16 sps:$4 sm:$0xff]   ;;  %v6036_v60 = vld [vmem:[%s8191_s1 + $0xb8c] ss:$16 sps:$4 sm:$0xff]  }
 0x139   : > { %4027 = vmatprep.subr.bf16.mxu0 %v5940_v61  ;;  %4414 = vmatprep.subr.bf16.mxu1 %v5943_v62  ;;  %v6031_v61 = vld [vmem:[%s8191_s1 + $0xb80] ss:$16 sps:$4 sm:$0xff]   ;;  %v6034_v62 = vld [vmem:[%s8191_s1 + $0xb88] ss:$16 sps:$4 sm:$0xff]  }
 0x13c   : > { %4028 = vmatpush1.bf16.msra.mxu0 %v5938_v63  ;;  %4415 = vmatpush1.bf16.msra.mxu1 %v5941_v0  ;;  %v6039_v63 = vld [vmem:[%s8191_s1 + $0xba4] ss:$16 sps:$4 sm:$0xff]   ;;  %v6042_v0 = vld [vmem:[%s8191_s1 + $0xbac] ss:$16 sps:$4 sm:$0xff]  }
 0x13d   : > { %4029 = vmatprep.subr.bf16.mxu0 %v5946_v1  ;;  %4416 = vmatprep.subr.bf16.mxu1 %v5949_v2  ;;  %v6037_v1 = vld [vmem:[%s8191_s1 + $0xba0] ss:$16 sps:$4 sm:$0xff]   ;;  %v6040_v2 = vld [vmem:[%s8191_s1 + $0xba8] ss:$16 sps:$4 sm:$0xff]  }
 0x140   : > { %4030 = vmatpush1.bf16.msra.mxu0 %v5944_v3  ;;  %4417 = vmatpush1.bf16.msra.mxu1 %v5947_v4  ;;  %v6045_v3 = vld [vmem:[%s8191_s1 + $0xbc4] ss:$16 sps:$4 sm:$0xff]   ;;  %v6048_v4 = vld [vmem:[%s8191_s1 + $0xbcc] ss:$16 sps:$4 sm:$0xff]  }
 0x141   : > { %4031 = vmatprep.subr.bf16.mxu0 %v5952_v5  ;;  %4418 = vmatprep.subr.bf16.mxu1 %v5955_v6  ;;  %v6043_v5 = vld [vmem:[%s8191_s1 + $0xbc0] ss:$16 sps:$4 sm:$0xff]   ;;  %v6046_v6 = vld [vmem:[%s8191_s1 + $0xbc8] ss:$16 sps:$4 sm:$0xff]  }
 0x144   : > { %4032 = vmatpush1.bf16.msra.mxu0 %v5950_v7  ;;  %4419 = vmatpush1.bf16.msra.mxu1 %v5953_v8  ;;  %v6051_v7 = vld [vmem:[%s8191_s1 + $0xbe4] ss:$16 sps:$4 sm:$0xff]   ;;  %v6054_v8 = vld [vmem:[%s8191_s1 + $0xbec] ss:$16 sps:$4 sm:$0xff]  }
 0x145   : > { %4044 = vmatprep.subr.bf16.mxu0 %v5961_v10  ;;  %4431 = vmatprep.subr.bf16.mxu1 %v5964_v11  ;;  %v6052_v10 = vld [vmem:[%s8191_s1 + $0xbe8] ss:$16 sps:$4 sm:$0xff]   ;;  %v6060_v11 = vld [vmem:[%s8191_s1 + $0xc04] ss:$16 sps:$4 sm:$0xff]  }
 0x147   : > { %4034 = vmatmul.mubr.bf16.vlgmr.msra.gmra.mrb[0].mxu0 %v5956_v9  ;;  %4421 = vmatmul.mubr.bf16.vlgmr.msra.gmra.mrb[0].mxu1 %v5956_v9  ;;  %v6049_v9 = vld [vmem:[%s8191_s1 + $0xbe0] ss:$16 sps:$4 sm:$0xff]  }
 0x148   : > { %4045 = vmatpush1.bf16.msra.mxu0 %v5959_v12  ;;  %4432 = vmatpush1.bf16.msra.mxu1 %v5962_v13  ;;  %v6063_v12 = vld [vmem:[%s8191_s1 + $0xc0c] ss:$16 sps:$4 sm:$0xff]   ;;  %v6055_v13 = vld [vmem:[%s6561_s17 + $0x28] ss:$72 sps:$4 sm:$0xff]  }
 0x149   : > { %4046 = vmatprep.subr.bf16.mxu0 %v5967_v14  ;;  %4433 = vmatprep.subr.bf16.mxu1 %v5970_v15  ;;  %v6058_v14 = vld [vmem:[%s8191_s1 + $0xc00] ss:$16 sps:$4 sm:$0xff]   ;;  %v6061_v15 = vld [vmem:[%s8191_s1 + $0xc08] ss:$16 sps:$4 sm:$0xff]  }
 0x14a   : > { %4076 = vmatprep.mubr.bf16.mxu0 %v6057_v16  ;;  %4463 = vmatprep.mubr.bf16.mxu1 %v6057_v16  ;;  %v6066_v16 = vld [vmem:[%s8191_s1 + $0xc24] ss:$16 sps:$4 sm:$0xff]  }
 0x14c   : > { %4047 = vmatpush1.bf16.msra.mxu0 %v5965_v17  ;;  %4434 = vmatpush1.bf16.msra.mxu1 %v5968_v18  ;;  %v6069_v17 = vld [vmem:[%s8191_s1 + $0xc2c] ss:$16 sps:$4 sm:$0xff]  }
 0x14d   : > { %4048 = vmatprep.subr.bf16.mxu0 %v5973_v19  ;;  %4435 = vmatprep.subr.bf16.mxu1 %v5976_v20  ;;  %v6156_v18 = vld [vmem:[%s6561_s17 + $0x34] ss:$72 sps:$4 sm:$0xff]   ;;  %v6064_v19 = vld [vmem:[%s8191_s1 + $0xc20] ss:$16 sps:$4 sm:$0xff]   ;;  %v6067_v20 = vld [vmem:[%s8191_s1 + $0xc28] ss:$16 sps:$4 sm:$0xff]  }
 0x150   : > { %4049 = vmatpush1.bf16.msra.mxu0 %v5971_v21  ;;  %4436 = vmatpush1.bf16.msra.mxu1 %v5974_v22  ;;  %v6072_v21 = vld [vmem:[%s8191_s1 + $0xc44] ss:$16 sps:$4 sm:$0xff]   ;;  %v6075_v22 = vld [vmem:[%s8191_s1 + $0xc4c] ss:$16 sps:$4 sm:$0xff]  }
 0x151   : > { %4050 = vmatprep.subr.bf16.mxu0 %v5979_v23  ;;  %4437 = vmatprep.subr.bf16.mxu1 %v5982_v24  ;;  %v6070_v23 = vld [vmem:[%s8191_s1 + $0xc40] ss:$16 sps:$4 sm:$0xff]   ;;  %v6073_v24 = vld [vmem:[%s8191_s1 + $0xc48] ss:$16 sps:$4 sm:$0xff]  }
 0x154   : > { %4051 = vmatpush1.bf16.msra.mxu0 %v5977_v25  ;;  %4438 = vmatpush1.bf16.msra.mxu1 %v5980_v26  ;;  %v6078_v25 = vld [vmem:[%s8191_s1 + $0xc64] ss:$16 sps:$4 sm:$0xff]   ;;  %v6081_v26 = vld [vmem:[%s8191_s1 + $0xc6c] ss:$16 sps:$4 sm:$0xff]  }
 0x155   : > { %4052 = vmatprep.subr.bf16.mxu0 %v5985_v27  ;;  %4439 = vmatprep.subr.bf16.mxu1 %v5988_v28  ;;  %v6076_v27 = vld [vmem:[%s8191_s1 + $0xc60] ss:$16 sps:$4 sm:$0xff]   ;;  %v6079_v28 = vld [vmem:[%s8191_s1 + $0xc68] ss:$16 sps:$4 sm:$0xff]  }
 0x158   : > { %4053 = vmatpush1.bf16.msra.mxu0 %v5983_v29  ;;  %4440 = vmatpush1.bf16.msra.mxu1 %v5986_v30  ;;  %v6084_v29 = vld [vmem:[%s8191_s1 + $0xc84] ss:$16 sps:$4 sm:$0xff]   ;;  %v6087_v30 = vld [vmem:[%s8191_s1 + $0xc8c] ss:$16 sps:$4 sm:$0xff]  }
 0x159   : > { %4054 = vmatprep.subr.bf16.mxu0 %v5991_v31  ;;  %4441 = vmatprep.subr.bf16.mxu1 %v5994_v32  ;;  %v6082_v31 = vld [vmem:[%s8191_s1 + $0xc80] ss:$16 sps:$4 sm:$0xff]   ;;  %v6085_v32 = vld [vmem:[%s8191_s1 + $0xc88] ss:$16 sps:$4 sm:$0xff]  }
 0x15c   : > { %4055 = vmatpush1.bf16.msra.mxu0 %v5989_v33  ;;  %4442 = vmatpush1.bf16.msra.mxu1 %v5992_v34  ;;  %v6090_v33 = vld [vmem:[%s8191_s1 + $0xca4] ss:$16 sps:$4 sm:$0xff]   ;;  %v6093_v34 = vld [vmem:[%s8191_s1 + $0xcac] ss:$16 sps:$4 sm:$0xff]  }
 0x15d   : > { %4056 = vmatprep.subr.bf16.mxu0 %v5997_v35  ;;  %4443 = vmatprep.subr.bf16.mxu1 %v6000_v36  ;;  %v6088_v35 = vld [vmem:[%s8191_s1 + $0xca0] ss:$16 sps:$4 sm:$0xff]   ;;  %v6091_v36 = vld [vmem:[%s8191_s1 + $0xca8] ss:$16 sps:$4 sm:$0xff]  }
 0x160   : > { %4057 = vmatpush1.bf16.msra.mxu0 %v5995_v37  ;;  %4444 = vmatpush1.bf16.msra.mxu1 %v5998_v38  ;;  %v6096_v37 = vld [vmem:[%s8191_s1 + $0xcc4] ss:$16 sps:$4 sm:$0xff]   ;;  %v6099_v38 = vld [vmem:[%s8191_s1 + $0xccc] ss:$16 sps:$4 sm:$0xff]  }
 0x161   : > { %4058 = vmatprep.subr.bf16.mxu0 %v6003_v39  ;;  %4445 = vmatprep.subr.bf16.mxu1 %v6006_v40  ;;  %v6094_v39 = vld [vmem:[%s8191_s1 + $0xcc0] ss:$16 sps:$4 sm:$0xff]   ;;  %v6097_v40 = vld [vmem:[%s8191_s1 + $0xcc8] ss:$16 sps:$4 sm:$0xff]  }
 0x164   : > { %4059 = vmatpush1.bf16.msra.mxu0 %v6001_v41  ;;  %4446 = vmatpush1.bf16.msra.mxu1 %v6004_v42  ;;  %v6102_v41 = vld [vmem:[%s8191_s1 + $0xce4] ss:$16 sps:$4 sm:$0xff]   ;;  %v6105_v42 = vld [vmem:[%s8191_s1 + $0xcec] ss:$16 sps:$4 sm:$0xff]  }
 0x165   : > { %4060 = vmatprep.subr.bf16.mxu0 %v6009_v43  ;;  %4447 = vmatprep.subr.bf16.mxu1 %v6012_v44  ;;  %v6100_v43 = vld [vmem:[%s8191_s1 + $0xce0] ss:$16 sps:$4 sm:$0xff]   ;;  %v6103_v44 = vld [vmem:[%s8191_s1 + $0xce8] ss:$16 sps:$4 sm:$0xff]  }
 0x168   : > { %4061 = vmatpush1.bf16.msra.mxu0 %v6007_v45  ;;  %4448 = vmatpush1.bf16.msra.mxu1 %v6010_v46  ;;  %v6108_v45 = vld [vmem:[%s8191_s1 + $0xd04] ss:$16 sps:$4 sm:$0xff]   ;;  %v6111_v46 = vld [vmem:[%s8191_s1 + $0xd0c] ss:$16 sps:$4 sm:$0xff]  }
 0x169   : > { %4062 = vmatprep.subr.bf16.mxu0 %v6015_v47  ;;  %4449 = vmatprep.subr.bf16.mxu1 %v6018_v48  ;;  %v6106_v47 = vld [vmem:[%s8191_s1 + $0xd00] ss:$16 sps:$4 sm:$0xff]   ;;  %v6109_v48 = vld [vmem:[%s8191_s1 + $0xd08] ss:$16 sps:$4 sm:$0xff]  }
 0x16c   : > { %4063 = vmatpush1.bf16.msra.mxu0 %v6013_v49  ;;  %4450 = vmatpush1.bf16.msra.mxu1 %v6016_v50  ;;  %v6114_v49 = vld [vmem:[%s8191_s1 + $0xd24] ss:$16 sps:$4 sm:$0xff]   ;;  %v6117_v50 = vld [vmem:[%s8191_s1 + $0xd2c] ss:$16 sps:$4 sm:$0xff]  }
 0x16d   : > { %4064 = vmatprep.subr.bf16.mxu0 %v6021_v51  ;;  %4451 = vmatprep.subr.bf16.mxu1 %v6024_v52  ;;  %v6112_v51 = vld [vmem:[%s8191_s1 + $0xd20] ss:$16 sps:$4 sm:$0xff]   ;;  %v6115_v52 = vld [vmem:[%s8191_s1 + $0xd28] ss:$16 sps:$4 sm:$0xff]  }
 0x170   : > { %4065 = vmatpush1.bf16.msra.mxu0 %v6019_v53  ;;  %4452 = vmatpush1.bf16.msra.mxu1 %v6022_v54  ;;  %v6120_v53 = vld [vmem:[%s8191_s1 + $0xd44] ss:$16 sps:$4 sm:$0xff]   ;;  %v6123_v54 = vld [vmem:[%s8191_s1 + $0xd4c] ss:$16 sps:$4 sm:$0xff]  }
 0x171   : > { %4066 = vmatprep.subr.bf16.mxu0 %v6027_v55  ;;  %4453 = vmatprep.subr.bf16.mxu1 %v6030_v56  ;;  %v6118_v55 = vld [vmem:[%s8191_s1 + $0xd40] ss:$16 sps:$4 sm:$0xff]   ;;  %v6121_v56 = vld [vmem:[%s8191_s1 + $0xd48] ss:$16 sps:$4 sm:$0xff]  }
 0x174   : > { %4067 = vmatpush1.bf16.msra.mxu0 %v6025_v57  ;;  %4454 = vmatpush1.bf16.msra.mxu1 %v6028_v58  ;;  %v6126_v57 = vld [vmem:[%s8191_s1 + $0xd64] ss:$16 sps:$4 sm:$0xff]   ;;  %v6129_v58 = vld [vmem:[%s8191_s1 + $0xd6c] ss:$16 sps:$4 sm:$0xff]  }
 0x175   : > { %4068 = vmatprep.subr.bf16.mxu0 %v6033_v59  ;;  %4455 = vmatprep.subr.bf16.mxu1 %v6036_v60  ;;  %v6124_v59 = vld [vmem:[%s8191_s1 + $0xd60] ss:$16 sps:$4 sm:$0xff]   ;;  %v6127_v60 = vld [vmem:[%s8191_s1 + $0xd68] ss:$16 sps:$4 sm:$0xff]  }
 0x178   : > { %4069 = vmatpush1.bf16.msra.mxu0 %v6031_v61  ;;  %4456 = vmatpush1.bf16.msra.mxu1 %v6034_v62  ;;  %v6132_v61 = vld [vmem:[%s8191_s1 + $0xd84] ss:$16 sps:$4 sm:$0xff]   ;;  %v6135_v62 = vld [vmem:[%s8191_s1 + $0xd8c] ss:$16 sps:$4 sm:$0xff]  }
 0x179   : > { %4070 = vmatprep.subr.bf16.mxu0 %v6039_v63  ;;  %4457 = vmatprep.subr.bf16.mxu1 %v6042_v0  ;;  %v6130_v63 = vld [vmem:[%s8191_s1 + $0xd80] ss:$16 sps:$4 sm:$0xff]   ;;  %v6133_v0 = vld [vmem:[%s8191_s1 + $0xd88] ss:$16 sps:$4 sm:$0xff]  }
 0x17c   : > { %4071 = vmatpush1.bf16.msra.mxu0 %v6037_v1  ;;  %4458 = vmatpush1.bf16.msra.mxu1 %v6040_v2  ;;  %v6138_v1 = vld [vmem:[%s8191_s1 + $0xda4] ss:$16 sps:$4 sm:$0xff]   ;;  %v6141_v2 = vld [vmem:[%s8191_s1 + $0xdac] ss:$16 sps:$4 sm:$0xff]  }
 0x17d   : > { %4072 = vmatprep.subr.bf16.mxu0 %v6045_v3  ;;  %4459 = vmatprep.subr.bf16.mxu1 %v6048_v4  ;;  %v6136_v3 = vld [vmem:[%s8191_s1 + $0xda0] ss:$16 sps:$4 sm:$0xff]   ;;  %v6139_v4 = vld [vmem:[%s8191_s1 + $0xda8] ss:$16 sps:$4 sm:$0xff]  }
 0x180   : > { %4073 = vmatpush1.bf16.msra.mxu0 %v6043_v5  ;;  %4460 = vmatpush1.bf16.msra.mxu1 %v6046_v6  ;;  %v6144_v5 = vld [vmem:[%s8191_s1 + $0xdc4] ss:$16 sps:$4 sm:$0xff]   ;;  %v6147_v6 = vld [vmem:[%s8191_s1 + $0xdcc] ss:$16 sps:$4 sm:$0xff]  }
 0x181   : > { %4074 = vmatprep.subr.bf16.mxu0 %v6051_v7  ;;  %4461 = vmatprep.subr.bf16.mxu1 %v6054_v8  ;;  %v6142_v7 = vld [vmem:[%s8191_s1 + $0xdc0] ss:$16 sps:$4 sm:$0xff]   ;;  %v6145_v8 = vld [vmem:[%s8191_s1 + $0xdc8] ss:$16 sps:$4 sm:$0xff]  }
 0x184   : > { %4075 = vmatpush1.bf16.msra.mxu0 %v6049_v9  ;;  %4462 = vmatpush1.bf16.msra.mxu1 %v6052_v10  ;;  %v6150_v9 = vld [vmem:[%s8191_s1 + $0xde4] ss:$16 sps:$4 sm:$0xff]   ;;  %v6153_v10 = vld [vmem:[%s8191_s1 + $0xdec] ss:$16 sps:$4 sm:$0xff]  }
 0x185   : > { %4087 = vmatprep.subr.bf16.mxu0 %v6060_v11  ;;  %4474 = vmatprep.subr.bf16.mxu1 %v6063_v12  ;;  %v6148_v11 = vld [vmem:[%s8191_s1 + $0xde0] ss:$16 sps:$4 sm:$0xff]   ;;  %v6151_v12 = vld [vmem:[%s8191_s1 + $0xde8] ss:$16 sps:$4 sm:$0xff]  }
 0x187   : > { %4077 = vmatmul.mubr.bf16.vlgmr.msra.gmra.mrb[0].mxu0 %v6055_v13  ;;  %4464 = vmatmul.mubr.bf16.vlgmr.msra.gmra.mrb[0].mxu1 %v6055_v13  ;;  %v6159_v13 = vld [vmem:[%s8191_s1 + $0xe04] ss:$16 sps:$4 sm:$0xff]  }
 0x188   : > { %4088 = vmatpush1.bf16.msra.mxu0 %v6058_v14  ;;  %4475 = vmatpush1.bf16.msra.mxu1 %v6061_v15  ;;  %v6162_v14 = vld [vmem:[%s8191_s1 + $0xe0c] ss:$16 sps:$4 sm:$0xff]   ;;  %v6154_v15 = vld [vmem:[%s6561_s17 + $0x30] ss:$72 sps:$4 sm:$0xff]  }
 0x189   : > { %4089 = vmatprep.subr.bf16.mxu0 %v6066_v16  ;;  %4476 = vmatprep.subr.bf16.mxu1 %v6069_v17  ;;  %v6157_v16 = vld [vmem:[%s8191_s1 + $0xe00] ss:$16 sps:$4 sm:$0xff]   ;;  %v6160_v17 = vld [vmem:[%s8191_s1 + $0xe08] ss:$16 sps:$4 sm:$0xff]  }
 0x18a   : > { %4119 = vmatprep.mubr.bf16.mxu0 %v6156_v18  ;;  %4506 = vmatprep.mubr.bf16.mxu1 %v6156_v18  ;;  %v6165_v18 = vld [vmem:[%s8191_s1 + $0xe24] ss:$16 sps:$4 sm:$0xff]  }
 0x18c   : > { %4090 = vmatpush1.bf16.msra.mxu0 %v6064_v19  ;;  %4477 = vmatpush1.bf16.msra.mxu1 %v6067_v20  ;;  %v6168_v19 = vld [vmem:[%s8191_s1 + $0xe2c] ss:$16 sps:$4 sm:$0xff]  }
 0x18d   : > { %4091 = vmatprep.subr.bf16.mxu0 %v6072_v21  ;;  %4478 = vmatprep.subr.bf16.mxu1 %v6075_v22  ;;  %v6255_v20 = vld [vmem:[%s6561_s17 + $0x3c] ss:$72 sps:$4 sm:$0xff]   ;;  %v6163_v21 = vld [vmem:[%s8191_s1 + $0xe20] ss:$16 sps:$4 sm:$0xff]   ;;  %v6166_v22 = vld [vmem:[%s8191_s1 + $0xe28] ss:$16 sps:$4 sm:$0xff]  }
 0x190   : > { %4092 = vmatpush1.bf16.msra.mxu0 %v6070_v23  ;;  %4479 = vmatpush1.bf16.msra.mxu1 %v6073_v24  ;;  %v6171_v23 = vld [vmem:[%s8191_s1 + $0xe44] ss:$16 sps:$4 sm:$0xff]   ;;  %v6174_v24 = vld [vmem:[%s8191_s1 + $0xe4c] ss:$16 sps:$4 sm:$0xff]  }
 0x191   : > { %4093 = vmatprep.subr.bf16.mxu0 %v6078_v25  ;;  %4480 = vmatprep.subr.bf16.mxu1 %v6081_v26  ;;  %v6169_v25 = vld [vmem:[%s8191_s1 + $0xe40] ss:$16 sps:$4 sm:$0xff]   ;;  %v6172_v26 = vld [vmem:[%s8191_s1 + $0xe48] ss:$16 sps:$4 sm:$0xff]  }
 0x194   : > { %4094 = vmatpush1.bf16.msra.mxu0 %v6076_v27  ;;  %4481 = vmatpush1.bf16.msra.mxu1 %v6079_v28  ;;  %v6177_v27 = vld [vmem:[%s8191_s1 + $0xe64] ss:$16 sps:$4 sm:$0xff]   ;;  %v6180_v28 = vld [vmem:[%s8191_s1 + $0xe6c] ss:$16 sps:$4 sm:$0xff]  }
 0x195   : > { %4095 = vmatprep.subr.bf16.mxu0 %v6084_v29  ;;  %4482 = vmatprep.subr.bf16.mxu1 %v6087_v30  ;;  %v6175_v29 = vld [vmem:[%s8191_s1 + $0xe60] ss:$16 sps:$4 sm:$0xff]   ;;  %v6178_v30 = vld [vmem:[%s8191_s1 + $0xe68] ss:$16 sps:$4 sm:$0xff]  }
 0x198   : > { %4096 = vmatpush1.bf16.msra.mxu0 %v6082_v31  ;;  %4483 = vmatpush1.bf16.msra.mxu1 %v6085_v32  ;;  %v6183_v31 = vld [vmem:[%s8191_s1 + $0xe84] ss:$16 sps:$4 sm:$0xff]   ;;  %v6186_v32 = vld [vmem:[%s8191_s1 + $0xe8c] ss:$16 sps:$4 sm:$0xff]  }
 0x199   : > { %4097 = vmatprep.subr.bf16.mxu0 %v6090_v33  ;;  %4484 = vmatprep.subr.bf16.mxu1 %v6093_v34  ;;  %v6181_v33 = vld [vmem:[%s8191_s1 + $0xe80] ss:$16 sps:$4 sm:$0xff]   ;;  %v6184_v34 = vld [vmem:[%s8191_s1 + $0xe88] ss:$16 sps:$4 sm:$0xff]  }
 0x19c   : > { %4098 = vmatpush1.bf16.msra.mxu0 %v6088_v35  ;;  %4485 = vmatpush1.bf16.msra.mxu1 %v6091_v36  ;;  %v6189_v35 = vld [vmem:[%s8191_s1 + $0xea4] ss:$16 sps:$4 sm:$0xff]   ;;  %v6192_v36 = vld [vmem:[%s8191_s1 + $0xeac] ss:$16 sps:$4 sm:$0xff]  }
 0x19d   : > { %4099 = vmatprep.subr.bf16.mxu0 %v6096_v37  ;;  %4486 = vmatprep.subr.bf16.mxu1 %v6099_v38  ;;  %v6187_v37 = vld [vmem:[%s8191_s1 + $0xea0] ss:$16 sps:$4 sm:$0xff]   ;;  %v6190_v38 = vld [vmem:[%s8191_s1 + $0xea8] ss:$16 sps:$4 sm:$0xff]  }
 0x1a0   : > { %4100 = vmatpush1.bf16.msra.mxu0 %v6094_v39  ;;  %4487 = vmatpush1.bf16.msra.mxu1 %v6097_v40  ;;  %v6195_v39 = vld [vmem:[%s8191_s1 + $0xec4] ss:$16 sps:$4 sm:$0xff]   ;;  %v6198_v40 = vld [vmem:[%s8191_s1 + $0xecc] ss:$16 sps:$4 sm:$0xff]  }
 0x1a1   : > { %4101 = vmatprep.subr.bf16.mxu0 %v6102_v41  ;;  %4488 = vmatprep.subr.bf16.mxu1 %v6105_v42  ;;  %v6193_v41 = vld [vmem:[%s8191_s1 + $0xec0] ss:$16 sps:$4 sm:$0xff]   ;;  %v6196_v42 = vld [vmem:[%s8191_s1 + $0xec8] ss:$16 sps:$4 sm:$0xff]  }
 0x1a4   : > { %4102 = vmatpush1.bf16.msra.mxu0 %v6100_v43  ;;  %4489 = vmatpush1.bf16.msra.mxu1 %v6103_v44  ;;  %v6201_v43 = vld [vmem:[%s8191_s1 + $0xee4] ss:$16 sps:$4 sm:$0xff]   ;;  %v6204_v44 = vld [vmem:[%s8191_s1 + $0xeec] ss:$16 sps:$4 sm:$0xff]  }
 0x1a5   : > { %4103 = vmatprep.subr.bf16.mxu0 %v6108_v45  ;;  %4490 = vmatprep.subr.bf16.mxu1 %v6111_v46  ;;  %v6199_v45 = vld [vmem:[%s8191_s1 + $0xee0] ss:$16 sps:$4 sm:$0xff]   ;;  %v6202_v46 = vld [vmem:[%s8191_s1 + $0xee8] ss:$16 sps:$4 sm:$0xff]  }
 0x1a8   : > { %4104 = vmatpush1.bf16.msra.mxu0 %v6106_v47  ;;  %4491 = vmatpush1.bf16.msra.mxu1 %v6109_v48  ;;  %v6207_v47 = vld [vmem:[%s8191_s1 + $0xf04] ss:$16 sps:$4 sm:$0xff]   ;;  %v6210_v48 = vld [vmem:[%s8191_s1 + $0xf0c] ss:$16 sps:$4 sm:$0xff]  }
 0x1a9   : > { %4105 = vmatprep.subr.bf16.mxu0 %v6114_v49  ;;  %4492 = vmatprep.subr.bf16.mxu1 %v6117_v50  ;;  %v6205_v49 = vld [vmem:[%s8191_s1 + $0xf00] ss:$16 sps:$4 sm:$0xff]   ;;  %v6208_v50 = vld [vmem:[%s8191_s1 + $0xf08] ss:$16 sps:$4 sm:$0xff]  }
 0x1ac   : > { %4106 = vmatpush1.bf16.msra.mxu0 %v6112_v51  ;;  %4493 = vmatpush1.bf16.msra.mxu1 %v6115_v52  ;;  %v6213_v51 = vld [vmem:[%s8191_s1 + $0xf24] ss:$16 sps:$4 sm:$0xff]   ;;  %v6216_v52 = vld [vmem:[%s8191_s1 + $0xf2c] ss:$16 sps:$4 sm:$0xff]  }
 0x1ad   : > { %4107 = vmatprep.subr.bf16.mxu0 %v6120_v53  ;;  %4494 = vmatprep.subr.bf16.mxu1 %v6123_v54  ;;  %v6211_v53 = vld [vmem:[%s8191_s1 + $0xf20] ss:$16 sps:$4 sm:$0xff]   ;;  %v6214_v54 = vld [vmem:[%s8191_s1 + $0xf28] ss:$16 sps:$4 sm:$0xff]  }
 0x1b0   : > { %4108 = vmatpush1.bf16.msra.mxu0 %v6118_v55  ;;  %4495 = vmatpush1.bf16.msra.mxu1 %v6121_v56  ;;  %v6219_v55 = vld [vmem:[%s8191_s1 + $0xf44] ss:$16 sps:$4 sm:$0xff]   ;;  %v6222_v56 = vld [vmem:[%s8191_s1 + $0xf4c] ss:$16 sps:$4 sm:$0xff]  }
 0x1b1   : > { %4109 = vmatprep.subr.bf16.mxu0 %v6126_v57  ;;  %4496 = vmatprep.subr.bf16.mxu1 %v6129_v58  ;;  %v6217_v57 = vld [vmem:[%s8191_s1 + $0xf40] ss:$16 sps:$4 sm:$0xff]   ;;  %v6220_v58 = vld [vmem:[%s8191_s1 + $0xf48] ss:$16 sps:$4 sm:$0xff]  }
 0x1b4   : > { %4110 = vmatpush1.bf16.msra.mxu0 %v6124_v59  ;;  %4497 = vmatpush1.bf16.msra.mxu1 %v6127_v60  ;;  %v6225_v59 = vld [vmem:[%s8191_s1 + $0xf64] ss:$16 sps:$4 sm:$0xff]   ;;  %v6228_v60 = vld [vmem:[%s8191_s1 + $0xf6c] ss:$16 sps:$4 sm:$0xff]  }
 0x1b5   : > { %4111 = vmatprep.subr.bf16.mxu0 %v6132_v61  ;;  %4498 = vmatprep.subr.bf16.mxu1 %v6135_v62  ;;  %v6223_v61 = vld [vmem:[%s8191_s1 + $0xf60] ss:$16 sps:$4 sm:$0xff]   ;;  %v6226_v62 = vld [vmem:[%s8191_s1 + $0xf68] ss:$16 sps:$4 sm:$0xff]  }
 0x1b8   : > { %4112 = vmatpush1.bf16.msra.mxu0 %v6130_v63  ;;  %4499 = vmatpush1.bf16.msra.mxu1 %v6133_v0  ;;  %v6231_v63 = vld [vmem:[%s8191_s1 + $0xf84] ss:$16 sps:$4 sm:$0xff]   ;;  %v6234_v0 = vld [vmem:[%s8191_s1 + $0xf8c] ss:$16 sps:$4 sm:$0xff]  }
 0x1b9   : > { %4113 = vmatprep.subr.bf16.mxu0 %v6138_v1  ;;  %4500 = vmatprep.subr.bf16.mxu1 %v6141_v2  ;;  %v6229_v1 = vld [vmem:[%s8191_s1 + $0xf80] ss:$16 sps:$4 sm:$0xff]   ;;  %v6232_v2 = vld [vmem:[%s8191_s1 + $0xf88] ss:$16 sps:$4 sm:$0xff]  }
 0x1bc   : > { %4114 = vmatpush1.bf16.msra.mxu0 %v6136_v3  ;;  %4501 = vmatpush1.bf16.msra.mxu1 %v6139_v4  ;;  %v6237_v3 = vld [vmem:[%s8191_s1 + $0xfa4] ss:$16 sps:$4 sm:$0xff]   ;;  %v6240_v4 = vld [vmem:[%s8191_s1 + $0xfac] ss:$16 sps:$4 sm:$0xff]  }
 0x1bd   : > { %4115 = vmatprep.subr.bf16.mxu0 %v6144_v5  ;;  %4502 = vmatprep.subr.bf16.mxu1 %v6147_v6  ;;  %v6235_v5 = vld [vmem:[%s8191_s1 + $0xfa0] ss:$16 sps:$4 sm:$0xff]   ;;  %v6238_v6 = vld [vmem:[%s8191_s1 + $0xfa8] ss:$16 sps:$4 sm:$0xff]  }
 0x1c0   : > { %4116 = vmatpush1.bf16.msra.mxu0 %v6142_v7  ;;  %4503 = vmatpush1.bf16.msra.mxu1 %v6145_v8  ;;  %v6243_v7 = vld [vmem:[%s8191_s1 + $0xfc4] ss:$16 sps:$4 sm:$0xff]   ;;  %v6246_v8 = vld [vmem:[%s8191_s1 + $0xfcc] ss:$16 sps:$4 sm:$0xff]  }
 0x1c1   : > { %4117 = vmatprep.subr.bf16.mxu0 %v6150_v9  ;;  %4504 = vmatprep.subr.bf16.mxu1 %v6153_v10  ;;  %v6241_v9 = vld [vmem:[%s8191_s1 + $0xfc0] ss:$16 sps:$4 sm:$0xff]   ;;  %v6244_v10 = vld [vmem:[%s8191_s1 + $0xfc8] ss:$16 sps:$4 sm:$0xff]  }
 0x1c4   : > { %4118 = vmatpush1.bf16.msra.mxu0 %v6148_v11  ;;  %4505 = vmatpush1.bf16.msra.mxu1 %v6151_v12  ;;  %v6249_v11 = vld [vmem:[%s8191_s1 + $0xfe4] ss:$16 sps:$4 sm:$0xff]   ;;  %v6252_v12 = vld [vmem:[%s8191_s1 + $0xfec] ss:$16 sps:$4 sm:$0xff]  }
 0x1c5   : > { %4130 = vmatprep.subr.bf16.mxu0 %v6159_v13  ;;  %4517 = vmatprep.subr.bf16.mxu1 %v6162_v14  ;;  %v6247_v13 = vld [vmem:[%s8191_s1 + $0xfe0] ss:$16 sps:$4 sm:$0xff]   ;;  %v6250_v14 = vld [vmem:[%s8191_s1 + $0xfe8] ss:$16 sps:$4 sm:$0xff]  }
 0x1c7   : > { %4120 = vmatmul.mubr.bf16.vlgmr.msra.gmra.mrb[0].mxu0 %v6154_v15  ;;  %4507 = vmatmul.mubr.bf16.vlgmr.msra.gmra.mrb[0].mxu1 %v6154_v15  ;;  %v6258_v15 = vld [vmem:[%s8191_s1 + $0x1004] ss:$16 sps:$4 sm:$0xff]  }
 0x1c8   : > { %4131 = vmatpush1.bf16.msra.mxu0 %v6157_v16  ;;  %4518 = vmatpush1.bf16.msra.mxu1 %v6160_v17  ;;  %v6261_v16 = vld [vmem:[%s8191_s1 + $0x100c] ss:$16 sps:$4 sm:$0xff]   ;;  %v6253_v17 = vld [vmem:[%s6561_s17 + $0x38] ss:$72 sps:$4 sm:$0xff]  }
 0x1c9   : > { %4132 = vmatprep.subr.bf16.mxu0 %v6165_v18  ;;  %4519 = vmatprep.subr.bf16.mxu1 %v6168_v19  ;;  %v6256_v18 = vld [vmem:[%s8191_s1 + $0x1000] ss:$16 sps:$4 sm:$0xff]   ;;  %v6259_v19 = vld [vmem:[%s8191_s1 + $0x1008] ss:$16 sps:$4 sm:$0xff]  }
 0x1ca   : > { %4162 = vmatprep.mubr.bf16.mxu0 %v6255_v20  ;;  %4549 = vmatprep.mubr.bf16.mxu1 %v6255_v20  ;;  %v6264_v20 = vld [vmem:[%s8191_s1 + $0x1024] ss:$16 sps:$4 sm:$0xff]  }
 0x1cc   : > { %4133 = vmatpush1.bf16.msra.mxu0 %v6163_v21  ;;  %4520 = vmatpush1.bf16.msra.mxu1 %v6166_v22  ;;  %v6267_v21 = vld [vmem:[%s8191_s1 + $0x102c] ss:$16 sps:$4 sm:$0xff]  }
 0x1cd   : > { %4134 = vmatprep.subr.bf16.mxu0 %v6171_v23  ;;  %4521 = vmatprep.subr.bf16.mxu1 %v6174_v24  ;;  %v6354_v22 = vld [vmem:[%s6561_s17 + $0x44] ss:$72 sps:$4 sm:$0xff]   ;;  %v6262_v23 = vld [vmem:[%s8191_s1 + $0x1020] ss:$16 sps:$4 sm:$0xff]   ;;  %v6265_v24 = vld [vmem:[%s8191_s1 + $0x1028] ss:$16 sps:$4 sm:$0xff]  }
 0x1d0   : > { %4135 = vmatpush1.bf16.msra.mxu0 %v6169_v25  ;;  %4522 = vmatpush1.bf16.msra.mxu1 %v6172_v26  ;;  %v6270_v25 = vld [vmem:[%s8191_s1 + $0x1044] ss:$16 sps:$4 sm:$0xff]   ;;  %v6273_v26 = vld [vmem:[%s8191_s1 + $0x104c] ss:$16 sps:$4 sm:$0xff]  }
 0x1d1   : > { %4136 = vmatprep.subr.bf16.mxu0 %v6177_v27  ;;  %4523 = vmatprep.subr.bf16.mxu1 %v6180_v28  ;;  %v6268_v27 = vld [vmem:[%s8191_s1 + $0x1040] ss:$16 sps:$4 sm:$0xff]   ;;  %v6271_v28 = vld [vmem:[%s8191_s1 + $0x1048] ss:$16 sps:$4 sm:$0xff]  }
 0x1d4   : > { %4137 = vmatpush1.bf16.msra.mxu0 %v6175_v29  ;;  %4524 = vmatpush1.bf16.msra.mxu1 %v6178_v30  ;;  %v6276_v29 = vld [vmem:[%s8191_s1 + $0x1064] ss:$16 sps:$4 sm:$0xff]   ;;  %v6279_v30 = vld [vmem:[%s8191_s1 + $0x106c] ss:$16 sps:$4 sm:$0xff]  }
 0x1d5   : > { %4138 = vmatprep.subr.bf16.mxu0 %v6183_v31  ;;  %4525 = vmatprep.subr.bf16.mxu1 %v6186_v32  ;;  %v6274_v31 = vld [vmem:[%s8191_s1 + $0x1060] ss:$16 sps:$4 sm:$0xff]   ;;  %v6277_v32 = vld [vmem:[%s8191_s1 + $0x1068] ss:$16 sps:$4 sm:$0xff]  }
 0x1d8   : > { %4139 = vmatpush1.bf16.msra.mxu0 %v6181_v33  ;;  %4526 = vmatpush1.bf16.msra.mxu1 %v6184_v34  ;;  %v6282_v33 = vld [vmem:[%s8191_s1 + $0x1084] ss:$16 sps:$4 sm:$0xff]   ;;  %v6285_v34 = vld [vmem:[%s8191_s1 + $0x108c] ss:$16 sps:$4 sm:$0xff]  }
 0x1d9   : > { %4140 = vmatprep.subr.bf16.mxu0 %v6189_v35  ;;  %4527 = vmatprep.subr.bf16.mxu1 %v6192_v36  ;;  %v6280_v35 = vld [vmem:[%s8191_s1 + $0x1080] ss:$16 sps:$4 sm:$0xff]   ;;  %v6283_v36 = vld [vmem:[%s8191_s1 + $0x1088] ss:$16 sps:$4 sm:$0xff]  }
 0x1dc   : > { %4141 = vmatpush1.bf16.msra.mxu0 %v6187_v37  ;;  %4528 = vmatpush1.bf16.msra.mxu1 %v6190_v38  ;;  %v6288_v37 = vld [vmem:[%s8191_s1 + $0x10a4] ss:$16 sps:$4 sm:$0xff]   ;;  %v6291_v38 = vld [vmem:[%s8191_s1 + $0x10ac] ss:$16 sps:$4 sm:$0xff]  }
 0x1dd   : > { %4142 = vmatprep.subr.bf16.mxu0 %v6195_v39  ;;  %4529 = vmatprep.subr.bf16.mxu1 %v6198_v40  ;;  %v6286_v39 = vld [vmem:[%s8191_s1 + $0x10a0] ss:$16 sps:$4 sm:$0xff]   ;;  %v6289_v40 = vld [vmem:[%s8191_s1 + $0x10a8] ss:$16 sps:$4 sm:$0xff]  }
 0x1e0   : > { %4143 = vmatpush1.bf16.msra.mxu0 %v6193_v41  ;;  %4530 = vmatpush1.bf16.msra.mxu1 %v6196_v42  ;;  %v6294_v41 = vld [vmem:[%s8191_s1 + $0x10c4] ss:$16 sps:$4 sm:$0xff]   ;;  %v6297_v42 = vld [vmem:[%s8191_s1 + $0x10cc] ss:$16 sps:$4 sm:$0xff]  }
 0x1e1   : > { %4144 = vmatprep.subr.bf16.mxu0 %v6201_v43  ;;  %4531 = vmatprep.subr.bf16.mxu1 %v6204_v44  ;;  %v6292_v43 = vld [vmem:[%s8191_s1 + $0x10c0] ss:$16 sps:$4 sm:$0xff]   ;;  %v6295_v44 = vld [vmem:[%s8191_s1 + $0x10c8] ss:$16 sps:$4 sm:$0xff]  }
 0x1e4   : > { %4145 = vmatpush1.bf16.msra.mxu0 %v6199_v45  ;;  %4532 = vmatpush1.bf16.msra.mxu1 %v6202_v46  ;;  %v6300_v45 = vld [vmem:[%s8191_s1 + $0x10e4] ss:$16 sps:$4 sm:$0xff]   ;;  %v6303_v46 = vld [vmem:[%s8191_s1 + $0x10ec] ss:$16 sps:$4 sm:$0xff]  }
 0x1e5   : > { %4146 = vmatprep.subr.bf16.mxu0 %v6207_v47  ;;  %4533 = vmatprep.subr.bf16.mxu1 %v6210_v48  ;;  %v6298_v47 = vld [vmem:[%s8191_s1 + $0x10e0] ss:$16 sps:$4 sm:$0xff]   ;;  %v6301_v48 = vld [vmem:[%s8191_s1 + $0x10e8] ss:$16 sps:$4 sm:$0xff]  }
 0x1e8   : > { %4147 = vmatpush1.bf16.msra.mxu0 %v6205_v49  ;;  %4534 = vmatpush1.bf16.msra.mxu1 %v6208_v50  ;;  %v6306_v49 = vld [vmem:[%s8191_s1 + $0x1104] ss:$16 sps:$4 sm:$0xff]   ;;  %v6309_v50 = vld [vmem:[%s8191_s1 + $0x110c] ss:$16 sps:$4 sm:$0xff]  }
 0x1e9   : > { %4148 = vmatprep.subr.bf16.mxu0 %v6213_v51  ;;  %4535 = vmatprep.subr.bf16.mxu1 %v6216_v52  ;;  %v6304_v51 = vld [vmem:[%s8191_s1 + $0x1100] ss:$16 sps:$4 sm:$0xff]   ;;  %v6307_v52 = vld [vmem:[%s8191_s1 + $0x1108] ss:$16 sps:$4 sm:$0xff]  }
 0x1ec   : > { %4149 = vmatpush1.bf16.msra.mxu0 %v6211_v53  ;;  %4536 = vmatpush1.bf16.msra.mxu1 %v6214_v54  ;;  %v6312_v53 = vld [vmem:[%s8191_s1 + $0x1124] ss:$16 sps:$4 sm:$0xff]   ;;  %v6315_v54 = vld [vmem:[%s8191_s1 + $0x112c] ss:$16 sps:$4 sm:$0xff]  }
 0x1ed   : > { %4150 = vmatprep.subr.bf16.mxu0 %v6219_v55  ;;  %4537 = vmatprep.subr.bf16.mxu1 %v6222_v56  ;;  %v6310_v55 = vld [vmem:[%s8191_s1 + $0x1120] ss:$16 sps:$4 sm:$0xff]   ;;  %v6313_v56 = vld [vmem:[%s8191_s1 + $0x1128] ss:$16 sps:$4 sm:$0xff]  }
 0x1f0   : > { %4151 = vmatpush1.bf16.msra.mxu0 %v6217_v57  ;;  %4538 = vmatpush1.bf16.msra.mxu1 %v6220_v58  ;;  %v6318_v57 = vld [vmem:[%s8191_s1 + $0x1144] ss:$16 sps:$4 sm:$0xff]   ;;  %v6321_v58 = vld [vmem:[%s8191_s1 + $0x114c] ss:$16 sps:$4 sm:$0xff]  }
 0x1f1   : > { %4152 = vmatprep.subr.bf16.mxu0 %v6225_v59  ;;  %4539 = vmatprep.subr.bf16.mxu1 %v6228_v60  ;;  %v6316_v59 = vld [vmem:[%s8191_s1 + $0x1140] ss:$16 sps:$4 sm:$0xff]   ;;  %v6319_v60 = vld [vmem:[%s8191_s1 + $0x1148] ss:$16 sps:$4 sm:$0xff]  }
 0x1f4   : > { %4153 = vmatpush1.bf16.msra.mxu0 %v6223_v61  ;;  %4540 = vmatpush1.bf16.msra.mxu1 %v6226_v62  ;;  %v6324_v61 = vld [vmem:[%s8191_s1 + $0x1164] ss:$16 sps:$4 sm:$0xff]   ;;  %v6327_v62 = vld [vmem:[%s8191_s1 + $0x116c] ss:$16 sps:$4 sm:$0xff]  }
 0x1f5   : > { %4154 = vmatprep.subr.bf16.mxu0 %v6231_v63  ;;  %4541 = vmatprep.subr.bf16.mxu1 %v6234_v0  ;;  %v6322_v63 = vld [vmem:[%s8191_s1 + $0x1160] ss:$16 sps:$4 sm:$0xff]   ;;  %v6325_v0 = vld [vmem:[%s8191_s1 + $0x1168] ss:$16 sps:$4 sm:$0xff]  }
 0x1f8   : > { %4155 = vmatpush1.bf16.msra.mxu0 %v6229_v1  ;;  %4542 = vmatpush1.bf16.msra.mxu1 %v6232_v2  ;;  %v6330_v1 = vld [vmem:[%s8191_s1 + $0x1184] ss:$16 sps:$4 sm:$0xff]   ;;  %v6333_v2 = vld [vmem:[%s8191_s1 + $0x118c] ss:$16 sps:$4 sm:$0xff]  }
 0x1f9   : > { %4156 = vmatprep.subr.bf16.mxu0 %v6237_v3  ;;  %4543 = vmatprep.subr.bf16.mxu1 %v6240_v4  ;;  %v6328_v3 = vld [vmem:[%s8191_s1 + $0x1180] ss:$16 sps:$4 sm:$0xff]   ;;  %v6331_v4 = vld [vmem:[%s8191_s1 + $0x1188] ss:$16 sps:$4 sm:$0xff]  }
 0x1fc   : > { %4157 = vmatpush1.bf16.msra.mxu0 %v6235_v5  ;;  %4544 = vmatpush1.bf16.msra.mxu1 %v6238_v6  ;;  %v6336_v5 = vld [vmem:[%s8191_s1 + $0x11a4] ss:$16 sps:$4 sm:$0xff]   ;;  %v6339_v6 = vld [vmem:[%s8191_s1 + $0x11ac] ss:$16 sps:$4 sm:$0xff]  }
 0x1fd   : > { %4158 = vmatprep.subr.bf16.mxu0 %v6243_v7  ;;  %4545 = vmatprep.subr.bf16.mxu1 %v6246_v8  ;;  %v6334_v7 = vld [vmem:[%s8191_s1 + $0x11a0] ss:$16 sps:$4 sm:$0xff]   ;;  %v6337_v8 = vld [vmem:[%s8191_s1 + $0x11a8] ss:$16 sps:$4 sm:$0xff]  }
 0x200   : > { %4159 = vmatpush1.bf16.msra.mxu0 %v6241_v9  ;;  %4546 = vmatpush1.bf16.msra.mxu1 %v6244_v10  ;;  %v6342_v9 = vld [vmem:[%s8191_s1 + $0x11c4] ss:$16 sps:$4 sm:$0xff]   ;;  %v6345_v10 = vld [vmem:[%s8191_s1 + $0x11cc] ss:$16 sps:$4 sm:$0xff]  }
 0x201   : > { %4160 = vmatprep.subr.bf16.mxu0 %v6249_v11  ;;  %4547 = vmatprep.subr.bf16.mxu1 %v6252_v12  ;;  %v6340_v11 = vld [vmem:[%s8191_s1 + $0x11c0] ss:$16 sps:$4 sm:$0xff]   ;;  %v6343_v12 = vld [vmem:[%s8191_s1 + $0x11c8] ss:$16 sps:$4 sm:$0xff]  }
 0x204   : > { %4161 = vmatpush1.bf16.msra.mxu0 %v6247_v13  ;;  %4548 = vmatpush1.bf16.msra.mxu1 %v6250_v14  ;;  %v6348_v13 = vld [vmem:[%s8191_s1 + $0x11e4] ss:$16 sps:$4 sm:$0xff]   ;;  %v6351_v14 = vld [vmem:[%s8191_s1 + $0x11ec] ss:$16 sps:$4 sm:$0xff]  }
 0x205   : > { %4173 = vmatprep.subr.bf16.mxu0 %v6258_v15  ;;  %4560 = vmatprep.subr.bf16.mxu1 %v6261_v16  ;;  %v6346_v15 = vld [vmem:[%s8191_s1 + $0x11e0] ss:$16 sps:$4 sm:$0xff]   ;;  %v6349_v16 = vld [vmem:[%s8191_s1 + $0x11e8] ss:$16 sps:$4 sm:$0xff]  }
 0x207   : > { %4163 = vmatmul.mubr.bf16.vlgmr.msra.gmra.mrb[0].mxu0 %v6253_v17  ;;  %4550 = vmatmul.mubr.bf16.vlgmr.msra.gmra.mrb[0].mxu1 %v6253_v17  ;;  %v6352_v17 = vld [vmem:[%s6561_s17 + $0x40] ss:$72 sps:$4 sm:$0xff]   ;;  %s5362_s17 = sshll.u32 %s8199_s30, 4 }
 0x208   : > { %4174 = vmatpush1.bf16.msra.mxu0 %v6256_v18  ;;  %4561 = vmatpush1.bf16.msra.mxu1 %v6259_v19  ;;  %v839_v18 = vlaneseq  ;;  %s240_s28 = scalar_lea.vmem %s8193_s3, %s5362_s17 }
 0x209   : > { %4175 = vmatprep.subr.bf16.mxu0 %v6264_v20  ;;  %4562 = vmatprep.subr.bf16.mxu1 %v6267_v21 }
 0x20a   : > { %4205 = vmatprep.mubr.bf16.mxu0 %v6354_v22  ;;  %4592 = vmatprep.mubr.bf16.mxu1 %v6354_v22  ;;  %v840_v19 = vshrl.u32 %v839_v18, 7  ;;  %v837_v22 = vld [vmem:[%s8192_s2] sm:$0xf] }
 0x20c   : > { %4176 = vmatpush1.bf16.msra.mxu0 %v6262_v23  ;;  %4563 = vmatpush1.bf16.msra.mxu1 %v6265_v24  ;;  %v841_v20 = vsub.s32 0, %v840_v19  ;;  %v849_v21 = vsub.s32 2, %v840_v19  ;;  %v845_v23 = vsub.s32 1, %v840_v19  ;;  %v853_v24 = vsub.s32 3, %v840_v19 }
 0x20d   : > { %4177 = vmatprep.subr.bf16.mxu0 %v6270_v25  ;;  %4564 = vmatprep.subr.bf16.mxu1 %v6273_v26 }
 0x20e   : > { %v842_v25 = vrot.slane %v837_v22, %v841_v20  ;;  %v850_v26 = vrot.slane %v837_v22, %v849_v21 }
 0x210   : > { %4178 = vmatpush1.bf16.msra.mxu0 %v6268_v27  ;;  %4565 = vmatpush1.bf16.msra.mxu1 %v6271_v28  ;;  %v846_v27 = vrot.slane %v837_v22, %v845_v23  ;;  %v854_v28 = vrot.slane %v837_v22, %v853_v24 }
 0x211   : > { %4179 = vmatprep.subr.bf16.mxu0 %v6276_v29  ;;  %4566 = vmatprep.subr.bf16.mxu1 %v6279_v30 }
 0x214   : > { %4180 = vmatpush1.bf16.msra.mxu0 %v6274_v31  ;;  %4567 = vmatpush1.bf16.msra.mxu1 %v6277_v32 }
 0x215   : > { %4181 = vmatprep.subr.bf16.mxu0 %v6282_v33  ;;  %4568 = vmatprep.subr.bf16.mxu1 %v6285_v34 }
 0x218   : > { %4182 = vmatpush1.bf16.msra.mxu0 %v6280_v35  ;;  %4569 = vmatpush1.bf16.msra.mxu1 %v6283_v36 }
 0x219   : > { %4183 = vmatprep.subr.bf16.mxu0 %v6288_v37  ;;  %4570 = vmatprep.subr.bf16.mxu1 %v6291_v38 }
 0x21c   : > { %4184 = vmatpush1.bf16.msra.mxu0 %v6286_v39  ;;  %4571 = vmatpush1.bf16.msra.mxu1 %v6289_v40 }
 0x21d   : > { %4185 = vmatprep.subr.bf16.mxu0 %v6294_v41  ;;  %4572 = vmatprep.subr.bf16.mxu1 %v6297_v42 }
 0x220   : > { %4186 = vmatpush1.bf16.msra.mxu0 %v6292_v43  ;;  %4573 = vmatpush1.bf16.msra.mxu1 %v6295_v44 }
 0x221   : > { %4187 = vmatprep.subr.bf16.mxu0 %v6300_v45  ;;  %4574 = vmatprep.subr.bf16.mxu1 %v6303_v46 }
 0x224   : > { %4188 = vmatpush1.bf16.msra.mxu0 %v6298_v47  ;;  %4575 = vmatpush1.bf16.msra.mxu1 %v6301_v48 }
 0x225   : > { %4189 = vmatprep.subr.bf16.mxu0 %v6306_v49  ;;  %4576 = vmatprep.subr.bf16.mxu1 %v6309_v50 }
 0x228   : > { %4190 = vmatpush1.bf16.msra.mxu0 %v6304_v51  ;;  %4577 = vmatpush1.bf16.msra.mxu1 %v6307_v52 }
 0x229   : > { %4191 = vmatprep.subr.bf16.mxu0 %v6312_v53  ;;  %4578 = vmatprep.subr.bf16.mxu1 %v6315_v54 }
 0x22c   : > { %4192 = vmatpush1.bf16.msra.mxu0 %v6310_v55  ;;  %4579 = vmatpush1.bf16.msra.mxu1 %v6313_v56 }
 0x22d   : > { %4193 = vmatprep.subr.bf16.mxu0 %v6318_v57  ;;  %4580 = vmatprep.subr.bf16.mxu1 %v6321_v58 }
 0x230   : > { %4194 = vmatpush1.bf16.msra.mxu0 %v6316_v59  ;;  %4581 = vmatpush1.bf16.msra.mxu1 %v6319_v60 }
 0x231   : > { %4195 = vmatprep.subr.bf16.mxu0 %v6324_v61  ;;  %4582 = vmatprep.subr.bf16.mxu1 %v6327_v62 }
 0x234   : > { %4196 = vmatpush1.bf16.msra.mxu0 %v6322_v63  ;;  %4583 = vmatpush1.bf16.msra.mxu1 %v6325_v0 }
 0x235   : > { %4197 = vmatprep.subr.bf16.mxu0 %v6330_v1  ;;  %4584 = vmatprep.subr.bf16.mxu1 %v6333_v2 }
 0x238   : > { %4198 = vmatpush1.bf16.msra.mxu0 %v6328_v3  ;;  %4585 = vmatpush1.bf16.msra.mxu1 %v6331_v4 }
 0x239   : > { %4199 = vmatprep.subr.bf16.mxu0 %v6336_v5  ;;  %4586 = vmatprep.subr.bf16.mxu1 %v6339_v6 }
 0x23c   : > { %4200 = vmatpush1.bf16.msra.mxu0 %v6334_v7  ;;  %4587 = vmatpush1.bf16.msra.mxu1 %v6337_v8 }
 0x23d   : > { %4201 = vmatprep.subr.bf16.mxu0 %v6342_v9  ;;  %4588 = vmatprep.subr.bf16.mxu1 %v6345_v10 }
 0x240   : > { %4202 = vmatpush1.bf16.msra.mxu0 %v6340_v11  ;;  %4589 = vmatpush1.bf16.msra.mxu1 %v6343_v12 }
 0x241   : > { %4203 = vmatprep.subr.bf16.mxu0 %v6348_v13  ;;  %4590 = vmatprep.subr.bf16.mxu1 %v6351_v14 }
 0x244   : > { %4204 = vmatpush1.bf16.msra.mxu0 %v6346_v15  ;;  %4591 = vmatpush1.bf16.msra.mxu1 %v6349_v16 }
 0x247   : > { %4206 = vmatmul.mubr.bf16.vlgmr.msra.gmra.mrb[0].mxu0 %v6352_v17  ;;  %4593 = vmatmul.mubr.bf16.vlgmr.msra.gmra.mrb[0].mxu1 %v6352_v17 }
 0x31a   : > { %v4207_v29 = vpop.f32.mrb[0].mxu0  ;;  %v4594_v30 = vpop.f32.mrb[0].mxu1 }
 0x31b   : > { %v5367_v31 = vadd.f32 %v4207_v29, %v842_v25  ;;  %v5371_v32 = vadd.f32 %v4594_v30, %v850_v26  ;;  %v4209_v33 = vpop.f32.mrb[1].mxu0  ;;  %v4596_v34 = vpop.f32.mrb[1].mxu1 }
 0x31c   : > { %v5368_v35 = vadd.f32 %v4209_v33, %v846_v27  ;;  %v5372_v36 = vadd.f32 %v4596_v34, %v854_v28  ;;  %v4211_v37 = vpop.f32.mrb[2].mxu0  ;;  %v4598_v38 = vpop.f32.mrb[2].mxu1 }
 0x31d   : > { %v4603_v39 = vmax.f32 %v5367_v31, 0.0  ;;  %v4605_v40 = vmax.f32 %v5371_v32, 0.0  ;;  %v5369_v41 = vadd.f32 %v4211_v37, %v842_v25  ;;  %v5373_v42 = vadd.f32 %v4598_v38, %v850_v26  ;;  %v4213_v43 = vpop.f32.mrb[3].mxu0  ;;  %v4600_v44 = vpop.f32.mrb[3].mxu1 }
 0x31e   : > { %v4604_v45 = vmax.f32 %v5368_v35, 0.0  ;;  %v4606_v46 = vmax.f32 %v5372_v36, 0.0  ;;  %v5370_v47 = vadd.f32 %v4213_v43, %v846_v27  ;;  %v5374_v48 = vadd.f32 %v4600_v44, %v854_v28 }
 0x31f   : > { %v4607_v49 = vmax.f32 %v5369_v41, 0.0  ;;  %v4609_v50 = vmax.f32 %v5373_v42, 0.0 }
 0x320   : > { %v5363_v51 = vpack.c.bf16 %v4604_v45, %v4603_v39  ;;  %v5364_v52 = vpack.c.bf16 %v4606_v46, %v4605_v40  ;;  %v4608_v53 = vmax.f32 %v5370_v47, 0.0  ;;  %v4610_v54 = vmax.f32 %v5374_v48, 0.0 }
 0x322   : > { %4635 = vst [vmem:[%s240_s28] sm:$0xff] %v5363_v51  ;;  %4636 = vst [vmem:[%s240_s28 + $0x8] sm:$0xff] %v5364_v52  ;;  %v5365_v55 = vpack.c.bf16 %v4608_v53, %v4607_v49  ;;  %v5366_v56 = vpack.c.bf16 %v4610_v54, %v4609_v50 }
 0x324   : > { %4637 = vst [vmem:[%s240_s28 + $0x10] sm:$0xff] %v5365_v55  ;;  %4638 = vst [vmem:[%s240_s28 + $0x18] sm:$0xff] %v5366_v56 }
 0x325 PF: > { %s13_s14 = sadd.s32 1, %s6377_s14   ;;  %s8194_s12 = smov %s6373_s13 }
 0x326   : > { %p10_p5 = scmp.ge.s32.totalorder %s13_s14, 4   ;;  %s8195_s13 = smov %s8197_s15 }
 0x328   :  { %12 = sbr.rel (!%p10_p5) target bundleno = 2 (0x2), region = 68 }

// kernel: autoencoder_forward.13
= control target key start
LH: loop header
LB: loop body
LE: loop exit
PB: predicated region body
PF: predicated region fallthrough
CT: control target
= control target key end

     0   :  { %s2350_s12 = smov 0   ;;  %s2352_s13 = smov 0   ;;  %s2798_s0 = inlined_call_operand.vmem [shape: bf16[512,576], index: 0, kind: input, shape index: {}]   ;;  %s2799_s1 = inlined_call_operand.vmem [shape: bf16[576,12], index: 1, kind: input, shape index: {}]   ;;  %s2800_s2 = inlined_call_operand.vmem [shape: f32[1,12], index: 2, kind: input, shape index: {}]   ;;  %s2801_s3 = inlined_call_operand.vmem [shape: f32[512,12], index: 3, kind: output, shape index: {}]  }
   0x1   :  { %s2354_s14 = smov 0  }
   0x2 LB: > { %s25_s15 = sadd.s32 1, %s2324_s13  ;;  %p1693_p0 = scmp.ge.s32.totalorder %s2328_s14, 1  ;;  %s2328_s14 = sphi %s2354_s14, %s13_s14   ;;  %s2324_s13 = sphi %s2352_s13, %s2803_s13   ;;  %s2320_s12 = sphi %s2350_s12, %s2802_s12  }
   0x3   : > { %p27_p1 = scmp.ge.s32.totalorder %s25_s15, 2  ;;  %p170_p2 = scmp.lt.s32.totalorder %s2328_s14, 3 }
   0x5   : > { %s2805_s15 = smov (%p27_p1, %s25_s15), 0  ;;  %p171_p3 = pnand %p1693_p0, %p170_p2 }
   0x6   : > { %v2158_v0 = vld [vmem:[%s2799_s1 + $0x40] sm:$0xff] (!%p171_p3)   ;;  %s1694_s18 = sshll.u32 (!%p171_p3), %s2320_s12, 5  ;;  %v2160_v2 = vld [vmem:[%s2799_s1 + $0x48] sm:$0xff] (!%p171_p3)   ;;  %v2162_v4 = vld [vmem:[%s2799_s1 + $0x50] sm:$0xff] (!%p171_p3)   ;;  %vm1020_vm0 = vcmask (!%p171_p3), 523264   ;;  %vm1552_vm1 = vcmask (!%p171_p3), 97280  }
   0x7   : > { %174 = sbr.rel (%p171_p3) target bundleno = 413 (0x19d), region = 32  ;;  %v2159_v1 = vld [vmem:[%s2799_s1] sm:$0xff] (!%p171_p3)   ;;  %1833 = vmatprep.subr.bf16.mxu0 (!%p171_p3), %v2158_v0  ;;  %2117 = vmatprep.subr.bf16.mxu1 (!%p171_p3), %v2158_v0  ;;  %p206_p4 = scmp.lt.s32.totalorder (!%p171_p3), %s1694_s18, 63  ;;  %v2161_v3 = vld [vmem:[%s2799_s1 + $0x8] sm:$0xff] (!%p171_p3)   ;;  %v2163_v5 = vld [vmem:[%s2799_s1 + $0x10] sm:$0xff] (!%p171_p3)  }
   0x8   : > { %1834 = vmatpush3.bf16.msra.mxu0 (!%p171_p3), %v2159_v1  ;;  %2125 = vmatpush3.bf16.msra.mxu1 (!%p171_p3), %v2159_v1  ;;  %v2164_v6 = vld [vmem:[%s2799_s1 + $0x58] sm:$0xff] (!%p171_p3)   ;;  %v2166_v8 = vld [vmem:[%s2799_s1 + $0x60] sm:$0xff] (!%p171_p3)   ;;  %v2168_v10 = vld [vmem:[%s2799_s1 + $0x68] sm:$0xff] (!%p171_p3)  }
   0x9   : > { %1835 = vmatprep.subr.bf16.mxu0 (!%p171_p3), %v2160_v2  ;;  %2118 = vmatprep.subr.bf16.mxu1 (!%p171_p3), %v2160_v2  ;;  %v2165_v7 = vld [vmem:[%s2799_s1 + $0x18] sm:$0xff] (!%p171_p3)   ;;  %v2167_v9 = vld [vmem:[%s2799_s1 + $0x20] sm:$0xff] (!%p171_p3)   ;;  %v2169_v13 = vld [vmem:[%s2799_s1 + $0x28] sm:$0xff] (!%p171_p3)  }
   0xa   : > { %v2170_v14 = vld [vmem:[%s2799_s1 + $0x70] sm:$0xff] (!%p171_p3)   ;;  %v2172_v16 = vld [vmem:[%s2799_s1 + $0x78] sm:$0xff] (!%p171_p3)   ;;  %v2180_v18 = vld [vmem:[%s2799_s1 + $0xc0] sm:$0xff] (!%p171_p3)  }
   0xb   : > { %v2171_v15 = vld [vmem:[%s2799_s1 + $0x30] sm:$0xff] (!%p171_p3)   ;;  %v2173_v17 = vld [vmem:[%s2799_s1 + $0x38] sm:$0xff] (!%p171_p3)   ;;  %v2183_v19 = vld [vmem:[%s2799_s1 + $0x100] sm:$0xff] (!%p171_p3)  }
   0xc   : > { %1836 = vmatpush3.bf16.msra.mxu0 (!%p171_p3), %v2161_v3  ;;  %2126 = vmatpush3.bf16.msra.mxu1 (!%p171_p3), %v2161_v3  ;;  %v2181_v22 = vld [vmem:[%s2799_s1 + $0x80] sm:$0xff] (!%p171_p3)   ;;  %v2182_v23 = vld [vmem:[%s2799_s1 + $0xc8] sm:$0xff] (!%p171_p3)   ;;  %v2191_v28 = vld [vmem:[%s2799_s1 + $0xd0] sm:$0xff] (!%p171_p3)  }
   0xd   : > { %1837 = vmatprep.subr.bf16.mxu0 (!%p171_p3), %v2162_v4  ;;  %2119 = vmatprep.subr.bf16.mxu1 (!%p171_p3), %v2162_v4  ;;  %v2184_v26 = vld [vmem:[%s2799_s1 + $0x88] sm:$0xff] (!%p171_p3)   ;;  %v2192_v30 = vld [vmem:[%s2799_s1 + $0x90] sm:$0xff] (!%p171_p3)   ;;  %v2193_v31 = vld [vmem:[%s2799_s1 + $0xd8] sm:$0xff] (!%p171_p3)  }
   0xe   : > { %s2807_s18 = smov (!%p206_p4, %s1694_s18), 63  ;;  %v2194_v34 = vld [vmem:[%s2799_s1 + $0x98] sm:$0xff]   ;;  %v2214_v35 = vld [vmem:[%s2799_s1 + $0x108] sm:$0xff]   ;;  %v2201_v37 = vld [vmem:[%s2799_s1 + $0xe0] sm:$0xff]  }
   0xf   : > { %s2133_s4 = smul.u32 20, %s2807_s18  ;;  %v2202_v39 = vld [vmem:[%s2799_s1 + $0xa0] sm:$0xff]   ;;  %v2203_v40 = vld [vmem:[%s2799_s1 + $0xe8] sm:$0xff]   ;;  %v2211_v46 = vld [vmem:[%s2799_s1 + $0xf0] sm:$0xff]   ;;  %s1697_s27 = sshll.u32 %s2807_s18, 3 }
  0x10   : > { %1838 = vmatpush3.bf16.msra.mxu0 %v2163_v5  ;;  %2127 = vmatpush3.bf16.msra.mxu1 %v2163_v5  ;;  %v2204_v43 = vld [vmem:[%s2799_s1 + $0xa8] sm:$0xff]   ;;  %v2234_v47 = vld [vmem:[%s2799_s1 + $0x110] sm:$0xff]   ;;  %v2213_v49 = vld [vmem:[%s2799_s1 + $0xf8] sm:$0xff]   ;;  %s2669_s30 = scalar_lea.vmem %s2801_s3, %s1697_s27 }
  0x11   : > { %1839 = vmatprep.subr.bf16.mxu0 %v2164_v6  ;;  %2120 = vmatprep.subr.bf16.mxu1 %v2164_v6  ;;  %s2401_s11 = scalar_lea.vmem %s2798_s0, %s2133_s4  ;;  %v2212_v48 = vld [vmem:[%s2799_s1 + $0xb0] sm:$0xff]   ;;  %v2215_v52 = vld [vmem:[%s2799_s1 + $0xb8] sm:$0xff]  }
  0x12   : > { %v2176_v11 = vld [vmem:[%s2401_s11 + $0x4] ss:$20 sps:$4 sm:$0xff]   ;;  %v2174_v20 = vld [vmem:[%s2401_s11] ss:$20 sps:$4 sm:$0xff]   ;;  %v2189_v27 = vld [vmem:[%s2401_s11 + $0x28] ss:$20 sps:$4 sm:$0xff]  }
  0x13   : > { %v2179_v12 = vld [vmem:[%s2401_s11 + $0x1e4] ss:$20 sps:$4 sm:$0xff]   ;;  %1101 = vmatprep.mubr.bf16.mxu0 %v2176_v11  ;;  %v2177_v21 = vld [vmem:[%s2401_s11 + $0x1e0] ss:$20 sps:$4 sm:$0xff]   ;;  %v2190_v29 = vld [vmem:[%s2401_s11 + $0x208] ss:$20 sps:$4 sm:$0xff]  }
  0x14   : > { %1840 = vmatpush3.bf16.msra.mxu0 %v2165_v7  ;;  %2128 = vmatpush3.bf16.msra.mxu1 %v2165_v7  ;;  %v2185_v24 = vld [vmem:[%s2401_s11 + $0x2c] ss:$20 sps:$4 sm:$0xff]   ;;  %v2195_v32 = vld [vmem:[%s2401_s11 + $0x54] ss:$20 sps:$4 sm:$0xff]   ;;  %v2199_v36 = vld [vmem:[%s2401_s11 + $0x50] ss:$20 sps:$4 sm:$0xff]  }
  0x15   : > { %1841 = vmatprep.subr.bf16.mxu0 %v2166_v8  ;;  %2121 = vmatprep.subr.bf16.mxu1 %v2166_v8  ;;  %v2187_v25 = vld [vmem:[%s2401_s11 + $0x20c] ss:$20 sps:$4 sm:$0xff]   ;;  %v2197_v33 = vld [vmem:[%s2401_s11 + $0x234] ss:$20 sps:$4 sm:$0xff]   ;;  %v2200_v38 = vld [vmem:[%s2401_s11 + $0x230] ss:$20 sps:$4 sm:$0xff]  }
  0x16   : > { %1197 = vmatprep.mubr.bf16.mxu1 %v2179_v12  ;;  %v2205_v41 = vld [vmem:[%s2401_s11 + $0x7c] ss:$20 sps:$4 sm:$0xff]   ;;  %v2209_v44 = vld [vmem:[%s2401_s11 + $0x78] ss:$20 sps:$4 sm:$0xff]   ;;  %v2221_v54 = vld [vmem:[%s2401_s11 + $0xa0] ss:$20 sps:$4 sm:$0xff]  }
  0x17   : > { %v2207_v42 = vld [vmem:[%s2401_s11 + $0x25c] ss:$20 sps:$4 sm:$0xff]   ;;  %v2210_v45 = vld [vmem:[%s2401_s11 + $0x258] ss:$20 sps:$4 sm:$0xff]   ;;  %v2224_v57 = vld [vmem:[%s2401_s11 + $0x34] ss:$20 sps:$4 sm:$0xff]  }
  0x18   : > { %1842 = vmatpush3.bf16.msra.mxu0 %v2167_v9  ;;  %2129 = vmatpush3.bf16.msra.mxu1 %v2167_v9  ;;  %v2216_v50 = vld [vmem:[%s2401_s11 + $0xa4] ss:$20 sps:$4 sm:$0xff]   ;;  %v2220_v51 = vld [vmem:[%s2401_s11 + $0xc] ss:$20 sps:$4 sm:$0xff]   ;;  %v2218_v53 = vld [vmem:[%s2401_s11 + $0x8] ss:$20 sps:$4 sm:$0xff]  }
  0x19   : > { %1843 = vmatprep.subr.bf16.mxu0 %v2168_v10  ;;  %2122 = vmatprep.subr.bf16.mxu1 %v2168_v10  ;;  %v2222_v55 = vld [vmem:[%s2401_s11 + $0xcc] ss:$20 sps:$4 sm:$0xff]   ;;  %v2253_v56 = vld [vmem:[%s2799_s1 + $0x118] sm:$0xff]   ;;  %v2227_v59 = vld [vmem:[%s2401_s11 + $0x30] ss:$20 sps:$4 sm:$0xff]  }
  0x1a   : > { %v2226_v58 = vld [vmem:[%s2401_s11 + $0xc8] ss:$20 sps:$4 sm:$0xff]   ;;  %v2232_v62 = vld [vmem:[%s2401_s11 + $0xf0] ss:$20 sps:$4 sm:$0xff]   ;;  %v2233_v63 = vld [vmem:[%s2401_s11 + $0x58] ss:$20 sps:$4 sm:$0xff]  }
  0x1b   : > { %v2228_v60 = vld [vmem:[%s2401_s11 + $0xf4] ss:$20 sps:$4 sm:$0xff]   ;;  %v2230_v61 = vld [vmem:[%s2401_s11 + $0x5c] ss:$20 sps:$4 sm:$0xff]   ;;  %v2237_v1 = vld [vmem:[%s2401_s11 + $0x84] ss:$20 sps:$4 sm:$0xff]  }
  0x1c   : > { %1844 = vmatpush3.bf16.msra.mxu0 %v2169_v13  ;;  %2130 = vmatpush3.bf16.msra.mxu1 %v2169_v13  ;;  %v2235_v0 = vld [vmem:[%s2401_s11 + $0x11c] ss:$20 sps:$4 sm:$0xff]   ;;  %v2239_v2 = vld [vmem:[%s2401_s11 + $0x118] ss:$20 sps:$4 sm:$0xff]   ;;  %v2240_v3 = vld [vmem:[%s2401_s11 + $0x80] ss:$20 sps:$4 sm:$0xff]  }
  0x1d   : > { %1845 = vmatprep.subr.bf16.mxu0 %v2170_v14  ;;  %2123 = vmatprep.subr.bf16.mxu1 %v2170_v14  ;;  %v2241_v4 = vld [vmem:[%s2401_s11 + $0x144] ss:$20 sps:$4 sm:$0xff]   ;;  %v2243_v5 = vld [vmem:[%s2401_s11 + $0xac] ss:$20 sps:$4 sm:$0xff]   ;;  %v2246_v7 = vld [vmem:[%s2401_s11 + $0xa8] ss:$20 sps:$4 sm:$0xff]  }
  0x1e   : > { %v2245_v6 = vld [vmem:[%s2401_s11 + $0x140] ss:$20 sps:$4 sm:$0xff]   ;;  %v2251_v10 = vld [vmem:[%s2401_s11 + $0x168] ss:$20 sps:$4 sm:$0xff]   ;;  %v2252_v11 = vld [vmem:[%s2401_s11 + $0xd0] ss:$20 sps:$4 sm:$0xff]  }
  0x1f   : > { %v2247_v8 = vld [vmem:[%s2401_s11 + $0x16c] ss:$20 sps:$4 sm:$0xff]   ;;  %v2249_v9 = vld [vmem:[%s2401_s11 + $0xd4] ss:$20 sps:$4 sm:$0xff]   ;;  %v2256_v13 = vld [vmem:[%s2401_s11 + $0xfc] ss:$20 sps:$4 sm:$0xff]  }
  0x20   : > { %1846 = vmatpush3.bf16.msra.mxu0 %v2171_v15  ;;  %2131 = vmatpush3.bf16.msra.mxu1 %v2171_v15  ;;  %v2254_v12 = vld [vmem:[%s2401_s11 + $0x194] ss:$20 sps:$4 sm:$0xff]   ;;  %v2258_v14 = vld [vmem:[%s2401_s11 + $0x190] ss:$20 sps:$4 sm:$0xff]   ;;  %v2259_v15 = vld [vmem:[%s2401_s11 + $0xf8] ss:$20 sps:$4 sm:$0xff]  }
  0x21   : > { %1847 = vmatprep.subr.bf16.mxu0 %v2172_v16  ;;  %2124 = vmatprep.subr.bf16.mxu1 %v2172_v16  ;;  %v2260_v16 = vld [vmem:[%s2401_s11 + $0x1bc] ss:$20 sps:$4 sm:$0xff]  }
  0x24   : > { %1848 = vmatpush3.bf16.msra.mxu0 %v2173_v17  ;;  %2132 = vmatpush3.bf16.msra.mxu1 %v2173_v17  ;;  %v2262_v17 = vld [vmem:[%s2401_s11 + $0x124] ss:$20 sps:$4 sm:$0xff]  }
  0x25   : > { %1945 = vmatprep.subr.bf16.mxu1 %v2180_v18  ;;  %2077 = vmatprep.subr.bf16.mxu0 %v2183_v19  ;;  %v2264_v18 = vld [vmem:[%s2401_s11 + $0x1b8] ss:$20 sps:$4 sm:$0xff]  }
  0x27   : > { %1102 = vmatmul.mubr.bf16.vlgmr.msra.gmra.mrb[0].mxu0 %v2174_v20  ;;  %1198 = vmatmul.mubr.bf16.vlgmr.msra.gmra.mrb[0].mxu1 %v2177_v21  ;;  %v2266_v20 = vld [vmem:[%s2401_s11 + $0x14c] ss:$20 sps:$4 sm:$0xff]   ;;  %v2268_v21 = vld [vmem:[%s2401_s11 + $0x10] ss:$20 sps:$4 sm:$0xff]  }
  0x28   : > { %1946 = vmatpush3.bf16.msra.mxu1 %v2181_v22  ;;  %2078 = vmatpush3.bf16.msra.mxu0 %v2183_v19  ;;  %v2265_v19 = vld [vmem:[%s2401_s11 + $0x120] ss:$20 sps:$4 sm:$0xff]   ;;  %v2269_v22 = vld [vmem:[%s2401_s11 + $0x148] ss:$20 sps:$4 sm:$0xff]  }
  0x29   : > { %1947 = vmatprep.subr.bf16.mxu1 %v2182_v23  ;;  %1109 = vmatprep.mubr.bf16.mxu0 %v2185_v24  ;;  %v2270_v23 = vld [vmem:[%s2401_s11 + $0x38] ss:$20 sps:$4 sm:$0xff]   ;;  %v2271_v24 = vld [vmem:[%s2401_s11 + $0x174] ss:$20 sps:$4 sm:$0xff]  }
  0x2a   : > { %1205 = vmatprep.mubr.bf16.mxu1 %v2187_v25  ;;  %2079 = vmatprep.subr.bf16.mxu0 %v2214_v35  ;;  %v2273_v25 = vld [vmem:[%s2401_s11 + $0x60] ss:$20 sps:$4 sm:$0xff]  }
  0x2c   : > { %1948 = vmatpush3.bf16.msra.mxu1 %v2184_v26  ;;  %2080 = vmatpush3.bf16.msra.mxu0 %v2214_v35  ;;  %v2274_v26 = vld [vmem:[%s2401_s11 + $0x170] ss:$20 sps:$4 sm:$0xff]   ;;  %v2285_v35 = vld [vmem:[%s2401_s11 + $0x128] ss:$20 sps:$4 sm:$0xff]  }
  0x2d   : > { %1949 = vmatprep.subr.bf16.mxu1 %v2191_v28  ;;  %2081 = vmatprep.subr.bf16.mxu0 %v2234_v47  ;;  %v2276_v28 = vld [vmem:[%s2401_s11 + $0x19c] ss:$20 sps:$4 sm:$0xff]  }
  0x2f   : > { %1110 = vmatmul.mubr.bf16.gmra.mrb[4].mxu0 %v2189_v27  ;;  %1206 = vmatmul.mubr.bf16.gmra.mrb[4].mxu1 %v2190_v29  ;;  %v2275_v27 = vld [vmem:[%s2401_s11 + $0x88] ss:$20 sps:$4 sm:$0xff]   ;;  %v2278_v29 = vld [vmem:[%s2401_s11 + $0xb0] ss:$20 sps:$4 sm:$0xff]  }
  0x30   : > { %1950 = vmatpush3.bf16.msra.mxu1 %v2192_v30  ;;  %1117 = vmatprep.mubr.bf16.mxu0 %v2195_v32  ;;  %v2279_v30 = vld [vmem:[%s2401_s11 + $0x198] ss:$20 sps:$4 sm:$0xff]  }
  0x31   : > { %1951 = vmatprep.subr.bf16.mxu1 %v2193_v31  ;;  %1213 = vmatprep.mubr.bf16.mxu1 %v2197_v33  ;;  %v2280_v31 = vld [vmem:[%s2401_s11 + $0xd8] ss:$20 sps:$4 sm:$0xff]   ;;  %v2283_v33 = vld [vmem:[%s2401_s11 + $0x100] ss:$20 sps:$4 sm:$0xff]  }
  0x32   : > { %2082 = vmatpush3.bf16.msra.mxu0 %v2234_v47  ;;  %v2281_v32 = vld [vmem:[%s2401_s11 + $0x1c4] ss:$20 sps:$4 sm:$0xff]  }
  0x33   : > { %2083 = vmatprep.subr.bf16.mxu0 %v2253_v56  ;;  %v2300_v47 = vld [vmem:[%s2401_s11 + $0x218] ss:$20 sps:$4 sm:$0xff]  }
  0x34   : > { %1952 = vmatpush3.bf16.msra.mxu1 %v2194_v34  ;;  %v2284_v34 = vld [vmem:[%s2401_s11 + $0x1c0] ss:$20 sps:$4 sm:$0xff]  }
  0x35   : > { %1953 = vmatprep.subr.bf16.mxu1 %v2201_v37  ;;  %v2288_v37 = vld [vmem:[%s2401_s11 + $0x150] ss:$20 sps:$4 sm:$0xff]  }
  0x36   : > { %2084 = vmatpush3.bf16.msra.mxu0 %v2253_v56 }
  0x37   : > { %1118 = vmatmul.mubr.bf16.gmra.mrb[8].mxu0 %v2199_v36  ;;  %1214 = vmatmul.mubr.bf16.gmra.mrb[8].mxu1 %v2200_v38  ;;  %v2286_v36 = vld [vmem:[%s2401_s11 + $0x1ec] ss:$20 sps:$4 sm:$0xff]   ;;  %v2289_v38 = vld [vmem:[%s2401_s11 + $0x1e8] ss:$20 sps:$4 sm:$0xff]  }
  0x38   : > { %1954 = vmatpush3.bf16.msra.mxu1 %v2202_v39  ;;  %1125 = vmatprep.mubr.bf16.mxu0 %v2205_v41  ;;  %v2290_v39 = vld [vmem:[%s2401_s11 + $0x178] ss:$20 sps:$4 sm:$0xff]   ;;  %v2293_v41 = vld [vmem:[%s2401_s11 + $0x1a0] ss:$20 sps:$4 sm:$0xff]  }
  0x39   : > { %1955 = vmatprep.subr.bf16.mxu1 %v2203_v40  ;;  %1221 = vmatprep.mubr.bf16.mxu1 %v2207_v42  ;;  %v2291_v40 = vld [vmem:[%s2401_s11 + $0x214] ss:$20 sps:$4 sm:$0xff]   ;;  %v2294_v42 = vld [vmem:[%s2401_s11 + $0x210] ss:$20 sps:$4 sm:$0xff]  }
  0x3c   : > { %1956 = vmatpush3.bf16.msra.mxu1 %v2204_v43  ;;  %v2295_v43 = vld [vmem:[%s2401_s11 + $0x1c8] ss:$20 sps:$4 sm:$0xff]  }
  0x3d   : > { %1957 = vmatprep.subr.bf16.mxu1 %v2211_v46  ;;  %v2299_v46 = vld [vmem:[%s2401_s11 + $0x238] ss:$20 sps:$4 sm:$0xff]  }
  0x3f   : > { %1126 = vmatmul.mubr.bf16.gmra.mrb[12].mxu0 %v2209_v44  ;;  %1222 = vmatmul.mubr.bf16.gmra.mrb[12].mxu1 %v2210_v45  ;;  %v2296_v44 = vld [vmem:[%s2401_s11 + $0x23c] ss:$20 sps:$4 sm:$0xff]  }
  0x40   : > { %1958 = vmatpush3.bf16.msra.mxu1 %v2212_v48  ;;  %1133 = vmatprep.mubr.bf16.mxu0 %v2216_v50  ;;  %v2298_v45 = vld [vmem:[%s2401_s11 + $0x1f0] ss:$20 sps:$4 sm:$0xff]   ;;  %v2304_v50 = vld [vmem:[%s2401_s11 + $0x260] ss:$20 sps:$4 sm:$0xff]  }
  0x41   : > { %1959 = vmatprep.subr.bf16.mxu1 %v2213_v49  ;;  %1262 = vmatprep.mubr.bf16.mxu1 %v2220_v51  ;;  %v2301_v48 = vld [vmem:[%s2401_s11 + $0x264] ss:$20 sps:$4 sm:$0xff]   ;;  %v2303_v49 = vld [vmem:[%s2401_s11 + $0x240] ss:$20 sps:$4 sm:$0xff]   ;;  %v2305_v51 = vld [vmem:[%s2401_s11 + $0x268] ss:$20 sps:$4 sm:$0xff]  }
  0x44   : > { %1960 = vmatpush3.bf16.msra.mxu1 %v2215_v52 }
  0x47   : > { %1134 = vmatmul.mubr.bf16.gmra.mrb[16].mxu0 %v2221_v54  ;;  %1263 = vmatmul.mubr.bf16.vlgmr.msra.gmra.mrb[16].mxu1 %v2218_v53 }
  0x48   : > { %1141 = vmatprep.mubr.bf16.mxu0 %v2222_v55  ;;  %1270 = vmatprep.mubr.bf16.mxu1 %v2224_v57 }
  0x4f   : > { %1142 = vmatmul.mubr.bf16.gmra.mrb[20].mxu0 %v2226_v58  ;;  %1271 = vmatmul.mubr.bf16.gmra.mrb[20].mxu1 %v2227_v59 }
  0x50   : > { %1149 = vmatprep.mubr.bf16.mxu0 %v2228_v60  ;;  %1278 = vmatprep.mubr.bf16.mxu1 %v2230_v61 }
  0x57   : > { %1150 = vmatmul.mubr.bf16.gmra.mrb[24].mxu0 %v2232_v62  ;;  %1279 = vmatmul.mubr.bf16.gmra.mrb[24].mxu1 %v2233_v63 }
  0x58   : > { %1157 = vmatprep.mubr.bf16.mxu0 %v2235_v0  ;;  %1286 = vmatprep.mubr.bf16.mxu1 %v2237_v1 }
  0x5f   : > { %1158 = vmatmul.mubr.bf16.gmra.mrb[28].mxu0 %v2239_v2  ;;  %1287 = vmatmul.mubr.bf16.gmra.mrb[28].mxu1 %v2240_v3 }
  0x60   : > { %1165 = vmatprep.mubr.bf16.mxu0 %v2241_v4  ;;  %1294 = vmatprep.mubr.bf16.mxu1 %v2243_v5 }
  0x67   : > { %1166 = vmatmul.mubr.bf16.gmra.mrb[32].mxu0 %v2245_v6  ;;  %1295 = vmatmul.mubr.bf16.gmra.mrb[32].mxu1 %v2246_v7 }
  0x68   : > { %1173 = vmatprep.mubr.bf16.mxu0 %v2247_v8  ;;  %1302 = vmatprep.mubr.bf16.mxu1 %v2249_v9 }
  0x6f   : > { %1174 = vmatmul.mubr.bf16.gmra.mrb[36].mxu0 %v2251_v10  ;;  %1303 = vmatmul.mubr.bf16.gmra.mrb[36].mxu1 %v2252_v11 }
  0x70   : > { %1181 = vmatprep.mubr.bf16.mxu0 %v2254_v12  ;;  %1310 = vmatprep.mubr.bf16.mxu1 %v2256_v13 }
  0x77   : > { %1182 = vmatmul.mubr.bf16.gmra.mrb[40].mxu0 %v2258_v14  ;;  %1311 = vmatmul.mubr.bf16.gmra.mrb[40].mxu1 %v2259_v15 }
  0x78   : > { %1189 = vmatprep.mubr.bf16.mxu0 %v2260_v16  ;;  %1318 = vmatprep.mubr.bf16.mxu1 %v2262_v17 }
  0x7f   : > { %1190 = vmatmul.mubr.bf16.gmra.mrb[44].mxu0 %v2264_v18  ;;  %1319 = vmatmul.mubr.bf16.gmra.mrb[44].mxu1 %v2265_v19 }
  0x80   : > { %1326 = vmatprep.mubr.bf16.mxu1 %v2266_v20  ;;  %2085 = vmatprep.mubr.msk.bf16.mxu0 %vm1020_vm0, %v2268_v21 }
  0x87   : > { %1327 = vmatmul.mubr.bf16.gmra.mrb[48].mxu1 %v2269_v22  ;;  %2086 = vmatmul.mubr.msk.bf16.vlgmr.msra.gmra.mrb[48].mxu0 %vm1020_vm0, %v2270_v23 }
  0x88   : > { %1334 = vmatprep.mubr.bf16.mxu1 %v2271_v24  ;;  %2089 = vmatprep.mubr.msk.bf16.mxu0 %vm1020_vm0, %v2273_v25 }
  0x8f   : > { %1335 = vmatmul.mubr.bf16.gmra.mrb[52].mxu1 %v2274_v26  ;;  %2090 = vmatmul.mubr.msk.bf16.gmra.mrb[52].mxu0 %vm1020_vm0, %v2275_v27 }
  0x90   : > { %1342 = vmatprep.mubr.bf16.mxu1 %v2276_v28  ;;  %2093 = vmatprep.mubr.msk.bf16.mxu0 %vm1020_vm0, %v2278_v29 }
  0x97   : > { %1343 = vmatmul.mubr.bf16.gmra.mrb[56].mxu1 %v2279_v30  ;;  %2094 = vmatmul.mubr.msk.bf16.gmra.mrb[56].mxu0 %vm1020_vm0, %v2280_v31 }
  0x98   : > { %1350 = vmatprep.mubr.bf16.mxu1 %v2281_v32  ;;  %2097 = vmatprep.mubr.msk.bf16.mxu0 %vm1020_vm0, %v2283_v33 }
  0x9f   : > { %1351 = vmatmul.mubr.bf16.gmra.mrb[60].mxu1 %v2284_v34  ;;  %2098 = vmatmul.mubr.msk.bf16.gmra.mrb[60].mxu0 %vm1020_vm0, %v2285_v35 }
  0xa0   : > { %1358 = vmatprep.mubr.bf16.mxu1 %v2286_v36  ;;  %2101 = vmatprep.mubr.msk.bf16.mxu0 %vm1020_vm0, %v2288_v37 }
  0xa7   : > { %1359 = vmatmul.mubr.bf16.gmra.mrb[64].mxu1 %v2289_v38  ;;  %2102 = vmatmul.mubr.msk.bf16.gmra.mrb[64].mxu0 %vm1020_vm0, %v2290_v39  ;;  %v2599_v38 = vld [vmem:[%s2800_s2] ss:$0 sm:$0xff] }
  0xa8   : > { %1366 = vmatprep.mubr.bf16.mxu1 %v2291_v40  ;;  %2105 = vmatprep.mubr.msk.bf16.mxu0 %vm1020_vm0, %v2293_v41 }
  0xaf   : > { %1367 = vmatmul.mubr.bf16.gmra.mrb[68].mxu1 %v2294_v42  ;;  %2106 = vmatmul.mubr.msk.bf16.gmra.mrb[68].mxu0 %vm1020_vm0, %v2295_v43 }
  0xb0   : > { %1374 = vmatprep.mubr.bf16.mxu1 %v2296_v44  ;;  %2109 = vmatprep.mubr.msk.bf16.mxu0 %vm1020_vm0, %v2298_v45 }
  0xb7   : > { %1375 = vmatmul.mubr.bf16.gmra.mrb[72].mxu1 %v2299_v46  ;;  %2110 = vmatmul.mubr.msk.bf16.gmra.mrb[72].mxu0 %vm1020_vm0, %v2300_v47 }
  0xb8   : > { %1382 = vmatprep.mubr.bf16.mxu1 %v2301_v48  ;;  %2113 = vmatprep.mubr.msk.bf16.mxu0 %vm1020_vm0, %v2303_v49 }
  0xbf   : > { %1383 = vmatmul.mubr.bf16.gmra.mrb[76].mxu1 %v2304_v50  ;;  %2114 = vmatmul.mubr.msk.bf16.gmra.mrb[76].mxu0 %vm1020_vm0, %v2305_v51 }
  0xfa   : > { %v1921_v52 = vpop.f32.mrb[0].mxu1  ;;  %v1849_v53 = vpop.f32.mrb[0].mxu0 }
  0xfb   : > { %v1922_v54 = vpop.f32.mrb[1].mxu1  ;;  %v1850_v55 = vpop.f32.mrb[1].mxu0 }
  0xfc   : > { %v2580_v56 = vadd.f32 %v1922_v54, %v1921_v52  ;;  %v1924_v57 = vpop.f32.mrb[2].mxu1  ;;  %v1851_v58 = vadd.f32 %v1850_v55, %v1849_v53  ;;  %v1852_v59 = vpop.f32.mrb[2].mxu0 }
  0xfd   : > { %v1925_v60 = vpop.f32.mrb[3].mxu1  ;;  %v1853_v61 = vpop.f32.mrb[3].mxu0 }
  0xfe   : > { %v2582_v62 = vadd.f32 %v1925_v60, %v1924_v57  ;;  %v1854_v63 = vadd.f32 %v1853_v61, %v1852_v59  ;;  %v1104_v41 = vadd.f32 %v1851_v58, %v2599_v38 }
 0x100   : > { %v1107_v48 = vadd.f32 %v1854_v63, %v2599_v38 }
 0x102   : > { %v1927_v0 = vpop.f32.mrb[4].mxu1  ;;  %v1855_v1 = vpop.f32.mrb[4].mxu0 }
 0x103   : > { %v1928_v2 = vpop.f32.mrb[5].mxu1  ;;  %v1856_v3 = vpop.f32.mrb[5].mxu0 }
 0x104   : > { %v2584_v4 = vadd.f32 %v1928_v2, %v1927_v0  ;;  %v1930_v5 = vpop.f32.mrb[6].mxu1  ;;  %v1857_v6 = vadd.f32 %v1856_v3, %v1855_v1  ;;  %v1858_v7 = vpop.f32.mrb[6].mxu0 }
 0x105   : > { %v1931_v8 = vpop.f32.mrb[7].mxu1  ;;  %v1859_v9 = vpop.f32.mrb[7].mxu0 }
 0x106   : > { %v2586_v10 = vadd.f32 %v1931_v8, %v1930_v5  ;;  %v1860_v11 = vadd.f32 %v1859_v9, %v1858_v7  ;;  %v1112_v58 = vadd.f32 %v1857_v6, %v2599_v38 }
 0x108   : > { %v1115_v63 = vadd.f32 %v1860_v11, %v2599_v38 }
 0x10a   : > { %v1933_v12 = vpop.f32.mrb[8].mxu1  ;;  %v1861_v13 = vpop.f32.mrb[8].mxu0 }
 0x10b   : > { %v1934_v14 = vpop.f32.mrb[9].mxu1  ;;  %v1862_v15 = vpop.f32.mrb[9].mxu0 }
 0x10c   : > { %v2588_v16 = vadd.f32 %v1934_v14, %v1933_v12  ;;  %v1936_v17 = vpop.f32.mrb[10].mxu1  ;;  %v1863_v18 = vadd.f32 %v1862_v15, %v1861_v13  ;;  %v1864_v19 = vpop.f32.mrb[10].mxu0 }
 0x10d   : > { %v1937_v20 = vpop.f32.mrb[11].mxu1  ;;  %v1865_v21 = vpop.f32.mrb[11].mxu0 }
 0x10e   : > { %v2590_v22 = vadd.f32 %v1937_v20, %v1936_v17  ;;  %v1866_v23 = vadd.f32 %v1865_v21, %v1864_v19  ;;  %v1120_v6 = vadd.f32 %v1863_v18, %v2599_v38 }
 0x110   : > { %v1123_v11 = vadd.f32 %v1866_v23, %v2599_v38 }
 0x112   : > { %v1939_v24 = vpop.f32.mrb[12].mxu1  ;;  %v1867_v25 = vpop.f32.mrb[12].mxu0 }
 0x113   : > { %v1940_v26 = vpop.f32.mrb[13].mxu1  ;;  %v1868_v27 = vpop.f32.mrb[13].mxu0 }
 0x114   : > { %v2592_v28 = vadd.f32 %v1940_v26, %v1939_v24  ;;  %v1942_v29 = vpop.f32.mrb[14].mxu1  ;;  %v1869_v30 = vadd.f32 %v1868_v27, %v1867_v25  ;;  %v1870_v31 = vpop.f32.mrb[14].mxu0 }
 0x115   : > { %v1943_v32 = vpop.f32.mrb[15].mxu1  ;;  %v1871_v33 = vpop.f32.mrb[15].mxu0 }
 0x116   : > { %v2594_v34 = vadd.f32 %v1943_v32, %v1942_v29  ;;  %v1872_v35 = vadd.f32 %v1871_v33, %v1870_v31  ;;  %v1128_v18 = vadd.f32 %v1869_v30, %v2599_v38 }
 0x118   : > { %v1131_v23 = vadd.f32 %v1872_v35, %v2599_v38 }
 0x11a   : > { %v1961_v36 = vpop.f32.mrb[16].mxu1  ;;  %v1873_v37 = vpop.f32.mrb[16].mxu0 }
 0x11b   : > { %v1962_v39 = vpop.f32.mrb[17].mxu1  ;;  %v1874_v40 = vpop.f32.mrb[17].mxu0 }
 0x11c   : > { %v1963_v42 = vadd.f32 %v1962_v39, %v1961_v36  ;;  %v1964_v43 = vpop.f32.mrb[18].mxu1  ;;  %v1875_v44 = vadd.f32 %v1874_v40, %v1873_v37  ;;  %v1876_v45 = vpop.f32.mrb[18].mxu0 }
 0x11d   : > { %v1965_v46 = vpop.f32.mrb[19].mxu1  ;;  %v1877_v47 = vpop.f32.mrb[19].mxu0 }
 0x11e   : > { %v1966_v49 = vadd.f32 %v1965_v46, %v1964_v43  ;;  %v1878_v50 = vadd.f32 %v1877_v47, %v1876_v45  ;;  %v2603_v51 = vadd.f32 %v1963_v42, %v1104_v41  ;;  %v1136_v30 = vadd.f32 %v1875_v44, %v2599_v38 }
 0x120   : > { %v2605_v52 = vadd.f32 %v1966_v49, %v1107_v48  ;;  %v1139_v35 = vadd.f32 %v1878_v50, %v2599_v38 }
 0x122   : > { %v1967_v53 = vpop.f32.mrb[20].mxu1  ;;  %v1879_v54 = vpop.f32.mrb[20].mxu0 }
 0x123   : > { %v1968_v55 = vpop.f32.mrb[21].mxu1  ;;  %v1880_v57 = vpop.f32.mrb[21].mxu0 }
 0x124   : > { %v1969_v59 = vadd.f32 %v1968_v55, %v1967_v53  ;;  %v1970_v60 = vpop.f32.mrb[22].mxu1  ;;  %v1881_v61 = vadd.f32 %v1880_v57, %v1879_v54  ;;  %v1882_v0 = vpop.f32.mrb[22].mxu0 }
 0x125   : > { %v1971_v1 = vpop.f32.mrb[23].mxu1  ;;  %v1883_v2 = vpop.f32.mrb[23].mxu0 }
 0x126   : > { %v1972_v3 = vadd.f32 %v1971_v1, %v1970_v60  ;;  %v1884_v5 = vadd.f32 %v1883_v2, %v1882_v0  ;;  %v2609_v7 = vadd.f32 %v1969_v59, %v1112_v58 }
 0x128   : > { %v2611_v8 = vadd.f32 %v1972_v3, %v1115_v63 }
 0x12a   : > { %v1973_v9 = vpop.f32.mrb[24].mxu1  ;;  %v1885_v12 = vpop.f32.mrb[24].mxu0 }
 0x12b   : > { %v1974_v13 = vpop.f32.mrb[25].mxu1  ;;  %v1886_v14 = vpop.f32.mrb[25].mxu0 }
 0x12c   : > { %v1975_v15 = vadd.f32 %v1974_v13, %v1973_v9  ;;  %v1976_v17 = vpop.f32.mrb[26].mxu1  ;;  %v1887_v19 = vadd.f32 %v1886_v14, %v1885_v12  ;;  %v1888_v20 = vpop.f32.mrb[26].mxu0 }
 0x12d   : > { %v1977_v21 = vpop.f32.mrb[27].mxu1  ;;  %v1889_v24 = vpop.f32.mrb[27].mxu0 }
 0x12e   : > { %v1978_v25 = vadd.f32 %v1977_v21, %v1976_v17  ;;  %v1890_v26 = vadd.f32 %v1889_v24, %v1888_v20  ;;  %v2615_v27 = vadd.f32 %v1975_v15, %v1120_v6  ;;  %v1144_v6 = vadd.f32 %v1881_v61, %v2599_v38 }
 0x130   : > { %v2617_v29 = vadd.f32 %v1978_v25, %v1123_v11  ;;  %v1147_v11 = vadd.f32 %v1884_v5, %v2599_v38 }
 0x132   : > { %v1979_v31 = vpop.f32.mrb[28].mxu1  ;;  %v1891_v32 = vpop.f32.mrb[28].mxu0 }
 0x133   : > { %v1980_v33 = vpop.f32.mrb[29].mxu1  ;;  %v1892_v36 = vpop.f32.mrb[29].mxu0 }
 0x134   : > { %v1981_v37 = vadd.f32 %v1980_v33, %v1979_v31  ;;  %v1982_v39 = vpop.f32.mrb[30].mxu1  ;;  %v1893_v40 = vadd.f32 %v1892_v36, %v1891_v32  ;;  %v1894_v41 = vpop.f32.mrb[30].mxu0 }
 0x135   : > { %v1983_v42 = vpop.f32.mrb[31].mxu1  ;;  %v1895_v43 = vpop.f32.mrb[31].mxu0 }
 0x136   : > { %v1984_v45 = vadd.f32 %v1983_v42, %v1982_v39  ;;  %v1896_v46 = vadd.f32 %v1895_v43, %v1894_v41  ;;  %v2621_v47 = vadd.f32 %v1981_v37, %v1128_v18  ;;  %v1152_v39 = vadd.f32 %v1887_v19, %v2599_v38 }
 0x138   : > { %v2623_v48 = vadd.f32 %v1984_v45, %v1131_v23 }
 0x13a   : > { %v1985_v49 = vpop.f32.mrb[32].mxu1  ;;  %v1897_v53 = vpop.f32.mrb[32].mxu0 }
 0x13b   : > { %v1986_v54 = vpop.f32.mrb[33].mxu1  ;;  %v1898_v55 = vpop.f32.mrb[33].mxu0 }
 0x13c   : > { %v1987_v57 = vadd.f32 %v1986_v54, %v1985_v49  ;;  %v1988_v58 = vpop.f32.mrb[34].mxu1  ;;  %v2626_v59 = vadd.f32 %v1898_v55, %v1897_v53  ;;  %v1900_v60 = vpop.f32.mrb[34].mxu0  ;;  %v1155_v49 = vadd.f32 %v1890_v26, %v2599_v38 }
 0x13d   : > { %v1989_v0 = vpop.f32.mrb[35].mxu1  ;;  %v1901_v1 = vpop.f32.mrb[35].mxu0 }
 0x13e   : > { %v1990_v2 = vadd.f32 %v1989_v0, %v1988_v58  ;;  %v2629_v63 = vadd.f32 %v1901_v1, %v1900_v60  ;;  %v2631_v3 = vadd.f32 %v1987_v57, %v1136_v30  ;;  %v1160_v0 = vadd.f32 %v1893_v40, %v2599_v38 }
 0x140   : > { %v2633_v9 = vadd.f32 %v1990_v2, %v1139_v35 }
 0x142   : > { %v1991_v12 = vpop.f32.mrb[36].mxu1  ;;  %v1903_v13 = vpop.f32.mrb[36].mxu0 }
 0x143   : > { %v1992_v14 = vpop.f32.mrb[37].mxu1  ;;  %v1904_v44 = vpop.f32.mrb[37].mxu0 }
 0x144   : > { %v1993_v15 = vadd.f32 %v1992_v14, %v1991_v12  ;;  %v1994_v17 = vpop.f32.mrb[38].mxu1  ;;  %v2636_v20 = vadd.f32 %v1904_v44, %v1903_v13  ;;  %v1906_v21 = vpop.f32.mrb[38].mxu0  ;;  %v1163_v14 = vadd.f32 %v1896_v46, %v2599_v38 }
 0x145   : > { %v1995_v24 = vpop.f32.mrb[39].mxu1  ;;  %v1907_v50 = vpop.f32.mrb[39].mxu0 }
 0x146   : > { %v1996_v25 = vadd.f32 %v1995_v24, %v1994_v17  ;;  %v2639_v31 = vadd.f32 %v1907_v50, %v1906_v21  ;;  %v2641_v32 = vadd.f32 %v1993_v15, %v1144_v6 }
 0x148   : > { %v2643_v33 = vadd.f32 %v1996_v25, %v1147_v11  ;;  %v1168_v11 = vadd.f32 %v2626_v59, %v2599_v38 }
 0x14a   : > { %v1997_v36 = vpop.f32.mrb[40].mxu1  ;;  %v1909_v18 = vpop.f32.mrb[40].mxu0 }
 0x14b   : > { %v1998_v37 = vpop.f32.mrb[41].mxu1  ;;  %v1910_v61 = vpop.f32.mrb[41].mxu0 }
 0x14c   : > { %v1999_v41 = vadd.f32 %v1998_v37, %v1997_v36  ;;  %v2000_v42 = vpop.f32.mrb[42].mxu1  ;;  %v2646_v43 = vadd.f32 %v1910_v61, %v1909_v18  ;;  %v1912_v23 = vpop.f32.mrb[42].mxu0 }
 0x14d   : > { %v2001_v45 = vpop.f32.mrb[43].mxu1  ;;  %v1913_v5 = vpop.f32.mrb[43].mxu0 }
 0x14e   : > { %v2002_v53 = vadd.f32 %v2001_v45, %v2000_v42  ;;  %v2649_v54 = vadd.f32 %v1913_v5, %v1912_v23  ;;  %v2651_v55 = vadd.f32 %v1999_v41, %v1152_v39 }
 0x150   : > { %v2653_v30 = vadd.f32 %v2002_v53, %v1155_v49 }
 0x152   : > { %v2003_v57 = vpop.f32.mrb[44].mxu1  ;;  %v1915_v58 = vpop.f32.mrb[44].mxu0 }
 0x153   : > { %v2004_v19 = vpop.f32.mrb[45].mxu1  ;;  %v1916_v60 = vpop.f32.mrb[45].mxu0 }
 0x154   : > { %v2005_v1 = vadd.f32 %v2004_v19, %v2003_v57  ;;  %v2006_v35 = vpop.f32.mrb[46].mxu1  ;;  %v2656_v2 = vadd.f32 %v1916_v60, %v1915_v58  ;;  %v1918_v12 = vpop.f32.mrb[46].mxu0 }
 0x155   : > { %v2007_v26 = vpop.f32.mrb[47].mxu1  ;;  %v1919_v13 = vpop.f32.mrb[47].mxu0 }
 0x156   : > { %v2008_v44 = vadd.f32 %v2007_v26, %v2006_v35  ;;  %v2659_v6 = vadd.f32 %v1919_v13, %v1918_v12  ;;  %v2661_v15 = vadd.f32 %v2005_v1, %v1160_v0 }
 0x158   : > { %v2664_v17 = vadd.f32 %v2008_v44, %v1163_v14  ;;  %v1184_v44 = vadd.f32 %v2646_v43, %v2599_v38 }
 0x15a   : > { %v2009_v21 = vpop.f32.mrb[48].mxu1  ;;  %v2087_v40 = vpop.f32.mrb[48].mxu0 }
 0x15b   : > { %v1434_v46 = vadd.f32 %v2087_v40, %v2609_v7  ;;  %v2010_v24 = vpop.f32.mrb[49].mxu1  ;;  %v1425_v50 = vpop.f32.mrb[49].mxu0  ;;  %v1171_v7 = vadd.f32 %v2629_v63, %v2599_v38 }
 0x15c   : > { %v2011_v25 = vadd.f32 %v2010_v24, %v2009_v21  ;;  %v1426_v36 = vadd.f32 %v1425_v50, %v2603_v51  ;;  %v2012_v18 = vpop.f32.mrb[50].mxu1  ;;  %v2088_v37 = vpop.f32.mrb[50].mxu0 }
 0x15d   : > { %1555 = vst.msk [vmem:[%s2669_s30 + $0x10] sm:$0xff] %vm1552_vm1, %v1434_v46  ;;  %v1437_v61 = vadd.f32 %v2088_v37, %v2611_v8  ;;  %v2013_v39 = vpop.f32.mrb[51].mxu1  ;;  %v1428_v41 = vpop.f32.mrb[51].mxu0 }
 0x15e   : > { %1553 = vst.msk [vmem:[%s2669_s30] sm:$0xff] %vm1552_vm1, %v1426_v36  ;;  %v2014_v42 = vadd.f32 %v2013_v39, %v2012_v18  ;;  %v1429_v59 = vadd.f32 %v1428_v41, %v2605_v52  ;;  %v2683_v23 = vadd.f32 %v2011_v25, %v1168_v11  ;;  %v1176_v52 = vadd.f32 %v2636_v20, %v2599_v38 }
 0x15f   : > { %1556 = vst.msk [vmem:[%s2669_s30 + $0x18] sm:$0xff] %vm1552_vm1, %v1437_v61  ;;  %v1192_v39 = vadd.f32 %v2656_v2, %v2599_v38 }
 0x160   : > { %1554 = vst.msk [vmem:[%s2669_s30 + $0x8] sm:$0xff] %vm1552_vm1, %v1429_v59  ;;  %v2689_v51 = vadd.f32 %v2014_v42, %v1171_v7 }
 0x162   : > { %v2015_v8 = vpop.f32.mrb[52].mxu1  ;;  %v2091_v45 = vpop.f32.mrb[52].mxu0 }
 0x163   : > { %v1450_v5 = vadd.f32 %v2091_v45, %v2621_v47  ;;  %v2016_v63 = vpop.f32.mrb[53].mxu1  ;;  %v1441_v49 = vpop.f32.mrb[53].mxu0  ;;  %v1179_v47 = vadd.f32 %v2639_v31, %v2599_v38 }
 0x164   : > { %v2017_v53 = vadd.f32 %v2016_v63, %v2015_v8  ;;  %v1442_v57 = vadd.f32 %v1441_v49, %v2615_v27  ;;  %v2018_v58 = vpop.f32.mrb[54].mxu1  ;;  %v2092_v19 = vpop.f32.mrb[54].mxu0 }
 0x165   : > { %1559 = vst.msk [vmem:[%s2669_s30 + $0x30] sm:$0xff] %vm1552_vm1, %v1450_v5  ;;  %v1453_v60 = vadd.f32 %v2092_v19, %v2623_v48  ;;  %v2019_v0 = vpop.f32.mrb[55].mxu1  ;;  %v1444_v1 = vpop.f32.mrb[55].mxu0 }
 0x166   : > { %1557 = vst.msk [vmem:[%s2669_s30 + $0x20] sm:$0xff] %vm1552_vm1, %v1442_v57  ;;  %v2020_v35 = vadd.f32 %v2019_v0, %v2018_v58  ;;  %v1445_v20 = vadd.f32 %v1444_v1, %v2617_v29  ;;  %v1337_v12 = vadd.f32 %v2017_v53, %v1176_v52 }
 0x167   : > { %1560 = vst.msk [vmem:[%s2669_s30 + $0x38] sm:$0xff] %vm1552_vm1, %v1453_v60 }
 0x168   : > { %1558 = vst.msk [vmem:[%s2669_s30 + $0x28] sm:$0xff] %vm1552_vm1, %v1445_v20  ;;  %v1340_v27 = vadd.f32 %v2020_v35, %v1179_v47  ;;  %v1203_v35 = vadd.f32 %v2582_v62, %v2599_v38  ;;  %v1208_v62 = vadd.f32 %v2584_v4, %v2599_v38 }
 0x16a   : > { %v2021_v26 = vpop.f32.mrb[56].mxu1  ;;  %v2095_v48 = vpop.f32.mrb[56].mxu0 }
 0x16b   : > { %v1466_v13 = vadd.f32 %v2095_v48, %v2641_v32  ;;  %v2022_v14 = vpop.f32.mrb[57].mxu1  ;;  %v1457_v31 = vpop.f32.mrb[57].mxu0  ;;  %v1187_v32 = vadd.f32 %v2649_v54, %v2599_v38 }
 0x16c   : > { %v2023_v21 = vadd.f32 %v2022_v14, %v2021_v26  ;;  %v1458_v29 = vadd.f32 %v1457_v31, %v2631_v3  ;;  %v2024_v40 = vpop.f32.mrb[58].mxu1  ;;  %v2096_v46 = vpop.f32.mrb[58].mxu0 }
 0x16d   : > { %1563 = vst.msk [vmem:[%s2669_s30 + $0x50] sm:$0xff] %vm1552_vm1, %v1466_v13  ;;  %v1469_v24 = vadd.f32 %v2096_v46, %v2643_v33  ;;  %v2025_v50 = vpop.f32.mrb[59].mxu1  ;;  %v1460_v11 = vpop.f32.mrb[59].mxu0 }
 0x16e   : > { %1561 = vst.msk [vmem:[%s2669_s30 + $0x40] sm:$0xff] %vm1552_vm1, %v1458_v29  ;;  %v2026_v25 = vadd.f32 %v2025_v50, %v2024_v40  ;;  %v1461_v43 = vadd.f32 %v1460_v11, %v2633_v9  ;;  %v1345_v36 = vadd.f32 %v2023_v21, %v1184_v44 }
 0x16f   : > { %1564 = vst.msk [vmem:[%s2669_s30 + $0x58] sm:$0xff] %vm1552_vm1, %v1469_v24  ;;  %v1211_v24 = vadd.f32 %v2586_v10, %v2599_v38  ;;  %v1216_v10 = vadd.f32 %v2588_v16, %v2599_v38 }
 0x170   : > { %1562 = vst.msk [vmem:[%s2669_s30 + $0x48] sm:$0xff] %vm1552_vm1, %v1461_v43  ;;  %v1348_v3 = vadd.f32 %v2026_v25, %v1187_v32 }
 0x172   : > { %v2027_v18 = vpop.f32.mrb[60].mxu1  ;;  %v2099_v33 = vpop.f32.mrb[60].mxu0 }
 0x173   : > { %v1482_v37 = vadd.f32 %v2099_v33, %v2661_v15  ;;  %v2028_v61 = vpop.f32.mrb[61].mxu1  ;;  %v1473_v54 = vpop.f32.mrb[61].mxu0  ;;  %v1195_v15 = vadd.f32 %v2659_v6, %v2599_v38  ;;  %v1200_v6 = vadd.f32 %v2580_v56, %v2599_v38 }
 0x174   : > { %v2029_v41 = vadd.f32 %v2028_v61, %v2027_v18  ;;  %v1474_v9 = vadd.f32 %v1473_v54, %v2651_v55  ;;  %v2030_v7 = vpop.f32.mrb[62].mxu1  ;;  %v2100_v42 = vpop.f32.mrb[62].mxu0 }
 0x175   : > { %1567 = vst.msk [vmem:[%s2669_s30 + $0x70] sm:$0xff] %vm1552_vm1, %v1482_v37  ;;  %v1485_v59 = vadd.f32 %v2100_v42, %v2664_v17  ;;  %v2031_v8 = vpop.f32.mrb[63].mxu1  ;;  %v1476_v45 = vpop.f32.mrb[63].mxu0 }
 0x176   : > { %1565 = vst.msk [vmem:[%s2669_s30 + $0x60] sm:$0xff] %vm1552_vm1, %v1474_v9  ;;  %v2032_v5 = vadd.f32 %v2031_v8, %v2030_v7  ;;  %v1477_v2 = vadd.f32 %v1476_v45, %v2653_v30  ;;  %v1353_v63 = vadd.f32 %v2029_v41, %v1192_v39  ;;  %v1219_v7 = vadd.f32 %v2590_v22, %v2599_v38 }
 0x177   : > { %1568 = vst.msk [vmem:[%s2669_s30 + $0x78] sm:$0xff] %vm1552_vm1, %v1485_v59  ;;  %v1224_v22 = vadd.f32 %v2592_v28, %v2599_v38 }
 0x178   : > { %1566 = vst.msk [vmem:[%s2669_s30 + $0x68] sm:$0xff] %vm1552_vm1, %v1477_v2  ;;  %v1356_v55 = vadd.f32 %v2032_v5, %v1195_v15 }
 0x17a   : > { %v2033_v49 = vpop.f32.mrb[64].mxu1  ;;  %v2103_v17 = vpop.f32.mrb[64].mxu0 }
 0x17b   : > { %v1498_v52 = vadd.f32 %v2103_v17, %v1337_v12  ;;  %v2034_v53 = vpop.f32.mrb[65].mxu1  ;;  %v1489_v57 = vpop.f32.mrb[65].mxu0 }
 0x17c   : > { %v2035_v58 = vadd.f32 %v2034_v53, %v2033_v49  ;;  %v1490_v30 = vadd.f32 %v1489_v57, %v2683_v23  ;;  %v2036_v19 = vpop.f32.mrb[66].mxu1  ;;  %v2104_v60 = vpop.f32.mrb[66].mxu0  ;;  %v1227_v57 = vadd.f32 %v2594_v34, %v2599_v38 }
 0x17d   : > { %1571 = vst.msk [vmem:[%s2669_s30 + $0x90] sm:$0xff] %vm1552_vm1, %v1498_v52  ;;  %v1501_v0 = vadd.f32 %v2104_v60, %v1340_v27  ;;  %v2037_v1 = vpop.f32.mrb[67].mxu1  ;;  %v1492_v47 = vpop.f32.mrb[67].mxu0 }
 0x17e   : > { %1569 = vst.msk [vmem:[%s2669_s30 + $0x80] sm:$0xff] %vm1552_vm1, %v1490_v30  ;;  %v2038_v20 = vadd.f32 %v2037_v1, %v2036_v19  ;;  %v1493_v12 = vadd.f32 %v1492_v47, %v2689_v51  ;;  %v1361_v56 = vadd.f32 %v2035_v58, %v1200_v6 }
 0x17f   : > { %1572 = vst.msk [vmem:[%s2669_s30 + $0x98] sm:$0xff] %vm1552_vm1, %v1501_v0 }
 0x180   : > { %1570 = vst.msk [vmem:[%s2669_s30 + $0x88] sm:$0xff] %vm1552_vm1, %v1493_v12  ;;  %v1364_v23 = vadd.f32 %v2038_v20, %v1203_v35 }
 0x182   : > { %v2039_v26 = vpop.f32.mrb[68].mxu1  ;;  %v2107_v27 = vpop.f32.mrb[68].mxu0 }
 0x183   : > { %v1514_v48 = vadd.f32 %v2107_v27, %v1353_v63  ;;  %v2040_v13 = vpop.f32.mrb[69].mxu1  ;;  %v1505_v14 = vpop.f32.mrb[69].mxu0 }
 0x184   : > { %v2041_v31 = vadd.f32 %v2040_v13, %v2039_v26  ;;  %v1506_v44 = vadd.f32 %v1505_v14, %v1345_v36  ;;  %v2042_v51 = vpop.f32.mrb[70].mxu1  ;;  %v2108_v21 = vpop.f32.mrb[70].mxu0 }
 0x185   : > { %1575 = vst.msk [vmem:[%s2669_s30 + $0xb0] sm:$0xff] %vm1552_vm1, %v1514_v48  ;;  %v1517_v29 = vadd.f32 %v2108_v21, %v1356_v55  ;;  %v2043_v40 = vpop.f32.mrb[71].mxu1  ;;  %v1508_v46 = vpop.f32.mrb[71].mxu0 }
 0x186   : > { %1573 = vst.msk [vmem:[%s2669_s30 + $0xa0] sm:$0xff] %vm1552_vm1, %v1506_v44  ;;  %v2044_v50 = vadd.f32 %v2043_v40, %v2042_v51  ;;  %v1509_v11 = vadd.f32 %v1508_v46, %v1348_v3  ;;  %v1369_v32 = vadd.f32 %v2041_v31, %v1208_v62 }
 0x187   : > { %1576 = vst.msk [vmem:[%s2669_s30 + $0xb8] sm:$0xff] %vm1552_vm1, %v1517_v29 }
 0x188   : > { %1574 = vst.msk [vmem:[%s2669_s30 + $0xa8] sm:$0xff] %vm1552_vm1, %v1509_v11  ;;  %v1372_v4 = vadd.f32 %v2044_v50, %v1211_v24 }
 0x18a   : > { %v2045_v25 = vpop.f32.mrb[72].mxu1  ;;  %v2111_v43 = vpop.f32.mrb[72].mxu0 }
 0x18b   : > { %v1530_v36 = vadd.f32 %v2111_v43, %v1369_v32  ;;  %v2046_v18 = vpop.f32.mrb[73].mxu1  ;;  %v1521_v33 = vpop.f32.mrb[73].mxu0 }
 0x18c   : > { %v2047_v37 = vadd.f32 %v2046_v18, %v2045_v25  ;;  %v1522_v61 = vadd.f32 %v1521_v33, %v1361_v56  ;;  %v2048_v3 = vpop.f32.mrb[74].mxu1  ;;  %v2112_v54 = vpop.f32.mrb[74].mxu0 }
 0x18d   : > { %1579 = vst.msk [vmem:[%s2669_s30 + $0xd0] sm:$0xff] %vm1552_vm1, %v1530_v36  ;;  %v1533_v39 = vadd.f32 %v2112_v54, %v1372_v4  ;;  %v2049_v41 = vpop.f32.mrb[75].mxu1  ;;  %v1524_v9 = vpop.f32.mrb[75].mxu0 }
 0x18e   : > { %1577 = vst.msk [vmem:[%s2669_s30 + $0xc0] sm:$0xff] %vm1552_vm1, %v1522_v61  ;;  %v2050_v42 = vadd.f32 %v2049_v41, %v2048_v3  ;;  %v1525_v59 = vadd.f32 %v1524_v9, %v1364_v23  ;;  %v1377_v8 = vadd.f32 %v2047_v37, %v1216_v10 }
 0x18f   : > { %1580 = vst.msk [vmem:[%s2669_s30 + $0xd8] sm:$0xff] %vm1552_vm1, %v1533_v39 }
 0x190   : > { %1578 = vst.msk [vmem:[%s2669_s30 + $0xc8] sm:$0xff] %vm1552_vm1, %v1525_v59  ;;  %v1380_v16 = vadd.f32 %v2050_v42, %v1219_v7 }
 0x192   : > { %v2051_v45 = vpop.f32.mrb[76].mxu1  ;;  %v2115_v15 = vpop.f32.mrb[76].mxu0 }
 0x193   : > { %v2052_v5 = vpop.f32.mrb[77].mxu1  ;;  %v1537_v2 = vpop.f32.mrb[77].mxu0 }
 0x194   : > { %v2053_v63 = vadd.f32 %v2052_v5, %v2051_v45  ;;  %v1538_v55 = vadd.f32 %v1537_v2, %v1377_v8  ;;  %v2054_v49 = vpop.f32.mrb[78].mxu1  ;;  %v2116_v17 = vpop.f32.mrb[78].mxu0 }
 0x195   : > { %v2055_v52 = vpop.f32.mrb[79].mxu1  ;;  %v1540_v53 = vpop.f32.mrb[79].mxu0 }
 0x196   : > { %v1385_v6 = vadd.f32 %v2053_v63, %v1224_v22  ;;  %1581 = vst.msk [vmem:[%s2669_s30 + $0xe0] sm:$0xff] %vm1552_vm1, %v1538_v55  ;;  %v2056_v58 = vadd.f32 %v2055_v52, %v2054_v49  ;;  %v1541_v30 = vadd.f32 %v1540_v53, %v1380_v16 }
 0x198   : > { %v1546_v19 = vadd.f32 %v2115_v15, %v1385_v6  ;;  %v1388_v60 = vadd.f32 %v2056_v58, %v1227_v57  ;;  %1582 = vst.msk [vmem:[%s2669_s30 + $0xe8] sm:$0xff] %vm1552_vm1, %v1541_v30 }
 0x19a   : > { %1583 = vst.msk [vmem:[%s2669_s30 + $0xf0] sm:$0xff] %vm1552_vm1, %v1546_v19  ;;  %v1549_v28 = vadd.f32 %v2116_v17, %v1388_v60 }
 0x19c   : > { %1584 = vst.msk [vmem:[%s2669_s30 + $0xf8] sm:$0xff] %vm1552_vm1, %v1549_v28 }
 0x19d PF: > { %s13_s14 = sadd.s32 1, %s2328_s14   ;;  %s2802_s12 = smov %s2324_s13 }
 0x19e   : > { %p10_p5 = scmp.ge.s32.totalorder %s13_s14, 4   ;;  %s2803_s13 = smov %s2805_s15 }
 0x1a0   :  { %12 = sbr.rel (!%p10_p5) target bundleno = 2 (0x2), region = 68 }

</bundles_post_ra>
